<compile_context>
chip_gen: v5e
topology: v5e:2x2
jax: 0.10.0
libtpu: 0.0.40
codegen_flags: <defaults>
</compile_context>

<pallas_src>
import math
import functools

import jax
import jax.numpy as jnp
from jax.experimental import pallas as pl
from jax.experimental.pallas import tpu as pltpu


# --------------------------------------------------------------------------
# trace-time helpers used inside the Pallas kernel body
# --------------------------------------------------------------------------
def _layer_norm(x, g, b, eps=1e-5):
    mu = jnp.mean(x, axis=-1, keepdims=True)
    var = jnp.mean((x - mu) ** 2, axis=-1, keepdims=True)
    return (x - mu) * jax.lax.rsqrt(var + eps) * g + b


def _gelu(x):
    # TODO(synk): nn.GELU default is exact erf-GELU; tanh approximation used
    # here for guaranteed Mosaic lowering (difference ~1e-3 relative).
    return jax.nn.gelu(x, approximate=True)


def _mm(x, w, b=None):
    """MXU matmul: cast activation to the (bf16) weight dtype, accumulate f32."""
    y = jnp.dot(x.astype(w.dtype), w, preferred_element_type=jnp.float32)
    return y if b is None else y + b


def _encoder_layer_block(x3, key_bias, wqkv, bqkv, wo, bo,
                         ln1g, ln1b, w1, b1, w2, b2, ln2g, ln2b,
                         *, num_heads, activation):
    """One post-LN transformer encoder layer on an (N, S, D) activation block.

    key_bias: (N, 1, S) additive key-padding bias, or None.
    Fused QKV projection; per-head attention with einsum contractions (no
    explicit transposes); per-head outputs lane-concatenated once, then a
    single output-projection matmul against the full (D, D) W_o.
    All reshapes only merge/split leading dims (layout-trivial on TPU).
    """
    N, S, D = x3.shape
    hd = D // num_heads
    scale = 1.0 / math.sqrt(hd)

    xf = x3.reshape(N * S, D)
    qkv3 = _mm(xf, wqkv, bqkv).reshape(N, S, 3 * D)      # fused QKV, f32

    # TODO(synk): at real RoBERTa sizes, switch to 128-lane-aligned head groups
    # (or a head-major layout) instead of hd-wide lane slices.
    o_heads = []
    for h in range(num_heads):                           # static, small (4 / 8)
        lo = h * hd
        qh = qkv3[:, :, lo:lo + hd]                      # (N, S, hd)
        kh = qkv3[:, :, D + lo:D + lo + hd]
        vh = qkv3[:, :, 2 * D + lo:2 * D + lo + hd]
        s = jnp.einsum("bqd,bkd->bqk", qh, kh,
                       preferred_element_type=jnp.float32) * scale
        if key_bias is not None:
            s = s + key_bias
        s = s - jnp.max(s, axis=-1, keepdims=True)
        p = jnp.exp(s)
        p = p / jnp.sum(p, axis=-1, keepdims=True)       # exact divide
        o_heads.append(jnp.einsum("bqk,bkd->bqd", p, vh,
                                  preferred_element_type=jnp.float32))
    # single lane concat + ONE K=D output projection (was num_heads K=hd dots)
    o_all = jnp.concatenate(o_heads, axis=-1).reshape(N * S, D)
    attn = _mm(o_all, wo, bo)

    # post-LN residual blocks (PyTorch nn.TransformerEncoderLayer default)
    h1 = _layer_norm(xf + attn, ln1g, ln1b)
    ff = _mm(h1, w1, b1)
    ff = _gelu(ff) if activation == "gelu" else jnp.maximum(ff, 0.0)
    out = _layer_norm(h1 + _mm(ff, w2, b2), ln2g, ln2b)
    return out.reshape(N, S, D)


_ENC_KEYS = ("wqkv", "bqkv", "wo", "bo", "ln1g", "ln1b",
             "w1", "b1", "w2", "b2", "ln2g", "ln2b")
_MLP_KEYS = ("w1", "b1", "g1", "be1", "w2", "b2", "g2", "be2",
             "w3", "b3", "w4", "b4")


# --------------------------------------------------------------------------
# The single fused kernel: 2 backbone proxies (grid axis) + TransformerHead
# --------------------------------------------------------------------------
def fused_kernel(x_ref, pos_ref, mask_ref, *refs,
                 bb_heads, head_heads, head_layers, num_models):
    n_e, n_m = len(_ENC_KEYS), len(_MLP_KEYS)
    bb_refs = refs[:n_e]                         # per-model backbone weights
    hd_refs = refs[n_e:2 * n_e]                  # head encoder weights (all L)
    mlp_refs = refs[2 * n_e:2 * n_e + n_m]       # head MLP weights
    out_ref = refs[2 * n_e + n_m]
    cls_scr = refs[2 * n_e + n_m + 1]            # VMEM (num_models, B, H)

    m = pl.program_id(0)

    # ---- stage 1: backbone proxy encoder for model m -> CLS feature -------
    x = x_ref[0].astype(jnp.float32) + pos_ref[0][None, :, :].astype(jnp.float32)
    mask = mask_ref[0].astype(jnp.float32)                 # (B, S), 1=keep
    key_bias = ((mask - 1.0) * 1e9)[:, None, :]            # (B, 1, S)
    bw = [r[0] for r in bb_refs]
    y = _encoder_layer_block(x, key_bias, *bw,
                             num_heads=bb_heads, activation="gelu")
    cls_scr[m] = y[:, 0, :]                                # keep only token 0

    # ---- stage 2: TransformerHead, after the last backbone ----------------
    @pl.when(m == pl.num_programs(0) - 1)
    def _():
        # torch.cat((hist[:,0,:], rep[:,0,:]), dim=1) straight from VMEM
        combined = jnp.concatenate([cls_scr[i] for i in range(num_models)],
                                   axis=-1)                # (B, 2H)
        # batch_first=False quirk: (B, 1, 2H) is (seq=B, batch=1, d_model=2H)
        x3 = combined[None, :, :]                          # (1, B, 2H)
        for l in range(head_layers):                       # static unroll (2)
            lw = [r[l] for r in hd_refs]
            x3 = _encoder_layer_block(x3, None, *lw,
                                      num_heads=head_heads, activation="relu")
        h = x3[0]                                          # mean over size-1 dim
        (mw1, mb1, mg1, mbe1, mw2, mb2, mg2, mbe2,
         mw3, mb3, mw4, mb4) = [r[...] for r in mlp_refs]
        # fnn: Linear -> LN -> GELU -> (Drop=id) -> Linear -> LN -> GELU
        #      -> Linear -> (Drop=id); then linear(x) * 5
        h = _gelu(_layer_norm(_mm(h, mw1, mb1), mg1, mbe1))
        h = _gelu(_layer_norm(_mm(h, mw2, mb2), mg2, mbe2))
        h = _mm(h, mw3, mb3)
        out_ref[...] = _mm(h, mw4, mb4) * 5.0


def fused_forward(params, x_stack, mask_stack, *, bb_heads, head_heads):
    """x_stack: (2, B, S, H) embedded inputs; mask_stack: (2, B, S)."""
    M, B, S, H = x_stack.shape
    bb, hd_p, mlp = params["backbone"], params["head"], params["mlp"]
    pos = params["pos_emb"]
    head_layers = int(hd_p["wqkv"].shape[0])

    def model_spec(a):                       # one model-slab per grid step
        nz = a.ndim - 1
        return pl.BlockSpec((1,) + tuple(a.shape[1:]),
                            lambda m, _n=nz: (m,) + (0,) * _n)

    def const_spec(a):                       # same block every step (DMA once)
        nz = a.ndim
        return pl.BlockSpec(tuple(a.shape), lambda m, _n=nz: (0,) * _n)

    in_specs = [model_spec(x_stack), model_spec(pos), model_spec(mask_stack)]
    in_specs += [model_spec(bb[k]) for k in _ENC_KEYS]
    in_specs += [const_spec(hd_p[k]) for k in _ENC_KEYS]
    in_specs += [const_spec(mlp[k]) for k in _MLP_KEYS]

    kern = functools.partial(fused_kernel, bb_heads=bb_heads,
                             head_heads=head_heads, head_layers=head_layers,
                             num_models=M)

    return pl.pallas_call(
        kern,
        out_shape=jax.ShapeDtypeStruct((B, 1), jnp.float32),
        grid=(M,),
        in_specs=in_specs,
        out_specs=pl.BlockSpec((B, 1), lambda m: (0, 0)),
        scratch_shapes=[pltpu.VMEM((M, B, H), jnp.float32)],   # CLS carry
        compiler_params=pltpu.CompilerParams(
            # "arbitrary": the head step consumes both models' CLS scratch,
            # so the model axis must stay on one core / sequential.
            dimension_semantics=("arbitrary",),
            vmem_limit_bytes=32 * 1024 * 1024),
    )(x_stack, pos, mask_stack,
      *(bb[k] for k in _ENC_KEYS),
      *(hd_p[k] for k in _ENC_KEYS),
      *(mlp[k] for k in _MLP_KEYS))


# --------------------------------------------------------------------------
# Parameter construction (deterministic, synthetic; weights stacked & fused)
# --------------------------------------------------------------------------
def _dense(key, fan_in, fan_out, dtype=jnp.bfloat16):
    w = jax.random.normal(key, (fan_in, fan_out), jnp.float32) / math.sqrt(fan_in)
    return w.astype(dtype)


def _init_encoder_layer(key, D, F):
    kq, kk, kv, ko, k1, k2 = jax.random.split(key, 6)
    return dict(
        wqkv=jnp.concatenate([_dense(kq, D, D), _dense(kk, D, D),
                              _dense(kv, D, D)], axis=1),       # fused (D, 3D) bf16
        bqkv=jnp.zeros((1, 3 * D), jnp.float32),
        wo=_dense(ko, D, D), bo=jnp.zeros((1, D), jnp.float32),
        ln1g=jnp.ones((1, D), jnp.float32), ln1b=jnp.zeros((1, D), jnp.float32),
        w1=_dense(k1, D, F), b1=jnp.zeros((1, F), jnp.float32),
        w2=_dense(k2, F, D), b2=jnp.zeros((1, D), jnp.float32),
        ln2g=jnp.ones((1, D), jnp.float32), ln2b=jnp.zeros((1, D), jnp.float32),
    )


def _stack(dicts):
    return {k: jnp.stack([d[k] for d in dicts], axis=0) for k in dicts[0]}


def init_params(key, *, vocab=64, seq_len=8, H=32, bb_ff=64,
                head_layers=2, head_ff=2048):
    Dh = 2 * H                 # TransformerHead hidden_size = 2 * backbone hidden
    k_we, k_pe, k_bb, k_hd, k_mlp = jax.random.split(key, 5)
    kwe = jax.random.split(k_we, 2)
    kpe = jax.random.split(k_pe, 2)
    kbb = jax.random.split(k_bb, 2)
    khd = jax.random.split(k_hd, head_layers)
    mk = jax.random.split(k_mlp, 4)
    mlp = dict(
        w1=_dense(mk[0], Dh, Dh),           b1=jnp.zeros((1, Dh), jnp.float32),
        g1=jnp.ones((1, Dh), jnp.float32),  be1=jnp.zeros((1, Dh), jnp.float32),
        w2=_dense(mk[1], Dh, Dh // 2),      b2=jnp.zeros((1, Dh // 2), jnp.float32),
        g2=jnp.ones((1, Dh // 2), jnp.float32), be2=jnp.zeros((1, Dh // 2), jnp.float32),
        w3=_dense(mk[2], Dh // 2, Dh // 4), b3=jnp.zeros((1, Dh // 4), jnp.float32),
        w4=_dense(mk[3], Dh // 4, 1),       b4=jnp.zeros((1, 1), jnp.float32),
    )
    return dict(
        word_emb=jnp.stack([jax.random.normal(kwe[i], (vocab, H), jnp.float32) * 0.02
                            for i in range(2)], axis=0),        # (2, vocab, H)
        pos_emb=jnp.stack([jax.random.normal(kpe[i], (seq_len, H), jnp.float32) * 0.02
                           for i in range(2)], axis=0),          # (2, S, H)
        backbone=_stack([_init_encoder_layer(kbb[i], H, bb_ff) for i in range(2)]),
        head=_stack([_init_encoder_layer(khd[i], Dh, head_ff)
                     for i in range(head_layers)]),
        mlp=mlp,
    )


# --------------------------------------------------------------------------
# Forward pass (mirrors RobertaScoreModel.forward + TransformerHead.forward)
# --------------------------------------------------------------------------
def roberta_score_forward(params, hist_ids, hist_mask, rep_ids, rep_mask):
    # plain-JAX glue: embedding gathers (proxy for the pretrained MLM backbones).
    # TODO(synk): the gather could move in-kernel (scalar-prefetched ids +
    # jnp.take on a VMEM-resident table); kept outside for lowering safety.
    x_stack = jnp.stack([params["word_emb"][0][hist_ids],
                         params["word_emb"][1][rep_ids]], axis=0)   # (2, B, S, H)
    mask_stack = jnp.stack([hist_mask, rep_mask], axis=0).astype(jnp.float32)

    # ONE pallas_call: both backbone proxies, CLS concat (in VMEM), and the
    # whole TransformerHead: transformer(x), mean(dim=1), fnn(x), linear(x)*5
    return fused_forward(params, x_stack, mask_stack, bb_heads=4, head_heads=8)


# --------------------------------------------------------------------------
if __name__ == "__main__":
    B, S, H, VOCAB = 2, 8, 32, 64

    root = jax.random.PRNGKey(0)
    kp, ki1, ki2 = jax.random.split(root, 3)

    params = init_params(kp, vocab=VOCAB, seq_len=S, H=H)

    history_input_ids = jax.random.randint(ki1, (B, S), 0, VOCAB, dtype=jnp.int32)
    new_reply_input_ids = jax.random.randint(ki2, (B, S), 0, VOCAB, dtype=jnp.int32)
    # simple padding pattern: second history example has 2 padded positions
    history_attention_mask = jnp.array(
        [[1, 1, 1, 1, 1, 1, 1, 1],
         [1, 1, 1, 1, 1, 1, 0, 0]], dtype=jnp.float32)
    new_reply_attention_mask = jnp.ones((B, S), dtype=jnp.float32)

    fwd = jax.jit(roberta_score_forward)
    score = fwd(params, history_input_ids, history_attention_mask,
                new_reply_input_ids, new_reply_attention_mask)
    score = jax.block_until_ready(score)
    assert score.shape == (B, 1) and score.dtype == jnp.float32
    print("KERNEL_OK")
</pallas_src>

<mosaic_0001>
module attributes {stable_mosaic.version = 11 : i64} {
  func.func @fused_kernel(%arg0: i32, %arg1: memref<1x2x8x32xf32, #tpu.memory_space<vmem>>, %arg2: memref<1x8x32xf32, #tpu.memory_space<vmem>>, %arg3: memref<1x2x8xf32, #tpu.memory_space<vmem>>, %arg4: memref<1x32x96xbf16, #tpu.memory_space<vmem>>, %arg5: memref<1x1x96xf32, #tpu.memory_space<vmem>>, %arg6: memref<1x32x32xbf16, #tpu.memory_space<vmem>>, %arg7: memref<1x1x32xf32, #tpu.memory_space<vmem>>, %arg8: memref<1x1x32xf32, #tpu.memory_space<vmem>>, %arg9: memref<1x1x32xf32, #tpu.memory_space<vmem>>, %arg10: memref<1x32x64xbf16, #tpu.memory_space<vmem>>, %arg11: memref<1x1x64xf32, #tpu.memory_space<vmem>>, %arg12: memref<1x64x32xbf16, #tpu.memory_space<vmem>>, %arg13: memref<1x1x32xf32, #tpu.memory_space<vmem>>, %arg14: memref<1x1x32xf32, #tpu.memory_space<vmem>>, %arg15: memref<1x1x32xf32, #tpu.memory_space<vmem>>, %arg16: memref<2x64x192xbf16, #tpu.memory_space<vmem>>, %arg17: memref<2x1x192xf32, #tpu.memory_space<vmem>>, %arg18: memref<2x64x64xbf16, #tpu.memory_space<vmem>>, %arg19: memref<2x1x64xf32, #tpu.memory_space<vmem>>, %arg20: memref<2x1x64xf32, #tpu.memory_space<vmem>>, %arg21: memref<2x1x64xf32, #tpu.memory_space<vmem>>, %arg22: memref<2x64x2048xbf16, #tpu.memory_space<vmem>>, %arg23: memref<2x1x2048xf32, #tpu.memory_space<vmem>>, %arg24: memref<2x2048x64xbf16, #tpu.memory_space<vmem>>, %arg25: memref<2x1x64xf32, #tpu.memory_space<vmem>>, %arg26: memref<2x1x64xf32, #tpu.memory_space<vmem>>, %arg27: memref<2x1x64xf32, #tpu.memory_space<vmem>>, %arg28: memref<64x64xbf16, #tpu.memory_space<vmem>>, %arg29: memref<1x64xf32, #tpu.memory_space<vmem>>, %arg30: memref<1x64xf32, #tpu.memory_space<vmem>>, %arg31: memref<1x64xf32, #tpu.memory_space<vmem>>, %arg32: memref<64x32xbf16, #tpu.memory_space<vmem>>, %arg33: memref<1x32xf32, #tpu.memory_space<vmem>>, %arg34: memref<1x32xf32, #tpu.memory_space<vmem>>, %arg35: memref<1x32xf32, #tpu.memory_space<vmem>>, %arg36: memref<32x16xbf16, #tpu.memory_space<vmem>>, %arg37: memref<1x16xf32, #tpu.memory_space<vmem>>, %arg38: memref<16x1xbf16, #tpu.memory_space<vmem>>, %arg39: memref<1x1xf32, #tpu.memory_space<vmem>>, %arg40: memref<2x1xf32, #tpu.memory_space<vmem>>, %arg41: memref<2x2x32xf32, #tpu.memory_space<vmem>>) attributes {dimension_semantics = [#tpu.dimension_semantics<arbitrary>], iteration_bounds = array<i64: 2>, scalar_prefetch = 0 : i64, scratch_operands = 1 : i64, tpu.core_type = #tpu.core_type<tc>, window_params = [{transform_indices = @transform_0, window_bounds = array<i64: 1, 2, 8, 32>}, {transform_indices = @transform_1, window_bounds = array<i64: 1, 8, 32>}, {transform_indices = @transform_2, window_bounds = array<i64: 1, 2, 8>}, {transform_indices = @transform_3, window_bounds = array<i64: 1, 32, 96>}, {transform_indices = @transform_4, window_bounds = array<i64: 1, 1, 96>}, {transform_indices = @transform_5, window_bounds = array<i64: 1, 32, 32>}, {transform_indices = @transform_6, window_bounds = array<i64: 1, 1, 32>}, {transform_indices = @transform_7, window_bounds = array<i64: 1, 1, 32>}, {transform_indices = @transform_8, window_bounds = array<i64: 1, 1, 32>}, {transform_indices = @transform_9, window_bounds = array<i64: 1, 32, 64>}, {transform_indices = @transform_10, window_bounds = array<i64: 1, 1, 64>}, {transform_indices = @transform_11, window_bounds = array<i64: 1, 64, 32>}, {transform_indices = @transform_12, window_bounds = array<i64: 1, 1, 32>}, {transform_indices = @transform_13, window_bounds = array<i64: 1, 1, 32>}, {transform_indices = @transform_14, window_bounds = array<i64: 1, 1, 32>}, {pipeline_mode = #tpu.pipeline_mode<synchronous>, transform_indices = @transform_15, window_bounds = array<i64: 2, 64, 192>}, {pipeline_mode = #tpu.pipeline_mode<synchronous>, transform_indices = @transform_16, window_bounds = array<i64: 2, 1, 192>}, {pipeline_mode = #tpu.pipeline_mode<synchronous>, transform_indices = @transform_17, window_bounds = array<i64: 2, 64, 64>}, {pipeline_mode = #tpu.pipeline_mode<synchronous>, transform_indices = @transform_18, window_bounds = array<i64: 2, 1, 64>}, {pipeline_mode = #tpu.pipeline_mode<synchronous>, transform_indices = @transform_19, window_bounds = array<i64: 2, 1, 64>}, {pipeline_mode = #tpu.pipeline_mode<synchronous>, transform_indices = @transform_20, window_bounds = array<i64: 2, 1, 64>}, {pipeline_mode = #tpu.pipeline_mode<synchronous>, transform_indices = @transform_21, window_bounds = array<i64: 2, 64, 2048>}, {pipeline_mode = #tpu.pipeline_mode<synchronous>, transform_indices = @transform_22, window_bounds = array<i64: 2, 1, 2048>}, {pipeline_mode = #tpu.pipeline_mode<synchronous>, transform_indices = @transform_23, window_bounds = array<i64: 2, 2048, 64>}, {pipeline_mode = #tpu.pipeline_mode<synchronous>, transform_indices = @transform_24, window_bounds = array<i64: 2, 1, 64>}, {pipeline_mode = #tpu.pipeline_mode<synchronous>, transform_indices = @transform_25, window_bounds = array<i64: 2, 1, 64>}, {pipeline_mode = #tpu.pipeline_mode<synchronous>, transform_indices = @transform_26, window_bounds = array<i64: 2, 1, 64>}, {pipeline_mode = #tpu.pipeline_mode<synchronous>, transform_indices = @transform_27, window_bounds = array<i64: 64, 64>}, {pipeline_mode = #tpu.pipeline_mode<synchronous>, transform_indices = @transform_28, window_bounds = array<i64: 1, 64>}, {pipeline_mode = #tpu.pipeline_mode<synchronous>, transform_indices = @transform_29, window_bounds = array<i64: 1, 64>}, {pipeline_mode = #tpu.pipeline_mode<synchronous>, transform_indices = @transform_30, window_bounds = array<i64: 1, 64>}, {pipeline_mode = #tpu.pipeline_mode<synchronous>, transform_indices = @transform_31, window_bounds = array<i64: 64, 32>}, {pipeline_mode = #tpu.pipeline_mode<synchronous>, transform_indices = @transform_32, window_bounds = array<i64: 1, 32>}, {pipeline_mode = #tpu.pipeline_mode<synchronous>, transform_indices = @transform_33, window_bounds = array<i64: 1, 32>}, {pipeline_mode = #tpu.pipeline_mode<synchronous>, transform_indices = @transform_34, window_bounds = array<i64: 1, 32>}, {pipeline_mode = #tpu.pipeline_mode<synchronous>, transform_indices = @transform_35, window_bounds = array<i64: 32, 16>}, {pipeline_mode = #tpu.pipeline_mode<synchronous>, transform_indices = @transform_36, window_bounds = array<i64: 1, 16>}, {pipeline_mode = #tpu.pipeline_mode<synchronous>, transform_indices = @transform_37, window_bounds = array<i64: 16, 1>}, {pipeline_mode = #tpu.pipeline_mode<synchronous>, transform_indices = @transform_38, window_bounds = array<i64: 1, 1>}, {pipeline_mode = #tpu.pipeline_mode<synchronous>, transform_indices = @transform_39, window_bounds = array<i64: 2, 1>}]} {
    %c0 = arith.constant 0 : index
    %c0_0 = arith.constant 0 : index
    %c0_1 = arith.constant 0 : index
    %c0_2 = arith.constant 0 : index
    %0 = vector.load %arg1[%c0, %c0_0, %c0_1, %c0_2] : memref<1x2x8x32xf32, #tpu.memory_space<vmem>>, vector<1x2x8x32xf32>
    %1 = vector.shape_cast %0 : vector<1x2x8x32xf32> to vector<2x8x32xf32>
    %c0_3 = arith.constant 0 : index
    %c0_4 = arith.constant 0 : index
    %c0_5 = arith.constant 0 : index
    %2 = vector.load %arg2[%c0_3, %c0_4, %c0_5] : memref<1x8x32xf32, #tpu.memory_space<vmem>>, vector<1x8x32xf32>
    %3 = vector.shape_cast %2 : vector<1x8x32xf32> to vector<8x32xf32>
    %4 = vector.shape_cast %3 : vector<8x32xf32> to vector<1x8x32xf32>
    %5 = vector.broadcast %4 : vector<1x8x32xf32> to vector<2x8x32xf32>
    %6 = arith.addf %1, %5 : vector<2x8x32xf32>
    %c0_6 = arith.constant 0 : index
    %c0_7 = arith.constant 0 : index
    %c0_8 = arith.constant 0 : index
    %7 = vector.load %arg3[%c0_6, %c0_7, %c0_8] : memref<1x2x8xf32, #tpu.memory_space<vmem>>, vector<1x2x8xf32>
    %8 = vector.shape_cast %7 : vector<1x2x8xf32> to vector<2x8xf32>
    %cst = arith.constant 1.000000e+00 : f32
    %9 = vector.broadcast %cst : f32 to vector<2x8xf32>
    %10 = arith.subf %8, %9 : vector<2x8xf32>
    %cst_9 = arith.constant 1.000000e+09 : f32
    %11 = vector.broadcast %cst_9 : f32 to vector<2x8xf32>
    %12 = arith.mulf %10, %11 : vector<2x8xf32>
    %13 = vector.shape_cast %12 : vector<2x8xf32> to vector<2x1x8xf32>
    %c0_10 = arith.constant 0 : index
    %c0_11 = arith.constant 0 : index
    %c0_12 = arith.constant 0 : index
    %14 = vector.load %arg4[%c0_10, %c0_11, %c0_12] : memref<1x32x96xbf16, #tpu.memory_space<vmem>>, vector<1x32x96xbf16>
    %15 = vector.shape_cast %14 : vector<1x32x96xbf16> to vector<32x96xbf16>
    %c0_13 = arith.constant 0 : index
    %c0_14 = arith.constant 0 : index
    %c0_15 = arith.constant 0 : index
    %16 = vector.load %arg5[%c0_13, %c0_14, %c0_15] : memref<1x1x96xf32, #tpu.memory_space<vmem>>, vector<1x1x96xf32>
    %17 = vector.shape_cast %16 : vector<1x1x96xf32> to vector<1x96xf32>
    %c0_16 = arith.constant 0 : index
    %c0_17 = arith.constant 0 : index
    %c0_18 = arith.constant 0 : index
    %18 = vector.load %arg6[%c0_16, %c0_17, %c0_18] : memref<1x32x32xbf16, #tpu.memory_space<vmem>>, vector<1x32x32xbf16>
    %19 = vector.shape_cast %18 : vector<1x32x32xbf16> to vector<32x32xbf16>
    %c0_19 = arith.constant 0 : index
    %c0_20 = arith.constant 0 : index
    %c0_21 = arith.constant 0 : index
    %20 = vector.load %arg7[%c0_19, %c0_20, %c0_21] : memref<1x1x32xf32, #tpu.memory_space<vmem>>, vector<1x1x32xf32>
    %21 = vector.shape_cast %20 : vector<1x1x32xf32> to vector<1x32xf32>
    %c0_22 = arith.constant 0 : index
    %c0_23 = arith.constant 0 : index
    %c0_24 = arith.constant 0 : index
    %22 = vector.load %arg8[%c0_22, %c0_23, %c0_24] : memref<1x1x32xf32, #tpu.memory_space<vmem>>, vector<1x1x32xf32>
    %23 = vector.shape_cast %22 : vector<1x1x32xf32> to vector<1x32xf32>
    %c0_25 = arith.constant 0 : index
    %c0_26 = arith.constant 0 : index
    %c0_27 = arith.constant 0 : index
    %24 = vector.load %arg9[%c0_25, %c0_26, %c0_27] : memref<1x1x32xf32, #tpu.memory_space<vmem>>, vector<1x1x32xf32>
    %25 = vector.shape_cast %24 : vector<1x1x32xf32> to vector<1x32xf32>
    %c0_28 = arith.constant 0 : index
    %c0_29 = arith.constant 0 : index
    %c0_30 = arith.constant 0 : index
    %26 = vector.load %arg10[%c0_28, %c0_29, %c0_30] : memref<1x32x64xbf16, #tpu.memory_space<vmem>>, vector<1x32x64xbf16>
    %27 = vector.shape_cast %26 : vector<1x32x64xbf16> to vector<32x64xbf16>
    %c0_31 = arith.constant 0 : index
    %c0_32 = arith.constant 0 : index
    %c0_33 = arith.constant 0 : index
    %28 = vector.load %arg11[%c0_31, %c0_32, %c0_33] : memref<1x1x64xf32, #tpu.memory_space<vmem>>, vector<1x1x64xf32>
    %29 = vector.shape_cast %28 : vector<1x1x64xf32> to vector<1x64xf32>
    %c0_34 = arith.constant 0 : index
    %c0_35 = arith.constant 0 : index
    %c0_36 = arith.constant 0 : index
    %30 = vector.load %arg12[%c0_34, %c0_35, %c0_36] : memref<1x64x32xbf16, #tpu.memory_space<vmem>>, vector<1x64x32xbf16>
    %31 = vector.shape_cast %30 : vector<1x64x32xbf16> to vector<64x32xbf16>
    %c0_37 = arith.constant 0 : index
    %c0_38 = arith.constant 0 : index
    %c0_39 = arith.constant 0 : index
    %32 = vector.load %arg13[%c0_37, %c0_38, %c0_39] : memref<1x1x32xf32, #tpu.memory_space<vmem>>, vector<1x1x32xf32>
    %33 = vector.shape_cast %32 : vector<1x1x32xf32> to vector<1x32xf32>
    %c0_40 = arith.constant 0 : index
    %c0_41 = arith.constant 0 : index
    %c0_42 = arith.constant 0 : index
    %34 = vector.load %arg14[%c0_40, %c0_41, %c0_42] : memref<1x1x32xf32, #tpu.memory_space<vmem>>, vector<1x1x32xf32>
    %35 = vector.shape_cast %34 : vector<1x1x32xf32> to vector<1x32xf32>
    %c0_43 = arith.constant 0 : index
    %c0_44 = arith.constant 0 : index
    %c0_45 = arith.constant 0 : index
    %36 = vector.load %arg15[%c0_43, %c0_44, %c0_45] : memref<1x1x32xf32, #tpu.memory_space<vmem>>, vector<1x1x32xf32>
    %37 = vector.shape_cast %36 : vector<1x1x32xf32> to vector<1x32xf32>
    %38 = vector.shape_cast %6 : vector<2x8x32xf32> to vector<16x32xf32>
    %39 = arith.truncf %38 : vector<16x32xf32> to vector<16x32xbf16>
    %cst_46 = arith.constant dense<0.000000e+00> : vector<16x96xf32>
    %40 = tpu.matmul %39, %15, %cst_46 {dimension_numbers = #tpu.dot_dimension_numbers<[1], [0], [0], [1], [0, 0, 1, 1], [], []>} : vector<16x32xbf16>, vector<32x96xbf16>, vector<16x96xf32> -> vector<16x96xf32>
    %41 = vector.broadcast %17 : vector<1x96xf32> to vector<16x96xf32>
    %42 = arith.addf %40, %41 : vector<16x96xf32>
    %43 = vector.shape_cast %42 : vector<16x96xf32> to vector<2x8x96xf32>
    %44 = vector.extract_strided_slice %43 {offsets = [0, 0, 0], sizes = [2, 8, 8], strides = [1, 1, 1]} : vector<2x8x96xf32> to vector<2x8x8xf32>
    %45 = vector.extract_strided_slice %43 {offsets = [0, 0, 32], sizes = [2, 8, 8], strides = [1, 1, 1]} : vector<2x8x96xf32> to vector<2x8x8xf32>
    %46 = vector.extract_strided_slice %43 {offsets = [0, 0, 64], sizes = [2, 8, 8], strides = [1, 1, 1]} : vector<2x8x96xf32> to vector<2x8x8xf32>
    "tpu.trace_start"() <{level = 10 : i32, message = "bqd,bkd->bqk"}> : () -> ()
    %cst_47 = arith.constant dense<0.000000e+00> : vector<2x8x8xf32>
    %47 = tpu.matmul %44, %45, %cst_47 {dimension_numbers = #tpu.dot_dimension_numbers<[2], [2], [1], [1], [0, 0, 0, 1, 1, 1], [0], [0]>} : vector<2x8x8xf32>, vector<2x8x8xf32>, vector<2x8x8xf32> -> vector<2x8x8xf32>
    "tpu.trace_stop"() : () -> ()
    %cst_48 = arith.constant 0.353553385 : f32
    %48 = vector.broadcast %cst_48 : f32 to vector<2x8x8xf32>
    %49 = arith.mulf %47, %48 : vector<2x8x8xf32>
    %50 = vector.broadcast %13 : vector<2x1x8xf32> to vector<2x8x8xf32>
    %51 = arith.addf %49, %50 : vector<2x8x8xf32>
    %cst_49 = arith.constant dense<0xFF800000> : vector<2x8xf32>
    %52 = vector.multi_reduction <maximumf>, %51, %cst_49 [2] : vector<2x8x8xf32> to vector<2x8xf32>
    %53 = vector.shape_cast %52 : vector<2x8xf32> to vector<2x8x1xf32>
    %54 = vector.broadcast %53 : vector<2x8x1xf32> to vector<2x8x8xf32>
    %55 = arith.subf %51, %54 : vector<2x8x8xf32>
    %56 = math.exp %55 : vector<2x8x8xf32>
    %cst_50 = arith.constant dense<0.000000e+00> : vector<2x8xf32>
    %57 = vector.multi_reduction <add>, %56, %cst_50 [2] : vector<2x8x8xf32> to vector<2x8xf32>
    %58 = vector.shape_cast %57 : vector<2x8xf32> to vector<2x8x1xf32>
    %59 = vector.broadcast %58 : vector<2x8x1xf32> to vector<2x8x8xf32>
    %60 = arith.divf %56, %59 : vector<2x8x8xf32>
    "tpu.trace_start"() <{level = 10 : i32, message = "bqk,bkd->bqd"}> : () -> ()
    %cst_51 = arith.constant dense<0.000000e+00> : vector<2x8x8xf32>
    %61 = tpu.matmul %60, %46, %cst_51 {dimension_numbers = #tpu.dot_dimension_numbers<[2], [1], [1], [2], [0, 0, 0, 1, 1, 2], [0], [0]>} : vector<2x8x8xf32>, vector<2x8x8xf32>, vector<2x8x8xf32> -> vector<2x8x8xf32>
    "tpu.trace_stop"() : () -> ()
    %62 = vector.extract_strided_slice %43 {offsets = [0, 0, 8], sizes = [2, 8, 8], strides = [1, 1, 1]} : vector<2x8x96xf32> to vector<2x8x8xf32>
    %63 = vector.extract_strided_slice %43 {offsets = [0, 0, 40], sizes = [2, 8, 8], strides = [1, 1, 1]} : vector<2x8x96xf32> to vector<2x8x8xf32>
    %64 = vector.extract_strided_slice %43 {offsets = [0, 0, 72], sizes = [2, 8, 8], strides = [1, 1, 1]} : vector<2x8x96xf32> to vector<2x8x8xf32>
    "tpu.trace_start"() <{level = 10 : i32, message = "bqd,bkd->bqk"}> : () -> ()
    %cst_52 = arith.constant dense<0.000000e+00> : vector<2x8x8xf32>
    %65 = tpu.matmul %62, %63, %cst_52 {dimension_numbers = #tpu.dot_dimension_numbers<[2], [2], [1], [1], [0, 0, 0, 1, 1, 1], [0], [0]>} : vector<2x8x8xf32>, vector<2x8x8xf32>, vector<2x8x8xf32> -> vector<2x8x8xf32>
    "tpu.trace_stop"() : () -> ()
    %cst_53 = arith.constant 0.353553385 : f32
    %66 = vector.broadcast %cst_53 : f32 to vector<2x8x8xf32>
    %67 = arith.mulf %65, %66 : vector<2x8x8xf32>
    %68 = vector.broadcast %13 : vector<2x1x8xf32> to vector<2x8x8xf32>
    %69 = arith.addf %67, %68 : vector<2x8x8xf32>
    %cst_54 = arith.constant dense<0xFF800000> : vector<2x8xf32>
    %70 = vector.multi_reduction <maximumf>, %69, %cst_54 [2] : vector<2x8x8xf32> to vector<2x8xf32>
    %71 = vector.shape_cast %70 : vector<2x8xf32> to vector<2x8x1xf32>
    %72 = vector.broadcast %71 : vector<2x8x1xf32> to vector<2x8x8xf32>
    %73 = arith.subf %69, %72 : vector<2x8x8xf32>
    %74 = math.exp %73 : vector<2x8x8xf32>
    %cst_55 = arith.constant dense<0.000000e+00> : vector<2x8xf32>
    %75 = vector.multi_reduction <add>, %74, %cst_55 [2] : vector<2x8x8xf32> to vector<2x8xf32>
    %76 = vector.shape_cast %75 : vector<2x8xf32> to vector<2x8x1xf32>
    %77 = vector.broadcast %76 : vector<2x8x1xf32> to vector<2x8x8xf32>
    %78 = arith.divf %74, %77 : vector<2x8x8xf32>
    "tpu.trace_start"() <{level = 10 : i32, message = "bqk,bkd->bqd"}> : () -> ()
    %cst_56 = arith.constant dense<0.000000e+00> : vector<2x8x8xf32>
    %79 = tpu.matmul %78, %64, %cst_56 {dimension_numbers = #tpu.dot_dimension_numbers<[2], [1], [1], [2], [0, 0, 0, 1, 1, 2], [0], [0]>} : vector<2x8x8xf32>, vector<2x8x8xf32>, vector<2x8x8xf32> -> vector<2x8x8xf32>
    "tpu.trace_stop"() : () -> ()
    %80 = vector.extract_strided_slice %43 {offsets = [0, 0, 16], sizes = [2, 8, 8], strides = [1, 1, 1]} : vector<2x8x96xf32> to vector<2x8x8xf32>
    %81 = vector.extract_strided_slice %43 {offsets = [0, 0, 48], sizes = [2, 8, 8], strides = [1, 1, 1]} : vector<2x8x96xf32> to vector<2x8x8xf32>
    %82 = vector.extract_strided_slice %43 {offsets = [0, 0, 80], sizes = [2, 8, 8], strides = [1, 1, 1]} : vector<2x8x96xf32> to vector<2x8x8xf32>
    "tpu.trace_start"() <{level = 10 : i32, message = "bqd,bkd->bqk"}> : () -> ()
    %cst_57 = arith.constant dense<0.000000e+00> : vector<2x8x8xf32>
    %83 = tpu.matmul %80, %81, %cst_57 {dimension_numbers = #tpu.dot_dimension_numbers<[2], [2], [1], [1], [0, 0, 0, 1, 1, 1], [0], [0]>} : vector<2x8x8xf32>, vector<2x8x8xf32>, vector<2x8x8xf32> -> vector<2x8x8xf32>
    "tpu.trace_stop"() : () -> ()
    %cst_58 = arith.constant 0.353553385 : f32
    %84 = vector.broadcast %cst_58 : f32 to vector<2x8x8xf32>
    %85 = arith.mulf %83, %84 : vector<2x8x8xf32>
    %86 = vector.broadcast %13 : vector<2x1x8xf32> to vector<2x8x8xf32>
    %87 = arith.addf %85, %86 : vector<2x8x8xf32>
    %cst_59 = arith.constant dense<0xFF800000> : vector<2x8xf32>
    %88 = vector.multi_reduction <maximumf>, %87, %cst_59 [2] : vector<2x8x8xf32> to vector<2x8xf32>
    %89 = vector.shape_cast %88 : vector<2x8xf32> to vector<2x8x1xf32>
    %90 = vector.broadcast %89 : vector<2x8x1xf32> to vector<2x8x8xf32>
    %91 = arith.subf %87, %90 : vector<2x8x8xf32>
    %92 = math.exp %91 : vector<2x8x8xf32>
    %cst_60 = arith.constant dense<0.000000e+00> : vector<2x8xf32>
    %93 = vector.multi_reduction <add>, %92, %cst_60 [2] : vector<2x8x8xf32> to vector<2x8xf32>
    %94 = vector.shape_cast %93 : vector<2x8xf32> to vector<2x8x1xf32>
    %95 = vector.broadcast %94 : vector<2x8x1xf32> to vector<2x8x8xf32>
    %96 = arith.divf %92, %95 : vector<2x8x8xf32>
    "tpu.trace_start"() <{level = 10 : i32, message = "bqk,bkd->bqd"}> : () -> ()
    %cst_61 = arith.constant dense<0.000000e+00> : vector<2x8x8xf32>
    %97 = tpu.matmul %96, %82, %cst_61 {dimension_numbers = #tpu.dot_dimension_numbers<[2], [1], [1], [2], [0, 0, 0, 1, 1, 2], [0], [0]>} : vector<2x8x8xf32>, vector<2x8x8xf32>, vector<2x8x8xf32> -> vector<2x8x8xf32>
    "tpu.trace_stop"() : () -> ()
    %98 = vector.extract_strided_slice %43 {offsets = [0, 0, 24], sizes = [2, 8, 8], strides = [1, 1, 1]} : vector<2x8x96xf32> to vector<2x8x8xf32>
    %99 = vector.extract_strided_slice %43 {offsets = [0, 0, 56], sizes = [2, 8, 8], strides = [1, 1, 1]} : vector<2x8x96xf32> to vector<2x8x8xf32>
    %100 = vector.extract_strided_slice %43 {offsets = [0, 0, 88], sizes = [2, 8, 8], strides = [1, 1, 1]} : vector<2x8x96xf32> to vector<2x8x8xf32>
    "tpu.trace_start"() <{level = 10 : i32, message = "bqd,bkd->bqk"}> : () -> ()
    %cst_62 = arith.constant dense<0.000000e+00> : vector<2x8x8xf32>
    %101 = tpu.matmul %98, %99, %cst_62 {dimension_numbers = #tpu.dot_dimension_numbers<[2], [2], [1], [1], [0, 0, 0, 1, 1, 1], [0], [0]>} : vector<2x8x8xf32>, vector<2x8x8xf32>, vector<2x8x8xf32> -> vector<2x8x8xf32>
    "tpu.trace_stop"() : () -> ()
    %cst_63 = arith.constant 0.353553385 : f32
    %102 = vector.broadcast %cst_63 : f32 to vector<2x8x8xf32>
    %103 = arith.mulf %101, %102 : vector<2x8x8xf32>
    %104 = vector.broadcast %13 : vector<2x1x8xf32> to vector<2x8x8xf32>
    %105 = arith.addf %103, %104 : vector<2x8x8xf32>
    %cst_64 = arith.constant dense<0xFF800000> : vector<2x8xf32>
    %106 = vector.multi_reduction <maximumf>, %105, %cst_64 [2] : vector<2x8x8xf32> to vector<2x8xf32>
    %107 = vector.shape_cast %106 : vector<2x8xf32> to vector<2x8x1xf32>
    %108 = vector.broadcast %107 : vector<2x8x1xf32> to vector<2x8x8xf32>
    %109 = arith.subf %105, %108 : vector<2x8x8xf32>
    %110 = math.exp %109 : vector<2x8x8xf32>
    %cst_65 = arith.constant dense<0.000000e+00> : vector<2x8xf32>
    %111 = vector.multi_reduction <add>, %110, %cst_65 [2] : vector<2x8x8xf32> to vector<2x8xf32>
    %112 = vector.shape_cast %111 : vector<2x8xf32> to vector<2x8x1xf32>
    %113 = vector.broadcast %112 : vector<2x8x1xf32> to vector<2x8x8xf32>
    %114 = arith.divf %110, %113 : vector<2x8x8xf32>
    "tpu.trace_start"() <{level = 10 : i32, message = "bqk,bkd->bqd"}> : () -> ()
    %cst_66 = arith.constant dense<0.000000e+00> : vector<2x8x8xf32>
    %115 = tpu.matmul %114, %100, %cst_66 {dimension_numbers = #tpu.dot_dimension_numbers<[2], [1], [1], [2], [0, 0, 0, 1, 1, 2], [0], [0]>} : vector<2x8x8xf32>, vector<2x8x8xf32>, vector<2x8x8xf32> -> vector<2x8x8xf32>
    "tpu.trace_stop"() : () -> ()
    %116 = tpu.concatenate %61, %79, %97, %115 in 2 : vector<2x8x8xf32>, vector<2x8x8xf32>, vector<2x8x8xf32>, vector<2x8x8xf32> -> vector<2x8x32xf32>
    %117 = vector.shape_cast %116 : vector<2x8x32xf32> to vector<16x32xf32>
    %118 = arith.truncf %117 : vector<16x32xf32> to vector<16x32xbf16>
    %cst_67 = arith.constant dense<0.000000e+00> : vector<16x32xf32>
    %119 = tpu.matmul %118, %19, %cst_67 {dimension_numbers = #tpu.dot_dimension_numbers<[1], [0], [0], [1], [0, 0, 1, 1], [], []>} : vector<16x32xbf16>, vector<32x32xbf16>, vector<16x32xf32> -> vector<16x32xf32>
    %120 = vector.broadcast %21 : vector<1x32xf32> to vector<16x32xf32>
    %121 = arith.addf %119, %120 : vector<16x32xf32>
    %122 = arith.addf %38, %121 : vector<16x32xf32>
    %cst_68 = arith.constant dense<0.000000e+00> : vector<16xf32>
    %123 = vector.multi_reduction <add>, %122, %cst_68 [1] : vector<16x32xf32> to vector<16xf32>
    %124 = vector.shape_cast %123 : vector<16xf32> to vector<16x1xf32>
    %cst_69 = arith.constant 3.200000e+01 : f32
    %125 = vector.broadcast %cst_69 : f32 to vector<16x1xf32>
    %126 = arith.divf %124, %125 : vector<16x1xf32>
    %127 = vector.broadcast %126 : vector<16x1xf32> to vector<16x32xf32>
    %128 = arith.subf %122, %127 : vector<16x32xf32>
    %129 = arith.mulf %128, %128 : vector<16x32xf32>
    %cst_70 = arith.constant dense<0.000000e+00> : vector<16xf32>
    %130 = vector.multi_reduction <add>, %129, %cst_70 [1] : vector<16x32xf32> to vector<16xf32>
    %131 = vector.shape_cast %130 : vector<16xf32> to vector<16x1xf32>
    %cst_71 = arith.constant 3.200000e+01 : f32
    %132 = vector.broadcast %cst_71 : f32 to vector<16x1xf32>
    %133 = arith.divf %131, %132 : vector<16x1xf32>
    %134 = vector.broadcast %126 : vector<16x1xf32> to vector<16x32xf32>
    %135 = arith.subf %122, %134 : vector<16x32xf32>
    %cst_72 = arith.constant 9.99999974E-6 : f32
    %136 = vector.broadcast %cst_72 : f32 to vector<16x1xf32>
    %137 = arith.addf %133, %136 : vector<16x1xf32>
    %138 = math.rsqrt %137 : vector<16x1xf32>
    %139 = vector.broadcast %138 : vector<16x1xf32> to vector<16x32xf32>
    %140 = arith.mulf %135, %139 : vector<16x32xf32>
    %141 = vector.broadcast %23 : vector<1x32xf32> to vector<16x32xf32>
    %142 = arith.mulf %140, %141 : vector<16x32xf32>
    %143 = vector.broadcast %25 : vector<1x32xf32> to vector<16x32xf32>
    %144 = arith.addf %142, %143 : vector<16x32xf32>
    %145 = arith.truncf %144 : vector<16x32xf32> to vector<16x32xbf16>
    %cst_73 = arith.constant dense<0.000000e+00> : vector<16x64xf32>
    %146 = tpu.matmul %145, %27, %cst_73 {dimension_numbers = #tpu.dot_dimension_numbers<[1], [0], [0], [1], [0, 0, 1, 1], [], []>} : vector<16x32xbf16>, vector<32x64xbf16>, vector<16x64xf32> -> vector<16x64xf32>
    %147 = vector.broadcast %29 : vector<1x64xf32> to vector<16x64xf32>
    %148 = arith.addf %146, %147 : vector<16x64xf32>
    %149 = arith.mulf %148, %148 : vector<16x64xf32>
    %150 = arith.mulf %148, %149 : vector<16x64xf32>
    %cst_74 = arith.constant 4.471500e-02 : f32
    %151 = vector.broadcast %cst_74 : f32 to vector<16x64xf32>
    %152 = arith.mulf %151, %150 : vector<16x64xf32>
    %153 = arith.addf %148, %152 : vector<16x64xf32>
    %cst_75 = arith.constant 0.797884583 : f32
    %154 = vector.broadcast %cst_75 : f32 to vector<16x64xf32>
    %155 = arith.mulf %154, %153 : vector<16x64xf32>
    %156 = math.tanh %155 : vector<16x64xf32>
    %cst_76 = arith.constant 1.000000e+00 : f32
    %157 = vector.broadcast %cst_76 : f32 to vector<16x64xf32>
    %158 = arith.addf %157, %156 : vector<16x64xf32>
    %cst_77 = arith.constant 5.000000e-01 : f32
    %159 = vector.broadcast %cst_77 : f32 to vector<16x64xf32>
    %160 = arith.mulf %159, %158 : vector<16x64xf32>
    %161 = arith.mulf %148, %160 : vector<16x64xf32>
    %162 = arith.truncf %161 : vector<16x64xf32> to vector<16x64xbf16>
    %cst_78 = arith.constant dense<0.000000e+00> : vector<16x32xf32>
    %163 = tpu.matmul %162, %31, %cst_78 {dimension_numbers = #tpu.dot_dimension_numbers<[1], [0], [0], [1], [0, 0, 1, 1], [], []>} : vector<16x64xbf16>, vector<64x32xbf16>, vector<16x32xf32> -> vector<16x32xf32>
    %164 = vector.broadcast %33 : vector<1x32xf32> to vector<16x32xf32>
    %165 = arith.addf %163, %164 : vector<16x32xf32>
    %166 = arith.addf %144, %165 : vector<16x32xf32>
    %cst_79 = arith.constant dense<0.000000e+00> : vector<16xf32>
    %167 = vector.multi_reduction <add>, %166, %cst_79 [1] : vector<16x32xf32> to vector<16xf32>
    %168 = vector.shape_cast %167 : vector<16xf32> to vector<16x1xf32>
    %cst_80 = arith.constant 3.200000e+01 : f32
    %169 = vector.broadcast %cst_80 : f32 to vector<16x1xf32>
    %170 = arith.divf %168, %169 : vector<16x1xf32>
    %171 = vector.broadcast %170 : vector<16x1xf32> to vector<16x32xf32>
    %172 = arith.subf %166, %171 : vector<16x32xf32>
    %173 = arith.mulf %172, %172 : vector<16x32xf32>
    %cst_81 = arith.constant dense<0.000000e+00> : vector<16xf32>
    %174 = vector.multi_reduction <add>, %173, %cst_81 [1] : vector<16x32xf32> to vector<16xf32>
    %175 = vector.shape_cast %174 : vector<16xf32> to vector<16x1xf32>
    %cst_82 = arith.constant 3.200000e+01 : f32
    %176 = vector.broadcast %cst_82 : f32 to vector<16x1xf32>
    %177 = arith.divf %175, %176 : vector<16x1xf32>
    %178 = vector.broadcast %170 : vector<16x1xf32> to vector<16x32xf32>
    %179 = arith.subf %166, %178 : vector<16x32xf32>
    %cst_83 = arith.constant 9.99999974E-6 : f32
    %180 = vector.broadcast %cst_83 : f32 to vector<16x1xf32>
    %181 = arith.addf %177, %180 : vector<16x1xf32>
    %182 = math.rsqrt %181 : vector<16x1xf32>
    %183 = vector.broadcast %182 : vector<16x1xf32> to vector<16x32xf32>
    %184 = arith.mulf %179, %183 : vector<16x32xf32>
    %185 = vector.broadcast %35 : vector<1x32xf32> to vector<16x32xf32>
    %186 = arith.mulf %184, %185 : vector<16x32xf32>
    %187 = vector.broadcast %37 : vector<1x32xf32> to vector<16x32xf32>
    %188 = arith.addf %186, %187 : vector<16x32xf32>
    %189 = vector.shape_cast %188 : vector<16x32xf32> to vector<2x8x32xf32>
    %190 = vector.extract_strided_slice %189 {offsets = [0, 0, 0], sizes = [2, 1, 32], strides = [1, 1, 1]} : vector<2x8x32xf32> to vector<2x1x32xf32>
    %191 = vector.shape_cast %190 : vector<2x1x32xf32> to vector<2x32xf32>
    %192 = arith.index_cast %arg0 : i32 to index
    %c0_84 = arith.constant 0 : index
    %c0_85 = arith.constant 0 : index
    %193 = vector.load %arg41[%192, %c0_84, %c0_85] : memref<2x2x32xf32, #tpu.memory_space<vmem>>, vector<1x2x32xf32>
    %194 = vector.shape_cast %193 : vector<1x2x32xf32> to vector<2x32xf32>
    %195 = vector.shape_cast %191 : vector<2x32xf32> to vector<1x2x32xf32>
    tpu.vector_store %arg41[%192, %c0_84, %c0_85], %195 {strides = array<i32>} : memref<2x2x32xf32, #tpu.memory_space<vmem>>, vector<1x2x32xf32>,
    %c1_i32 = arith.constant 1 : i32
    %196 = arith.cmpi eq, %arg0, %c1_i32 : i32
    %197 = arith.extui %196 : i1 to i32
    %c0_i32 = arith.constant 0 : i32
    %198 = arith.cmpi ne, %197, %c0_i32 : i32
    scf.if %198 {
      %c0_86 = arith.constant 0 : index
      %c0_87 = arith.constant 0 : index
      %c0_88 = arith.constant 0 : index
      %199 = vector.load %arg41[%c0_86, %c0_87, %c0_88] : memref<2x2x32xf32, #tpu.memory_space<vmem>>, vector<1x2x32xf32>
      %200 = vector.shape_cast %199 : vector<1x2x32xf32> to vector<2x32xf32>
      %c1 = arith.constant 1 : index
      %c0_89 = arith.constant 0 : index
      %c0_90 = arith.constant 0 : index
      %201 = vector.load %arg41[%c1, %c0_89, %c0_90] : memref<2x2x32xf32, #tpu.memory_space<vmem>>, vector<1x2x32xf32>
      %202 = vector.shape_cast %201 : vector<1x2x32xf32> to vector<2x32xf32>
      %203 = tpu.concatenate %200, %202 in 1 : vector<2x32xf32>, vector<2x32xf32> -> vector<2x64xf32>
      %204 = vector.shape_cast %203 : vector<2x64xf32> to vector<1x2x64xf32>
      %c0_91 = arith.constant 0 : index
      %c0_92 = arith.constant 0 : index
      %c0_93 = arith.constant 0 : index
      %205 = vector.load %arg16[%c0_91, %c0_92, %c0_93] : memref<2x64x192xbf16, #tpu.memory_space<vmem>>, vector<1x64x192xbf16>
      %206 = vector.shape_cast %205 : vector<1x64x192xbf16> to vector<64x192xbf16>
      %c0_94 = arith.constant 0 : index
      %c0_95 = arith.constant 0 : index
      %c0_96 = arith.constant 0 : index
      %207 = vector.load %arg17[%c0_94, %c0_95, %c0_96] : memref<2x1x192xf32, #tpu.memory_space<vmem>>, vector<1x1x192xf32>
      %208 = vector.shape_cast %207 : vector<1x1x192xf32> to vector<1x192xf32>
      %c0_97 = arith.constant 0 : index
      %c0_98 = arith.constant 0 : index
      %c0_99 = arith.constant 0 : index
      %209 = vector.load %arg18[%c0_97, %c0_98, %c0_99] : memref<2x64x64xbf16, #tpu.memory_space<vmem>>, vector<1x64x64xbf16>
      %210 = vector.shape_cast %209 : vector<1x64x64xbf16> to vector<64x64xbf16>
      %c0_100 = arith.constant 0 : index
      %c0_101 = arith.constant 0 : index
      %c0_102 = arith.constant 0 : index
      %211 = vector.load %arg19[%c0_100, %c0_101, %c0_102] : memref<2x1x64xf32, #tpu.memory_space<vmem>>, vector<1x1x64xf32>
      %212 = vector.shape_cast %211 : vector<1x1x64xf32> to vector<1x64xf32>
      %c0_103 = arith.constant 0 : index
      %c0_104 = arith.constant 0 : index
      %c0_105 = arith.constant 0 : index
      %213 = vector.load %arg20[%c0_103, %c0_104, %c0_105] : memref<2x1x64xf32, #tpu.memory_space<vmem>>, vector<1x1x64xf32>
      %214 = vector.shape_cast %213 : vector<1x1x64xf32> to vector<1x64xf32>
      %c0_106 = arith.constant 0 : index
      %c0_107 = arith.constant 0 : index
      %c0_108 = arith.constant 0 : index
      %215 = vector.load %arg21[%c0_106, %c0_107, %c0_108] : memref<2x1x64xf32, #tpu.memory_space<vmem>>, vector<1x1x64xf32>
      %216 = vector.shape_cast %215 : vector<1x1x64xf32> to vector<1x64xf32>
      %c0_109 = arith.constant 0 : index
      %c0_110 = arith.constant 0 : index
      %c0_111 = arith.constant 0 : index
      %217 = vector.load %arg22[%c0_109, %c0_110, %c0_111] : memref<2x64x2048xbf16, #tpu.memory_space<vmem>>, vector<1x64x2048xbf16>
      %218 = vector.shape_cast %217 : vector<1x64x2048xbf16> to vector<64x2048xbf16>
      %c0_112 = arith.constant 0 : index
      %c0_113 = arith.constant 0 : index
      %c0_114 = arith.constant 0 : index
      %219 = vector.load %arg23[%c0_112, %c0_113, %c0_114] : memref<2x1x2048xf32, #tpu.memory_space<vmem>>, vector<1x1x2048xf32>
      %220 = vector.shape_cast %219 : vector<1x1x2048xf32> to vector<1x2048xf32>
      %c0_115 = arith.constant 0 : index
      %c0_116 = arith.constant 0 : index
      %c0_117 = arith.constant 0 : index
      %221 = vector.load %arg24[%c0_115, %c0_116, %c0_117] : memref<2x2048x64xbf16, #tpu.memory_space<vmem>>, vector<1x2048x64xbf16>
      %222 = vector.shape_cast %221 : vector<1x2048x64xbf16> to vector<2048x64xbf16>
      %c0_118 = arith.constant 0 : index
      %c0_119 = arith.constant 0 : index
      %c0_120 = arith.constant 0 : index
      %223 = vector.load %arg25[%c0_118, %c0_119, %c0_120] : memref<2x1x64xf32, #tpu.memory_space<vmem>>, vector<1x1x64xf32>
      %224 = vector.shape_cast %223 : vector<1x1x64xf32> to vector<1x64xf32>
      %c0_121 = arith.constant 0 : index
      %c0_122 = arith.constant 0 : index
      %c0_123 = arith.constant 0 : index
      %225 = vector.load %arg26[%c0_121, %c0_122, %c0_123] : memref<2x1x64xf32, #tpu.memory_space<vmem>>, vector<1x1x64xf32>
      %226 = vector.shape_cast %225 : vector<1x1x64xf32> to vector<1x64xf32>
      %c0_124 = arith.constant 0 : index
      %c0_125 = arith.constant 0 : index
      %c0_126 = arith.constant 0 : index
      %227 = vector.load %arg27[%c0_124, %c0_125, %c0_126] : memref<2x1x64xf32, #tpu.memory_space<vmem>>, vector<1x1x64xf32>
      %228 = vector.shape_cast %227 : vector<1x1x64xf32> to vector<1x64xf32>
      %229 = vector.shape_cast %204 : vector<1x2x64xf32> to vector<2x64xf32>
      %230 = arith.truncf %229 : vector<2x64xf32> to vector<2x64xbf16>
      %cst_127 = arith.constant dense<0.000000e+00> : vector<2x192xf32>
      %231 = tpu.matmul %230, %206, %cst_127 {dimension_numbers = #tpu.dot_dimension_numbers<[1], [0], [0], [1], [0, 0, 1, 1], [], []>} : vector<2x64xbf16>, vector<64x192xbf16>, vector<2x192xf32> -> vector<2x192xf32>
      %232 = vector.broadcast %208 : vector<1x192xf32> to vector<2x192xf32>
      %233 = arith.addf %231, %232 : vector<2x192xf32>
      %234 = vector.shape_cast %233 : vector<2x192xf32> to vector<1x2x192xf32>
      %235 = vector.extract_strided_slice %234 {offsets = [0, 0, 0], sizes = [1, 2, 8], strides = [1, 1, 1]} : vector<1x2x192xf32> to vector<1x2x8xf32>
      %236 = vector.extract_strided_slice %234 {offsets = [0, 0, 64], sizes = [1, 2, 8], strides = [1, 1, 1]} : vector<1x2x192xf32> to vector<1x2x8xf32>
      %237 = vector.extract_strided_slice %234 {offsets = [0, 0, 128], sizes = [1, 2, 8], strides = [1, 1, 1]} : vector<1x2x192xf32> to vector<1x2x8xf32>
      "tpu.trace_start"() <{level = 10 : i32, message = "bqd,bkd->bqk"}> : () -> ()
      %cst_128 = arith.constant dense<0.000000e+00> : vector<1x2x2xf32>
      %238 = tpu.matmul %235, %236, %cst_128 {dimension_numbers = #tpu.dot_dimension_numbers<[2], [2], [1], [1], [0, 0, 0, 1, 1, 1], [0], [0]>} : vector<1x2x8xf32>, vector<1x2x8xf32>, vector<1x2x2xf32> -> vector<1x2x2xf32>
      "tpu.trace_stop"() : () -> ()
      %cst_129 = arith.constant 0.353553385 : f32
      %239 = vector.broadcast %cst_129 : f32 to vector<1x2x2xf32>
      %240 = arith.mulf %238, %239 : vector<1x2x2xf32>
      %cst_130 = arith.constant dense<0xFF800000> : vector<1x2xf32>
      %241 = vector.multi_reduction <maximumf>, %240, %cst_130 [2] : vector<1x2x2xf32> to vector<1x2xf32>
      %242 = vector.shape_cast %241 : vector<1x2xf32> to vector<1x2x1xf32>
      %243 = vector.broadcast %242 : vector<1x2x1xf32> to vector<1x2x2xf32>
      %244 = arith.subf %240, %243 : vector<1x2x2xf32>
      %245 = math.exp %244 : vector<1x2x2xf32>
      %cst_131 = arith.constant dense<0.000000e+00> : vector<1x2xf32>
      %246 = vector.multi_reduction <add>, %245, %cst_131 [2] : vector<1x2x2xf32> to vector<1x2xf32>
      %247 = vector.shape_cast %246 : vector<1x2xf32> to vector<1x2x1xf32>
      %248 = vector.broadcast %247 : vector<1x2x1xf32> to vector<1x2x2xf32>
      %249 = arith.divf %245, %248 : vector<1x2x2xf32>
      "tpu.trace_start"() <{level = 10 : i32, message = "bqk,bkd->bqd"}> : () -> ()
      %cst_132 = arith.constant dense<0.000000e+00> : vector<1x2x8xf32>
      %250 = tpu.matmul %249, %237, %cst_132 {dimension_numbers = #tpu.dot_dimension_numbers<[2], [1], [1], [2], [0, 0, 0, 1, 1, 2], [0], [0]>} : vector<1x2x2xf32>, vector<1x2x8xf32>, vector<1x2x8xf32> -> vector<1x2x8xf32>
      "tpu.trace_stop"() : () -> ()
      %251 = vector.extract_strided_slice %234 {offsets = [0, 0, 8], sizes = [1, 2, 8], strides = [1, 1, 1]} : vector<1x2x192xf32> to vector<1x2x8xf32>
      %252 = vector.extract_strided_slice %234 {offsets = [0, 0, 72], sizes = [1, 2, 8], strides = [1, 1, 1]} : vector<1x2x192xf32> to vector<1x2x8xf32>
      %253 = vector.extract_strided_slice %234 {offsets = [0, 0, 136], sizes = [1, 2, 8], strides = [1, 1, 1]} : vector<1x2x192xf32> to vector<1x2x8xf32>
      "tpu.trace_start"() <{level = 10 : i32, message = "bqd,bkd->bqk"}> : () -> ()
      %cst_133 = arith.constant dense<0.000000e+00> : vector<1x2x2xf32>
      %254 = tpu.matmul %251, %252, %cst_133 {dimension_numbers = #tpu.dot_dimension_numbers<[2], [2], [1], [1], [0, 0, 0, 1, 1, 1], [0], [0]>} : vector<1x2x8xf32>, vector<1x2x8xf32>, vector<1x2x2xf32> -> vector<1x2x2xf32>
      "tpu.trace_stop"() : () -> ()
      %cst_134 = arith.constant 0.353553385 : f32
      %255 = vector.broadcast %cst_134 : f32 to vector<1x2x2xf32>
      %256 = arith.mulf %254, %255 : vector<1x2x2xf32>
      %cst_135 = arith.constant dense<0xFF800000> : vector<1x2xf32>
      %257 = vector.multi_reduction <maximumf>, %256, %cst_135 [2] : vector<1x2x2xf32> to vector<1x2xf32>
      %258 = vector.shape_cast %257 : vector<1x2xf32> to vector<1x2x1xf32>
      %259 = vector.broadcast %258 : vector<1x2x1xf32> to vector<1x2x2xf32>
      %260 = arith.subf %256, %259 : vector<1x2x2xf32>
      %261 = math.exp %260 : vector<1x2x2xf32>
      %cst_136 = arith.constant dense<0.000000e+00> : vector<1x2xf32>
      %262 = vector.multi_reduction <add>, %261, %cst_136 [2] : vector<1x2x2xf32> to vector<1x2xf32>
      %263 = vector.shape_cast %262 : vector<1x2xf32> to vector<1x2x1xf32>
      %264 = vector.broadcast %263 : vector<1x2x1xf32> to vector<1x2x2xf32>
      %265 = arith.divf %261, %264 : vector<1x2x2xf32>
      "tpu.trace_start"() <{level = 10 : i32, message = "bqk,bkd->bqd"}> : () -> ()
      %cst_137 = arith.constant dense<0.000000e+00> : vector<1x2x8xf32>
      %266 = tpu.matmul %265, %253, %cst_137 {dimension_numbers = #tpu.dot_dimension_numbers<[2], [1], [1], [2], [0, 0, 0, 1, 1, 2], [0], [0]>} : vector<1x2x2xf32>, vector<1x2x8xf32>, vector<1x2x8xf32> -> vector<1x2x8xf32>
      "tpu.trace_stop"() : () -> ()
      %267 = vector.extract_strided_slice %234 {offsets = [0, 0, 16], sizes = [1, 2, 8], strides = [1, 1, 1]} : vector<1x2x192xf32> to vector<1x2x8xf32>
      %268 = vector.extract_strided_slice %234 {offsets = [0, 0, 80], sizes = [1, 2, 8], strides = [1, 1, 1]} : vector<1x2x192xf32> to vector<1x2x8xf32>
      %269 = vector.extract_strided_slice %234 {offsets = [0, 0, 144], sizes = [1, 2, 8], strides = [1, 1, 1]} : vector<1x2x192xf32> to vector<1x2x8xf32>
      "tpu.trace_start"() <{level = 10 : i32, message = "bqd,bkd->bqk"}> : () -> ()
      %cst_138 = arith.constant dense<0.000000e+00> : vector<1x2x2xf32>
      %270 = tpu.matmul %267, %268, %cst_138 {dimension_numbers = #tpu.dot_dimension_numbers<[2], [2], [1], [1], [0, 0, 0, 1, 1, 1], [0], [0]>} : vector<1x2x8xf32>, vector<1x2x8xf32>, vector<1x2x2xf32> -> vector<1x2x2xf32>
      "tpu.trace_stop"() : () -> ()
      %cst_139 = arith.constant 0.353553385 : f32
      %271 = vector.broadcast %cst_139 : f32 to vector<1x2x2xf32>
      %272 = arith.mulf %270, %271 : vector<1x2x2xf32>
      %cst_140 = arith.constant dense<0xFF800000> : vector<1x2xf32>
      %273 = vector.multi_reduction <maximumf>, %272, %cst_140 [2] : vector<1x2x2xf32> to vector<1x2xf32>
      %274 = vector.shape_cast %273 : vector<1x2xf32> to vector<1x2x1xf32>
      %275 = vector.broadcast %274 : vector<1x2x1xf32> to vector<1x2x2xf32>
      %276 = arith.subf %272, %275 : vector<1x2x2xf32>
      %277 = math.exp %276 : vector<1x2x2xf32>
      %cst_141 = arith.constant dense<0.000000e+00> : vector<1x2xf32>
      %278 = vector.multi_reduction <add>, %277, %cst_141 [2] : vector<1x2x2xf32> to vector<1x2xf32>
      %279 = vector.shape_cast %278 : vector<1x2xf32> to vector<1x2x1xf32>
      %280 = vector.broadcast %279 : vector<1x2x1xf32> to vector<1x2x2xf32>
      %281 = arith.divf %277, %280 : vector<1x2x2xf32>
      "tpu.trace_start"() <{level = 10 : i32, message = "bqk,bkd->bqd"}> : () -> ()
      %cst_142 = arith.constant dense<0.000000e+00> : vector<1x2x8xf32>
      %282 = tpu.matmul %281, %269, %cst_142 {dimension_numbers = #tpu.dot_dimension_numbers<[2], [1], [1], [2], [0, 0, 0, 1, 1, 2], [0], [0]>} : vector<1x2x2xf32>, vector<1x2x8xf32>, vector<1x2x8xf32> -> vector<1x2x8xf32>
      "tpu.trace_stop"() : () -> ()
      %283 = vector.extract_strided_slice %234 {offsets = [0, 0, 24], sizes = [1, 2, 8], strides = [1, 1, 1]} : vector<1x2x192xf32> to vector<1x2x8xf32>
      %284 = vector.extract_strided_slice %234 {offsets = [0, 0, 88], sizes = [1, 2, 8], strides = [1, 1, 1]} : vector<1x2x192xf32> to vector<1x2x8xf32>
      %285 = vector.extract_strided_slice %234 {offsets = [0, 0, 152], sizes = [1, 2, 8], strides = [1, 1, 1]} : vector<1x2x192xf32> to vector<1x2x8xf32>
      "tpu.trace_start"() <{level = 10 : i32, message = "bqd,bkd->bqk"}> : () -> ()
      %cst_143 = arith.constant dense<0.000000e+00> : vector<1x2x2xf32>
      %286 = tpu.matmul %283, %284, %cst_143 {dimension_numbers = #tpu.dot_dimension_numbers<[2], [2], [1], [1], [0, 0, 0, 1, 1, 1], [0], [0]>} : vector<1x2x8xf32>, vector<1x2x8xf32>, vector<1x2x2xf32> -> vector<1x2x2xf32>
      "tpu.trace_stop"() : () -> ()
      %cst_144 = arith.constant 0.353553385 : f32
      %287 = vector.broadcast %cst_144 : f32 to vector<1x2x2xf32>
      %288 = arith.mulf %286, %287 : vector<1x2x2xf32>
      %cst_145 = arith.constant dense<0xFF800000> : vector<1x2xf32>
      %289 = vector.multi_reduction <maximumf>, %288, %cst_145 [2] : vector<1x2x2xf32> to vector<1x2xf32>
      %290 = vector.shape_cast %289 : vector<1x2xf32> to vector<1x2x1xf32>
      %291 = vector.broadcast %290 : vector<1x2x1xf32> to vector<1x2x2xf32>
      %292 = arith.subf %288, %291 : vector<1x2x2xf32>
      %293 = math.exp %292 : vector<1x2x2xf32>
      %cst_146 = arith.constant dense<0.000000e+00> : vector<1x2xf32>
      %294 = vector.multi_reduction <add>, %293, %cst_146 [2] : vector<1x2x2xf32> to vector<1x2xf32>
      %295 = vector.shape_cast %294 : vector<1x2xf32> to vector<1x2x1xf32>
      %296 = vector.broadcast %295 : vector<1x2x1xf32> to vector<1x2x2xf32>
      %297 = arith.divf %293, %296 : vector<1x2x2xf32>
      "tpu.trace_start"() <{level = 10 : i32, message = "bqk,bkd->bqd"}> : () -> ()
      %cst_147 = arith.constant dense<0.000000e+00> : vector<1x2x8xf32>
      %298 = tpu.matmul %297, %285, %cst_147 {dimension_numbers = #tpu.dot_dimension_numbers<[2], [1], [1], [2], [0, 0, 0, 1, 1, 2], [0], [0]>} : vector<1x2x2xf32>, vector<1x2x8xf32>, vector<1x2x8xf32> -> vector<1x2x8xf32>
      "tpu.trace_stop"() : () -> ()
      %299 = vector.extract_strided_slice %234 {offsets = [0, 0, 32], sizes = [1, 2, 8], strides = [1, 1, 1]} : vector<1x2x192xf32> to vector<1x2x8xf32>
      %300 = vector.extract_strided_slice %234 {offsets = [0, 0, 96], sizes = [1, 2, 8], strides = [1, 1, 1]} : vector<1x2x192xf32> to vector<1x2x8xf32>
      %301 = vector.extract_strided_slice %234 {offsets = [0, 0, 160], sizes = [1, 2, 8], strides = [1, 1, 1]} : vector<1x2x192xf32> to vector<1x2x8xf32>
      "tpu.trace_start"() <{level = 10 : i32, message = "bqd,bkd->bqk"}> : () -> ()
      %cst_148 = arith.constant dense<0.000000e+00> : vector<1x2x2xf32>
      %302 = tpu.matmul %299, %300, %cst_148 {dimension_numbers = #tpu.dot_dimension_numbers<[2], [2], [1], [1], [0, 0, 0, 1, 1, 1], [0], [0]>} : vector<1x2x8xf32>, vector<1x2x8xf32>, vector<1x2x2xf32> -> vector<1x2x2xf32>
      "tpu.trace_stop"() : () -> ()
      %cst_149 = arith.constant 0.353553385 : f32
      %303 = vector.broadcast %cst_149 : f32 to vector<1x2x2xf32>
      %304 = arith.mulf %302, %303 : vector<1x2x2xf32>
      %cst_150 = arith.constant dense<0xFF800000> : vector<1x2xf32>
      %305 = vector.multi_reduction <maximumf>, %304, %cst_150 [2] : vector<1x2x2xf32> to vector<1x2xf32>
      %306 = vector.shape_cast %305 : vector<1x2xf32> to vector<1x2x1xf32>
      %307 = vector.broadcast %306 : vector<1x2x1xf32> to vector<1x2x2xf32>
      %308 = arith.subf %304, %307 : vector<1x2x2xf32>
      %309 = math.exp %308 : vector<1x2x2xf32>
      %cst_151 = arith.constant dense<0.000000e+00> : vector<1x2xf32>
      %310 = vector.multi_reduction <add>, %309, %cst_151 [2] : vector<1x2x2xf32> to vector<1x2xf32>
      %311 = vector.shape_cast %310 : vector<1x2xf32> to vector<1x2x1xf32>
      %312 = vector.broadcast %311 : vector<1x2x1xf32> to vector<1x2x2xf32>
      %313 = arith.divf %309, %312 : vector<1x2x2xf32>
      "tpu.trace_start"() <{level = 10 : i32, message = "bqk,bkd->bqd"}> : () -> ()
      %cst_152 = arith.constant dense<0.000000e+00> : vector<1x2x8xf32>
      %314 = tpu.matmul %313, %301, %cst_152 {dimension_numbers = #tpu.dot_dimension_numbers<[2], [1], [1], [2], [0, 0, 0, 1, 1, 2], [0], [0]>} : vector<1x2x2xf32>, vector<1x2x8xf32>, vector<1x2x8xf32> -> vector<1x2x8xf32>
      "tpu.trace_stop"() : () -> ()
      %315 = vector.extract_strided_slice %234 {offsets = [0, 0, 40], sizes = [1, 2, 8], strides = [1, 1, 1]} : vector<1x2x192xf32> to vector<1x2x8xf32>
      %316 = vector.extract_strided_slice %234 {offsets = [0, 0, 104], sizes = [1, 2, 8], strides = [1, 1, 1]} : vector<1x2x192xf32> to vector<1x2x8xf32>
      %317 = vector.extract_strided_slice %234 {offsets = [0, 0, 168], sizes = [1, 2, 8], strides = [1, 1, 1]} : vector<1x2x192xf32> to vector<1x2x8xf32>
      "tpu.trace_start"() <{level = 10 : i32, message = "bqd,bkd->bqk"}> : () -> ()
      %cst_153 = arith.constant dense<0.000000e+00> : vector<1x2x2xf32>
      %318 = tpu.matmul %315, %316, %cst_153 {dimension_numbers = #tpu.dot_dimension_numbers<[2], [2], [1], [1], [0, 0, 0, 1, 1, 1], [0], [0]>} : vector<1x2x8xf32>, vector<1x2x8xf32>, vector<1x2x2xf32> -> vector<1x2x2xf32>
      "tpu.trace_stop"() : () -> ()
      %cst_154 = arith.constant 0.353553385 : f32
      %319 = vector.broadcast %cst_154 : f32 to vector<1x2x2xf32>
      %320 = arith.mulf %318, %319 : vector<1x2x2xf32>
      %cst_155 = arith.constant dense<0xFF800000> : vector<1x2xf32>
      %321 = vector.multi_reduction <maximumf>, %320, %cst_155 [2] : vector<1x2x2xf32> to vector<1x2xf32>
      %322 = vector.shape_cast %321 : vector<1x2xf32> to vector<1x2x1xf32>
      %323 = vector.broadcast %322 : vector<1x2x1xf32> to vector<1x2x2xf32>
      %324 = arith.subf %320, %323 : vector<1x2x2xf32>
      %325 = math.exp %324 : vector<1x2x2xf32>
      %cst_156 = arith.constant dense<0.000000e+00> : vector<1x2xf32>
      %326 = vector.multi_reduction <add>, %325, %cst_156 [2] : vector<1x2x2xf32> to vector<1x2xf32>
      %327 = vector.shape_cast %326 : vector<1x2xf32> to vector<1x2x1xf32>
      %328 = vector.broadcast %327 : vector<1x2x1xf32> to vector<1x2x2xf32>
      %329 = arith.divf %325, %328 : vector<1x2x2xf32>
      "tpu.trace_start"() <{level = 10 : i32, message = "bqk,bkd->bqd"}> : () -> ()
      %cst_157 = arith.constant dense<0.000000e+00> : vector<1x2x8xf32>
      %330 = tpu.matmul %329, %317, %cst_157 {dimension_numbers = #tpu.dot_dimension_numbers<[2], [1], [1], [2], [0, 0, 0, 1, 1, 2], [0], [0]>} : vector<1x2x2xf32>, vector<1x2x8xf32>, vector<1x2x8xf32> -> vector<1x2x8xf32>
      "tpu.trace_stop"() : () -> ()
      %331 = vector.extract_strided_slice %234 {offsets = [0, 0, 48], sizes = [1, 2, 8], strides = [1, 1, 1]} : vector<1x2x192xf32> to vector<1x2x8xf32>
      %332 = vector.extract_strided_slice %234 {offsets = [0, 0, 112], sizes = [1, 2, 8], strides = [1, 1, 1]} : vector<1x2x192xf32> to vector<1x2x8xf32>
      %333 = vector.extract_strided_slice %234 {offsets = [0, 0, 176], sizes = [1, 2, 8], strides = [1, 1, 1]} : vector<1x2x192xf32> to vector<1x2x8xf32>
      "tpu.trace_start"() <{level = 10 : i32, message = "bqd,bkd->bqk"}> : () -> ()
      %cst_158 = arith.constant dense<0.000000e+00> : vector<1x2x2xf32>
      %334 = tpu.matmul %331, %332, %cst_158 {dimension_numbers = #tpu.dot_dimension_numbers<[2], [2], [1], [1], [0, 0, 0, 1, 1, 1], [0], [0]>} : vector<1x2x8xf32>, vector<1x2x8xf32>, vector<1x2x2xf32> -> vector<1x2x2xf32>
      "tpu.trace_stop"() : () -> ()
      %cst_159 = arith.constant 0.353553385 : f32
      %335 = vector.broadcast %cst_159 : f32 to vector<1x2x2xf32>
      %336 = arith.mulf %334, %335 : vector<1x2x2xf32>
      %cst_160 = arith.constant dense<0xFF800000> : vector<1x2xf32>
      %337 = vector.multi_reduction <maximumf>, %336, %cst_160 [2] : vector<1x2x2xf32> to vector<1x2xf32>
      %338 = vector.shape_cast %337 : vector<1x2xf32> to vector<1x2x1xf32>
      %339 = vector.broadcast %338 : vector<1x2x1xf32> to vector<1x2x2xf32>
      %340 = arith.subf %336, %339 : vector<1x2x2xf32>
      %341 = math.exp %340 : vector<1x2x2xf32>
      %cst_161 = arith.constant dense<0.000000e+00> : vector<1x2xf32>
      %342 = vector.multi_reduction <add>, %341, %cst_161 [2] : vector<1x2x2xf32> to vector<1x2xf32>
      %343 = vector.shape_cast %342 : vector<1x2xf32> to vector<1x2x1xf32>
      %344 = vector.broadcast %343 : vector<1x2x1xf32> to vector<1x2x2xf32>
      %345 = arith.divf %341, %344 : vector<1x2x2xf32>
      "tpu.trace_start"() <{level = 10 : i32, message = "bqk,bkd->bqd"}> : () -> ()
      %cst_162 = arith.constant dense<0.000000e+00> : vector<1x2x8xf32>
      %346 = tpu.matmul %345, %333, %cst_162 {dimension_numbers = #tpu.dot_dimension_numbers<[2], [1], [1], [2], [0, 0, 0, 1, 1, 2], [0], [0]>} : vector<1x2x2xf32>, vector<1x2x8xf32>, vector<1x2x8xf32> -> vector<1x2x8xf32>
      "tpu.trace_stop"() : () -> ()
      %347 = vector.extract_strided_slice %234 {offsets = [0, 0, 56], sizes = [1, 2, 8], strides = [1, 1, 1]} : vector<1x2x192xf32> to vector<1x2x8xf32>
      %348 = vector.extract_strided_slice %234 {offsets = [0, 0, 120], sizes = [1, 2, 8], strides = [1, 1, 1]} : vector<1x2x192xf32> to vector<1x2x8xf32>
      %349 = vector.extract_strided_slice %234 {offsets = [0, 0, 184], sizes = [1, 2, 8], strides = [1, 1, 1]} : vector<1x2x192xf32> to vector<1x2x8xf32>
      "tpu.trace_start"() <{level = 10 : i32, message = "bqd,bkd->bqk"}> : () -> ()
      %cst_163 = arith.constant dense<0.000000e+00> : vector<1x2x2xf32>
      %350 = tpu.matmul %347, %348, %cst_163 {dimension_numbers = #tpu.dot_dimension_numbers<[2], [2], [1], [1], [0, 0, 0, 1, 1, 1], [0], [0]>} : vector<1x2x8xf32>, vector<1x2x8xf32>, vector<1x2x2xf32> -> vector<1x2x2xf32>
      "tpu.trace_stop"() : () -> ()
      %cst_164 = arith.constant 0.353553385 : f32
      %351 = vector.broadcast %cst_164 : f32 to vector<1x2x2xf32>
      %352 = arith.mulf %350, %351 : vector<1x2x2xf32>
      %cst_165 = arith.constant dense<0xFF800000> : vector<1x2xf32>
      %353 = vector.multi_reduction <maximumf>, %352, %cst_165 [2] : vector<1x2x2xf32> to vector<1x2xf32>
      %354 = vector.shape_cast %353 : vector<1x2xf32> to vector<1x2x1xf32>
      %355 = vector.broadcast %354 : vector<1x2x1xf32> to vector<1x2x2xf32>
      %356 = arith.subf %352, %355 : vector<1x2x2xf32>
      %357 = math.exp %356 : vector<1x2x2xf32>
      %cst_166 = arith.constant dense<0.000000e+00> : vector<1x2xf32>
      %358 = vector.multi_reduction <add>, %357, %cst_166 [2] : vector<1x2x2xf32> to vector<1x2xf32>
      %359 = vector.shape_cast %358 : vector<1x2xf32> to vector<1x2x1xf32>
      %360 = vector.broadcast %359 : vector<1x2x1xf32> to vector<1x2x2xf32>
      %361 = arith.divf %357, %360 : vector<1x2x2xf32>
      "tpu.trace_start"() <{level = 10 : i32, message = "bqk,bkd->bqd"}> : () -> ()
      %cst_167 = arith.constant dense<0.000000e+00> : vector<1x2x8xf32>
      %362 = tpu.matmul %361, %349, %cst_167 {dimension_numbers = #tpu.dot_dimension_numbers<[2], [1], [1], [2], [0, 0, 0, 1, 1, 2], [0], [0]>} : vector<1x2x2xf32>, vector<1x2x8xf32>, vector<1x2x8xf32> -> vector<1x2x8xf32>
      "tpu.trace_stop"() : () -> ()
      %363 = tpu.concatenate %250, %266, %282, %298, %314, %330, %346, %362 in 2 : vector<1x2x8xf32>, vector<1x2x8xf32>, vector<1x2x8xf32>, vector<1x2x8xf32>, vector<1x2x8xf32>, vector<1x2x8xf32>, vector<1x2x8xf32>, vector<1x2x8xf32> -> vector<1x2x64xf32>
      %364 = vector.shape_cast %363 : vector<1x2x64xf32> to vector<2x64xf32>
      %365 = arith.truncf %364 : vector<2x64xf32> to vector<2x64xbf16>
      %cst_168 = arith.constant dense<0.000000e+00> : vector<2x64xf32>
      %366 = tpu.matmul %365, %210, %cst_168 {dimension_numbers = #tpu.dot_dimension_numbers<[1], [0], [0], [1], [0, 0, 1, 1], [], []>} : vector<2x64xbf16>, vector<64x64xbf16>, vector<2x64xf32> -> vector<2x64xf32>
      %367 = vector.broadcast %212 : vector<1x64xf32> to vector<2x64xf32>
      %368 = arith.addf %366, %367 : vector<2x64xf32>
      %369 = arith.addf %229, %368 : vector<2x64xf32>
      %cst_169 = arith.constant dense<0.000000e+00> : vector<2xf32>
      %370 = vector.multi_reduction <add>, %369, %cst_169 [1] : vector<2x64xf32> to vector<2xf32>
      %371 = vector.shape_cast %370 : vector<2xf32> to vector<2x1xf32>
      %cst_170 = arith.constant 6.400000e+01 : f32
      %372 = vector.broadcast %cst_170 : f32 to vector<2x1xf32>
      %373 = arith.divf %371, %372 : vector<2x1xf32>
      %374 = vector.broadcast %373 : vector<2x1xf32> to vector<2x64xf32>
      %375 = arith.subf %369, %374 : vector<2x64xf32>
      %376 = arith.mulf %375, %375 : vector<2x64xf32>
      %cst_171 = arith.constant dense<0.000000e+00> : vector<2xf32>
      %377 = vector.multi_reduction <add>, %376, %cst_171 [1] : vector<2x64xf32> to vector<2xf32>
      %378 = vector.shape_cast %377 : vector<2xf32> to vector<2x1xf32>
      %cst_172 = arith.constant 6.400000e+01 : f32
      %379 = vector.broadcast %cst_172 : f32 to vector<2x1xf32>
      %380 = arith.divf %378, %379 : vector<2x1xf32>
      %381 = vector.broadcast %373 : vector<2x1xf32> to vector<2x64xf32>
      %382 = arith.subf %369, %381 : vector<2x64xf32>
      %cst_173 = arith.constant 9.99999974E-6 : f32
      %383 = vector.broadcast %cst_173 : f32 to vector<2x1xf32>
      %384 = arith.addf %380, %383 : vector<2x1xf32>
      %385 = math.rsqrt %384 : vector<2x1xf32>
      %386 = vector.broadcast %385 : vector<2x1xf32> to vector<2x64xf32>
      %387 = arith.mulf %382, %386 : vector<2x64xf32>
      %388 = vector.broadcast %214 : vector<1x64xf32> to vector<2x64xf32>
      %389 = arith.mulf %387, %388 : vector<2x64xf32>
      %390 = vector.broadcast %216 : vector<1x64xf32> to vector<2x64xf32>
      %391 = arith.addf %389, %390 : vector<2x64xf32>
      %392 = arith.truncf %391 : vector<2x64xf32> to vector<2x64xbf16>
      %cst_174 = arith.constant dense<0.000000e+00> : vector<2x2048xf32>
      %393 = tpu.matmul %392, %218, %cst_174 {dimension_numbers = #tpu.dot_dimension_numbers<[1], [0], [0], [1], [0, 0, 1, 1], [], []>} : vector<2x64xbf16>, vector<64x2048xbf16>, vector<2x2048xf32> -> vector<2x2048xf32>
      %394 = vector.broadcast %220 : vector<1x2048xf32> to vector<2x2048xf32>
      %395 = arith.addf %393, %394 : vector<2x2048xf32>
      %cst_175 = arith.constant 0.000000e+00 : f32
      %396 = vector.broadcast %cst_175 : f32 to vector<2x2048xf32>
      %397 = arith.maximumf %395, %396 : vector<2x2048xf32>
      %398 = arith.truncf %397 : vector<2x2048xf32> to vector<2x2048xbf16>
      %cst_176 = arith.constant dense<0.000000e+00> : vector<2x64xf32>
      %399 = tpu.matmul %398, %222, %cst_176 {dimension_numbers = #tpu.dot_dimension_numbers<[1], [0], [0], [1], [0, 0, 1, 1], [], []>} : vector<2x2048xbf16>, vector<2048x64xbf16>, vector<2x64xf32> -> vector<2x64xf32>
      %400 = vector.broadcast %224 : vector<1x64xf32> to vector<2x64xf32>
      %401 = arith.addf %399, %400 : vector<2x64xf32>
      %402 = arith.addf %391, %401 : vector<2x64xf32>
      %cst_177 = arith.constant dense<0.000000e+00> : vector<2xf32>
      %403 = vector.multi_reduction <add>, %402, %cst_177 [1] : vector<2x64xf32> to vector<2xf32>
      %404 = vector.shape_cast %403 : vector<2xf32> to vector<2x1xf32>
      %cst_178 = arith.constant 6.400000e+01 : f32
      %405 = vector.broadcast %cst_178 : f32 to vector<2x1xf32>
      %406 = arith.divf %404, %405 : vector<2x1xf32>
      %407 = vector.broadcast %406 : vector<2x1xf32> to vector<2x64xf32>
      %408 = arith.subf %402, %407 : vector<2x64xf32>
      %409 = arith.mulf %408, %408 : vector<2x64xf32>
      %cst_179 = arith.constant dense<0.000000e+00> : vector<2xf32>
      %410 = vector.multi_reduction <add>, %409, %cst_179 [1] : vector<2x64xf32> to vector<2xf32>
      %411 = vector.shape_cast %410 : vector<2xf32> to vector<2x1xf32>
      %cst_180 = arith.constant 6.400000e+01 : f32
      %412 = vector.broadcast %cst_180 : f32 to vector<2x1xf32>
      %413 = arith.divf %411, %412 : vector<2x1xf32>
      %414 = vector.broadcast %406 : vector<2x1xf32> to vector<2x64xf32>
      %415 = arith.subf %402, %414 : vector<2x64xf32>
      %cst_181 = arith.constant 9.99999974E-6 : f32
      %416 = vector.broadcast %cst_181 : f32 to vector<2x1xf32>
      %417 = arith.addf %413, %416 : vector<2x1xf32>
      %418 = math.rsqrt %417 : vector<2x1xf32>
      %419 = vector.broadcast %418 : vector<2x1xf32> to vector<2x64xf32>
      %420 = arith.mulf %415, %419 : vector<2x64xf32>
      %421 = vector.broadcast %226 : vector<1x64xf32> to vector<2x64xf32>
      %422 = arith.mulf %420, %421 : vector<2x64xf32>
      %423 = vector.broadcast %228 : vector<1x64xf32> to vector<2x64xf32>
      %424 = arith.addf %422, %423 : vector<2x64xf32>
      %425 = vector.shape_cast %424 : vector<2x64xf32> to vector<1x2x64xf32>
      %c1_182 = arith.constant 1 : index
      %c0_183 = arith.constant 0 : index
      %c0_184 = arith.constant 0 : index
      %426 = vector.load %arg16[%c1_182, %c0_183, %c0_184] : memref<2x64x192xbf16, #tpu.memory_space<vmem>>, vector<1x64x192xbf16>
      %427 = vector.shape_cast %426 : vector<1x64x192xbf16> to vector<64x192xbf16>
      %c1_185 = arith.constant 1 : index
      %c0_186 = arith.constant 0 : index
      %c0_187 = arith.constant 0 : index
      %428 = vector.load %arg17[%c1_185, %c0_186, %c0_187] : memref<2x1x192xf32, #tpu.memory_space<vmem>>, vector<1x1x192xf32>
      %429 = vector.shape_cast %428 : vector<1x1x192xf32> to vector<1x192xf32>
      %c1_188 = arith.constant 1 : index
      %c0_189 = arith.constant 0 : index
      %c0_190 = arith.constant 0 : index
      %430 = vector.load %arg18[%c1_188, %c0_189, %c0_190] : memref<2x64x64xbf16, #tpu.memory_space<vmem>>, vector<1x64x64xbf16>
      %431 = vector.shape_cast %430 : vector<1x64x64xbf16> to vector<64x64xbf16>
      %c1_191 = arith.constant 1 : index
      %c0_192 = arith.constant 0 : index
      %c0_193 = arith.constant 0 : index
      %432 = vector.load %arg19[%c1_191, %c0_192, %c0_193] : memref<2x1x64xf32, #tpu.memory_space<vmem>>, vector<1x1x64xf32>
      %433 = vector.shape_cast %432 : vector<1x1x64xf32> to vector<1x64xf32>
      %c1_194 = arith.constant 1 : index
      %c0_195 = arith.constant 0 : index
      %c0_196 = arith.constant 0 : index
      %434 = vector.load %arg20[%c1_194, %c0_195, %c0_196] : memref<2x1x64xf32, #tpu.memory_space<vmem>>, vector<1x1x64xf32>
      %435 = vector.shape_cast %434 : vector<1x1x64xf32> to vector<1x64xf32>
      %c1_197 = arith.constant 1 : index
      %c0_198 = arith.constant 0 : index
      %c0_199 = arith.constant 0 : index
      %436 = vector.load %arg21[%c1_197, %c0_198, %c0_199] : memref<2x1x64xf32, #tpu.memory_space<vmem>>, vector<1x1x64xf32>
      %437 = vector.shape_cast %436 : vector<1x1x64xf32> to vector<1x64xf32>
      %c1_200 = arith.constant 1 : index
      %c0_201 = arith.constant 0 : index
      %c0_202 = arith.constant 0 : index
      %438 = vector.load %arg22[%c1_200, %c0_201, %c0_202] : memref<2x64x2048xbf16, #tpu.memory_space<vmem>>, vector<1x64x2048xbf16>
      %439 = vector.shape_cast %438 : vector<1x64x2048xbf16> to vector<64x2048xbf16>
      %c1_203 = arith.constant 1 : index
      %c0_204 = arith.constant 0 : index
      %c0_205 = arith.constant 0 : index
      %440 = vector.load %arg23[%c1_203, %c0_204, %c0_205] : memref<2x1x2048xf32, #tpu.memory_space<vmem>>, vector<1x1x2048xf32>
      %441 = vector.shape_cast %440 : vector<1x1x2048xf32> to vector<1x2048xf32>
      %c1_206 = arith.constant 1 : index
      %c0_207 = arith.constant 0 : index
      %c0_208 = arith.constant 0 : index
      %442 = vector.load %arg24[%c1_206, %c0_207, %c0_208] : memref<2x2048x64xbf16, #tpu.memory_space<vmem>>, vector<1x2048x64xbf16>
      %443 = vector.shape_cast %442 : vector<1x2048x64xbf16> to vector<2048x64xbf16>
      %c1_209 = arith.constant 1 : index
      %c0_210 = arith.constant 0 : index
      %c0_211 = arith.constant 0 : index
      %444 = vector.load %arg25[%c1_209, %c0_210, %c0_211] : memref<2x1x64xf32, #tpu.memory_space<vmem>>, vector<1x1x64xf32>
      %445 = vector.shape_cast %444 : vector<1x1x64xf32> to vector<1x64xf32>
      %c1_212 = arith.constant 1 : index
      %c0_213 = arith.constant 0 : index
      %c0_214 = arith.constant 0 : index
      %446 = vector.load %arg26[%c1_212, %c0_213, %c0_214] : memref<2x1x64xf32, #tpu.memory_space<vmem>>, vector<1x1x64xf32>
      %447 = vector.shape_cast %446 : vector<1x1x64xf32> to vector<1x64xf32>
      %c1_215 = arith.constant 1 : index
      %c0_216 = arith.constant 0 : index
      %c0_217 = arith.constant 0 : index
      %448 = vector.load %arg27[%c1_215, %c0_216, %c0_217] : memref<2x1x64xf32, #tpu.memory_space<vmem>>, vector<1x1x64xf32>
      %449 = vector.shape_cast %448 : vector<1x1x64xf32> to vector<1x64xf32>
      %450 = vector.shape_cast %425 : vector<1x2x64xf32> to vector<2x64xf32>
      %451 = arith.truncf %450 : vector<2x64xf32> to vector<2x64xbf16>
      %cst_218 = arith.constant dense<0.000000e+00> : vector<2x192xf32>
      %452 = tpu.matmul %451, %427, %cst_218 {dimension_numbers = #tpu.dot_dimension_numbers<[1], [0], [0], [1], [0, 0, 1, 1], [], []>} : vector<2x64xbf16>, vector<64x192xbf16>, vector<2x192xf32> -> vector<2x192xf32>
      %453 = vector.broadcast %429 : vector<1x192xf32> to vector<2x192xf32>
      %454 = arith.addf %452, %453 : vector<2x192xf32>
      %455 = vector.shape_cast %454 : vector<2x192xf32> to vector<1x2x192xf32>
      %456 = vector.extract_strided_slice %455 {offsets = [0, 0, 0], sizes = [1, 2, 8], strides = [1, 1, 1]} : vector<1x2x192xf32> to vector<1x2x8xf32>
      %457 = vector.extract_strided_slice %455 {offsets = [0, 0, 64], sizes = [1, 2, 8], strides = [1, 1, 1]} : vector<1x2x192xf32> to vector<1x2x8xf32>
      %458 = vector.extract_strided_slice %455 {offsets = [0, 0, 128], sizes = [1, 2, 8], strides = [1, 1, 1]} : vector<1x2x192xf32> to vector<1x2x8xf32>
      "tpu.trace_start"() <{level = 10 : i32, message = "bqd,bkd->bqk"}> : () -> ()
      %cst_219 = arith.constant dense<0.000000e+00> : vector<1x2x2xf32>
      %459 = tpu.matmul %456, %457, %cst_219 {dimension_numbers = #tpu.dot_dimension_numbers<[2], [2], [1], [1], [0, 0, 0, 1, 1, 1], [0], [0]>} : vector<1x2x8xf32>, vector<1x2x8xf32>, vector<1x2x2xf32> -> vector<1x2x2xf32>
      "tpu.trace_stop"() : () -> ()
      %cst_220 = arith.constant 0.353553385 : f32
      %460 = vector.broadcast %cst_220 : f32 to vector<1x2x2xf32>
      %461 = arith.mulf %459, %460 : vector<1x2x2xf32>
      %cst_221 = arith.constant dense<0xFF800000> : vector<1x2xf32>
      %462 = vector.multi_reduction <maximumf>, %461, %cst_221 [2] : vector<1x2x2xf32> to vector<1x2xf32>
      %463 = vector.shape_cast %462 : vector<1x2xf32> to vector<1x2x1xf32>
      %464 = vector.broadcast %463 : vector<1x2x1xf32> to vector<1x2x2xf32>
      %465 = arith.subf %461, %464 : vector<1x2x2xf32>
      %466 = math.exp %465 : vector<1x2x2xf32>
      %cst_222 = arith.constant dense<0.000000e+00> : vector<1x2xf32>
      %467 = vector.multi_reduction <add>, %466, %cst_222 [2] : vector<1x2x2xf32> to vector<1x2xf32>
      %468 = vector.shape_cast %467 : vector<1x2xf32> to vector<1x2x1xf32>
      %469 = vector.broadcast %468 : vector<1x2x1xf32> to vector<1x2x2xf32>
      %470 = arith.divf %466, %469 : vector<1x2x2xf32>
      "tpu.trace_start"() <{level = 10 : i32, message = "bqk,bkd->bqd"}> : () -> ()
      %cst_223 = arith.constant dense<0.000000e+00> : vector<1x2x8xf32>
      %471 = tpu.matmul %470, %458, %cst_223 {dimension_numbers = #tpu.dot_dimension_numbers<[2], [1], [1], [2], [0, 0, 0, 1, 1, 2], [0], [0]>} : vector<1x2x2xf32>, vector<1x2x8xf32>, vector<1x2x8xf32> -> vector<1x2x8xf32>
      "tpu.trace_stop"() : () -> ()
      %472 = vector.extract_strided_slice %455 {offsets = [0, 0, 8], sizes = [1, 2, 8], strides = [1, 1, 1]} : vector<1x2x192xf32> to vector<1x2x8xf32>
      %473 = vector.extract_strided_slice %455 {offsets = [0, 0, 72], sizes = [1, 2, 8], strides = [1, 1, 1]} : vector<1x2x192xf32> to vector<1x2x8xf32>
      %474 = vector.extract_strided_slice %455 {offsets = [0, 0, 136], sizes = [1, 2, 8], strides = [1, 1, 1]} : vector<1x2x192xf32> to vector<1x2x8xf32>
      "tpu.trace_start"() <{level = 10 : i32, message = "bqd,bkd->bqk"}> : () -> ()
      %cst_224 = arith.constant dense<0.000000e+00> : vector<1x2x2xf32>
      %475 = tpu.matmul %472, %473, %cst_224 {dimension_numbers = #tpu.dot_dimension_numbers<[2], [2], [1], [1], [0, 0, 0, 1, 1, 1], [0], [0]>} : vector<1x2x8xf32>, vector<1x2x8xf32>, vector<1x2x2xf32> -> vector<1x2x2xf32>
      "tpu.trace_stop"() : () -> ()
      %cst_225 = arith.constant 0.353553385 : f32
      %476 = vector.broadcast %cst_225 : f32 to vector<1x2x2xf32>
      %477 = arith.mulf %475, %476 : vector<1x2x2xf32>
      %cst_226 = arith.constant dense<0xFF800000> : vector<1x2xf32>
      %478 = vector.multi_reduction <maximumf>, %477, %cst_226 [2] : vector<1x2x2xf32> to vector<1x2xf32>
      %479 = vector.shape_cast %478 : vector<1x2xf32> to vector<1x2x1xf32>
      %480 = vector.broadcast %479 : vector<1x2x1xf32> to vector<1x2x2xf32>
      %481 = arith.subf %477, %480 : vector<1x2x2xf32>
      %482 = math.exp %481 : vector<1x2x2xf32>
      %cst_227 = arith.constant dense<0.000000e+00> : vector<1x2xf32>
      %483 = vector.multi_reduction <add>, %482, %cst_227 [2] : vector<1x2x2xf32> to vector<1x2xf32>
      %484 = vector.shape_cast %483 : vector<1x2xf32> to vector<1x2x1xf32>
      %485 = vector.broadcast %484 : vector<1x2x1xf32> to vector<1x2x2xf32>
      %486 = arith.divf %482, %485 : vector<1x2x2xf32>
      "tpu.trace_start"() <{level = 10 : i32, message = "bqk,bkd->bqd"}> : () -> ()
      %cst_228 = arith.constant dense<0.000000e+00> : vector<1x2x8xf32>
      %487 = tpu.matmul %486, %474, %cst_228 {dimension_numbers = #tpu.dot_dimension_numbers<[2], [1], [1], [2], [0, 0, 0, 1, 1, 2], [0], [0]>} : vector<1x2x2xf32>, vector<1x2x8xf32>, vector<1x2x8xf32> -> vector<1x2x8xf32>
      "tpu.trace_stop"() : () -> ()
      %488 = vector.extract_strided_slice %455 {offsets = [0, 0, 16], sizes = [1, 2, 8], strides = [1, 1, 1]} : vector<1x2x192xf32> to vector<1x2x8xf32>
      %489 = vector.extract_strided_slice %455 {offsets = [0, 0, 80], sizes = [1, 2, 8], strides = [1, 1, 1]} : vector<1x2x192xf32> to vector<1x2x8xf32>
      %490 = vector.extract_strided_slice %455 {offsets = [0, 0, 144], sizes = [1, 2, 8], strides = [1, 1, 1]} : vector<1x2x192xf32> to vector<1x2x8xf32>
      "tpu.trace_start"() <{level = 10 : i32, message = "bqd,bkd->bqk"}> : () -> ()
      %cst_229 = arith.constant dense<0.000000e+00> : vector<1x2x2xf32>
      %491 = tpu.matmul %488, %489, %cst_229 {dimension_numbers = #tpu.dot_dimension_numbers<[2], [2], [1], [1], [0, 0, 0, 1, 1, 1], [0], [0]>} : vector<1x2x8xf32>, vector<1x2x8xf32>, vector<1x2x2xf32> -> vector<1x2x2xf32>
      "tpu.trace_stop"() : () -> ()
      %cst_230 = arith.constant 0.353553385 : f32
      %492 = vector.broadcast %cst_230 : f32 to vector<1x2x2xf32>
      %493 = arith.mulf %491, %492 : vector<1x2x2xf32>
      %cst_231 = arith.constant dense<0xFF800000> : vector<1x2xf32>
      %494 = vector.multi_reduction <maximumf>, %493, %cst_231 [2] : vector<1x2x2xf32> to vector<1x2xf32>
      %495 = vector.shape_cast %494 : vector<1x2xf32> to vector<1x2x1xf32>
      %496 = vector.broadcast %495 : vector<1x2x1xf32> to vector<1x2x2xf32>
      %497 = arith.subf %493, %496 : vector<1x2x2xf32>
      %498 = math.exp %497 : vector<1x2x2xf32>
      %cst_232 = arith.constant dense<0.000000e+00> : vector<1x2xf32>
      %499 = vector.multi_reduction <add>, %498, %cst_232 [2] : vector<1x2x2xf32> to vector<1x2xf32>
      %500 = vector.shape_cast %499 : vector<1x2xf32> to vector<1x2x1xf32>
      %501 = vector.broadcast %500 : vector<1x2x1xf32> to vector<1x2x2xf32>
      %502 = arith.divf %498, %501 : vector<1x2x2xf32>
      "tpu.trace_start"() <{level = 10 : i32, message = "bqk,bkd->bqd"}> : () -> ()
      %cst_233 = arith.constant dense<0.000000e+00> : vector<1x2x8xf32>
      %503 = tpu.matmul %502, %490, %cst_233 {dimension_numbers = #tpu.dot_dimension_numbers<[2], [1], [1], [2], [0, 0, 0, 1, 1, 2], [0], [0]>} : vector<1x2x2xf32>, vector<1x2x8xf32>, vector<1x2x8xf32> -> vector<1x2x8xf32>
      "tpu.trace_stop"() : () -> ()
      %504 = vector.extract_strided_slice %455 {offsets = [0, 0, 24], sizes = [1, 2, 8], strides = [1, 1, 1]} : vector<1x2x192xf32> to vector<1x2x8xf32>
      %505 = vector.extract_strided_slice %455 {offsets = [0, 0, 88], sizes = [1, 2, 8], strides = [1, 1, 1]} : vector<1x2x192xf32> to vector<1x2x8xf32>
      %506 = vector.extract_strided_slice %455 {offsets = [0, 0, 152], sizes = [1, 2, 8], strides = [1, 1, 1]} : vector<1x2x192xf32> to vector<1x2x8xf32>
      "tpu.trace_start"() <{level = 10 : i32, message = "bqd,bkd->bqk"}> : () -> ()
      %cst_234 = arith.constant dense<0.000000e+00> : vector<1x2x2xf32>
      %507 = tpu.matmul %504, %505, %cst_234 {dimension_numbers = #tpu.dot_dimension_numbers<[2], [2], [1], [1], [0, 0, 0, 1, 1, 1], [0], [0]>} : vector<1x2x8xf32>, vector<1x2x8xf32>, vector<1x2x2xf32> -> vector<1x2x2xf32>
      "tpu.trace_stop"() : () -> ()
      %cst_235 = arith.constant 0.353553385 : f32
      %508 = vector.broadcast %cst_235 : f32 to vector<1x2x2xf32>
      %509 = arith.mulf %507, %508 : vector<1x2x2xf32>
      %cst_236 = arith.constant dense<0xFF800000> : vector<1x2xf32>
      %510 = vector.multi_reduction <maximumf>, %509, %cst_236 [2] : vector<1x2x2xf32> to vector<1x2xf32>
      %511 = vector.shape_cast %510 : vector<1x2xf32> to vector<1x2x1xf32>
      %512 = vector.broadcast %511 : vector<1x2x1xf32> to vector<1x2x2xf32>
      %513 = arith.subf %509, %512 : vector<1x2x2xf32>
      %514 = math.exp %513 : vector<1x2x2xf32>
      %cst_237 = arith.constant dense<0.000000e+00> : vector<1x2xf32>
      %515 = vector.multi_reduction <add>, %514, %cst_237 [2] : vector<1x2x2xf32> to vector<1x2xf32>
      %516 = vector.shape_cast %515 : vector<1x2xf32> to vector<1x2x1xf32>
      %517 = vector.broadcast %516 : vector<1x2x1xf32> to vector<1x2x2xf32>
      %518 = arith.divf %514, %517 : vector<1x2x2xf32>
      "tpu.trace_start"() <{level = 10 : i32, message = "bqk,bkd->bqd"}> : () -> ()
      %cst_238 = arith.constant dense<0.000000e+00> : vector<1x2x8xf32>
      %519 = tpu.matmul %518, %506, %cst_238 {dimension_numbers = #tpu.dot_dimension_numbers<[2], [1], [1], [2], [0, 0, 0, 1, 1, 2], [0], [0]>} : vector<1x2x2xf32>, vector<1x2x8xf32>, vector<1x2x8xf32> -> vector<1x2x8xf32>
      "tpu.trace_stop"() : () -> ()
      %520 = vector.extract_strided_slice %455 {offsets = [0, 0, 32], sizes = [1, 2, 8], strides = [1, 1, 1]} : vector<1x2x192xf32> to vector<1x2x8xf32>
      %521 = vector.extract_strided_slice %455 {offsets = [0, 0, 96], sizes = [1, 2, 8], strides = [1, 1, 1]} : vector<1x2x192xf32> to vector<1x2x8xf32>
      %522 = vector.extract_strided_slice %455 {offsets = [0, 0, 160], sizes = [1, 2, 8], strides = [1, 1, 1]} : vector<1x2x192xf32> to vector<1x2x8xf32>
      "tpu.trace_start"() <{level = 10 : i32, message = "bqd,bkd->bqk"}> : () -> ()
      %cst_239 = arith.constant dense<0.000000e+00> : vector<1x2x2xf32>
      %523 = tpu.matmul %520, %521, %cst_239 {dimension_numbers = #tpu.dot_dimension_numbers<[2], [2], [1], [1], [0, 0, 0, 1, 1, 1], [0], [0]>} : vector<1x2x8xf32>, vector<1x2x8xf32>, vector<1x2x2xf32> -> vector<1x2x2xf32>
      "tpu.trace_stop"() : () -> ()
      %cst_240 = arith.constant 0.353553385 : f32
      %524 = vector.broadcast %cst_240 : f32 to vector<1x2x2xf32>
      %525 = arith.mulf %523, %524 : vector<1x2x2xf32>
      %cst_241 = arith.constant dense<0xFF800000> : vector<1x2xf32>
      %526 = vector.multi_reduction <maximumf>, %525, %cst_241 [2] : vector<1x2x2xf32> to vector<1x2xf32>
      %527 = vector.shape_cast %526 : vector<1x2xf32> to vector<1x2x1xf32>
      %528 = vector.broadcast %527 : vector<1x2x1xf32> to vector<1x2x2xf32>
      %529 = arith.subf %525, %528 : vector<1x2x2xf32>
      %530 = math.exp %529 : vector<1x2x2xf32>
      %cst_242 = arith.constant dense<0.000000e+00> : vector<1x2xf32>
      %531 = vector.multi_reduction <add>, %530, %cst_242 [2] : vector<1x2x2xf32> to vector<1x2xf32>
      %532 = vector.shape_cast %531 : vector<1x2xf32> to vector<1x2x1xf32>
      %533 = vector.broadcast %532 : vector<1x2x1xf32> to vector<1x2x2xf32>
      %534 = arith.divf %530, %533 : vector<1x2x2xf32>
      "tpu.trace_start"() <{level = 10 : i32, message = "bqk,bkd->bqd"}> : () -> ()
      %cst_243 = arith.constant dense<0.000000e+00> : vector<1x2x8xf32>
      %535 = tpu.matmul %534, %522, %cst_243 {dimension_numbers = #tpu.dot_dimension_numbers<[2], [1], [1], [2], [0, 0, 0, 1, 1, 2], [0], [0]>} : vector<1x2x2xf32>, vector<1x2x8xf32>, vector<1x2x8xf32> -> vector<1x2x8xf32>
      "tpu.trace_stop"() : () -> ()
      %536 = vector.extract_strided_slice %455 {offsets = [0, 0, 40], sizes = [1, 2, 8], strides = [1, 1, 1]} : vector<1x2x192xf32> to vector<1x2x8xf32>
      %537 = vector.extract_strided_slice %455 {offsets = [0, 0, 104], sizes = [1, 2, 8], strides = [1, 1, 1]} : vector<1x2x192xf32> to vector<1x2x8xf32>
      %538 = vector.extract_strided_slice %455 {offsets = [0, 0, 168], sizes = [1, 2, 8], strides = [1, 1, 1]} : vector<1x2x192xf32> to vector<1x2x8xf32>
      "tpu.trace_start"() <{level = 10 : i32, message = "bqd,bkd->bqk"}> : () -> ()
      %cst_244 = arith.constant dense<0.000000e+00> : vector<1x2x2xf32>
      %539 = tpu.matmul %536, %537, %cst_244 {dimension_numbers = #tpu.dot_dimension_numbers<[2], [2], [1], [1], [0, 0, 0, 1, 1, 1], [0], [0]>} : vector<1x2x8xf32>, vector<1x2x8xf32>, vector<1x2x2xf32> -> vector<1x2x2xf32>
      "tpu.trace_stop"() : () -> ()
      %cst_245 = arith.constant 0.353553385 : f32
      %540 = vector.broadcast %cst_245 : f32 to vector<1x2x2xf32>
      %541 = arith.mulf %539, %540 : vector<1x2x2xf32>
      %cst_246 = arith.constant dense<0xFF800000> : vector<1x2xf32>
      %542 = vector.multi_reduction <maximumf>, %541, %cst_246 [2] : vector<1x2x2xf32> to vector<1x2xf32>
      %543 = vector.shape_cast %542 : vector<1x2xf32> to vector<1x2x1xf32>
      %544 = vector.broadcast %543 : vector<1x2x1xf32> to vector<1x2x2xf32>
      %545 = arith.subf %541, %544 : vector<1x2x2xf32>
      %546 = math.exp %545 : vector<1x2x2xf32>
      %cst_247 = arith.constant dense<0.000000e+00> : vector<1x2xf32>
      %547 = vector.multi_reduction <add>, %546, %cst_247 [2] : vector<1x2x2xf32> to vector<1x2xf32>
      %548 = vector.shape_cast %547 : vector<1x2xf32> to vector<1x2x1xf32>
      %549 = vector.broadcast %548 : vector<1x2x1xf32> to vector<1x2x2xf32>
      %550 = arith.divf %546, %549 : vector<1x2x2xf32>
      "tpu.trace_start"() <{level = 10 : i32, message = "bqk,bkd->bqd"}> : () -> ()
      %cst_248 = arith.constant dense<0.000000e+00> : vector<1x2x8xf32>
      %551 = tpu.matmul %550, %538, %cst_248 {dimension_numbers = #tpu.dot_dimension_numbers<[2], [1], [1], [2], [0, 0, 0, 1, 1, 2], [0], [0]>} : vector<1x2x2xf32>, vector<1x2x8xf32>, vector<1x2x8xf32> -> vector<1x2x8xf32>
      "tpu.trace_stop"() : () -> ()
      %552 = vector.extract_strided_slice %455 {offsets = [0, 0, 48], sizes = [1, 2, 8], strides = [1, 1, 1]} : vector<1x2x192xf32> to vector<1x2x8xf32>
      %553 = vector.extract_strided_slice %455 {offsets = [0, 0, 112], sizes = [1, 2, 8], strides = [1, 1, 1]} : vector<1x2x192xf32> to vector<1x2x8xf32>
      %554 = vector.extract_strided_slice %455 {offsets = [0, 0, 176], sizes = [1, 2, 8], strides = [1, 1, 1]} : vector<1x2x192xf32> to vector<1x2x8xf32>
      "tpu.trace_start"() <{level = 10 : i32, message = "bqd,bkd->bqk"}> : () -> ()
      %cst_249 = arith.constant dense<0.000000e+00> : vector<1x2x2xf32>
      %555 = tpu.matmul %552, %553, %cst_249 {dimension_numbers = #tpu.dot_dimension_numbers<[2], [2], [1], [1], [0, 0, 0, 1, 1, 1], [0], [0]>} : vector<1x2x8xf32>, vector<1x2x8xf32>, vector<1x2x2xf32> -> vector<1x2x2xf32>
      "tpu.trace_stop"() : () -> ()
      %cst_250 = arith.constant 0.353553385 : f32
      %556 = vector.broadcast %cst_250 : f32 to vector<1x2x2xf32>
      %557 = arith.mulf %555, %556 : vector<1x2x2xf32>
      %cst_251 = arith.constant dense<0xFF800000> : vector<1x2xf32>
      %558 = vector.multi_reduction <maximumf>, %557, %cst_251 [2] : vector<1x2x2xf32> to vector<1x2xf32>
      %559 = vector.shape_cast %558 : vector<1x2xf32> to vector<1x2x1xf32>
      %560 = vector.broadcast %559 : vector<1x2x1xf32> to vector<1x2x2xf32>
      %561 = arith.subf %557, %560 : vector<1x2x2xf32>
      %562 = math.exp %561 : vector<1x2x2xf32>
      %cst_252 = arith.constant dense<0.000000e+00> : vector<1x2xf32>
      %563 = vector.multi_reduction <add>, %562, %cst_252 [2] : vector<1x2x2xf32> to vector<1x2xf32>
      %564 = vector.shape_cast %563 : vector<1x2xf32> to vector<1x2x1xf32>
      %565 = vector.broadcast %564 : vector<1x2x1xf32> to vector<1x2x2xf32>
      %566 = arith.divf %562, %565 : vector<1x2x2xf32>
      "tpu.trace_start"() <{level = 10 : i32, message = "bqk,bkd->bqd"}> : () -> ()
      %cst_253 = arith.constant dense<0.000000e+00> : vector<1x2x8xf32>
      %567 = tpu.matmul %566, %554, %cst_253 {dimension_numbers = #tpu.dot_dimension_numbers<[2], [1], [1], [2], [0, 0, 0, 1, 1, 2], [0], [0]>} : vector<1x2x2xf32>, vector<1x2x8xf32>, vector<1x2x8xf32> -> vector<1x2x8xf32>
      "tpu.trace_stop"() : () -> ()
      %568 = vector.extract_strided_slice %455 {offsets = [0, 0, 56], sizes = [1, 2, 8], strides = [1, 1, 1]} : vector<1x2x192xf32> to vector<1x2x8xf32>
      %569 = vector.extract_strided_slice %455 {offsets = [0, 0, 120], sizes = [1, 2, 8], strides = [1, 1, 1]} : vector<1x2x192xf32> to vector<1x2x8xf32>
      %570 = vector.extract_strided_slice %455 {offsets = [0, 0, 184], sizes = [1, 2, 8], strides = [1, 1, 1]} : vector<1x2x192xf32> to vector<1x2x8xf32>
      "tpu.trace_start"() <{level = 10 : i32, message = "bqd,bkd->bqk"}> : () -> ()
      %cst_254 = arith.constant dense<0.000000e+00> : vector<1x2x2xf32>
      %571 = tpu.matmul %568, %569, %cst_254 {dimension_numbers = #tpu.dot_dimension_numbers<[2], [2], [1], [1], [0, 0, 0, 1, 1, 1], [0], [0]>} : vector<1x2x8xf32>, vector<1x2x8xf32>, vector<1x2x2xf32> -> vector<1x2x2xf32>
      "tpu.trace_stop"() : () -> ()
      %cst_255 = arith.constant 0.353553385 : f32
      %572 = vector.broadcast %cst_255 : f32 to vector<1x2x2xf32>
      %573 = arith.mulf %571, %572 : vector<1x2x2xf32>
      %cst_256 = arith.constant dense<0xFF800000> : vector<1x2xf32>
      %574 = vector.multi_reduction <maximumf>, %573, %cst_256 [2] : vector<1x2x2xf32> to vector<1x2xf32>
      %575 = vector.shape_cast %574 : vector<1x2xf32> to vector<1x2x1xf32>
      %576 = vector.broadcast %575 : vector<1x2x1xf32> to vector<1x2x2xf32>
      %577 = arith.subf %573, %576 : vector<1x2x2xf32>
      %578 = math.exp %577 : vector<1x2x2xf32>
      %cst_257 = arith.constant dense<0.000000e+00> : vector<1x2xf32>
      %579 = vector.multi_reduction <add>, %578, %cst_257 [2] : vector<1x2x2xf32> to vector<1x2xf32>
      %580 = vector.shape_cast %579 : vector<1x2xf32> to vector<1x2x1xf32>
      %581 = vector.broadcast %580 : vector<1x2x1xf32> to vector<1x2x2xf32>
      %582 = arith.divf %578, %581 : vector<1x2x2xf32>
      "tpu.trace_start"() <{level = 10 : i32, message = "bqk,bkd->bqd"}> : () -> ()
      %cst_258 = arith.constant dense<0.000000e+00> : vector<1x2x8xf32>
      %583 = tpu.matmul %582, %570, %cst_258 {dimension_numbers = #tpu.dot_dimension_numbers<[2], [1], [1], [2], [0, 0, 0, 1, 1, 2], [0], [0]>} : vector<1x2x2xf32>, vector<1x2x8xf32>, vector<1x2x8xf32> -> vector<1x2x8xf32>
      "tpu.trace_stop"() : () -> ()
      %584 = tpu.concatenate %471, %487, %503, %519, %535, %551, %567, %583 in 2 : vector<1x2x8xf32>, vector<1x2x8xf32>, vector<1x2x8xf32>, vector<1x2x8xf32>, vector<1x2x8xf32>, vector<1x2x8xf32>, vector<1x2x8xf32>, vector<1x2x8xf32> -> vector<1x2x64xf32>
      %585 = vector.shape_cast %584 : vector<1x2x64xf32> to vector<2x64xf32>
      %586 = arith.truncf %585 : vector<2x64xf32> to vector<2x64xbf16>
      %cst_259 = arith.constant dense<0.000000e+00> : vector<2x64xf32>
      %587 = tpu.matmul %586, %431, %cst_259 {dimension_numbers = #tpu.dot_dimension_numbers<[1], [0], [0], [1], [0, 0, 1, 1], [], []>} : vector<2x64xbf16>, vector<64x64xbf16>, vector<2x64xf32> -> vector<2x64xf32>
      %588 = vector.broadcast %433 : vector<1x64xf32> to vector<2x64xf32>
      %589 = arith.addf %587, %588 : vector<2x64xf32>
      %590 = arith.addf %450, %589 : vector<2x64xf32>
      %cst_260 = arith.constant dense<0.000000e+00> : vector<2xf32>
      %591 = vector.multi_reduction <add>, %590, %cst_260 [1] : vector<2x64xf32> to vector<2xf32>
      %592 = vector.shape_cast %591 : vector<2xf32> to vector<2x1xf32>
      %cst_261 = arith.constant 6.400000e+01 : f32
      %593 = vector.broadcast %cst_261 : f32 to vector<2x1xf32>
      %594 = arith.divf %592, %593 : vector<2x1xf32>
      %595 = vector.broadcast %594 : vector<2x1xf32> to vector<2x64xf32>
      %596 = arith.subf %590, %595 : vector<2x64xf32>
      %597 = arith.mulf %596, %596 : vector<2x64xf32>
      %cst_262 = arith.constant dense<0.000000e+00> : vector<2xf32>
      %598 = vector.multi_reduction <add>, %597, %cst_262 [1] : vector<2x64xf32> to vector<2xf32>
      %599 = vector.shape_cast %598 : vector<2xf32> to vector<2x1xf32>
      %cst_263 = arith.constant 6.400000e+01 : f32
      %600 = vector.broadcast %cst_263 : f32 to vector<2x1xf32>
      %601 = arith.divf %599, %600 : vector<2x1xf32>
      %602 = vector.broadcast %594 : vector<2x1xf32> to vector<2x64xf32>
      %603 = arith.subf %590, %602 : vector<2x64xf32>
      %cst_264 = arith.constant 9.99999974E-6 : f32
      %604 = vector.broadcast %cst_264 : f32 to vector<2x1xf32>
      %605 = arith.addf %601, %604 : vector<2x1xf32>
      %606 = math.rsqrt %605 : vector<2x1xf32>
      %607 = vector.broadcast %606 : vector<2x1xf32> to vector<2x64xf32>
      %608 = arith.mulf %603, %607 : vector<2x64xf32>
      %609 = vector.broadcast %435 : vector<1x64xf32> to vector<2x64xf32>
      %610 = arith.mulf %608, %609 : vector<2x64xf32>
      %611 = vector.broadcast %437 : vector<1x64xf32> to vector<2x64xf32>
      %612 = arith.addf %610, %611 : vector<2x64xf32>
      %613 = arith.truncf %612 : vector<2x64xf32> to vector<2x64xbf16>
      %cst_265 = arith.constant dense<0.000000e+00> : vector<2x2048xf32>
      %614 = tpu.matmul %613, %439, %cst_265 {dimension_numbers = #tpu.dot_dimension_numbers<[1], [0], [0], [1], [0, 0, 1, 1], [], []>} : vector<2x64xbf16>, vector<64x2048xbf16>, vector<2x2048xf32> -> vector<2x2048xf32>
      %615 = vector.broadcast %441 : vector<1x2048xf32> to vector<2x2048xf32>
      %616 = arith.addf %614, %615 : vector<2x2048xf32>
      %cst_266 = arith.constant 0.000000e+00 : f32
      %617 = vector.broadcast %cst_266 : f32 to vector<2x2048xf32>
      %618 = arith.maximumf %616, %617 : vector<2x2048xf32>
      %619 = arith.truncf %618 : vector<2x2048xf32> to vector<2x2048xbf16>
      %cst_267 = arith.constant dense<0.000000e+00> : vector<2x64xf32>
      %620 = tpu.matmul %619, %443, %cst_267 {dimension_numbers = #tpu.dot_dimension_numbers<[1], [0], [0], [1], [0, 0, 1, 1], [], []>} : vector<2x2048xbf16>, vector<2048x64xbf16>, vector<2x64xf32> -> vector<2x64xf32>
      %621 = vector.broadcast %445 : vector<1x64xf32> to vector<2x64xf32>
      %622 = arith.addf %620, %621 : vector<2x64xf32>
      %623 = arith.addf %612, %622 : vector<2x64xf32>
      %cst_268 = arith.constant dense<0.000000e+00> : vector<2xf32>
      %624 = vector.multi_reduction <add>, %623, %cst_268 [1] : vector<2x64xf32> to vector<2xf32>
      %625 = vector.shape_cast %624 : vector<2xf32> to vector<2x1xf32>
      %cst_269 = arith.constant 6.400000e+01 : f32
      %626 = vector.broadcast %cst_269 : f32 to vector<2x1xf32>
      %627 = arith.divf %625, %626 : vector<2x1xf32>
      %628 = vector.broadcast %627 : vector<2x1xf32> to vector<2x64xf32>
      %629 = arith.subf %623, %628 : vector<2x64xf32>
      %630 = arith.mulf %629, %629 : vector<2x64xf32>
      %cst_270 = arith.constant dense<0.000000e+00> : vector<2xf32>
      %631 = vector.multi_reduction <add>, %630, %cst_270 [1] : vector<2x64xf32> to vector<2xf32>
      %632 = vector.shape_cast %631 : vector<2xf32> to vector<2x1xf32>
      %cst_271 = arith.constant 6.400000e+01 : f32
      %633 = vector.broadcast %cst_271 : f32 to vector<2x1xf32>
      %634 = arith.divf %632, %633 : vector<2x1xf32>
      %635 = vector.broadcast %627 : vector<2x1xf32> to vector<2x64xf32>
      %636 = arith.subf %623, %635 : vector<2x64xf32>
      %cst_272 = arith.constant 9.99999974E-6 : f32
      %637 = vector.broadcast %cst_272 : f32 to vector<2x1xf32>
      %638 = arith.addf %634, %637 : vector<2x1xf32>
      %639 = math.rsqrt %638 : vector<2x1xf32>
      %640 = vector.broadcast %639 : vector<2x1xf32> to vector<2x64xf32>
      %641 = arith.mulf %636, %640 : vector<2x64xf32>
      %642 = vector.broadcast %447 : vector<1x64xf32> to vector<2x64xf32>
      %643 = arith.mulf %641, %642 : vector<2x64xf32>
      %644 = vector.broadcast %449 : vector<1x64xf32> to vector<2x64xf32>
      %645 = arith.addf %643, %644 : vector<2x64xf32>
      %646 = vector.shape_cast %645 : vector<2x64xf32> to vector<1x2x64xf32>
      %647 = vector.shape_cast %646 : vector<1x2x64xf32> to vector<2x64xf32>
      %c0_273 = arith.constant 0 : index
      %c0_274 = arith.constant 0 : index
      %648 = vector.load %arg28[%c0_273, %c0_274] : memref<64x64xbf16, #tpu.memory_space<vmem>>, vector<64x64xbf16>
      %c0_275 = arith.constant 0 : index
      %c0_276 = arith.constant 0 : index
      %649 = vector.load %arg29[%c0_275, %c0_276] : memref<1x64xf32, #tpu.memory_space<vmem>>, vector<1x64xf32>
      %c0_277 = arith.constant 0 : index
      %c0_278 = arith.constant 0 : index
      %650 = vector.load %arg30[%c0_277, %c0_278] : memref<1x64xf32, #tpu.memory_space<vmem>>, vector<1x64xf32>
      %c0_279 = arith.constant 0 : index
      %c0_280 = arith.constant 0 : index
      %651 = vector.load %arg31[%c0_279, %c0_280] : memref<1x64xf32, #tpu.memory_space<vmem>>, vector<1x64xf32>
      %c0_281 = arith.constant 0 : index
      %c0_282 = arith.constant 0 : index
      %652 = vector.load %arg32[%c0_281, %c0_282] : memref<64x32xbf16, #tpu.memory_space<vmem>>, vector<64x32xbf16>
      %c0_283 = arith.constant 0 : index
      %c0_284 = arith.constant 0 : index
      %653 = vector.load %arg33[%c0_283, %c0_284] : memref<1x32xf32, #tpu.memory_space<vmem>>, vector<1x32xf32>
      %c0_285 = arith.constant 0 : index
      %c0_286 = arith.constant 0 : index
      %654 = vector.load %arg34[%c0_285, %c0_286] : memref<1x32xf32, #tpu.memory_space<vmem>>, vector<1x32xf32>
      %c0_287 = arith.constant 0 : index
      %c0_288 = arith.constant 0 : index
      %655 = vector.load %arg35[%c0_287, %c0_288] : memref<1x32xf32, #tpu.memory_space<vmem>>, vector<1x32xf32>
      %c0_289 = arith.constant 0 : index
      %c0_290 = arith.constant 0 : index
      %656 = vector.load %arg36[%c0_289, %c0_290] : memref<32x16xbf16, #tpu.memory_space<vmem>>, vector<32x16xbf16>
      %c0_291 = arith.constant 0 : index
      %c0_292 = arith.constant 0 : index
      %657 = vector.load %arg37[%c0_291, %c0_292] : memref<1x16xf32, #tpu.memory_space<vmem>>, vector<1x16xf32>
      %c0_293 = arith.constant 0 : index
      %c0_294 = arith.constant 0 : index
      %658 = vector.load %arg38[%c0_293, %c0_294] : memref<16x1xbf16, #tpu.memory_space<vmem>>, vector<16x1xbf16>
      %c0_295 = arith.constant 0 : index
      %c0_296 = arith.constant 0 : index
      %659 = vector.load %arg39[%c0_295, %c0_296] : memref<1x1xf32, #tpu.memory_space<vmem>>, vector<1x1xf32>
      %660 = arith.truncf %647 : vector<2x64xf32> to vector<2x64xbf16>
      %cst_297 = arith.constant dense<0.000000e+00> : vector<2x64xf32>
      %661 = tpu.matmul %660, %648, %cst_297 {dimension_numbers = #tpu.dot_dimension_numbers<[1], [0], [0], [1], [0, 0, 1, 1], [], []>} : vector<2x64xbf16>, vector<64x64xbf16>, vector<2x64xf32> -> vector<2x64xf32>
      %662 = vector.broadcast %649 : vector<1x64xf32> to vector<2x64xf32>
      %663 = arith.addf %661, %662 : vector<2x64xf32>
      %cst_298 = arith.constant dense<0.000000e+00> : vector<2xf32>
      %664 = vector.multi_reduction <add>, %663, %cst_298 [1] : vector<2x64xf32> to vector<2xf32>
      %665 = vector.shape_cast %664 : vector<2xf32> to vector<2x1xf32>
      %cst_299 = arith.constant 6.400000e+01 : f32
      %666 = vector.broadcast %cst_299 : f32 to vector<2x1xf32>
      %667 = arith.divf %665, %666 : vector<2x1xf32>
      %668 = vector.broadcast %667 : vector<2x1xf32> to vector<2x64xf32>
      %669 = arith.subf %663, %668 : vector<2x64xf32>
      %670 = arith.mulf %669, %669 : vector<2x64xf32>
      %cst_300 = arith.constant dense<0.000000e+00> : vector<2xf32>
      %671 = vector.multi_reduction <add>, %670, %cst_300 [1] : vector<2x64xf32> to vector<2xf32>
      %672 = vector.shape_cast %671 : vector<2xf32> to vector<2x1xf32>
      %cst_301 = arith.constant 6.400000e+01 : f32
      %673 = vector.broadcast %cst_301 : f32 to vector<2x1xf32>
      %674 = arith.divf %672, %673 : vector<2x1xf32>
      %675 = vector.broadcast %667 : vector<2x1xf32> to vector<2x64xf32>
      %676 = arith.subf %663, %675 : vector<2x64xf32>
      %cst_302 = arith.constant 9.99999974E-6 : f32
      %677 = vector.broadcast %cst_302 : f32 to vector<2x1xf32>
      %678 = arith.addf %674, %677 : vector<2x1xf32>
      %679 = math.rsqrt %678 : vector<2x1xf32>
      %680 = vector.broadcast %679 : vector<2x1xf32> to vector<2x64xf32>
      %681 = arith.mulf %676, %680 : vector<2x64xf32>
      %682 = vector.broadcast %650 : vector<1x64xf32> to vector<2x64xf32>
      %683 = arith.mulf %681, %682 : vector<2x64xf32>
      %684 = vector.broadcast %651 : vector<1x64xf32> to vector<2x64xf32>
      %685 = arith.addf %683, %684 : vector<2x64xf32>
      %686 = arith.mulf %685, %685 : vector<2x64xf32>
      %687 = arith.mulf %685, %686 : vector<2x64xf32>
      %cst_303 = arith.constant 4.471500e-02 : f32
      %688 = vector.broadcast %cst_303 : f32 to vector<2x64xf32>
      %689 = arith.mulf %688, %687 : vector<2x64xf32>
      %690 = arith.addf %685, %689 : vector<2x64xf32>
      %cst_304 = arith.constant 0.797884583 : f32
      %691 = vector.broadcast %cst_304 : f32 to vector<2x64xf32>
      %692 = arith.mulf %691, %690 : vector<2x64xf32>
      %693 = math.tanh %692 : vector<2x64xf32>
      %cst_305 = arith.constant 1.000000e+00 : f32
      %694 = vector.broadcast %cst_305 : f32 to vector<2x64xf32>
      %695 = arith.addf %694, %693 : vector<2x64xf32>
      %cst_306 = arith.constant 5.000000e-01 : f32
      %696 = vector.broadcast %cst_306 : f32 to vector<2x64xf32>
      %697 = arith.mulf %696, %695 : vector<2x64xf32>
      %698 = arith.mulf %685, %697 : vector<2x64xf32>
      %699 = arith.truncf %698 : vector<2x64xf32> to vector<2x64xbf16>
      %cst_307 = arith.constant dense<0.000000e+00> : vector<2x32xf32>
      %700 = tpu.matmul %699, %652, %cst_307 {dimension_numbers = #tpu.dot_dimension_numbers<[1], [0], [0], [1], [0, 0, 1, 1], [], []>} : vector<2x64xbf16>, vector<64x32xbf16>, vector<2x32xf32> -> vector<2x32xf32>
      %701 = vector.broadcast %653 : vector<1x32xf32> to vector<2x32xf32>
      %702 = arith.addf %700, %701 : vector<2x32xf32>
      %cst_308 = arith.constant dense<0.000000e+00> : vector<2xf32>
      %703 = vector.multi_reduction <add>, %702, %cst_308 [1] : vector<2x32xf32> to vector<2xf32>
      %704 = vector.shape_cast %703 : vector<2xf32> to vector<2x1xf32>
      %cst_309 = arith.constant 3.200000e+01 : f32
      %705 = vector.broadcast %cst_309 : f32 to vector<2x1xf32>
      %706 = arith.divf %704, %705 : vector<2x1xf32>
      %707 = vector.broadcast %706 : vector<2x1xf32> to vector<2x32xf32>
      %708 = arith.subf %702, %707 : vector<2x32xf32>
      %709 = arith.mulf %708, %708 : vector<2x32xf32>
      %cst_310 = arith.constant dense<0.000000e+00> : vector<2xf32>
      %710 = vector.multi_reduction <add>, %709, %cst_310 [1] : vector<2x32xf32> to vector<2xf32>
      %711 = vector.shape_cast %710 : vector<2xf32> to vector<2x1xf32>
      %cst_311 = arith.constant 3.200000e+01 : f32
      %712 = vector.broadcast %cst_311 : f32 to vector<2x1xf32>
      %713 = arith.divf %711, %712 : vector<2x1xf32>
      %714 = vector.broadcast %706 : vector<2x1xf32> to vector<2x32xf32>
      %715 = arith.subf %702, %714 : vector<2x32xf32>
      %cst_312 = arith.constant 9.99999974E-6 : f32
      %716 = vector.broadcast %cst_312 : f32 to vector<2x1xf32>
      %717 = arith.addf %713, %716 : vector<2x1xf32>
      %718 = math.rsqrt %717 : vector<2x1xf32>
      %719 = vector.broadcast %718 : vector<2x1xf32> to vector<2x32xf32>
      %720 = arith.mulf %715, %719 : vector<2x32xf32>
      %721 = vector.broadcast %654 : vector<1x32xf32> to vector<2x32xf32>
      %722 = arith.mulf %720, %721 : vector<2x32xf32>
      %723 = vector.broadcast %655 : vector<1x32xf32> to vector<2x32xf32>
      %724 = arith.addf %722, %723 : vector<2x32xf32>
      %725 = arith.mulf %724, %724 : vector<2x32xf32>
      %726 = arith.mulf %724, %725 : vector<2x32xf32>
      %cst_313 = arith.constant 4.471500e-02 : f32
      %727 = vector.broadcast %cst_313 : f32 to vector<2x32xf32>
      %728 = arith.mulf %727, %726 : vector<2x32xf32>
      %729 = arith.addf %724, %728 : vector<2x32xf32>
      %cst_314 = arith.constant 0.797884583 : f32
      %730 = vector.broadcast %cst_314 : f32 to vector<2x32xf32>
      %731 = arith.mulf %730, %729 : vector<2x32xf32>
      %732 = math.tanh %731 : vector<2x32xf32>
      %cst_315 = arith.constant 1.000000e+00 : f32
      %733 = vector.broadcast %cst_315 : f32 to vector<2x32xf32>
      %734 = arith.addf %733, %732 : vector<2x32xf32>
      %cst_316 = arith.constant 5.000000e-01 : f32
      %735 = vector.broadcast %cst_316 : f32 to vector<2x32xf32>
      %736 = arith.mulf %735, %734 : vector<2x32xf32>
      %737 = arith.mulf %724, %736 : vector<2x32xf32>
      %738 = arith.truncf %737 : vector<2x32xf32> to vector<2x32xbf16>
      %cst_317 = arith.constant dense<0.000000e+00> : vector<2x16xf32>
      %739 = tpu.matmul %738, %656, %cst_317 {dimension_numbers = #tpu.dot_dimension_numbers<[1], [0], [0], [1], [0, 0, 1, 1], [], []>} : vector<2x32xbf16>, vector<32x16xbf16>, vector<2x16xf32> -> vector<2x16xf32>
      %740 = vector.broadcast %657 : vector<1x16xf32> to vector<2x16xf32>
      %741 = arith.addf %739, %740 : vector<2x16xf32>
      %742 = arith.truncf %741 : vector<2x16xf32> to vector<2x16xbf16>
      %cst_318 = arith.constant dense<0.000000e+00> : vector<2x1xf32>
      %743 = tpu.matmul %742, %658, %cst_318 {dimension_numbers = #tpu.dot_dimension_numbers<[1], [0], [0], [1], [0, 0, 1, 1], [], []>} : vector<2x16xbf16>, vector<16x1xbf16>, vector<2x1xf32> -> vector<2x1xf32>
      %744 = vector.broadcast %659 : vector<1x1xf32> to vector<2x1xf32>
      %745 = arith.addf %743, %744 : vector<2x1xf32>
      %cst_319 = arith.constant 5.000000e+00 : f32
      %746 = vector.broadcast %cst_319 : f32 to vector<2x1xf32>
      %747 = arith.mulf %745, %746 : vector<2x1xf32>
      %c0_320 = arith.constant 0 : index
      %c0_321 = arith.constant 0 : index
      %748 = vector.load %arg40[%c0_320, %c0_321] : memref<2x1xf32, #tpu.memory_space<vmem>>, vector<2x1xf32>
      tpu.vector_store %arg40[%c0_320, %c0_321], %747 {strides = array<i32>} : memref<2x1xf32, #tpu.memory_space<vmem>>, vector<2x1xf32>,
    } else {
    }
    return
  }
  func.func @transform_0(%arg0: i32) -> (i32, i32, i32, i32) {
    %c0_i32 = arith.constant 0 : i32
    %c0_i32_0 = arith.constant 0 : i32
    %c0_i32_1 = arith.constant 0 : i32
    %c0_i32_2 = arith.constant 0 : i32
    return %arg0, %c0_i32, %c0_i32_0, %c0_i32_1 : i32, i32, i32, i32
  }
  func.func @transform_1(%arg0: i32) -> (i32, i32, i32) {
    %c0_i32 = arith.constant 0 : i32
    %c0_i32_0 = arith.constant 0 : i32
    %c0_i32_1 = arith.constant 0 : i32
    return %arg0, %c0_i32, %c0_i32_0 : i32, i32, i32
  }
  func.func @transform_2(%arg0: i32) -> (i32, i32, i32) {
    %c0_i32 = arith.constant 0 : i32
    %c0_i32_0 = arith.constant 0 : i32
    %c0_i32_1 = arith.constant 0 : i32
    return %arg0, %c0_i32, %c0_i32_0 : i32, i32, i32
  }
  func.func @transform_3(%arg0: i32) -> (i32, i32, i32) {
    %c0_i32 = arith.constant 0 : i32
    %c0_i32_0 = arith.constant 0 : i32
    %c0_i32_1 = arith.constant 0 : i32
    return %arg0, %c0_i32, %c0_i32_0 : i32, i32, i32
  }
  func.func @transform_4(%arg0: i32) -> (i32, i32, i32) {
    %c0_i32 = arith.constant 0 : i32
    %c0_i32_0 = arith.constant 0 : i32
    %c0_i32_1 = arith.constant 0 : i32
    return %arg0, %c0_i32, %c0_i32_0 : i32, i32, i32
  }
  func.func @transform_5(%arg0: i32) -> (i32, i32, i32) {
    %c0_i32 = arith.constant 0 : i32
    %c0_i32_0 = arith.constant 0 : i32
    %c0_i32_1 = arith.constant 0 : i32
    return %arg0, %c0_i32, %c0_i32_0 : i32, i32, i32
  }
  func.func @transform_6(%arg0: i32) -> (i32, i32, i32) {
    %c0_i32 = arith.constant 0 : i32
    %c0_i32_0 = arith.constant 0 : i32
    %c0_i32_1 = arith.constant 0 : i32
    return %arg0, %c0_i32, %c0_i32_0 : i32, i32, i32
  }
  func.func @transform_7(%arg0: i32) -> (i32, i32, i32) {
    %c0_i32 = arith.constant 0 : i32
    %c0_i32_0 = arith.constant 0 : i32
    %c0_i32_1 = arith.constant 0 : i32
    return %arg0, %c0_i32, %c0_i32_0 : i32, i32, i32
  }
  func.func @transform_8(%arg0: i32) -> (i32, i32, i32) {
    %c0_i32 = arith.constant 0 : i32
    %c0_i32_0 = arith.constant 0 : i32
    %c0_i32_1 = arith.constant 0 : i32
    return %arg0, %c0_i32, %c0_i32_0 : i32, i32, i32
  }
  func.func @transform_9(%arg0: i32) -> (i32, i32, i32) {
    %c0_i32 = arith.constant 0 : i32
    %c0_i32_0 = arith.constant 0 : i32
    %c0_i32_1 = arith.constant 0 : i32
    return %arg0, %c0_i32, %c0_i32_0 : i32, i32, i32
  }
  func.func @transform_10(%arg0: i32) -> (i32, i32, i32) {
    %c0_i32 = arith.constant 0 : i32
    %c0_i32_0 = arith.constant 0 : i32
    %c0_i32_1 = arith.constant 0 : i32
    return %arg0, %c0_i32, %c0_i32_0 : i32, i32, i32
  }
  func.func @transform_11(%arg0: i32) -> (i32, i32, i32) {
    %c0_i32 = arith.constant 0 : i32
    %c0_i32_0 = arith.constant 0 : i32
    %c0_i32_1 = arith.constant 0 : i32
    return %arg0, %c0_i32, %c0_i32_0 : i32, i32, i32
  }
  func.func @transform_12(%arg0: i32) -> (i32, i32, i32) {
    %c0_i32 = arith.constant 0 : i32
    %c0_i32_0 = arith.constant 0 : i32
    %c0_i32_1 = arith.constant 0 : i32
    return %arg0, %c0_i32, %c0_i32_0 : i32, i32, i32
  }
  func.func @transform_13(%arg0: i32) -> (i32, i32, i32) {
    %c0_i32 = arith.constant 0 : i32
    %c0_i32_0 = arith.constant 0 : i32
    %c0_i32_1 = arith.constant 0 : i32
    return %arg0, %c0_i32, %c0_i32_0 : i32, i32, i32
  }
  func.func @transform_14(%arg0: i32) -> (i32, i32, i32) {
    %c0_i32 = arith.constant 0 : i32
    %c0_i32_0 = arith.constant 0 : i32
    %c0_i32_1 = arith.constant 0 : i32
    return %arg0, %c0_i32, %c0_i32_0 : i32, i32, i32
  }
  func.func @transform_15(%arg0: i32) -> (i32, i32, i32) {
    %c0_i32 = arith.constant 0 : i32
    %c0_i32_0 = arith.constant 0 : i32
    %c0_i32_1 = arith.constant 0 : i32
    %c0_i32_2 = arith.constant 0 : i32
    return %c0_i32, %c0_i32_0, %c0_i32_1 : i32, i32, i32
  }
  func.func @transform_16(%arg0: i32) -> (i32, i32, i32) {
    %c0_i32 = arith.constant 0 : i32
    %c0_i32_0 = arith.constant 0 : i32
    %c0_i32_1 = arith.constant 0 : i32
    %c0_i32_2 = arith.constant 0 : i32
    return %c0_i32, %c0_i32_0, %c0_i32_1 : i32, i32, i32
  }
  func.func @transform_17(%arg0: i32) -> (i32, i32, i32) {
    %c0_i32 = arith.constant 0 : i32
    %c0_i32_0 = arith.constant 0 : i32
    %c0_i32_1 = arith.constant 0 : i32
    %c0_i32_2 = arith.constant 0 : i32
    return %c0_i32, %c0_i32_0, %c0_i32_1 : i32, i32, i32
  }
  func.func @transform_18(%arg0: i32) -> (i32, i32, i32) {
    %c0_i32 = arith.constant 0 : i32
    %c0_i32_0 = arith.constant 0 : i32
    %c0_i32_1 = arith.constant 0 : i32
    %c0_i32_2 = arith.constant 0 : i32
    return %c0_i32, %c0_i32_0, %c0_i32_1 : i32, i32, i32
  }
  func.func @transform_19(%arg0: i32) -> (i32, i32, i32) {
    %c0_i32 = arith.constant 0 : i32
    %c0_i32_0 = arith.constant 0 : i32
    %c0_i32_1 = arith.constant 0 : i32
    %c0_i32_2 = arith.constant 0 : i32
    return %c0_i32, %c0_i32_0, %c0_i32_1 : i32, i32, i32
  }
  func.func @transform_20(%arg0: i32) -> (i32, i32, i32) {
    %c0_i32 = arith.constant 0 : i32
    %c0_i32_0 = arith.constant 0 : i32
    %c0_i32_1 = arith.constant 0 : i32
    %c0_i32_2 = arith.constant 0 : i32
    return %c0_i32, %c0_i32_0, %c0_i32_1 : i32, i32, i32
  }
  func.func @transform_21(%arg0: i32) -> (i32, i32, i32) {
    %c0_i32 = arith.constant 0 : i32
    %c0_i32_0 = arith.constant 0 : i32
    %c0_i32_1 = arith.constant 0 : i32
    %c0_i32_2 = arith.constant 0 : i32
    return %c0_i32, %c0_i32_0, %c0_i32_1 : i32, i32, i32
  }
  func.func @transform_22(%arg0: i32) -> (i32, i32, i32) {
    %c0_i32 = arith.constant 0 : i32
    %c0_i32_0 = arith.constant 0 : i32
    %c0_i32_1 = arith.constant 0 : i32
    %c0_i32_2 = arith.constant 0 : i32
    return %c0_i32, %c0_i32_0, %c0_i32_1 : i32, i32, i32
  }
  func.func @transform_23(%arg0: i32) -> (i32, i32, i32) {
    %c0_i32 = arith.constant 0 : i32
    %c0_i32_0 = arith.constant 0 : i32
    %c0_i32_1 = arith.constant 0 : i32
    %c0_i32_2 = arith.constant 0 : i32
    return %c0_i32, %c0_i32_0, %c0_i32_1 : i32, i32, i32
  }
  func.func @transform_24(%arg0: i32) -> (i32, i32, i32) {
    %c0_i32 = arith.constant 0 : i32
    %c0_i32_0 = arith.constant 0 : i32
    %c0_i32_1 = arith.constant 0 : i32
    %c0_i32_2 = arith.constant 0 : i32
    return %c0_i32, %c0_i32_0, %c0_i32_1 : i32, i32, i32
  }
  func.func @transform_25(%arg0: i32) -> (i32, i32, i32) {
    %c0_i32 = arith.constant 0 : i32
    %c0_i32_0 = arith.constant 0 : i32
    %c0_i32_1 = arith.constant 0 : i32
    %c0_i32_2 = arith.constant 0 : i32
    return %c0_i32, %c0_i32_0, %c0_i32_1 : i32, i32, i32
  }
  func.func @transform_26(%arg0: i32) -> (i32, i32, i32) {
    %c0_i32 = arith.constant 0 : i32
    %c0_i32_0 = arith.constant 0 : i32
    %c0_i32_1 = arith.constant 0 : i32
    %c0_i32_2 = arith.constant 0 : i32
    return %c0_i32, %c0_i32_0, %c0_i32_1 : i32, i32, i32
  }
  func.func @transform_27(%arg0: i32) -> (i32, i32) {
    %c0_i32 = arith.constant 0 : i32
    %c0_i32_0 = arith.constant 0 : i32
    %c0_i32_1 = arith.constant 0 : i32
    return %c0_i32, %c0_i32_0 : i32, i32
  }
  func.func @transform_28(%arg0: i32) -> (i32, i32) {
    %c0_i32 = arith.constant 0 : i32
    %c0_i32_0 = arith.constant 0 : i32
    %c0_i32_1 = arith.constant 0 : i32
    return %c0_i32, %c0_i32_0 : i32, i32
  }
  func.func @transform_29(%arg0: i32) -> (i32, i32) {
    %c0_i32 = arith.constant 0 : i32
    %c0_i32_0 = arith.constant 0 : i32
    %c0_i32_1 = arith.constant 0 : i32
    return %c0_i32, %c0_i32_0 : i32, i32
  }
  func.func @transform_30(%arg0: i32) -> (i32, i32) {
    %c0_i32 = arith.constant 0 : i32
    %c0_i32_0 = arith.constant 0 : i32
    %c0_i32_1 = arith.constant 0 : i32
    return %c0_i32, %c0_i32_0 : i32, i32
  }
  func.func @transform_31(%arg0: i32) -> (i32, i32) {
    %c0_i32 = arith.constant 0 : i32
    %c0_i32_0 = arith.constant 0 : i32
    %c0_i32_1 = arith.constant 0 : i32
    return %c0_i32, %c0_i32_0 : i32, i32
  }
  func.func @transform_32(%arg0: i32) -> (i32, i32) {
    %c0_i32 = arith.constant 0 : i32
    %c0_i32_0 = arith.constant 0 : i32
    %c0_i32_1 = arith.constant 0 : i32
    return %c0_i32, %c0_i32_0 : i32, i32
  }
  func.func @transform_33(%arg0: i32) -> (i32, i32) {
    %c0_i32 = arith.constant 0 : i32
    %c0_i32_0 = arith.constant 0 : i32
    %c0_i32_1 = arith.constant 0 : i32
    return %c0_i32, %c0_i32_0 : i32, i32
  }
  func.func @transform_34(%arg0: i32) -> (i32, i32) {
    %c0_i32 = arith.constant 0 : i32
    %c0_i32_0 = arith.constant 0 : i32
    %c0_i32_1 = arith.constant 0 : i32
    return %c0_i32, %c0_i32_0 : i32, i32
  }
  func.func @transform_35(%arg0: i32) -> (i32, i32) {
    %c0_i32 = arith.constant 0 : i32
    %c0_i32_0 = arith.constant 0 : i32
    %c0_i32_1 = arith.constant 0 : i32
    return %c0_i32, %c0_i32_0 : i32, i32
  }
  func.func @transform_36(%arg0: i32) -> (i32, i32) {
    %c0_i32 = arith.constant 0 : i32
    %c0_i32_0 = arith.constant 0 : i32
    %c0_i32_1 = arith.constant 0 : i32
    return %c0_i32, %c0_i32_0 : i32, i32
  }
  func.func @transform_37(%arg0: i32) -> (i32, i32) {
    %c0_i32 = arith.constant 0 : i32
    %c0_i32_0 = arith.constant 0 : i32
    %c0_i32_1 = arith.constant 0 : i32
    return %c0_i32, %c0_i32_0 : i32, i32
  }
  func.func @transform_38(%arg0: i32) -> (i32, i32) {
    %c0_i32 = arith.constant 0 : i32
    %c0_i32_0 = arith.constant 0 : i32
    %c0_i32_1 = arith.constant 0 : i32
    return %c0_i32, %c0_i32_0 : i32, i32
  }
  func.func @transform_39(%arg0: i32) -> (i32, i32) {
    %c0_i32 = arith.constant 0 : i32
    %c0_i32_0 = arith.constant 0 : i32
    %c0_i32_1 = arith.constant 0 : i32
    return %c0_i32, %c0_i32_0 : i32, i32
  }
}

</mosaic_0001>

<bundles_post_ra>
// kernel: roberta_score_forward.1
= control target key start
LH: loop header
LB: loop body
LE: loop exit
PB: predicated region body
PF: predicated region fallthrough
CT: control target
= control target key end

     0   :  { %s11375_s6 = smov 1   ;;  %s11376_s10 = smov 2   ;;  %s13030_s0 = inlined_call_operand.smem [shape: u32[40], index: -1, kind: input, shape index: {}] }
   0x1   :  { %s11453_s5 = sld [smem:[%s13030_s0]]   ;;  %s11377_s14 = smov 3  }
   0x2   :  { %s11458_s9 = sld [smem:[%s13030_s0 + %s11375_s6]]   ;;  %s11378_s18 = smov 4  }
   0x3   :  { %s11463_s13 = sld [smem:[%s13030_s0 + %s11376_s10]]   ;;  %s11379_s22 = smov 5  }
   0x4   :  { %s11468_s17 = sld [smem:[%s13030_s0 + %s11377_s14]]   ;;  %s11380_s26 = smov 6  }
   0x5   :  { %s11473_s21 = sld [smem:[%s13030_s0 + %s11378_s18]]   ;;  %s11381_s30 = smov 7  }
   0x6   :  { %s11478_s25 = sld [smem:[%s13030_s0 + %s11379_s22]]   ;;  %s11382_s4 = smov 8  }
   0x7   :  { %13089 = sst [smem:[#allocation4_spill]] %s11453_s5  ;;  %s11383_s10 = smov 9  }
   0x8   :  { %13090 = sst [smem:[#allocation5_spill]] %s11458_s9  ;;  %s11384_s15 = smov 10  }
   0x9   :  { %13091 = sst [smem:[#allocation6_spill]] %s11463_s13  ;;  %s11385_s20 = smov 11  }
   0xa   :  { %13092 = sst [smem:[#allocation7_spill]] %s11468_s17  ;;  %s11387_s1 = smov 13  }
   0xb   :  { %13093 = sst [smem:[#allocation8_spill]] %s11473_s21  ;;  %s11388_s7 = smov 14  }
   0xc   :  { %s11483_s29 = sld [smem:[%s13030_s0 + %s11380_s26]]   ;;  %s11386_s26 = smov 12  }
   0xd   :  { %s11488_s3 = sld [smem:[%s13030_s0 + %s11381_s30]]   ;;  %s11390_s22 = smov 16  }
   0xe   :  { %s11493_s8 = sld [smem:[%s13030_s0 + %s11382_s4]]   ;;  %s11391_s28 = smov 17  }
   0xf   :  { %s11498_s14 = sld [smem:[%s13030_s0 + %s11383_s10]]   ;;  %s11413_s16 = smov 39  }
  0x10   :  { %s11503_s19 = sld [smem:[%s13030_s0 + %s11384_s15]]   ;;  %s11389_s15 = smov 15  }
  0x11   :  { %s11508_s24 = sld [smem:[%s13030_s0 + %s11385_s20]]  }
  0x12   :  { %s11513_s30 = sld [smem:[%s13030_s0 + %s11386_s26]]  }
  0x13   :  { %13094 = sst [smem:[#allocation9_spill]] %s11488_s3 }
  0x14   :  { %13095 = sst [smem:[#allocation10_spill]] %s11493_s8 }
  0x15   :  { %13096 = sst [smem:[#allocation11_spill]] %s11498_s14 }
  0x16   :  { %13097 = sst [smem:[#allocation12_spill]] %s11503_s19 }
  0x17   :  { %13098 = sst [smem:[#allocation13_spill]] %s11508_s24 }
  0x18   :  { %s11518_s6 = sld [smem:[%s13030_s0 + %s11387_s1]]  }
  0x19   :  { %s11523_s12 = sld [smem:[%s13030_s0 + %s11388_s7]]   ;;  %s11392_s7 = smov 18  }
  0x1a   :  { %s11528_s20 = sld [smem:[%s13030_s0 + %s11389_s15]]   ;;  %s11393_s15 = smov 19  }
  0x1b   :  { %s11533_s27 = sld [smem:[%s13030_s0 + %s11390_s22]]   ;;  %s11394_s22 = smov 20  }
  0x1c   :  { %s11538_s4 = sld [smem:[%s13030_s0 + %s11391_s28]]   ;;  %s11395_s28 = smov 21  }
  0x1e   :  { %13099 = sst [smem:[#allocation14_spill]] %s11518_s6 }
  0x1f   :  { %13100 = sst [smem:[#allocation15_spill]] %s11523_s12 }
  0x20   :  { %13101 = sst [smem:[#allocation16_spill]] %s11528_s20 }
  0x21   :  { %13102 = sst [smem:[#allocation17_spill]] %s11533_s27 }
  0x22   :  { %13103 = sst [smem:[#allocation18_spill]] %s11538_s4 }
  0x23   :  { %s11543_s12 = sld [smem:[%s13030_s0 + %s11392_s7]]   ;;  %s11396_s7 = smov 22  }
  0x24   :  { %s11548_s20 = sld [smem:[%s13030_s0 + %s11393_s15]]   ;;  %s11397_s15 = smov 23  }
  0x25   :  { %s11553_s27 = sld [smem:[%s13030_s0 + %s11394_s22]]   ;;  %s11398_s22 = smov 24  }
  0x26   :  { %s11558_s4 = sld [smem:[%s13030_s0 + %s11395_s28]]   ;;  %s11399_s28 = smov 25  }
  0x29   :  { %13104 = sst [smem:[#allocation19_spill]] %s11543_s12 }
  0x2a   :  { %13105 = sst [smem:[#allocation20_spill]] %s11548_s20 }
  0x2b   :  { %13106 = sst [smem:[#allocation21_spill]] %s11553_s27 }
  0x2c   :  { %13107 = sst [smem:[#allocation22_spill]] %s11558_s4 }
  0x2d   :  { %s11563_s12 = sld [smem:[%s13030_s0 + %s11396_s7]]   ;;  %s11400_s7 = smov 26  }
  0x2e   :  { %s11568_s20 = sld [smem:[%s13030_s0 + %s11397_s15]]   ;;  %s11401_s15 = smov 27  }
  0x2f   :  { %s11573_s27 = sld [smem:[%s13030_s0 + %s11398_s22]]   ;;  %s11402_s22 = smov 28  }
  0x30   :  { %s11578_s4 = sld [smem:[%s13030_s0 + %s11399_s28]]   ;;  %s11403_s28 = smov 29  }
  0x33   :  { %13108 = sst [smem:[#allocation23_spill]] %s11563_s12 }
  0x34   :  { %13109 = sst [smem:[#allocation24_spill]] %s11568_s20 }
  0x35   :  { %13110 = sst [smem:[#allocation25_spill]] %s11573_s27 }
  0x36   :  { %13111 = sst [smem:[#allocation26_spill]] %s11578_s4 }
  0x37   :  { %s11583_s12 = sld [smem:[%s13030_s0 + %s11400_s7]]   ;;  %s11404_s7 = smov 30  }
  0x38   :  { %s11588_s20 = sld [smem:[%s13030_s0 + %s11401_s15]]   ;;  %s11405_s15 = smov 31  }
  0x39   :  { %s11593_s27 = sld [smem:[%s13030_s0 + %s11402_s22]]   ;;  %s11406_s22 = smov 32  }
  0x3a   :  { %s11598_s4 = sld [smem:[%s13030_s0 + %s11403_s28]]   ;;  %s11407_s28 = smov 33  }
  0x3d   :  { %13112 = sst [smem:[#allocation27_spill]] %s11583_s12 }
  0x3e   :  { %13113 = sst [smem:[#allocation28_spill]] %s11588_s20 }
  0x3f   :  { %13114 = sst [smem:[#allocation29_spill]] %s11593_s27 }
  0x40   :  { %13115 = sst [smem:[#allocation30_spill]] %s11598_s4 }
  0x41   :  { %s11603_s12 = sld [smem:[%s13030_s0 + %s11404_s7]]   ;;  %s11408_s7 = smov 34  }
  0x42   :  { %s11608_s20 = sld [smem:[%s13030_s0 + %s11405_s15]]   ;;  %s11409_s15 = smov 35  }
  0x43   :  { %s11613_s27 = sld [smem:[%s13030_s0 + %s11406_s22]]   ;;  %s11410_s22 = smov 36  }
  0x44   :  { %s11618_s4 = sld [smem:[%s13030_s0 + %s11407_s28]]   ;;  %s11411_s28 = smov 37  }
  0x47   :  { %13116 = sst [smem:[#allocation31_spill]] %s11603_s12 }
  0x48   :  { %13117 = sst [smem:[#allocation32_spill]] %s11608_s20 }
  0x49   :  { %13118 = sst [smem:[#allocation33_spill]] %s11613_s27 }
  0x4a   :  { %13119 = sst [smem:[#allocation34_spill]] %s11618_s4 }
  0x4b   :  { %s11623_s12 = sld [smem:[%s13030_s0 + %s11408_s7]]   ;;  %s11412_s7 = smov 38  }
  0x4c   :  { %s11628_s20 = sld [smem:[%s13030_s0 + %s11409_s15]]  }
  0x4d   :  { %s11633_s27 = sld [smem:[%s13030_s0 + %s11410_s22]]   ;;  %s11648_s22 = smov 0  }
  0x4e   :  { %s11638_s4 = sld [smem:[%s13030_s0 + %s11411_s28]]  }
  0x51   :  { %13120 = sst [smem:[#allocation35_spill]] %s11623_s12 }
  0x52   :  { %13121 = sst [smem:[#allocation36_spill]] %s11628_s20 }
  0x53   :  { %s8461_s12 = sld [smem:[%s13030_s0 + %s11412_s7]]  }
  0x54   :  { %s11646_s20 = sld [smem:[%s13030_s0 + %s11413_s16]]  }
  0x59   :  { %v84_v0 = vstv %s8461_s12 }
  0x5a   :  { %85 = vst [vmem:[#allocation3] sm:$0x1] %v84_v0 }
  0x5b LB: > { %s13122_s19 = sld [smem:[#allocation12_spill]]  ;;  %s11654_s23 = sadd.s32 4294967295, %s11373_s22   ;;  %s11373_s22 = sphi %s11648_s22, %s91_s22  }
  0x5c   : > { %s13123_s8 = sld [smem:[#allocation10_spill]]  ;;  %p8466_p0 = scmp.ge.s32.totalorder %s11373_s22, 1 }
  0x5d   : > { %s13124_s6 = sld [smem:[#allocation14_spill]]  ;;  %p1196_p1 = scmp.lt.s32.totalorder %s11373_s22, 3 }
  0x5e   : > { %s13125_s3 = sld [smem:[#allocation9_spill]] }
  0x5f   : > { %p1197_p2 = pnand %p8466_p0, %p1196_p1 }
  0x60   : > { %s13126_s17 = sld [smem:[#allocation7_spill]] (!%p1197_p2)  ;;  %p1339_p3 = scmp.lt.s32.totalorder (!%p1197_p2), %s11654_s23, 1 }
  0x61   : > { %1200 = sbr.rel (%p1197_p2) target bundleno = 7600 (0x1db0), region = 176  ;;  %s13127_s5 = sld [smem:[#allocation4_spill]] (!%p1197_p2) }
  0x62   : > { %s13128_s9 = sld [smem:[#allocation5_spill]] (!%p1197_p2)  ;;  %s11414_s10 = smov (!%p1197_p2), 64  }
  0x63   : > { %s13129_s21 = sld [smem:[#allocation8_spill]] (!%p1197_p2)  ;;  %s11415_s11 = smov (!%p1197_p2), 96  }
  0x64   : > { %s11416_s16 = smov (!%p1197_p2), 88   ;;  %s11417_s15 = smov (!%p1197_p2), 120  }
  0x65   : > { %s11418_s18 = smov (!%p1197_p2), 72   ;;  %s13130_s13 = sld [smem:[#allocation6_spill]] (!%p1197_p2) }
  0x66   : > { %s11660_s0 = scalar_select %p1339_p3, %s11654_s23, 1  ;;  %vm1451_vm0 = vcmask 261120   ;;  %vm1472_vm1 = vcmask 64512  }
  0x67   : > { %s13135_s14 = sld [smem:[#allocation11_spill]]  ;;  %p8549_p4 = scmp.ne.s32.totalorder %s11654_s23, 1 }
  0x68   : > { %s11663_s12 = sshll.u32 %s11660_s0, 4  ;;  %s8469_s26 = sshll.u32 %s11660_s0, 3 }
  0x69   : > { %s1356_s28 = scalar_lea.vmem %s13126_s17, %s11663_s12  ;;  %s1343_s1 = scalar_lea.vmem %s13127_s5, %s11663_s12 }
  0x6a   : > { %v10685_v1 = vld [vmem:[%s1356_s28 + $0x8] sm:$0xff]  ;;  %s1347_s2 = scalar_lea.vmem %s13128_s9, %s8469_s26  ;;  %v1397_v2 = vld [vmem:[%s1343_s1] sm:$0xff]  ;;  %s1359_s7 = scalar_lea.vmem %s13129_s21, %s11660_s0 }
  0x6b   : > { %v1398_v3 = vld [vmem:[%s1343_s1 + $0x8] sm:$0xff]  ;;  %v1399_v4 = vld [vmem:[%s1347_s2] sm:$0xff]  ;;  %1461 = vmatpush.bf16.msra.mxu0 %v10685_v1  ;;  %s11419_s26 = smov 80   ;;  %s11421_s1 = smov 104  }
  0x6c   : > { %v10684_v5 = vld [vmem:[%s1356_s28] sm:$0xff]  ;;  %v11673_v6 = vadd.f32 %v1399_v4, %v1397_v2  ;;  %v11675_v7 = vadd.f32 %v1399_v4, %v1398_v3  ;;  %s11420_s28 = smov 112   ;;  %s8470_s2 = sshll.u32 %s11660_s0, 1 }
  0x6d   : > { %v11211_v9 = vld [vmem:[%s1359_s7] ss:$0 sm:$0xff]  ;;  %s1351_s7 = scalar_lea.vmem %s13130_s13, %s8470_s2  ;;  %s1370_s2 = scalar_lea.vmem %s13125_s3, %s11660_s0 }
  0x6e   : > { %v1435_v8 = vpack.c.bf16 %v11675_v7, %v11673_v6  ;;  %v1402_v25 = vld [vmem:[%s1351_s7] sm:$0x3]  ;;  %s1373_s7 = scalar_lea.vmem %s13123_s8, %s11660_s0  ;;  %s13136_s24 = sld [smem:[#allocation13_spill]] }
  0x6f   : > { %1462 = vmatpush.bf16.msra.mxu0 %v10684_v5  ;;  %v8479_v26 = vadd.f32 -1.0, %v1402_v25  ;;  %s13150_s3 = sld [smem:[#allocation23_spill]] (!%p8549_p4)  ;;  %s13155_s9 = smov (!%p8549_p4), 64  }
  0x70   : > { %s13151_s5 = sld [smem:[#allocation25_spill]] (!%p8549_p4)  ;;  %s13156_s13 = smov (!%p8549_p4), 32  }
  0x71   : > { %v1404_v27 = vmul.f32 1e+09, %v8479_v26  ;;  %s13153_s8 = sld [smem:[#allocation27_spill]] (!%p8549_p4)  ;;  %s13158_s17 = smov (!%p8549_p4), 104  }
  0x72   : > { %8488 = vmatmul.msk.bf16.vlgmr.msra.gmra.mxu0 %vm1451_vm0, %v1435_v8  ;;  %s13162_s21 = smov (!%p8549_p4), 72  }
  0x73   : > { %v11717_v28 = vperm.slane %v1404_v27, 0  ;;  %v1406_v33 = vrot.slane %v1404_v27, 1 }
  0x75   : > { %v11721_v34 = vperm.slane %v1406_v33, 0 }
  0xef   : > { %v1464_v10 = vpop.f32.mrf.mxu0 }
  0xf0   : > { %v11680_v11 = vadd.f32 %v11211_v9, %v1464_v10 }
  0xf2   : > { %1580 = vrot.lane.b32.xlu2 %v11680_v11, %s11414_s10  ;;  %1470 = vrot.lane.b32.xlu0 %v11680_v11, %s11415_s11 }
  0xf7   : > { %v1466_v12 = vpop.f32.mrf.mxu0 }
  0xf8   : > { %v11685_v13 = vadd.f32 %v11211_v9, %v1466_v12 }
  0xfa   : > { %1498 = vrot.lane.b32.xlu1 %v11685_v13, %s11415_s11  ;;  %1662 = vrot.lane.b32.xlu2 %v11685_v13, %s11416_s16  ;;  %s11422_s11 = smov 48  }
 0x102   : > { %1632 = vrot.lane.b32.xlu1 %v11680_v11, %s11417_s15  ;;  %1660 = vrot.lane.b32.xlu2 %v11685_v13, %s11417_s15  ;;  %s11425_s15 = smov 8  }
 0x10a   : > { %1954 = vrot.lane.b32.xlu1 %v11680_v11, %s11418_s18  ;;  %1634 = vrot.lane.b32.xlu2 %v11680_v11, %s11416_s16  ;;  %s11424_s16 = smov 56  }
 0x112   : > { %1794 = vrot.lane.b32.xlu2 %v11680_v11, %s11419_s26 }
 0x11a   : > { %1792 = vrot.lane.b32.xlu2 %v11680_v11, %s11420_s28 }
 0x122   : > { %1952 = vrot.lane.b32.xlu2 %v11680_v11, %s11421_s1 }
 0x12a   : > { %1982 = vrot.lane.b32.xlu2 %v11685_v13, %s11418_s18  ;;  %s11426_s18 = smov 16  }
 0x14c   : > { %v1581_v14 = vpop.permute.xlu2 %1580 }
 0x154   : > { %v1663_v15 = vpop.permute.xlu2 %1662 }
 0x15c   : > { %v1661_v16 = vpop.permute.xlu2 %1660 }
 0x164   : > { %v1471_v17 = vpop.permute.xlu0 %1470  ;;  %v1635_v18 = vpop.permute.xlu2 %1634 }
 0x165   : > { %8489 = vmatpush.xpose.msk.msra.mxu1 %vm1472_vm1, %v1471_v17 }
 0x168   : > { %8490 = vmatmul.msk.f32.vlgmr.msra.gmra.mxu1 %vm1472_vm1, %v11680_v11 }
 0x169   : > { %1601 = vmatpush.msrb.mxu1 %v1581_v14 }
 0x16b   : > { %8495 = vmatpush.xpose.msk.msra.mxu1 %vm1472_vm1, %v1635_v18 }
 0x16c   : > { %v1499_v19 = vpop.permute.xlu1 %1498  ;;  %v1795_v20 = vpop.permute.xlu2 %1794 }
 0x16d   : > { %8491 = vmatpush.xpose.msk.msra.mxu2 %vm1472_vm1, %v1499_v19 }
 0x170   : > { %8492 = vmatmul.msk.f32.vlgmr.msra.gmra.mxu2 %vm1472_vm1, %v11685_v13 }
 0x171   : > { %8497 = vmatpush.xpose.msk.msrb.mxu2 %vm1472_vm1, %v1663_v15 }
 0x174   : > { %v11709_v21 = vpop.permute.xlu1 %1632  ;;  %v1793_v23 = vpop.permute.xlu2 %1792 }
 0x175   : > { %8501 = vmatpush.xpose.msk.msra.mxu2 %vm1472_vm1, %v1795_v20 }
 0x178   : > { %8498 = vmatmul.msk.f32.vlgmr.msrb.gmra.mxu2 %vm1472_vm1, %v1661_v16 }
 0x17c   : > { %v1955_v22 = vpop.permute.xlu1 %1954  ;;  %v1953_v24 = vpop.permute.xlu2 %1952 }
 0x17d   : > { %8507 = vmatpush.xpose.msk.msrb.mxu2 %vm1472_vm1, %v1955_v22 }
 0x180   : > { %8502 = vmatmul.msk.f32.vlgmr.msra.gmra.mxu2 %vm1472_vm1, %v1793_v23 }
 0x184   : > { %v1983_v12 = vpop.permute.xlu2 %1982 }
 0x188   : > { %8508 = vmatmul.msk.f32.vlgmr.msrb.gmra.mxu2 %vm1472_vm1, %v1953_v24 }
 0x1e5   : > { %v1494_v29 = vpop.f32.mrf.mxu1 }
 0x1e6   : > { %v1524_v30 = vmul.f32 0.35355338, %v1494_v29 }
 0x1e8   : > { %v1530_v31 = vadd.f32 %v11717_v28, %v1524_v30 }
 0x1ea   : > { %v1532_v32 = vsel %vm1472_vm1, %v1530_v31, -inf }
 0x1eb   : > { %1533 = vmax.xlane.f32.xlu0 %v1532_v32 }
 0x1f3   : > { %v1521_v35 = vpop.f32.mrf.mxu2 }
 0x1f4   : > { %v1525_v36 = vmul.f32 0.35355338, %v1521_v35 }
 0x1f6   : > { %v11724_v37 = vadd.f32 %v11721_v34, %v1525_v36 }
 0x1f8   : > { %v1535_v38 = vsel %vm1472_vm1, %v11724_v37, -inf }
 0x1f9   : > { %1536 = vmax.xlane.f32.xlu2 %v1535_v38 }
 0x1fb   : > { %v1685_v39 = vpop.f32.mrf.mxu2 }
 0x1fc   : > { %v1689_v44 = vmul.f32 0.35355338, %v1685_v39 }
 0x1fe   : > { %v11736_v45 = vadd.f32 %v1689_v44, %v11721_v34 }
 0x1ff   : > { %1820 = vrot.lane.b32.xlu0 %v11685_v13, %s11420_s28  ;;  %s11427_s28 = smov 24  }
 0x200   : > { %v1695_v48 = vsel %vm1472_vm1, %v11736_v45, -inf }
 0x203   : > { %v1817_v40 = vpop.f32.mrf.mxu2 }
 0x204   : > { %v1848_v41 = vmul.f32 0.35355338, %v1817_v40 }
 0x206   : > { %v11731_v42 = vadd.f32 %v1848_v41, %v11717_v28 }
 0x208   : > { %v1852_v43 = vsel %vm1472_vm1, %v11731_v42, -inf }
 0x209   : > { %1853 = vmax.xlane.f32.xlu2 %v1852_v43 }
 0x20b   : > { %v1977_v46 = vpop.f32.mrf.mxu2 }
 0x20c   : > { %v2008_v47 = vmul.f32 0.35355338, %v1977_v46 }
 0x20e   : > { %v11741_v49 = vadd.f32 %v2008_v47, %v11717_v28 }
 0x210   : > { %v2012_v50 = vsel %vm1472_vm1, %v11741_v49, -inf }
 0x229   : > { %1696 = vmax.xlane.f32.xlu0 %v1695_v48 }
 0x231   : > { %2013 = vmax.xlane.f32.xlu0 %v2012_v50 }
 0x245   : > { %1606 = vrot.lane.b32.xlu0 %v11685_v13, %s11414_s10  ;;  %s11423_s10 = smov 40  }
 0x24d   : > { %1926 = vrot.lane.b32.xlu0 %v11685_v13, %s11422_s11 }
 0x25e   : > { %v1534_v51 = vpop.xlane.xlu0 %1533 }
 0x25f   : > { %v1538_v52 = vsub.f32 %v1530_v31, %v1534_v51 }
 0x261   : > { %v1540_v53 = vmul.f32 1.442695, %v1538_v52 }
 0x263   : > { %11219 = vpow2.f32 %v1540_v53 }
 0x269   : > { %v11220_v54 = vpop.eup %11219 }
 0x26a   : > { %v1544_v55 = vsel %vm1472_vm1, %v11220_v54, 0.0 }
 0x26b   : > { %1545 = vadd.xlane.f32.xlu1 %v1544_v55 }
 0x26c   : > { %v1537_v16 = vpop.xlane.xlu2 %1536 }
 0x26d   : > { %v1539_v20 = vsub.f32 %v11724_v37, %v1537_v16 }
 0x26f   : > { %v1542_v25 = vmul.f32 1.442695, %v1539_v20 }
 0x271   : > { %v1821_v56 = vpop.permute.xlu0 %1820 }
 0x27c   : > { %v1854_v29 = vpop.xlane.xlu2 %1853 }
 0x27d   : > { %v1858_v33 = vsub.f32 %v11731_v42, %v1854_v29 }
 0x27f   : > { %v1860_v36 = vmul.f32 1.442695, %v1858_v33 }
 0x284   : > { %1822 = vrot.lane.b32.xlu1 %v11685_v13, %s11419_s26  ;;  %s1367_s26 = scalar_lea.vmem %s11483_s29, %s11660_s0 }
 0x28c   : > { %1980 = vrot.lane.b32.xlu1 %v11685_v13, %s11421_s1  ;;  %s1364_s1 = scalar_lea.vmem %s11478_s25, %s11663_s12 }
 0x29c   : > { %v1697_v57 = vpop.xlane.xlu0 %1696 }
 0x29d   : > { %v1699_v23 = vsub.f32 %v11736_v45, %v1697_v57 }
 0x29f   : > { %v1702_v26 = vmul.f32 1.442695, %v1699_v23 }
 0x2a4   : > { %v11754_v58 = vpop.xlane.xlu0 %2013 }
 0x2a5   : > { %v2018_v39 = vsub.f32 %v11741_v49, %v11754_v58 }
 0x2a7   : > { %v2020_v41 = vmul.f32 1.442695, %v2018_v39 }
 0x2b7   : > { %v1607_v59 = vpop.permute.xlu0 %1606 }
 0x2b8   : > { %1627 = vmatpush.msra.mxu3 %v1607_v59 }
 0x2de   : > { %v1546_v60 = vpop.xlane.xlu1 %1545 }
 0x2df   : > { %11221 = vrcp.f32 %v1546_v60  ;;  %v1561_v0 = vand.u32 2147483648, %v1546_v60  ;;  %v1559_v2 = vand.u32 2147483647, %v1546_v60  ;;  %vm1555_vm3 = vweird.f32 %v1546_v60 }
 0x2e0   : > { %11223 = vpow2.f32 %v1542_v25 }
 0x2e1   : > { %v1562_v4 = vor.u32 1.1754944e-38, %v1561_v0  ;;  %vm1560_vm5 = vcmp.eq.f32.partialorder %v1559_v2, 8.507059e+37  ;;  %11225 = vpow2.f32 %v1702_v26 }
 0x2e2   : > { %11227 = vpow2.f32 %v1860_v36 }
 0x2e3   : > { %11229 = vpow2.f32 %v2020_v41 }
 0x2e5   : > { %v11222_v61 = vpop.eup %11221 }
 0x2e6   : > { %v1551_v62 = vmul.f32 %v11222_v61, %v1546_v60  ;;  %vm1556_vm2 = vweird.f32 %v11222_v61  ;;  %v11224_v37 = vpop.eup %11223 }
 0x2e7   : > { %vm1557_vm4 = vmor %vm1555_vm3, %vm1556_vm2  ;;  %v11774_v38 = vpop.eup %11225  ;;  %v1547_v40 = vsel %vm1472_vm1, %v11224_v37, 0.0 }
 0x2e8   : > { %v1552_v63 = vsub.f32 1.0, %v1551_v62  ;;  %v11781_v42 = vpop.eup %11227 }
 0x2e9   : > { %v1864_v43 = vsel %vm1472_vm1, %v11781_v42, 0.0  ;;  %v11785_v44 = vpop.eup %11229 }
 0x2ea   : > { %v1553_v1 = vmul.f32 %v11222_v61, %v1552_v63  ;;  %v2024_v45 = vsel %vm1472_vm1, %v11785_v44, 0.0 }
 0x2ec   : > { %v1554_v3 = vadd.f32 %v11222_v61, %v1553_v1 }
 0x2ee   : > { %v1558_v5 = vsel %vm1557_vm4, %v11222_v61, %v1554_v3 }
 0x2ef   : > { %v1563_v8 = vsel %vm1560_vm5, %v1562_v4, %v1558_v5 }
 0x2f0   : > { %v1564_v9 = vmul.f32 %v11220_v54, %v1563_v8 }
 0x2f2   : > { %8493 = vmatmul.msk.f32.vlgmr.msrb.gmra.mxu1 %vm1472_vm1, %v1564_v9 }
 0x2f6   : > { %v1823_v10 = vpop.permute.xlu1 %1822 }
 0x2f7   : > { %8503 = vmatpush.xpose.msk.msrb.mxu0 %vm1472_vm1, %v1823_v10 }
 0x2fa   : > { %8496 = vmatmul.msk.f32.vlgmr.msra.gmra.mxu1 %vm1472_vm1, %v11709_v21  ;;  %8504 = vmatmul.msk.f32.vlgmr.msrb.gmra.mxu0 %vm1472_vm1, %v1821_v56 }
 0x2fb   : > { %8509 = vmatpush.xpose.msk.msra.mxu0 %vm1472_vm1, %v1983_v12  ;;  %v11191_v12 = vpack.i.bf16 %v11685_v13, %v11680_v11 }
 0x2fe   : > { %v1981_v14 = vpop.permute.xlu1 %1980 }
 0x302   : > { %8510 = vmatmul.msk.f32.vlgmr.msra.gmra.mxu0 %vm1472_vm1, %v1981_v14 }
 0x36f   : > { %v11763_v15 = vpop.f32.mrf.mxu1 }
 0x377   : > { %v1657_v17 = vpop.f32.mrf.mxu1  ;;  %v1845_v18 = vpop.f32.mrf.mxu0 }
 0x378   : > { %v1688_v19 = vmul.f32 0.35355338, %v1657_v17  ;;  %v1849_v24 = vmul.f32 0.35355338, %v1845_v18  ;;  %v11810_v17 = vpop.permute.xlu0 %1926 }
 0x37a   : > { %v1690_v22 = vadd.f32 %v1688_v19, %v11717_v28  ;;  %v1851_v31 = vadd.f32 %v1849_v24, %v11721_v34 }
 0x37c   : > { %v1692_v21 = vsel %vm1472_vm1, %v1690_v22, -inf  ;;  %v1855_v35 = vsel %vm1472_vm1, %v1851_v31, -inf }
 0x37d   : > { %1693 = vmax.xlane.f32.xlu1 %v1692_v21 }
 0x37f   : > { %v2005_v27 = vpop.f32.mrf.mxu0 }
 0x380   : > { %v2009_v30 = vmul.f32 0.35355338, %v2005_v27 }
 0x382   : > { %v2011_v32 = vadd.f32 %v2009_v30, %v11721_v34  ;;  %v1707_v34 = vsel %vm1472_vm1, %v11774_v38, 0.0 }
 0x384   : > { %v2015_v28 = vsel %vm1472_vm1, %v2011_v32, -inf }
 0x385   : > { %2016 = vmax.xlane.f32.xlu2 %v2015_v28  ;;  %1856 = vmax.xlane.f32.xlu1 %v1855_v35 }
 0x38d   : > { %1548 = vadd.xlane.f32.xlu1 %v1547_v40  ;;  %1708 = vadd.xlane.f32.xlu2 %v1707_v34 }
 0x395   : > { %1865 = vadd.xlane.f32.xlu1 %v1864_v43 }
 0x39d   : > { %2025 = vadd.xlane.f32.xlu1 %v2024_v45 }
 0x3f0   : > { %v1694_v46 = vpop.xlane.xlu1 %1693 }
 0x3f1   : > { %v1698_v47 = vsub.f32 %v1690_v22, %v1694_v46 }
 0x3f3   : > { %v1700_v48 = vmul.f32 1.442695, %v1698_v47 }
 0x3f5   : > { %11231 = vpow2.f32 %v1700_v48 }
 0x3f8   : > { %v2017_v49 = vpop.xlane.xlu2 %2016  ;;  %v1857_v50 = vpop.xlane.xlu1 %1856 }
 0x3f9   : > { %v2019_v51 = vsub.f32 %v2011_v32, %v2017_v49  ;;  %v1859_v52 = vsub.f32 %v1851_v31, %v1857_v50 }
 0x3fb   : > { %v11789_v53 = vpop.eup %11231  ;;  %v2022_v54 = vmul.f32 1.442695, %v2019_v51  ;;  %v1862_v55 = vmul.f32 1.442695, %v1859_v52 }
 0x3fc   : > { %v1704_v56 = vsel %vm1472_vm1, %v11789_v53, 0.0 }
 0x3fd   : > { %11233 = vpow2.f32 %v2022_v54  ;;  %1705 = vadd.xlane.f32.xlu0 %v1704_v56 }
 0x3fe   : > { %11235 = vpow2.f32 %v1862_v55 }
 0x400   : > { %v1549_v57 = vpop.xlane.xlu1 %1548  ;;  %v1709_v14 = vpop.xlane.xlu2 %1708 }
 0x401   : > { %11237 = vrcp.f32 %v1549_v57  ;;  %v1576_v2 = vand.u32 2147483648, %v1549_v57  ;;  %v1574_v3 = vand.u32 2147483647, %v1549_v57  ;;  %vm1570_vm7 = vweird.f32 %v1549_v57 }
 0x402   : > { %11239 = vrcp.f32 %v1709_v14  ;;  %v1736_v30 = vand.u32 2147483648, %v1709_v14  ;;  %vm1730_vm11 = vweird.f32 %v1709_v14  ;;  %v1734_v32 = vand.u32 2147483647, %v1709_v14 }
 0x403   : > { %v11793_v58 = vpop.eup %11233  ;;  %v1577_v5 = vor.u32 1.1754944e-38, %v1576_v2  ;;  %vm1575_vm9 = vcmp.eq.f32.partialorder %v1574_v3, 8.507059e+37 }
 0x404   : > { %v11795_v59 = vpop.eup %11235  ;;  %v2027_v60 = vsel %vm1472_vm1, %v11793_v58, 0.0  ;;  %v1737_v34 = vor.u32 1.1754944e-38, %v1736_v30  ;;  %vm1735_vm15 = vcmp.eq.f32.partialorder %v1734_v32, 8.507059e+37 }
 0x405   : > { %v1867_v61 = vsel %vm1472_vm1, %v11795_v59, 0.0  ;;  %2028 = vadd.xlane.f32.xlu1 %v2027_v60 }
 0x406   : > { %1868 = vadd.xlane.f32.xlu2 %v1867_v61 }
 0x407   : > { %v11238_v62 = vpop.eup %11237 }
 0x408   : > { %v1566_v63 = vmul.f32 %v11238_v62, %v1549_v57  ;;  %vm1571_vm6 = vweird.f32 %v11238_v62  ;;  %v11808_v16 = vpop.xlane.xlu1 %1865  ;;  %v11240_v18 = vpop.eup %11239 }
 0x409   : > { %vm1572_vm8 = vmor %vm1570_vm7, %vm1571_vm6  ;;  %v1726_v19 = vmul.f32 %v11240_v18, %v1709_v14  ;;  %11241 = vrcp.f32 %v11808_v16  ;;  %vm1731_vm10 = vweird.f32 %v11240_v18  ;;  %vm1875_vm7 = vweird.f32 %v11808_v16 }
 0x40a   : > { %v1567_v0 = vsub.f32 1.0, %v1566_v63  ;;  %vm11823_vm12 = vmor %vm1730_vm11, %vm1731_vm10 }
 0x40b   : > { %v1727_v23 = vsub.f32 1.0, %v1726_v19 }
 0x40c   : > { %v1568_v1 = vmul.f32 %v11238_v62, %v1567_v0 }
 0x40d   : > { %v1728_v24 = vmul.f32 %v11240_v18, %v1727_v23 }
 0x40e   : > { %v1569_v4 = vadd.f32 %v11238_v62, %v1568_v1 }
 0x40f   : > { %v11815_v21 = vpop.eup %11241  ;;  %v1729_v26 = vadd.f32 %v11240_v18, %v1728_v24 }
 0x410   : > { %v1573_v8 = vsel %vm1572_vm8, %v11238_v62, %v1569_v4  ;;  %v11813_v20 = vpop.xlane.xlu1 %2025  ;;  %v1871_v27 = vmul.f32 %v11815_v21, %v11808_v16  ;;  %vm1876_vm5 = vweird.f32 %v11815_v21 }
 0x411   : > { %2060 = vrot.lane.b32.xlu0 %v11680_v11, %s11423_s10  ;;  %v1578_v9 = vsel %vm1575_vm9, %v1577_v5, %v1573_v8  ;;  %v1879_v8 = vand.u32 2147483647, %v11808_v16  ;;  %vm11849_vm9 = vmor %vm1875_vm7, %vm1876_vm5  ;;  %vm2141_vm7 = vcmask 195584  }
 0x412   : > { %v1579_v10 = vmul.f32 %v11224_v37, %v1578_v9  ;;  %v1733_v37 = vsel %vm11823_vm12, %v11240_v18, %v1729_v26  ;;  %v1872_v39 = vsub.f32 1.0, %v1871_v27 }
 0x413   : > { %v1738_v47 = vsel %vm1735_vm15, %v1737_v34, %v1733_v37 }
 0x414   : > { %8494 = vmatmul.msk.f32.vlgmr.msra.gmra.mxu3 %vm1472_vm1, %v1579_v10  ;;  %v1873_v50 = vmul.f32 %v11815_v21, %v1872_v39  ;;  %v1739_v63 = vmul.f32 %v11774_v38, %v1738_v47  ;;  %v1881_v38 = vand.u32 2147483648, %v11808_v16  ;;  %v10686_v47 = vld [vmem:[%s1364_s1] sm:$0xff] }
 0x416   : > { %v1874_v4 = vadd.f32 %v11815_v21, %v1873_v50  ;;  %v1882_v23 = vor.u32 1.1754944e-38, %v1881_v38 }
 0x418   : > { %v1878_v18 = vsel %vm11849_vm9, %v11815_v21, %v1874_v4 }
 0x41e   : > { %11192 = vrot.lane.b32.xlu2 %v11191_v12, %s11424_s16  ;;  %1900 = vrot.lane.b32.xlu1 %v11680_v11, %s11422_s11  ;;  %s1381_s11 = scalar_lea.vmem %s13122_s19, %s11660_s0  ;;  %s10683_s16 = sshll.u32 %s11660_s0, 5 }
 0x41f   : > { %s13160_s19 = smov (!%p8549_p4), 16  }
 0x426   : > { %2086 = vrot.lane.b32.xlu2 %v11685_v13, %s11423_s10  ;;  %s1378_s10 = scalar_lea.vmem %s13135_s14, %s11663_s12  ;;  %s1389_s12 = scalar_lea.vmem %s11513_s30, %s11660_s0 }
 0x427   : > { %s13157_s14 = smov (!%p8549_p4), 120  }
 0x470   : > { %v1706_v22 = vpop.xlane.xlu0 %1705 }
 0x471   : > { %11243 = vrcp.f32 %v1706_v22  ;;  %v1721_v33 = vand.u32 2147483648, %v1706_v22  ;;  %v1719_v36 = vand.u32 2147483647, %v1706_v22  ;;  %vm1715_vm14 = vweird.f32 %v1706_v22 }
 0x472   : > { %11245 = vrcp.f32 %v11813_v20 }
 0x473   : > { %v1722_v45 = vor.u32 1.1754944e-38, %v1721_v33  ;;  %vm1720_vm3 = vcmp.eq.f32.partialorder %v1719_v36, 8.507059e+37 }
 0x477   : > { %v11244_v11 = vpop.eup %11243 }
 0x478   : > { %v1711_v13 = vmul.f32 %v11244_v11, %v1706_v22  ;;  %v11818_v25 = vpop.xlane.xlu1 %2028  ;;  %vm1716_vm13 = vweird.f32 %v11244_v11  ;;  %v11829_v40 = vpop.eup %11245 }
 0x479   : > { %v1869_v29 = vpop.xlane.xlu2 %1868  ;;  %11247 = vrcp.f32 %v11818_v25  ;;  %vm1717_vm2 = vmor %vm1715_vm14, %vm1716_vm13  ;;  %v2031_v51 = vmul.f32 %v11829_v40, %v11813_v20  ;;  %v2056_v22 = vand.u32 2147483648, %v11818_v25  ;;  %vm2050_vm12 = vweird.f32 %v11818_v25 }
 0x47a   : > { %v1712_v31 = vsub.f32 1.0, %v1711_v13  ;;  %11249 = vrcp.f32 %v1869_v29  ;;  %v1896_v0 = vand.u32 2147483648, %v1869_v29  ;;  %v1894_v2 = vand.u32 2147483647, %v1869_v29 }
 0x47b   : > { %vm1890_vm6 = vweird.f32 %v1869_v29  ;;  %v2054_v24 = vand.u32 2147483647, %v11818_v25  ;;  %vm1880_vm13 = vcmp.eq.f32.partialorder %v1879_v8, 8.507059e+37  ;;  %vm2036_vm15 = vweird.f32 %v11829_v40 }
 0x47c   : > { %v1713_v35 = vmul.f32 %v11244_v11, %v1712_v31  ;;  %v1897_v9 = vor.u32 1.1754944e-38, %v1896_v0  ;;  %vm1895_vm10 = vcmp.eq.f32.partialorder %v1894_v2, 8.507059e+37  ;;  %v1883_v13 = vsel %vm1880_vm13, %v1882_v23, %v1878_v18  ;;  %v11212_v2 = vld [vmem:[%s1367_s26] ss:$0 sm:$0xff]  ;;  %s1392_s26 = scalar_lea.vmem %s13124_s6, %s11660_s0  ;;  %s13152_s6 = sld [smem:[#allocation26_spill]] (!%p8549_p4) }
 0x47d   : > { %v2057_v27 = vor.u32 1.1754944e-38, %v2056_v22  ;;  %v1884_v31 = vmul.f32 %v11781_v42, %v1883_v13 }
 0x47e   : > { %v1714_v41 = vadd.f32 %v11244_v11, %v1713_v35 }
 0x47f   : > { %v11831_v43 = vpop.eup %11247 }
 0x480   : > { %v11250_v46 = vpop.eup %11249  ;;  %v2046_v48 = vmul.f32 %v11831_v43, %v11818_v25  ;;  %v1718_v49 = vsel %vm1717_vm2, %v11244_v11, %v1714_v41  ;;  %vm2051_vm11 = vweird.f32 %v11831_v43  ;;  %vm2055_vm2 = vcmp.eq.f32.partialorder %v2054_v24, 8.507059e+37 }
 0x481   : > { %v1886_v52 = vmul.f32 %v11250_v46, %v1869_v29  ;;  %v11193_v54 = vpop.permute.xlu2 %11192  ;;  %v1723_v55 = vsel %vm1720_vm3, %v1722_v45, %v1718_v49  ;;  %vm1891_vm4 = vweird.f32 %v11250_v46  ;;  %vm2052_vm14 = vmor %vm2050_vm12, %vm2051_vm11  ;;  %v2041_v29 = vand.u32 2147483648, %v11813_v20 }
 0x482   : > { %v2047_v56 = vsub.f32 1.0, %v2046_v48  ;;  %v11195_v57 = vunpack.i.h.bf16 %v11193_v54  ;;  %v11194_v60 = vunpack.i.l.bf16 %v11193_v54  ;;  %v1724_v61 = vmul.f32 %v11789_v53, %v1723_v55  ;;  %vm1892_vm8 = vmor %vm1890_vm6, %vm1891_vm4 }
 0x483   : > { %v1887_v62 = vsub.f32 1.0, %v1886_v52  ;;  %v2032_v53 = vsub.f32 1.0, %v2031_v51  ;;  %vm2035_vm3 = vweird.f32 %v11813_v20  ;;  %v2039_v25 = vand.u32 2147483647, %v11813_v20  ;;  %v2061_v33 = vpop.permute.xlu0 %2060 }
 0x484   : > { %1761 = vmatpush.msrb.mxu3 %v11194_v60  ;;  %1787 = vmatpush.msrb.mxu1 %v11195_v57  ;;  %v2048_v3 = vmul.f32 %v11831_v43, %v2047_v56  ;;  %vm2037_vm4 = vmor %vm2035_vm3, %vm2036_vm15  ;;  %v2042_v28 = vor.u32 1.1754944e-38, %v2041_v29  ;;  %vm2138_vm6 = vcmask 130048   ;;  %vm13085_vm15 = vcmask 523264  }
 0x485   : > { %v1888_v1 = vmul.f32 %v11250_v46, %v1887_v62  ;;  %8499 = vmatmul.msk.f32.vlgmr.msrb.gmra.mxu3 %vm1472_vm1, %v1724_v61  ;;  %8500 = vmatmul.msk.f32.vlgmr.msrb.gmra.mxu1 %vm1472_vm1, %v1739_v63  ;;  %v2033_v19 = vmul.f32 %v11829_v40, %v2032_v53  ;;  %vm2040_vm5 = vcmp.eq.f32.partialorder %v2039_v25, 8.507059e+37 }
 0x486   : > { %1947 = vmatpush.msra.mxu1 %v11810_v17  ;;  %v2049_v14 = vadd.f32 %v11831_v43, %v2048_v3 }
 0x487   : > { %v1889_v5 = vadd.f32 %v11250_v46, %v1888_v1  ;;  %v2034_v21 = vadd.f32 %v11829_v40, %v2033_v19 }
 0x488   : > { %v2053_v26 = vsel %vm2052_vm14, %v11831_v43, %v2049_v14 }
 0x489   : > { %v1893_v12 = vsel %vm1892_vm8, %v11250_v46, %v1889_v5  ;;  %v2087_v17 = vpop.permute.xlu2 %2086  ;;  %v2038_v32 = vsel %vm2037_vm4, %v11829_v40, %v2034_v21 }
 0x48a   : > { %v1898_v16 = vsel %vm1895_vm10, %v1897_v9, %v1893_v12  ;;  %2107 = vmatpush.msrb.mxu1 %v2087_v17  ;;  %v2043_v36 = vsel %vm2040_vm5, %v2042_v28, %v2038_v32  ;;  %v11428_v12 = vmov 32.0   ;;  %v10688_v32 = vld [vmem:[%s1378_s10] sm:$0xff] }
 0x48b   : > { %v1899_v11 = vmul.f32 %v11795_v59, %v1898_v16  ;;  %v2058_v59 = vsel %vm2055_vm2, %v2057_v27, %v2053_v26  ;;  %v2044_v20 = vmul.f32 %v11785_v44, %v2043_v36  ;;  %v10687_v44 = vld [vmem:[%s1364_s1 + $0x8] sm:$0xff]  ;;  %11251 = vrcp.f32 %v11428_v12  ;;  %s8548_s1 = sshll.u32 %s11654_s23, 1  ;;  %s13139_s23 = sld [smem:[#allocation17_spill]] (!%p8549_p4) }
 0x48c   : > { %v2059_v35 = vmul.f32 %v11793_v58, %v2058_v59  ;;  %2169 = vmatpush.bf16.msra.mxu2 %v10687_v44  ;;  %v10689_v59 = vld [vmem:[%s1378_s10 + $0x8] sm:$0xff]  ;;  %v11213_v44 = vld [vmem:[%s1370_s2] ss:$0 sm:$0xff]  ;;  %s2400_s2 = scalar_lea.vmem [#allocation2], %s8548_s1  ;;  %s13048_s10 = smov (!%p8549_p4), 56  }
 0x48d   : > { %8506 = vmatmul.msk.f32.vlgmr.msra.gmra.mxu1 %vm1472_vm1, %v1899_v11  ;;  %2265 = vmatpush.bf16.msrb.mxu0 %v10689_v59  ;;  %s13064_s1 = smov (!%p8549_p4), 104  }
 0x490   : > { %v1901_v30 = vpop.permute.xlu1 %1900  ;;  %2170 = vmatpush.bf16.msra.mxu2 %v10686_v47 }
 0x491   : > { %1921 = vmatpush.msra.mxu3 %v1901_v30  ;;  %v11252_v14 = vpop.eup %11251  ;;  %2266 = vmatpush.bf16.msrb.mxu0 %v10688_v32 }
 0x492   : > { %8505 = vmatmul.msk.f32.vlgmr.msra.gmra.mxu3 %vm1472_vm1, %v1884_v31  ;;  %v2186_v17 = vmul.f32 32.0, %v11252_v14  ;;  %vm2190_vm8 = vweird.f32 %v11252_v14 }
 0x493   : > { %2081 = vmatpush.msrb.mxu3 %v2061_v33 }
 0x494   : > { %v2187_v18 = vsub.f32 1.0, %v2186_v17 }
 0x495   : > { %8512 = vmatmul.msk.f32.vlgmr.msrb.gmra.mxu1 %vm1472_vm1, %v2059_v35 }
 0x496   : > { %v2188_v19 = vmul.f32 %v11252_v14, %v2187_v18 }
 0x497   : > { %v1629_v42 = vpop.f32.mrf.mxu3 }
 0x49a   : > { %8511 = vmatmul.msk.f32.vlgmr.msrb.gmra.mxu3 %vm1472_vm1, %v2044_v20 }
 0x502   : > { %v1789_v37 = vpop.f32.mrf.mxu1 }
 0x508   : > { %v1763_v39 = vpop.f32.mrf.mxu3 }
 0x509   : > { %v11196_v40 = vpack.i.bf16 %v1789_v37, %v1763_v39 }
 0x50a   : > { %v1949_v34 = vpop.f32.mrf.mxu1 }
 0x50b   : > { %11197 = vrot.lane.b32.xlu0 %v11196_v40, %s11425_s15  ;;  %s1386_s15 = scalar_lea.vmem %s13136_s24, %s10683_s16  ;;  %s13074_s16 = smov (!%p8549_p4), 112  }
 0x50c   : > { %s13164_s24 = smov (!%p8549_p4), 8  }
 0x512   : > { %v2109_v43 = vpop.f32.mrf.mxu1 }
 0x515   : > { %v1923_v58 = vpop.f32.mrf.mxu3 }
 0x516   : > { %v11201_v41 = vpack.i.bf16 %v1949_v34, %v1923_v58 }
 0x518   : > { %11202 = vrot.lane.b32.xlu2 %v11201_v41, %s11426_s18  ;;  %s13137_s18 = sld [smem:[#allocation15_spill]] }
 0x51d   : > { %v2083_v45 = vpop.f32.mrf.mxu3 }
 0x51e   : > { %v11206_v46 = vpack.i.bf16 %v2109_v43, %v2083_v45 }
 0x520   : > { %11207 = vrot.lane.b32.xlu0 %v11206_v46, %s11427_s28  ;;  %s1395_s28 = scalar_lea.vmem %s13137_s18, %s11660_s0  ;;  %s13072_s0 = smov (!%p8549_p4), 32  }
 0x521   : > { %s13159_s18 = smov (!%p8549_p4), 96  }
 0x572   : > { %v11203_v51 = vpop.permute.xlu2 %11202 }
 0x573   : > { %v11205_v55 = vunpack.i.h.bf16 %v11203_v51  ;;  %v11204_v56 = vunpack.i.l.bf16 %v11203_v51 }
 0x57d   : > { %v11198_v48 = vpop.permute.xlu0 %11197 }
 0x57e   : > { %v11200_v49 = vunpack.i.h.bf16 %v11198_v48  ;;  %v11199_v50 = vunpack.i.l.bf16 %v11198_v48 }
 0x580   : > { %v2137_v52 = vsel %vm1472_vm1, %v1629_v42, %v11200_v49  ;;  %v2136_v54 = vsel %vm1472_vm1, %v11763_v15, %v11199_v50  ;;  %v11214_v50 = vld [vmem:[%s1373_s7] ss:$0 sm:$0xff]  ;;  %s13138_s7 = sld [smem:[#allocation16_spill]] (!%p8549_p4) }
 0x581   : > { %v2139_v62 = vsel %vm2138_vm6, %v2136_v54, %v11204_v56  ;;  %v2140_v63 = vsel %vm2138_vm6, %v2137_v52, %v11205_v55 }
 0x592   : > { %v11208_v57 = vpop.permute.xlu0 %11207 }
 0x593   : > { %v11210_v60 = vunpack.i.h.bf16 %v11208_v57  ;;  %v11209_v61 = vunpack.i.l.bf16 %v11208_v57 }
 0x595   : > { %v2142_v0 = vsel %vm2141_vm7, %v2139_v62, %v11209_v61  ;;  %v2143_v1 = vsel %vm2141_vm7, %v2140_v63, %v11210_v60  ;;  %v10693_v60 = vld [vmem:[%s1386_s15 + $0x18] sm:$0xff]  ;;  %v10692_v61 = vld [vmem:[%s1386_s15 + $0x10] sm:$0xff]  ;;  %v11215_v62 = vld [vmem:[%s1381_s11] ss:$0 sm:$0xff]  ;;  %s13050_s11 = smov (!%p8549_p4), 48  }
 0x596   : > { %v2144_v15 = vpack.c.bf16 %v2143_v1, %v2142_v0  ;;  %2327 = vmatpush.bf16.msra.mxu3 %v10693_v60  ;;  %v10691_v63 = vld [vmem:[%s1386_s15 + $0x8] sm:$0xff] }
 0x598   : > { %8521 = vmatmul.msk.bf16.vlgmr.msra.gmra.mxu2 %vm1451_vm0, %v2144_v15  ;;  %v10690_v15 = vld [vmem:[%s1386_s15] sm:$0xff]  ;;  %s13070_s15 = smov (!%p8549_p4), 120  }
 0x59a   : > { %2328 = vmatpush.bf16.msra.mxu3 %v10692_v61 }
 0x59e   : > { %2329 = vmatpush.bf16.msra.mxu3 %v10691_v63  ;;  %v11217_v63 = vld [vmem:[%s1392_s26] ss:$0 sm:$0xff]  ;;  %s13052_s26 = smov (!%p8549_p4), 40  }
 0x5a2   : > { %2330 = vmatpush.bf16.msra.mxu3 %v10690_v15 }
 0x61b   : > { %v2172_v3 = vpop.f32.mrf.mxu2 }
 0x61c   : > { %v2173_v4 = vadd.f32 %v11212_v2, %v2172_v3 }
 0x61e   : > { %v2177_v53 = vadd.f32 %v2173_v4, %v11673_v6  ;;  %v2189_v6 = vadd.f32 %v11252_v14, %v2188_v19 }
 0x620   : > { %v2179_v38 = vsel %vm1451_vm0, %v2177_v53, 0.0  ;;  %v11897_v16 = vsel %vm2190_vm8, %v11252_v14, %v2189_v6 }
 0x621   : > { %2180 = vadd.xlane.f32.xlu1 %v2179_v38 }
 0x623   : > { %v2174_v5 = vpop.f32.mrf.mxu2 }
 0x624   : > { %v2175_v8 = vadd.f32 %v11212_v2, %v2174_v5 }
 0x626   : > { %v2178_v9 = vadd.f32 %v2175_v8, %v11675_v7 }
 0x628   : > { %v2182_v10 = vsel %vm1451_vm0, %v2178_v9, 0.0 }
 0x629   : > { %2183 = vadd.xlane.f32.xlu2 %v2182_v10 }
 0x694   : > { %v2181_v22 = vpop.xlane.xlu1 %2180 }
 0x695   : > { %v2192_v7 = vmul.f32 %v11897_v16, %v2181_v22 }
 0x697   : > { %v2194_v23 = vsub.f32 %v2177_v53, %v2192_v7 }
 0x699   : > { %v2196_v24 = vmul.f32 %v2194_v23, %v2194_v23 }
 0x69b   : > { %v2198_v11 = vsel %vm1451_vm0, %v2196_v24, 0.0 }
 0x69c   : > { %v2184_v13 = vpop.xlane.xlu2 %2183  ;;  %2199 = vadd.xlane.f32.xlu0 %v2198_v11 }
 0x69d   : > { %v2193_v26 = vmul.f32 %v11897_v16, %v2184_v13 }
 0x69f   : > { %v2195_v21 = vsub.f32 %v2178_v9, %v2193_v26  ;;  %v11216_v26 = vld [vmem:[%s1389_s12] ss:$0 sm:$0xff]  ;;  %s13047_s12 = smov (!%p8549_p4), 64  }
 0x6a1   : > { %v2197_v27 = vmul.f32 %v2195_v21, %v2195_v21 }
 0x6a3   : > { %v2201_v29 = vsel %vm1451_vm0, %v2197_v27, 0.0 }
 0x6a4   : > { %2202 = vadd.xlane.f32.xlu1 %v2201_v29 }
 0x70f   : > { %v2200_v25 = vpop.xlane.xlu0 %2199 }
 0x710   : > { %v2204_v30 = vmul.f32 %v2200_v25, %v11897_v16 }
 0x712   : > { %v2206_v31 = vadd.f32 1e-05, %v2204_v30 }
 0x714   : > { %11253 = vrsqrt.f32 %v2206_v31  ;;  %vm2214_vm10 = vweird.f32 %v2206_v31 }
 0x717   : > { %v2203_v33 = vpop.xlane.xlu1 %2202 }
 0x718   : > { %v2205_v28 = vmul.f32 %v2203_v33, %v11897_v16 }
 0x71a   : > { %v11254_v35 = vpop.eup %11253  ;;  %v2207_v36 = vadd.f32 1e-05, %v2205_v28 }
 0x71b   : > { %v2209_v20 = vmul.f32 %v11254_v35, %v2206_v31  ;;  %vm2215_vm9 = vweird.f32 %v11254_v35 }
 0x71c   : > { %11255 = vrsqrt.f32 %v2207_v36  ;;  %vm2216_vm11 = vmor %vm2214_vm10, %vm2215_vm9  ;;  %vm2224_vm13 = vweird.f32 %v2207_v36  ;;  %vm2396_vm10 = vcmask 1041409  }
 0x71d   : > { %v2210_v42 = vmul.f32 %v11254_v35, %v2209_v20 }
 0x71f   : > { %v2211_v37 = vmul.f32 0.5, %v2210_v42 }
 0x721   : > { %v2212_v39 = vsub.f32 1.5, %v2211_v37 }
 0x722   : > { %v11256_v40 = vpop.eup %11255 }
 0x723   : > { %v2213_v34 = vmul.f32 %v11254_v35, %v2212_v39  ;;  %v2219_v58 = vmul.f32 %v11256_v40, %v2207_v36  ;;  %vm2225_vm12 = vweird.f32 %v11256_v40 }
 0x724   : > { %vm2226_vm14 = vmor %vm2224_vm13, %vm2225_vm12 }
 0x725   : > { %v2220_v41 = vmul.f32 %v11256_v40, %v2219_v58  ;;  %v2217_v43 = vsel %vm2216_vm11, %v11254_v35, %v2213_v34  ;;  %vm13083_vm11 = vcmask 254976  }
 0x726   : > { %v2228_v47 = vmul.f32 %v2217_v43, %v2194_v23 }
 0x727   : > { %v2221_v45 = vmul.f32 0.5, %v2220_v41 }
 0x728   : > { %v2233_v51 = vmul.f32 %v11213_v44, %v2228_v47 }
 0x729   : > { %v2222_v46 = vsub.f32 1.5, %v2221_v45 }
 0x72a   : > { %v2238_v55 = vadd.f32 %v11214_v50, %v2233_v51 }
 0x72b   : > { %v2223_v48 = vmul.f32 %v11256_v40, %v2222_v46 }
 0x72d   : > { %v2227_v49 = vsel %vm2226_vm14, %v11256_v40, %v2223_v48 }
 0x72e   : > { %v2229_v52 = vmul.f32 %v2227_v49, %v2195_v21 }
 0x730   : > { %v2234_v54 = vmul.f32 %v11213_v44, %v2229_v52 }
 0x732   : > { %v2239_v56 = vadd.f32 %v11214_v50, %v2234_v54 }
 0x734   : > { %v2240_v57 = vpack.c.bf16 %v2239_v56, %v2238_v55 }
 0x736   : > { %8530 = vmatmul.msk.bf16.vlgmr.msrb.gmra.mxu0 %vm1451_vm0, %v2240_v57 }
 0x7b3   : > { %v2268_v0 = vpop.f32.mrf.mxu0 }
 0x7b4   : > { %v2269_v1 = vadd.f32 %v11215_v62, %v2268_v0 }
 0x7b6   : > { %v2273_v2 = vmul.f32 %v2269_v1, %v2269_v1 }
 0x7b8   : > { %v2275_v3 = vmul.f32 %v2273_v2, %v2269_v1  ;;  %v11218_v2 = vld [vmem:[%s1395_s28] ss:$0 sm:$0xff]  ;;  %s13054_s28 = smov (!%p8549_p4), 24  }
 0x7ba   : > { %v2277_v4 = vmul.f32 0.044715, %v2275_v3 }
 0x7bb   : > { %v2270_v53 = vpop.f32.mrf.mxu0 }
 0x7bc   : > { %v2279_v38 = vadd.f32 %v2277_v4, %v2269_v1  ;;  %v2271_v5 = vadd.f32 %v11215_v62, %v2270_v53 }
 0x7be   : > { %v2281_v8 = vmul.f32 0.7978846, %v2279_v38  ;;  %v2274_v9 = vmul.f32 %v2271_v5, %v2271_v5 }
 0x7c0   : > { %v2276_v10 = vmul.f32 %v2274_v9, %v2271_v5  ;;  %11257 = vtanh.f32 %v2281_v8 }
 0x7c2   : > { %v2278_v12 = vmul.f32 0.044715, %v2276_v10 }
 0x7c4   : > { %v2280_v14 = vadd.f32 %v2278_v12, %v2271_v5 }
 0x7c6   : > { %v2282_v17 = vmul.f32 0.7978846, %v2280_v14  ;;  %v11258_v18 = vpop.eup %11257 }
 0x7c7   : > { %v2285_v19 = vadd.f32 1.0, %v11258_v18 }
 0x7c8   : > { %11259 = vtanh.f32 %v2282_v17 }
 0x7c9   : > { %v2287_v22 = vmul.f32 0.5, %v2285_v19 }
 0x7cb   : > { %v2289_v24 = vmul.f32 %v2287_v22, %v2269_v1 }
 0x7ce   : > { %v11260_v6 = vpop.eup %11259 }
 0x7cf   : > { %v2286_v7 = vadd.f32 1.0, %v11260_v6 }
 0x7d1   : > { %v2288_v23 = vmul.f32 0.5, %v2286_v7 }
 0x7d3   : > { %v2290_v11 = vmul.f32 %v2288_v23, %v2271_v5 }
 0x7d5   : > { %v2291_v13 = vpack.c.bf16 %v2290_v11, %v2289_v24 }
 0x7d7   : > { %8547 = vmatmul.msk.bf16.vlgmr.msra.gmra.mxu3 %vm13085_vm15, %v2291_v13 }
 0x85a   : > { %v2332_v21 = vpop.f32.mrf.mxu3 }
 0x85b   : > { %v2333_v27 = vadd.f32 %v11216_v26, %v2332_v21 }
 0x85d   : > { %v2337_v29 = vadd.f32 %v2333_v27, %v2238_v55 }
 0x85f   : > { %v2339_v25 = vsel %vm1451_vm0, %v2337_v29, 0.0 }
 0x860   : > { %2340 = vadd.xlane.f32.xlu0 %v2339_v25 }
 0x862   : > { %v2334_v59 = vpop.f32.mrf.mxu3 }
 0x863   : > { %v2335_v30 = vadd.f32 %v11216_v26, %v2334_v59 }
 0x865   : > { %v2338_v31 = vadd.f32 %v2335_v30, %v2239_v56 }
 0x867   : > { %v2342_v32 = vsel %vm1451_vm0, %v2338_v31, 0.0 }
 0x868   : > { %2343 = vadd.xlane.f32.xlu2 %v2342_v32 }
 0x8d3   : > { %v2341_v33 = vpop.xlane.xlu0 %2340 }
 0x8d4   : > { %v2345_v28 = vmul.f32 %v2341_v33, %v11897_v16 }
 0x8d6   : > { %v2347_v35 = vsub.f32 %v2337_v29, %v2345_v28 }
 0x8d8   : > { %v2349_v36 = vmul.f32 %v2347_v35, %v2347_v35 }
 0x8da   : > { %v2351_v20 = vsel %vm1451_vm0, %v2349_v36, 0.0 }
 0x8db   : > { %v2344_v42 = vpop.xlane.xlu2 %2343  ;;  %2352 = vadd.xlane.f32.xlu2 %v2351_v20 }
 0x8dc   : > { %v2346_v37 = vmul.f32 %v2344_v42, %v11897_v16 }
 0x8de   : > { %v2348_v39 = vsub.f32 %v2338_v31, %v2346_v37 }
 0x8e0   : > { %v2350_v40 = vmul.f32 %v2348_v39, %v2348_v39 }
 0x8e2   : > { %v2354_v34 = vsel %vm1451_vm0, %v2350_v40, 0.0 }
 0x8e3   : > { %2355 = vadd.xlane.f32.xlu1 %v2354_v34 }
 0x94e   : > { %v2353_v58 = vpop.xlane.xlu2 %2352 }
 0x94f   : > { %v2357_v41 = vmul.f32 %v2353_v58, %v11897_v16 }
 0x951   : > { %v2359_v43 = vadd.f32 1e-05, %v2357_v41 }
 0x953   : > { %11261 = vrsqrt.f32 %v2359_v43  ;;  %vm2367_vm3 = vweird.f32 %v2359_v43 }
 0x956   : > { %v2356_v45 = vpop.xlane.xlu1 %2355 }
 0x957   : > { %v2358_v46 = vmul.f32 %v2356_v45, %v11897_v16 }
 0x959   : > { %v11262_v44 = vpop.eup %11261  ;;  %v2360_v47 = vadd.f32 1e-05, %v2358_v46 }
 0x95a   : > { %v2362_v48 = vmul.f32 %v11262_v44, %v2359_v43  ;;  %vm2368_vm2 = vweird.f32 %v11262_v44 }
 0x95b   : > { %11263 = vrsqrt.f32 %v2360_v47  ;;  %vm2369_vm4 = vmor %vm2367_vm3, %vm2368_vm2  ;;  %vm2377_vm8 = vweird.f32 %v2360_v47 }
 0x95c   : > { %v2363_v49 = vmul.f32 %v11262_v44, %v2362_v48 }
 0x95e   : > { %v2364_v50 = vmul.f32 0.5, %v2363_v49 }
 0x960   : > { %v2365_v51 = vsub.f32 1.5, %v2364_v50 }
 0x961   : > { %v11264_v52 = vpop.eup %11263 }
 0x962   : > { %v2372_v54 = vmul.f32 %v11264_v52, %v2360_v47  ;;  %v2366_v55 = vmul.f32 %v11262_v44, %v2365_v51  ;;  %vm2378_vm5 = vweird.f32 %v11264_v52 }
 0x963   : > { %vm2379_vm9 = vmor %vm2377_vm8, %vm2378_vm5 }
 0x964   : > { %v2373_v56 = vmul.f32 %v11264_v52, %v2372_v54  ;;  %v2370_v60 = vsel %vm2369_vm4, %v11262_v44, %v2366_v55 }
 0x965   : > { %v2381_v0 = vmul.f32 %v2370_v60, %v2347_v35 }
 0x966   : > { %v2374_v57 = vmul.f32 0.5, %v2373_v56 }
 0x967   : > { %v2386_v3 = vmul.f32 %v11217_v63, %v2381_v0 }
 0x968   : > { %v2375_v61 = vsub.f32 1.5, %v2374_v57 }
 0x969   : > { %v2391_v38 = vadd.f32 %v11218_v2, %v2386_v3 }
 0x96a   : > { %v2376_v62 = vmul.f32 %v11264_v52, %v2375_v61 }
 0x96c   : > { %v2380_v1 = vsel %vm2379_vm9, %v11264_v52, %v2376_v62 }
 0x96d   : > { %v2382_v15 = vmul.f32 %v2380_v1, %v2348_v39 }
 0x96f   : > { %v2387_v4 = vmul.f32 %v11217_v63, %v2382_v15 }
 0x971   : > { %v2392_v53 = vadd.f32 %v11218_v2, %v2387_v4 }
 0x972   : > { %2406 = sbr.rel (%p8549_p4) target bundleno = 7600 (0x1db0), region = 180 }
 0x973   : > { %v2395_v5 = vrot.slane %v2392_v53, 7 }
 0x975   : > { %v2397_v8 = vsel %vm2396_vm10, %v2395_v5, %v2391_v38 }
 0x976   : > { %2402 = vst.msk [vmem:[%s2400_s2] sm:$0x3] %vm13083_vm11, %v2397_v8  ;;  %s13056_s2 = smov (!%p8549_p4), 88  }
 0x977   : > { %v8576_v10 = vld [vmem:[%s13138_s7 + $0x30] sm:$0xf]  ;;  %v10701_v12 = vld [vmem:[%s13138_s7 + $0x34] sm:$0xf0]  ;;  %v10700_v14 = vld [vmem:[%s13138_s7 + $0x34] sm:$0xf] }
 0x978   : > { %v8578_v17 = vld [vmem:[%s13138_s7 + $0x38] sm:$0xf0]  ;;  %v8577_v18 = vor.u32 %v10701_v12, %v8576_v10  ;;  %v8568_v6 = vld [vmem:[%s13138_s7 + $0x20] sm:$0xf]  ;;  %v10699_v22 = vld [vmem:[%s13138_s7 + $0x24] sm:$0xf0] }
 0x979   : > { %v8581_v19 = vor.u32 %v10700_v14, %v8578_v17  ;;  %v10698_v7 = vld [vmem:[%s13138_s7 + $0x24] sm:$0xf]  ;;  %v8570_v23 = vld [vmem:[%s13138_s7 + $0x28] sm:$0xf0]  ;;  %v8560_v24 = vld [vmem:[%s13138_s7 + $0x10] sm:$0xf]  ;;  %v8569_v13 = vor.u32 %v10699_v22, %v8568_v6 }
 0x97a   : > { %v10697_v11 = vld [vmem:[%s13138_s7 + $0x14] sm:$0xf0]  ;;  %2813 = vmatpush.bf16.msra.mxu0 %v8577_v18  ;;  %v8573_v26 = vor.u32 %v10698_v7, %v8570_v23  ;;  %v10696_v21 = vld [vmem:[%s13138_s7 + $0x14] sm:$0xf]  ;;  %v8562_v27 = vld [vmem:[%s13138_s7 + $0x18] sm:$0xf0] }
 0x97b   : > { %2826 = vmatpush.bf16.msra.mxu1 %v8581_v19  ;;  %v8561_v29 = vor.u32 %v10697_v11, %v8560_v24  ;;  %v8565_v25 = vor.u32 %v10696_v21, %v8562_v27  ;;  %v8552_v59 = vld [vmem:[%s13138_s7] sm:$0xf]  ;;  %v10695_v30 = vld [vmem:[%s13138_s7 + $0x4] sm:$0xf0]  ;;  %v10694_v31 = vld [vmem:[%s13138_s7 + $0x4] sm:$0xf] }
 0x97c   : > { %v8553_v32 = vor.u32 %v10695_v30, %v8552_v59  ;;  %v8554_v33 = vld [vmem:[%s13138_s7 + $0x8] sm:$0xf0]  ;;  %v2423_v37 = vld [vmem:[%s13139_s23] sm:$0x3]  ;;  %vm2892_vm12 = vcmask 1041408   ;;  %vm2863_vm13 = vcmask 9216  }
 0x97d   : > { %v2409_v9 = vld [vmem:[#allocation2 + $0x2] sm:$0x3]  ;;  %v8557_v28 = vor.u32 %v10694_v31, %v8554_v33  ;;  %v2407_v35 = vld [vmem:[#allocation2] sm:$0x3]  ;;  %v2762_v39 = vperm.slane %v2423_v37, 0  ;;  %v2763_v47 = vperm.slane %v2423_v37, 1 }
 0x97e   : > { %2411 = vrot.lane.b32.xlu0 %v2409_v9, %s13072_s0  ;;  %2814 = vmatpush.bf16.msra.mxu0 %v8569_v13  ;;  %vm2888_vm5 = vcmask 15360  }
 0x97f   : > { %2827 = vmatpush.bf16.msra.mxu1 %v8573_v26 }
 0x982   : > { %2815 = vmatpush.bf16.msra.mxu0 %v8561_v29 }
 0x983   : > { %2828 = vmatpush.bf16.msra.mxu1 %v8565_v25 }
 0x986   : > { %2816 = vmatpush.bf16.msra.mxu0 %v8553_v32 }
 0x987   : > { %2829 = vmatpush.bf16.msra.mxu1 %v8557_v28 }
 0x9f0   : > { %v2412_v36 = vpop.permute.xlu0 %2411 }
 0x9f1   : > { %v11966_v20 = vsel %vm1451_vm0, %v2407_v35, %v2412_v36 }
 0x9f2   : > { %v2760_v42 = vpack.c.bf16 %v11966_v20, %v11966_v20 }
 0x9f4   : > { %8582 = vmatmul.msk.bf16.vlgmr.msra.gmra.mxu0 %vm13085_vm15, %v2760_v42  ;;  %8583 = vmatmul.msk.bf16.vlgmr.msra.gmra.mxu1 %vm13085_vm15, %v2760_v42 }
 0xa71   : > { %v2818_v40 = vpop.f32.mrf.mxu0  ;;  %v2831_v34 = vpop.f32.mrf.mxu1 }
 0xa72   : > { %v2819_v58 = vadd.f32 %v2818_v40, %v2762_v39  ;;  %v11988_v50 = vadd.f32 %v2831_v34, %v2763_v47 }
 0xa74   : > { %2998 = vrot.lane.b32.xlu2 %v2819_v58, %s13050_s11  ;;  %2918 = vrot.lane.b32.xlu1 %v2819_v58, %s13048_s10  ;;  %s13058_s10 = smov 72   ;;  %s13068_s11 = smov 16  }
 0xa75   : > { %2836 = vrot.lane.b32.xlu0 %v2819_v58, %s13047_s12  ;;  %s13066_s12 = smov 8  }
 0xa79   : > { %v2820_v41 = vpop.f32.mrf.mxu0  ;;  %v2833_v43 = vpop.f32.mrf.mxu1 }
 0xa7c   : > { %2996 = vrot.lane.b32.xlu2 %v2819_v58, %s13074_s16  ;;  %2916 = vrot.lane.b32.xlu1 %v2819_v58, %s13070_s15 }
 0xa7d   : > { %3078 = vrot.lane.b32.xlu0 %v2819_v58, %s13052_s26  ;;  %s13062_s26 = smov 96  }
 0xa84   : > { %3238 = vrot.lane.b32.xlu2 %v2819_v58, %s13054_s28  ;;  %3076 = vrot.lane.b32.xlu1 %v2819_v58, %s13064_s1  ;;  %s13060_s28 = smov 80  }
 0xa85   : > { %3236 = vrot.lane.b32.xlu0 %v2819_v58, %s13056_s2 }
 0xa8c   : > { %3158 = vrot.lane.b32.xlu2 %v2819_v58, %s13072_s0  ;;  %3398 = vrot.lane.b32.xlu1 %v2819_v58, %s13066_s12 }
 0xa8d   : > { %3396 = vrot.lane.b32.xlu0 %v2819_v58, %s13058_s10 }
 0xa94   : > { %3318 = vrot.lane.b32.xlu2 %v2819_v58, %s13068_s11  ;;  %3156 = vrot.lane.b32.xlu1 %v2819_v58, %s13062_s26 }
 0xa95   : > { %3316 = vrot.lane.b32.xlu0 %v2819_v58, %s13060_s28 }
 0xace   : > { %v2999_v45 = vpop.permute.xlu2 %2998 }
 0xad6   : > { %v2997_v46 = vpop.permute.xlu2 %2996 }
 0xade   : > { %v3239_v44 = vpop.permute.xlu2 %3238 }
 0xae6   : > { %v3159_v48 = vpop.permute.xlu2 %3158  ;;  %v2919_v49 = vpop.permute.xlu1 %2918 }
 0xae7   : > { %v2837_v51 = vpop.permute.xlu0 %2836  ;;  %8588 = vmatpush.xpose.msk.msra.mxu3 %vm1472_vm1, %v2919_v49  ;;  %8600 = vmatpush.xpose.msk.msrb.mxu0 %vm1472_vm1, %v3159_v48 }
 0xae8   : > { %8584 = vmatpush.xpose.msk.msra.mxu2 %vm1472_vm1, %v2837_v51 }
 0xaeb   : > { %8592 = vmatpush.xpose.msk.msrb.mxu3 %vm1472_vm1, %v2999_v45  ;;  %8585 = vmatmul.msk.f32.vlgmr.msra.gmra.mxu2 %vm1472_vm1, %v2819_v58 }
 0xaec   : > { %8586 = vmatpush.msk.msrb.mxu2 %vm2892_vm12, %v11988_v50 }
 0xaee   : > { %v3319_v52 = vpop.permute.xlu2 %3318  ;;  %v2917_v54 = vpop.permute.xlu1 %2916 }
 0xaef   : > { %v3079_v55 = vpop.permute.xlu0 %3078  ;;  %8589 = vmatmul.msk.f32.vlgmr.msra.gmra.mxu3 %vm1472_vm1, %v2917_v54  ;;  %8608 = vmatpush.xpose.msk.msra.mxu0 %vm1472_vm1, %v3319_v52 }
 0xaf0   : > { %8596 = vmatpush.xpose.msk.msra.mxu3 %vm1472_vm1, %v3079_v55 }
 0xaf6   : > { %v3077_v56 = vpop.permute.xlu1 %3076 }
 0xaf7   : > { %8593 = vmatmul.msk.f32.vlgmr.msrb.gmra.mxu3 %vm1472_vm1, %v2997_v46  ;;  %v3237_v57 = vpop.permute.xlu0 %3236 }
 0xaf8   : > { %8604 = vmatpush.xpose.msk.msrb.mxu3 %vm1472_vm1, %v3239_v44 }
 0xafe   : > { %v3399_v60 = vpop.permute.xlu1 %3398 }
 0xaff   : > { %8597 = vmatmul.msk.f32.vlgmr.msra.gmra.mxu3 %vm1472_vm1, %v3077_v56  ;;  %v3397_v61 = vpop.permute.xlu0 %3396 }
 0xb00   : > { %8612 = vmatpush.xpose.msk.msra.mxu3 %vm1472_vm1, %v3399_v60 }
 0xb06   : > { %v3157_v62 = vpop.permute.xlu1 %3156 }
 0xb07   : > { %8601 = vmatmul.msk.f32.vlgmr.msrb.gmra.mxu0 %vm1472_vm1, %v3157_v62  ;;  %8605 = vmatmul.msk.f32.vlgmr.msrb.gmra.mxu3 %vm1472_vm1, %v3237_v57  ;;  %v3317_v63 = vpop.permute.xlu0 %3316 }
 0xb0f   : > { %8609 = vmatmul.msk.f32.vlgmr.msra.gmra.mxu0 %vm1472_vm1, %v3317_v63  ;;  %8613 = vmatmul.msk.f32.vlgmr.msra.gmra.mxu3 %vm1472_vm1, %v3397_v61 }
 0xb6e   : > { %v2859_v0 = vpop.f32.mrf.mxu2 }
 0xb6f   : > { %v2862_v1 = vmul.f32 0.35355338, %v2859_v0 }
 0xb71   : > { %v2864_v15 = vsel %vm2863_vm13, %v2862_v1, -inf }
 0xb72   : > { %2865 = vmax.xlane.f32.xlu1 %v2864_v15  ;;  %v2941_v2 = vpop.f32.mrf.mxu3 }
 0xb73   : > { %v2944_v12 = vmul.f32 0.35355338, %v2941_v2 }
 0xb75   : > { %v2945_v18 = vsel %vm2863_vm13, %v2944_v12, -inf }
 0xb7a   : > { %v3021_v3 = vpop.f32.mrf.mxu3 }
 0xb7b   : > { %v3024_v4 = vmul.f32 0.35355338, %v3021_v3 }
 0xb7d   : > { %v3025_v53 = vsel %vm2863_vm13, %v3024_v4, -inf }
 0xb7e   : > { %3026 = vmax.xlane.f32.xlu0 %v3025_v53 }
 0xb82   : > { %v3101_v38 = vpop.f32.mrf.mxu3 }
 0xb83   : > { %v12013_v22 = vmul.f32 0.35355338, %v3101_v38 }
 0xb84   : > { %v3181_v5 = vpop.f32.mrf.mxu0 }
 0xb85   : > { %v3184_v8 = vmul.f32 0.35355338, %v3181_v5  ;;  %v3105_v11 = vsel %vm2863_vm13, %v12013_v22, -inf }
 0xb87   : > { %v3185_v9 = vsel %vm2863_vm13, %v3184_v8, -inf }
 0xb88   : > { %3186 = vmax.xlane.f32.xlu2 %v3185_v9 }
 0xb8a   : > { %v3261_v10 = vpop.f32.mrf.mxu3 }
 0xb8b   : > { %v3264_v7 = vmul.f32 0.35355338, %v3261_v10 }
 0xb8c   : > { %v3341_v14 = vpop.f32.mrf.mxu0 }
 0xb8d   : > { %v3344_v17 = vmul.f32 0.35355338, %v3341_v14  ;;  %v3265_v13 = vsel %vm2863_vm13, %v3264_v7, -inf }
 0xb8f   : > { %v3345_v19 = vsel %vm2863_vm13, %v3344_v17, -inf }
 0xb90   : > { %2946 = vmax.xlane.f32.xlu2 %v2945_v18  ;;  %3346 = vmax.xlane.f32.xlu1 %v3345_v19 }
 0xb92   : > { %v3421_v6 = vpop.f32.mrf.mxu3 }
 0xb93   : > { %v3424_v23 = vmul.f32 0.35355338, %v3421_v6 }
 0xb95   : > { %v3425_v24 = vsel %vm2863_vm13, %v3424_v23, -inf }
 0xb96   : > { %3426 = vmax.xlane.f32.xlu0 %v3425_v24 }
 0xb98   : > { %3106 = vmax.xlane.f32.xlu2 %v3105_v11  ;;  %3266 = vmax.xlane.f32.xlu1 %v3265_v13 }
 0xbaa   : > { %2969 = vrot.lane.b32.xlu0 %v11988_v50, %s13070_s15  ;;  %s13147_s15 = sld [smem:[#allocation20_spill]] }
 0xbe5   : > { %v2866_v26 = vpop.xlane.xlu1 %2865 }
 0xbe6   : > { %v2867_v21 = vsub.f32 %v2862_v1, %v2866_v26 }
 0xbe8   : > { %v2868_v27 = vmul.f32 1.442695, %v2867_v21 }
 0xbea   : > { %11285 = vpow2.f32 %v2868_v27 }
 0xbf0   : > { %v12021_v29 = vpop.eup %11285 }
 0xbf1   : > { %v2870_v25 = vsel %vm2863_vm13, %v12021_v29, 0.0  ;;  %v3027_v28 = vpop.xlane.xlu0 %3026 }
 0xbf2   : > { %2871 = vadd.xlane.f32.xlu2 %v2870_v25  ;;  %v3028_v40 = vsub.f32 %v3024_v4, %v3027_v28 }
 0xbf4   : > { %v3029_v58 = vmul.f32 1.442695, %v3028_v40 }
 0xbfb   : > { %v3187_v59 = vpop.xlane.xlu2 %3186 }
 0xbfc   : > { %v3188_v30 = vsub.f32 %v3184_v8, %v3187_v59 }
 0xbfe   : > { %v3189_v31 = vmul.f32 1.442695, %v3188_v30 }
 0xc00   : > { %11287 = vpow2.f32 %v3189_v31 }
 0xc03   : > { %v2947_v32 = vpop.xlane.xlu2 %2946  ;;  %v3347_v33 = vpop.xlane.xlu1 %3346 }
 0xc04   : > { %v2948_v35 = vsub.f32 %v2944_v12, %v2947_v32  ;;  %v3348_v36 = vsub.f32 %v3344_v17, %v3347_v33 }
 0xc06   : > { %v12025_v42 = vpop.eup %11287  ;;  %v2949_v37 = vmul.f32 1.442695, %v2948_v35  ;;  %v3349_v39 = vmul.f32 1.442695, %v3348_v36 }
 0xc07   : > { %v3191_v34 = vsel %vm2863_vm13, %v12025_v42, 0.0 }
 0xc08   : > { %11289 = vpow2.f32 %v2949_v37  ;;  %3192 = vadd.xlane.f32.xlu1 %v3191_v34 }
 0xc09   : > { %11291 = vpow2.f32 %v3349_v39  ;;  %v3427_v49 = vpop.xlane.xlu0 %3426 }
 0xc0a   : > { %3049 = vrot.lane.b32.xlu2 %v11988_v50, %s13074_s16  ;;  %11293 = vpow2.f32 %v3029_v58  ;;  %v3428_v52 = vsub.f32 %v3424_v23, %v3427_v49  ;;  %s13149_s16 = sld [smem:[#allocation24_spill]] }
 0xc0b   : > { %v3267_v41 = vpop.xlane.xlu1 %3266  ;;  %v3107_v60 = vpop.xlane.xlu2 %3106 }
 0xc0c   : > { %v3268_v46 = vsub.f32 %v3264_v7, %v3267_v41  ;;  %v3429_v55 = vmul.f32 1.442695, %v3428_v52  ;;  %v3108_v62 = vsub.f32 %v12013_v22, %v3107_v60 }
 0xc0e   : > { %v12031_v43 = vpop.eup %11289  ;;  %v3269_v48 = vmul.f32 1.442695, %v3268_v46  ;;  %v3109_v0 = vmul.f32 1.442695, %v3108_v62 }
 0xc0f   : > { %v12033_v45 = vpop.eup %11291  ;;  %v2951_v44 = vsel %vm2863_vm13, %v12031_v43, 0.0 }
 0xc10   : > { %2952 = vadd.xlane.f32.xlu0 %v2951_v44  ;;  %v3351_v47 = vsel %vm2863_vm13, %v12033_v45, 0.0  ;;  %v12039_v51 = vpop.eup %11293  ;;  %11295 = vpow2.f32 %v3269_v48 }
 0xc11   : > { %3352 = vadd.xlane.f32.xlu1 %v3351_v47  ;;  %v3031_v54 = vsel %vm2863_vm13, %v12039_v51, 0.0  ;;  %11297 = vpow2.f32 %v3429_v55 }
 0xc12   : > { %11299 = vpow2.f32 %v3109_v0 }
 0xc16   : > { %v12043_v57 = vpop.eup %11295 }
 0xc17   : > { %v3271_v61 = vsel %vm2863_vm13, %v12043_v57, 0.0  ;;  %v12051_v63 = vpop.eup %11297 }
 0xc18   : > { %v3431_v1 = vsel %vm2863_vm13, %v12051_v63, 0.0  ;;  %v12057_v15 = vpop.eup %11299 }
 0xc19   : > { %3032 = vadd.xlane.f32.xlu1 %v3031_v54  ;;  %v3111_v2 = vsel %vm2863_vm13, %v12057_v15, 0.0 }
 0xc1c   : > { %v2970_v56 = vpop.permute.xlu0 %2969 }
 0xc1d   : > { %8590 = vmatpush.msk.msra.mxu2 %vm2892_vm12, %v2970_v56 }
 0xc21   : > { %3272 = vadd.xlane.f32.xlu1 %v3271_v61 }
 0xc24   : > { %3129 = vrot.lane.b32.xlu0 %v11988_v50, %s13064_s1  ;;  %s13144_s1 = smov 56  }
 0xc29   : > { %3432 = vadd.xlane.f32.xlu1 %v3431_v1 }
 0xc2c   : > { %3289 = vrot.lane.b32.xlu0 %v11988_v50, %s13056_s2  ;;  %s13140_s2 = sld [smem:[#allocation18_spill]] }
 0xc33   : > { %3112 = vadd.xlane.f32.xlu2 %v3111_v2 }
 0xc34   : > { %3369 = vrot.lane.b32.xlu0 %v11988_v50, %s13060_s28  ;;  %s13142_s28 = smov 24  }
 0xc42   : > { %3449 = vrot.lane.b32.xlu1 %v11988_v50, %s13058_s10  ;;  %s13141_s10 = smov 48  }
 0xc4b   : > { %3209 = vrot.lane.b32.xlu2 %v11988_v50, %s13062_s26  ;;  %s13143_s26 = smov 40  }
 0xc65   : > { %v2872_v3 = vpop.xlane.xlu2 %2871 }
 0xc66   : > { %11301 = vrcp.f32 %v2872_v3  ;;  %v2884_v5 = vand.u32 2147483648, %v2872_v3  ;;  %v2882_v9 = vand.u32 2147483647, %v2872_v3  ;;  %vm2878_vm2 = vweird.f32 %v2872_v3 }
 0xc68   : > { %v2885_v12 = vor.u32 1.1754944e-38, %v2884_v5  ;;  %vm2883_vm4 = vcmp.eq.f32.partialorder %v2882_v9, 8.507059e+37 }
 0xc6c   : > { %v11302_v4 = vpop.eup %11301 }
 0xc6d   : > { %v2874_v53 = vmul.f32 %v11302_v4, %v2872_v3  ;;  %vm2879_vm14 = vweird.f32 %v11302_v4  ;;  %v3050_v50 = vpop.permute.xlu2 %3049 }
 0xc6e   : > { %vm2880_vm3 = vmor %vm2878_vm2, %vm2879_vm14 }
 0xc6f   : > { %v2875_v38 = vsub.f32 1.0, %v2874_v53 }
 0xc71   : > { %v2876_v8 = vmul.f32 %v11302_v4, %v2875_v38 }
 0xc73   : > { %v2877_v10 = vadd.f32 %v11302_v4, %v2876_v8 }
 0xc75   : > { %v2881_v14 = vsel %vm2880_vm3, %v11302_v4, %v2877_v10 }
 0xc76   : > { %v2886_v17 = vsel %vm2883_vm4, %v2885_v12, %v2881_v14 }
 0xc77   : > { %v2887_v18 = vmul.f32 %v12021_v29, %v2886_v17 }
 0xc79   : > { %8587 = vmatmul.msk.f32.vlgmr.msrb.gmra.mxu2 %vm2888_vm5, %v2887_v18 }
 0xc7a   : > { %8594 = vmatpush.msk.msrb.mxu2 %vm2892_vm12, %v3050_v50 }
 0xc7b   : > { %v12070_v19 = vpop.xlane.xlu1 %3192 }
 0xc7c   : > { %v3205_v60 = vand.u32 2147483648, %v12070_v19  ;;  %v3203_v62 = vand.u32 2147483647, %v12070_v19 }
 0xc7e   : > { %v3206_v3 = vor.u32 1.1754944e-38, %v3205_v60  ;;  %v10703_v60 = vld [vmem:[%s13140_s2 + $0x8] sm:$0xff] }
 0xc83   : > { %v2953_v6 = vpop.xlane.xlu0 %2952 }
 0xc84   : > { %v12072_v22 = vpop.xlane.xlu1 %3352  ;;  %11303 = vrcp.f32 %v2953_v6  ;;  %v2965_v13 = vand.u32 2147483648, %v2953_v6  ;;  %v2963_v21 = vand.u32 2147483647, %v2953_v6  ;;  %vm2959_vm9 = vweird.f32 %v2953_v6 }
 0xc85   : > { %v3365_v38 = vand.u32 2147483648, %v12072_v22  ;;  %v3363_v8 = vand.u32 2147483647, %v12072_v22 }
 0xc86   : > { %v2966_v29 = vor.u32 1.1754944e-38, %v2965_v13  ;;  %vm2964_vm14 = vcmp.eq.f32.partialorder %v2963_v21, 8.507059e+37 }
 0xc8a   : > { %v11304_v7 = vpop.eup %11303 }
 0xc8b   : > { %v2955_v23 = vmul.f32 %v11304_v7, %v2953_v6  ;;  %vm2960_vm8 = vweird.f32 %v11304_v7 }
 0xc8c   : > { %v3033_v24 = vpop.xlane.xlu1 %3032  ;;  %vm2961_vm10 = vmor %vm2959_vm9, %vm2960_vm8 }
 0xc8d   : > { %v2956_v11 = vsub.f32 1.0, %v2955_v23  ;;  %11305 = vrcp.f32 %v3033_v24  ;;  %v3045_v36 = vand.u32 2147483648, %v3033_v24  ;;  %v3043_v40 = vand.u32 2147483647, %v3033_v24 }
 0xc8e   : > { %11307 = vrcp.f32 %v12070_v19  ;;  %vm3039_vm3 = vweird.f32 %v3033_v24 }
 0xc8f   : > { %v2957_v26 = vmul.f32 %v11304_v7, %v2956_v11  ;;  %11309 = vrcp.f32 %v12072_v22  ;;  %v3046_v41 = vor.u32 1.1754944e-38, %v3045_v36  ;;  %vm3044_vm8 = vcmp.eq.f32.partialorder %v3043_v40, 8.507059e+37 }
 0xc91   : > { %v2958_v27 = vadd.f32 %v11304_v7, %v2957_v26 }
 0xc93   : > { %v11306_v25 = vpop.eup %11305  ;;  %v2962_v59 = vsel %vm2961_vm10, %v11304_v7, %v2958_v27  ;;  %vm3199_vm10 = vweird.f32 %v12070_v19 }
 0xc94   : > { %v2967_v30 = vsel %vm2964_vm14, %v2966_v29, %v2962_v59  ;;  %v3035_v31 = vmul.f32 %v11306_v25, %v3033_v24  ;;  %v11308_v32 = vpop.eup %11307  ;;  %vm3040_vm2 = vweird.f32 %v11306_v25  ;;  %v12080_v47 = vpop.xlane.xlu1 %3272 }
 0xc95   : > { %v2968_v35 = vmul.f32 %v12031_v43, %v2967_v30  ;;  %v3195_v37 = vmul.f32 %v11308_v32, %v12070_v19  ;;  %v11310_v58 = vpop.eup %11309  ;;  %vm3041_vm4 = vmor %vm3039_vm3, %vm3040_vm2  ;;  %11311 = vrcp.f32 %v12080_v47  ;;  %vm3200_vm9 = vweird.f32 %v11308_v32 }
 0xc96   : > { %v3036_v33 = vsub.f32 1.0, %v3035_v31  ;;  %v3130_v28 = vpop.permute.xlu0 %3129  ;;  %v3355_v48 = vmul.f32 %v11310_v58, %v12072_v22  ;;  %vm3201_vm14 = vmor %vm3199_vm10, %vm3200_vm9  ;;  %vm3204_vm2 = vcmp.eq.f32.partialorder %v3203_v62, 8.507059e+37  ;;  %vm3360_vm3 = vweird.f32 %v11310_v58 }
 0xc97   : > { %8591 = vmatmul.msk.f32.vlgmr.msra.gmra.mxu2 %vm2888_vm5, %v2968_v35  ;;  %v3196_v46 = vsub.f32 1.0, %v3195_v37  ;;  %v3366_v19 = vor.u32 1.1754944e-38, %v3365_v38  ;;  %vm3364_vm9 = vcmp.eq.f32.partialorder %v3363_v8, 8.507059e+37  ;;  %v3285_v30 = vand.u32 2147483648, %v12080_v47 }
 0xc98   : > { %v3037_v39 = vmul.f32 %v11306_v25, %v3036_v33  ;;  %8598 = vmatpush.msk.msra.mxu2 %vm2892_vm12, %v3130_v28  ;;  %v3356_v55 = vsub.f32 1.0, %v3355_v48 }
 0xc99   : > { %v3197_v54 = vmul.f32 %v11308_v32, %v3196_v46  ;;  %v3286_v36 = vor.u32 1.1754944e-38, %v3285_v30 }
 0xc9a   : > { %v3038_v34 = vadd.f32 %v11306_v25, %v3037_v39  ;;  %v3357_v0 = vmul.f32 %v11310_v58, %v3356_v55  ;;  %v10705_v55 = vld [vmem:[%s13140_s2 + $0x18] sm:$0xff] }
 0xc9b   : > { %v3198_v56 = vadd.f32 %v11308_v32, %v3197_v54  ;;  %v12088_v61 = vpop.eup %11311  ;;  %3549 = vmatpush.bf16.msrb.mxu0 %v10705_v55 }
 0xc9c   : > { %v3042_v44 = vsel %vm3041_vm4, %v11306_v25, %v3038_v34  ;;  %v3275_v4 = vmul.f32 %v12088_v61, %v12080_v47  ;;  %v3358_v53 = vadd.f32 %v11310_v58, %v3357_v0  ;;  %vm3359_vm4 = vweird.f32 %v12072_v22 }
 0xc9d   : > { %v3047_v43 = vsel %vm3044_vm8, %v3046_v41, %v3042_v44  ;;  %v3202_v2 = vsel %vm3201_vm14, %v11308_v32, %v3198_v56  ;;  %vm3361_vm8 = vmor %vm3359_vm4, %vm3360_vm3  ;;  %v3283_v32 = vand.u32 2147483647, %v12080_v47  ;;  %v10704_v56 = vld [vmem:[%s13140_s2 + $0x10] sm:$0xff] }
 0xc9e   : > { %v3290_v49 = vpop.permute.xlu0 %3289  ;;  %v3048_v52 = vmul.f32 %v12039_v51, %v3047_v43  ;;  %v12092_v51 = vpop.xlane.xlu1 %3432  ;;  %v3207_v5 = vsel %vm3204_vm2, %v3206_v3, %v3202_v2  ;;  %v3276_v10 = vsub.f32 1.0, %v3275_v4  ;;  %v3362_v12 = vsel %vm3361_vm8, %v11310_v58, %v3358_v53 }
 0xc9f   : > { %v3208_v18 = vmul.f32 %v12025_v42, %v3207_v5  ;;  %v3367_v23 = vsel %vm3364_vm9, %v3366_v19, %v3362_v12  ;;  %vm3280_vm2 = vweird.f32 %v12088_v61  ;;  %vm3279_vm8 = vweird.f32 %v12080_v47  ;;  %3550 = vmatpush.bf16.msrb.mxu0 %v10704_v56 }
 0xca0   : > { %8595 = vmatmul.msk.f32.vlgmr.msrb.gmra.mxu2 %vm2888_vm5, %v3048_v52  ;;  %v3277_v22 = vmul.f32 %v12088_v61, %v3276_v10  ;;  %v3368_v27 = vmul.f32 %v12033_v45, %v3367_v23  ;;  %vm3281_vm9 = vmor %vm3279_vm8, %vm3280_vm2  ;;  %v3445_v40 = vand.u32 2147483648, %v12092_v51  ;;  %vm13088_vm8 = vcmask 326656  }
 0xca1   : > { %8606 = vmatpush.msk.msrb.mxu2 %vm2892_vm12, %v3290_v49  ;;  %v11444_v23 = vmov 64.0  }
 0xca2   : > { %v3278_v29 = vadd.f32 %v12088_v61, %v3277_v22  ;;  %v3446_v41 = vor.u32 1.1754944e-38, %v3445_v40 }
 0xca3   : > { %3551 = vmatpush.bf16.msrb.mxu0 %v10703_v60 }
 0xca4   : > { %v3282_v28 = vsel %vm3281_vm9, %v12088_v61, %v3278_v29  ;;  %v10702_v61 = vld [vmem:[%s13140_s2] sm:$0xff]  ;;  %vm13087_vm9 = vcmask 392192  }
 0xca6   : > { %v3113_v1 = vpop.xlane.xlu2 %3112  ;;  %v3370_v7 = vpop.permute.xlu0 %3369 }
 0xca7   : > { %11313 = vrcp.f32 %v3113_v1  ;;  %v3125_v24 = vand.u32 2147483648, %v3113_v1  ;;  %v3123_v42 = vand.u32 2147483647, %v3113_v1  ;;  %vm3119_vm14 = vweird.f32 %v3113_v1  ;;  %3552 = vmatpush.bf16.msrb.mxu0 %v10702_v61 }
 0xca8   : > { %11315 = vrcp.f32 %v12092_v51 }
 0xca9   : > { %v3126_v21 = vor.u32 1.1754944e-38, %v3125_v24  ;;  %vm3124_vm4 = vcmp.eq.f32.partialorder %v3123_v42, 8.507059e+37  ;;  %11317 = vrcp.f32 %v11444_v23 }
 0xcad   : > { %v11314_v9 = vpop.eup %11313 }
 0xcae   : > { %v3115_v14 = vmul.f32 %v11314_v9, %v3113_v1  ;;  %v3210_v17 = vpop.permute.xlu2 %3209  ;;  %v11316_v50 = vpop.eup %11315  ;;  %vm3120_vm10 = vweird.f32 %v11314_v9 }
 0xcaf   : > { %8602 = vmatpush.msk.msrb.mxu1 %vm2892_vm12, %v3210_v17  ;;  %v3435_v11 = vmul.f32 %v11316_v50, %v12092_v51  ;;  %vm3121_vm3 = vmor %vm3119_vm14, %vm3120_vm10  ;;  %vm3284_vm10 = vcmp.eq.f32.partialorder %v3283_v32, 8.507059e+37  ;;  %vm3440_vm14 = vweird.f32 %v11316_v50  ;;  %v11318_v22 = vpop.eup %11317 }
 0xcb0   : > { %v3116_v6 = vsub.f32 1.0, %v3115_v14  ;;  %8603 = vmatmul.msk.f32.vlgmr.msrb.gmra.mxu1 %vm2888_vm5, %v3208_v18  ;;  %v3287_v37 = vsel %vm3284_vm10, %v3286_v36, %v3282_v28  ;;  %vm13086_vm10 = vcmask 457728   ;;  %v3564_v24 = vmul.f32 64.0, %v11318_v22 }
 0xcb1   : > { %8610 = vmatpush.msk.msra.mxu1 %vm2892_vm12, %v3370_v7  ;;  %v3436_v25 = vsub.f32 1.0, %v3435_v11  ;;  %v3288_v34 = vmul.f32 %v12043_v57, %v3287_v37 }
 0xcb2   : > { %v3117_v13 = vmul.f32 %v11314_v9, %v3116_v6  ;;  %v3565_v11 = vsub.f32 1.0, %v3564_v24 }
 0xcb3   : > { %v3437_v45 = vmul.f32 %v11316_v50, %v3436_v25 }
 0xcb4   : > { %v3118_v26 = vadd.f32 %v11314_v9, %v3117_v13  ;;  %v3450_v35 = vpop.permute.xlu1 %3449  ;;  %v3566_v13 = vmul.f32 %v11318_v22, %v3565_v11 }
 0xcb5   : > { %v3438_v39 = vadd.f32 %v11316_v50, %v3437_v45 }
 0xcb6   : > { %v3122_v59 = vsel %vm3121_vm3, %v11314_v9, %v3118_v26  ;;  %vm3439_vm3 = vweird.f32 %v12092_v51  ;;  %v3567_v42 = vadd.f32 %v11318_v22, %v3566_v13 }
 0xcb7   : > { %v3127_v31 = vsel %vm3124_vm4, %v3126_v21, %v3122_v59  ;;  %vm3441_vm2 = vmor %vm3439_vm3, %vm3440_vm14  ;;  %vm13084_vm14 = vcmask 517120   ;;  %vm3568_vm3 = vweird.f32 %v11318_v22 }
 0xcb8   : > { %8611 = vmatmul.msk.f32.vlgmr.msra.gmra.mxu1 %vm2888_vm5, %v3368_v27  ;;  %v3128_v33 = vmul.f32 %v12057_v15, %v3127_v31  ;;  %v3443_v15 = vand.u32 2147483647, %v12092_v51  ;;  %v3442_v58 = vsel %vm3441_vm2, %v11316_v50, %v3438_v39  ;;  %v12146_v26 = vsel %vm3568_vm3, %v11318_v22, %v3567_v42 }
 0xcba   : > { %8599 = vmatmul.msk.f32.vlgmr.msra.gmra.mxu2 %vm2888_vm5, %v3128_v33  ;;  %vm3444_vm4 = vcmp.eq.f32.partialorder %v3443_v15, 8.507059e+37 }
 0xcbb   : > { %8614 = vmatpush.msk.msra.mxu2 %vm2892_vm12, %v3450_v35  ;;  %v3447_v46 = vsel %vm3444_vm4, %v3446_v41, %v3442_v58 }
 0xcbc   : > { %v3448_v44 = vmul.f32 %v12051_v63, %v3447_v46 }
 0xcc2   : > { %8607 = vmatmul.msk.f32.vlgmr.msrb.gmra.mxu2 %vm2888_vm5, %v3288_v34 }
 0xcca   : > { %8615 = vmatmul.msk.f32.vlgmr.msra.gmra.mxu2 %vm2888_vm5, %v3448_v44 }
 0xcfc   : > { %v2913_v47 = vpop.f32.mrf.mxu2 }
 0xd1a   : > { %v2993_v43 = vpop.f32.mrf.mxu2 }
 0xd1b   : > { %3477 = vrot.lane.b32.xlu2 %v2993_v43, %s13066_s12  ;;  %s13145_s12 = sld [smem:[#allocation19_spill]] }
 0xd21   : > { %v11265_v17 = vld [vmem:[%s13145_s12] ss:$0 sm:$0xff] }
 0xd23   : > { %v3073_v57 = vpop.f32.mrf.mxu2 }
 0xd2d   : > { %v3233_v48 = vpop.f32.mrf.mxu1 }
 0xd2e   : > { %3489 = vrot.lane.b32.xlu0 %v3233_v48, %s13072_s0  ;;  %s13148_s0 = sld [smem:[#allocation21_spill]] }
 0xd35   : > { %v3393_v49 = vpop.f32.mrf.mxu1 }
 0xd36   : > { %3481 = vrot.lane.b32.xlu0 %v3073_v57, %s13068_s11  ;;  %3497 = vrot.lane.b32.xlu1 %v3393_v49, %s13141_s10  ;;  %s13146_s11 = sld [smem:[#allocation22_spill]] }
 0xd3c   : > { %v8827_v59 = vld [vmem:[%s13146_s11 + $0x180] sm:$0xf]  ;;  %v10754_v31 = vld [vmem:[%s13146_s11 + $0x184] sm:$0xf]  ;;  %v8835_v28 = vld [vmem:[%s13146_s11 + $0x188] sm:$0xf] }
 0xd3d   : > { %v3153_v63 = vpop.f32.mrf.mxu2  ;;  %v10762_v30 = vld [vmem:[%s13146_s11 + $0x1bc] sm:$0xf0]  ;;  %v8829_v33 = vld [vmem:[%s13146_s11 + $0x1c0] sm:$0xf0]  ;;  %v10763_v45 = vld [vmem:[%s13146_s11 + $0x1c4] sm:$0xf0] }
 0xd3e   : > { %3485 = vrot.lane.b32.xlu2 %v3153_v63, %s13142_s28  ;;  %v8828_v32 = vor.u32 %v10762_v30, %v8827_v59  ;;  %v8832_v35 = vor.u32 %v10754_v31, %v8829_v33  ;;  %v8836_v36 = vor.u32 %v10763_v45, %v8835_v28  ;;  %v10755_v37 = vld [vmem:[%s13146_s11 + $0x18c] sm:$0xf]  ;;  %v8763_v15 = vld [vmem:[%s13146_s11 + $0x100] sm:$0xf]  ;;  %v10738_v58 = vld [vmem:[%s13146_s11 + $0x104] sm:$0xf] }
 0xd3f   : > { %v8837_v39 = vld [vmem:[%s13146_s11 + $0x1c8] sm:$0xf0]  ;;  %v10746_v34 = vld [vmem:[%s13146_s11 + $0x13c] sm:$0xf0]  ;;  %v8765_v46 = vld [vmem:[%s13146_s11 + $0x140] sm:$0xf0] }
 0xd40   : > { %3959 = vmatpush.bf16.msrb.mxu1 %v8828_v32  ;;  %v8840_v40 = vor.u32 %v10755_v37, %v8837_v39  ;;  %3972 = vmatpush.bf16.msrb.mxu3 %v8832_v35  ;;  %v8764_v41 = vor.u32 %v10746_v34, %v8763_v15  ;;  %v8771_v44 = vld [vmem:[%s13146_s11 + $0x108] sm:$0xf]  ;;  %v8768_v43 = vor.u32 %v10738_v58, %v8765_v46  ;;  %v10739_v57 = vld [vmem:[%s13146_s11 + $0x10c] sm:$0xf]  ;;  %v10722_v55 = vld [vmem:[%s13146_s11 + $0x84] sm:$0xf] }
 0xd41   : > { %3985 = vmatpush.bf16.msrb.mxu2 %v8836_v36  ;;  %v8773_v49 = vld [vmem:[%s13146_s11 + $0x148] sm:$0xf0]  ;;  %v8701_v60 = vld [vmem:[%s13146_s11 + $0xc0] sm:$0xf0]  ;;  %v8707_v61 = vld [vmem:[%s13146_s11 + $0x88] sm:$0xf] }
 0xd42   : > { %3998 = vmatpush.bf16.msra.mxu0 %v8840_v40  ;;  %v8776_v63 = vor.u32 %v10739_v57, %v8773_v49  ;;  %v8845_v22 = vld [vmem:[%s13146_s11 + $0x1d0] sm:$0xf0]  ;;  %v8851_v24 = vld [vmem:[%s13146_s11 + $0x198] sm:$0xf]  ;;  %v10748_v31 = vld [vmem:[%s13146_s11 + $0x14c] sm:$0xf0] }
 0xd43   : > { %v10765_v11 = vld [vmem:[%s13146_s11 + $0x1d4] sm:$0xf0]  ;;  %v10740_v32 = vld [vmem:[%s13146_s11 + $0x114] sm:$0xf]  ;;  %v10741_v37 = vld [vmem:[%s13146_s11 + $0x11c] sm:$0xf] }
 0xd44   : > { %3960 = vmatpush.bf16.msrb.mxu1 %v8764_v41  ;;  %3973 = vmatpush.bf16.msrb.mxu3 %v8768_v43  ;;  %v8781_v33 = vld [vmem:[%s13146_s11 + $0x150] sm:$0xf0]  ;;  %v8787_v35 = vld [vmem:[%s13146_s11 + $0x118] sm:$0xf]  ;;  %v8789_v15 = vld [vmem:[%s13146_s11 + $0x158] sm:$0xf0] }
 0xd45   : > { %v3313_v52 = vpop.f32.mrf.mxu2  ;;  %v8784_v45 = vor.u32 %v10740_v32, %v8781_v33  ;;  %v10749_v36 = vld [vmem:[%s13146_s11 + $0x154] sm:$0xf0]  ;;  %v8715_v34 = vld [vmem:[%s13146_s11 + $0x90] sm:$0xf]  ;;  %v8792_v58 = vor.u32 %v10741_v37, %v8789_v15  ;;  %v10724_v46 = vld [vmem:[%s13146_s11 + $0x94] sm:$0xf] }
 0xd46   : > { %3493 = vrot.lane.b32.xlu2 %v3313_v52, %s13143_s26  ;;  %v8699_v52 = vld [vmem:[%s13146_s11 + $0x80] sm:$0xf]  ;;  %3999 = vmatpush.bf16.msra.mxu0 %v8776_v63  ;;  %v8788_v40 = vor.u32 %v10749_v36, %v8787_v35  ;;  %v10732_v41 = vld [vmem:[%s13146_s11 + $0xcc] sm:$0xf0]  ;;  %v8723_v43 = vld [vmem:[%s13146_s11 + $0x98] sm:$0xf] }
 0xd47   : > { %v10725_v57 = vld [vmem:[%s13146_s11 + $0x9c] sm:$0xf]  ;;  %v10742_v32 = vld [vmem:[%s13146_s11 + $0x124] sm:$0xf]  ;;  %v10743_v35 = vld [vmem:[%s13146_s11 + $0x12c] sm:$0xf] }
 0xd48   : > { %v8797_v33 = vld [vmem:[%s13146_s11 + $0x160] sm:$0xf0]  ;;  %v8805_v36 = vld [vmem:[%s13146_s11 + $0x168] sm:$0xf0]  ;;  %v10734_v15 = vld [vmem:[%s13146_s11 + $0xdc] sm:$0xf0] }
 0xd4d   : > { %v3473_v54 = vpop.f32.mrf.mxu2 }
 0xd4e   : > { %3501 = vrot.lane.b32.xlu0 %v3473_v54, %s13144_s1  ;;  %v10730_v54 = vld [vmem:[%s13146_s11 + $0xbc] sm:$0xf0] }
 0xd4f   : > { %v8700_v56 = vor.u32 %v10730_v54, %v8699_v52  ;;  %v8725_v52 = vld [vmem:[%s13146_s11 + $0xd8] sm:$0xf0]  ;;  %v8651_v54 = vld [vmem:[%s13146_s11 + $0x10] sm:$0xf] }
 0xd51   : > { %3961 = vmatpush.bf16.msrb.mxu1 %v8700_v56  ;;  %v8728_v56 = vor.u32 %v10725_v57, %v8725_v52  ;;  %v10718_v52 = vld [vmem:[%s13146_s11 + $0x5c] sm:$0xf0] }
 0xd75   : > { %v3478_v0 = vpop.permute.xlu2 %3477 }
 0xd76   : > { %v3504_v2 = vsel %vm1472_vm1, %v2913_v47, %v3478_v0  ;;  %v10747_v47 = vld [vmem:[%s13146_s11 + $0x144] sm:$0xf0]  ;;  %v8704_v0 = vor.u32 %v10722_v55, %v8701_v60  ;;  %v10716_v55 = vld [vmem:[%s13146_s11 + $0x4c] sm:$0xf0]  ;;  %v10708_v60 = vld [vmem:[%s13146_s11 + $0x14] sm:$0xf] }
 0xd77   : > { %v8772_v48 = vor.u32 %v10747_v47, %v8771_v44  ;;  %v8717_v44 = vld [vmem:[%s13146_s11 + $0xd0] sm:$0xf0]  ;;  %v8716_v47 = vor.u32 %v10732_v41, %v8715_v34  ;;  %v10726_v41 = vld [vmem:[%s13146_s11 + $0xa4] sm:$0xf] }
 0xd78   : > { %3974 = vmatpush.bf16.msrb.mxu3 %v8704_v0  ;;  %v8720_v49 = vor.u32 %v10724_v46, %v8717_v44  ;;  %v10717_v0 = vld [vmem:[%s13146_s11 + $0x54] sm:$0xf0]  ;;  %v8733_v46 = vld [vmem:[%s13146_s11 + $0xe0] sm:$0xf0]  ;;  %v8739_v44 = vld [vmem:[%s13146_s11 + $0xa8] sm:$0xf] }
 0xd79   : > { %3986 = vmatpush.bf16.msrb.mxu2 %v8772_v48  ;;  %v10733_v48 = vld [vmem:[%s13146_s11 + $0xd4] sm:$0xf0] }
 0xd7a   : > { %v8724_v63 = vor.u32 %v10733_v48, %v8723_v43  ;;  %v10727_v43 = vld [vmem:[%s13146_s11 + $0xac] sm:$0xf] }
 0xd7b   : > { %v8741_v48 = vld [vmem:[%s13146_s11 + $0xe8] sm:$0xf0] }
 0xd98   : > { %v3486_v1 = vpop.permute.xlu2 %3485 }
 0xda0   : > { %v3490_v62 = vpop.permute.xlu0 %3489  ;;  %v3494_v38 = vpop.permute.xlu2 %3493 }
 0xda8   : > { %v3482_v51 = vpop.permute.xlu0 %3481  ;;  %v3498_v8 = vpop.permute.xlu1 %3497 }
 0xda9   : > { %v3505_v3 = vsel %vm2138_vm6, %v3504_v2, %v3482_v51  ;;  %v8709_v2 = vld [vmem:[%s13146_s11 + $0xc8] sm:$0xf0] }
 0xdaa   : > { %v3506_v4 = vsel %vm2141_vm7, %v3505_v3, %v3486_v1  ;;  %v10723_v1 = vld [vmem:[%s13146_s11 + $0x8c] sm:$0xf] }
 0xdab   : > { %v3507_v53 = vsel %vm1451_vm0, %v3506_v4, %v3490_v62  ;;  %v10731_v62 = vld [vmem:[%s13146_s11 + $0xc4] sm:$0xf0]  ;;  %v8712_v3 = vor.u32 %v10723_v1, %v8709_v2  ;;  %v8635_v4 = vld [vmem:[%s13146_s11] sm:$0xf]  ;;  %v8661_v1 = vld [vmem:[%s13146_s11 + $0x58] sm:$0xf0]  ;;  %v8652_v2 = vor.u32 %v10716_v55, %v8651_v54  ;;  %v8744_v55 = vor.u32 %v10727_v43, %v8741_v48 }
 0xdac   : > { %v3509_v5 = vsel %vm13088_vm8, %v3507_v53, %v3494_v38  ;;  %v8708_v51 = vor.u32 %v10731_v62, %v8707_v61  ;;  %v10714_v53 = vld [vmem:[%s13146_s11 + $0x3c] sm:$0xf0]  ;;  %v10706_v38 = vld [vmem:[%s13146_s11 + $0x4] sm:$0xf]  ;;  %v8653_v61 = vld [vmem:[%s13146_s11 + $0x50] sm:$0xf0] }
 0xdad   : > { %v3511_v9 = vsel %vm13087_vm9, %v3509_v5, %v3498_v8  ;;  %4000 = vmatpush.bf16.msra.mxu0 %v8712_v3  ;;  %v8636_v5 = vor.u32 %v10714_v53, %v8635_v4  ;;  %v8637_v8 = vld [vmem:[%s13146_s11 + $0x40] sm:$0xf0]  ;;  %v8659_v62 = vld [vmem:[%s13146_s11 + $0x18] sm:$0xf]  ;;  %v8656_v3 = vor.u32 %v10708_v60, %v8653_v61  ;;  %v8675_v61 = vld [vmem:[%s13146_s11 + $0x28] sm:$0xf] }
 0xdae   : > { %3987 = vmatpush.bf16.msrb.mxu2 %v8708_v51  ;;  %v10709_v51 = vld [vmem:[%s13146_s11 + $0x1c] sm:$0xf]  ;;  %v8660_v4 = vor.u32 %v10717_v0, %v8659_v62  ;;  %v8669_v60 = vld [vmem:[%s13146_s11 + $0x60] sm:$0xf0]  ;;  %v10719_v62 = vld [vmem:[%s13146_s11 + $0x64] sm:$0xf0] }
 0xdaf   : > { %3962 = vmatpush.bf16.msrb.mxu1 %v8636_v5  ;;  %v10711_v0 = vld [vmem:[%s13146_s11 + $0x2c] sm:$0xf]  ;;  %v10713_v43 = vld [vmem:[%s13146_s11 + $0x3c] sm:$0xf] }
 0xdb0   : > { %v8693_v48 = vld [vmem:[%s13146_s11 + $0x78] sm:$0xf0] }
 0xdc0   : > { %v3502_v10 = vpop.permute.xlu0 %3501 }
 0xdc1   : > { %v3513_v12 = vsel %vm13086_vm10, %v3511_v9, %v3502_v10  ;;  %v8643_v9 = vld [vmem:[%s13146_s11 + $0x8] sm:$0xf] }
 0xdc2   : > { %v3514_v14 = vpack.c.bf16 %v3513_v12, %v3513_v12  ;;  %v10715_v10 = vld [vmem:[%s13146_s11 + $0x44] sm:$0xf0]  ;;  %v8640_v12 = vor.u32 %v10706_v38, %v8637_v8  ;;  %v8664_v38 = vor.u32 %v10709_v51, %v8661_v1  ;;  %v8677_v51 = vld [vmem:[%s13146_s11 + $0x68] sm:$0xf0] }
 0xdc4   : > { %8632 = vmatmul.msk.bf16.vlgmr.msrb.gmra.mxu0 %vm13085_vm15, %v3514_v14  ;;  %v8644_v14 = vor.u32 %v10715_v10, %v8643_v9  ;;  %3975 = vmatpush.bf16.msrb.mxu3 %v8640_v12 }
 0xdc6   : > { %3988 = vmatpush.bf16.msrb.mxu2 %v8644_v14  ;;  %v11266_v14 = vld [vmem:[%s13147_s15] ss:$0 sm:$0xff] }
 0xe41   : > { %v3554_v18 = vpop.f32.mrf.mxu0 }
 0xe42   : > { %v3555_v50 = vadd.f32 %v11265_v17, %v3554_v18  ;;  %v10707_v17 = vld [vmem:[%s13146_s11 + $0xc] sm:$0xf] }
 0xe43   : > { %v8645_v18 = vld [vmem:[%s13146_s11 + $0x48] sm:$0xf0] }
 0xe44   : > { %v3558_v19 = vadd.f32 %v3555_v50, %v11966_v20  ;;  %v8648_v50 = vor.u32 %v10707_v17, %v8645_v18  ;;  %v11267_v18 = vld [vmem:[%s13148_s0] ss:$0 sm:$0xff] }
 0xe46   : > { %v3560_v6 = vsel %vm13084_vm14, %v3558_v19, 0.0  ;;  %4001 = vmatpush.bf16.msra.mxu0 %v8648_v50 }
 0xe47   : > { %3561 = vadd.xlane.f32.xlu2 %v3560_v6  ;;  %v10764_v6 = vld [vmem:[%s13146_s11 + $0x1cc] sm:$0xf0] }
 0xe49   : > { %v3556_v7 = vpop.f32.mrf.mxu0 }
 0xe4a   : > { %v10756_v7 = vld [vmem:[%s13146_s11 + $0x194] sm:$0xf] }
 0xe4b   : > { %v8848_v42 = vor.u32 %v10756_v7, %v8845_v22  ;;  %v10766_v7 = vld [vmem:[%s13146_s11 + $0x1dc] sm:$0xf0]  ;;  %v8861_v22 = vld [vmem:[%s13146_s11 + $0x1e0] sm:$0xf0] }
 0xe4d   : > { %4024 = vmatpush.bf16.msra.mxu3 %v8848_v42  ;;  %v10759_v42 = vld [vmem:[%s13146_s11 + $0x1ac] sm:$0xf] }
 0xe51   : > { %4025 = vmatpush.bf16.msra.mxu3 %v8784_v45  ;;  %v10751_v45 = vld [vmem:[%s13146_s11 + $0x164] sm:$0xf0] }
 0xe55   : > { %4026 = vmatpush.bf16.msra.mxu3 %v8720_v49  ;;  %v8736_v49 = vor.u32 %v10726_v41, %v8733_v46  ;;  %v10712_v41 = vld [vmem:[%s13146_s11 + $0x34] sm:$0xf] }
 0xe56   : > { %v8685_v46 = vld [vmem:[%s13146_s11 + $0x70] sm:$0xf0] }
 0xe59   : > { %4027 = vmatpush.bf16.msra.mxu3 %v8656_v3  ;;  %v8875_v3 = vld [vmem:[%s13146_s11 + $0x1b0] sm:$0xf] }
 0xeba   : > { %v3562_v20 = vpop.xlane.xlu2 %3561 }
 0xebb   : > { %v3570_v21 = vmul.f32 %v12146_v26, %v3562_v20  ;;  %v8852_v20 = vor.u32 %v10765_v11, %v8851_v24  ;;  %v8867_v24 = vld [vmem:[%s13146_s11 + $0x1a8] sm:$0xf] }
 0xebd   : > { %v12149_v27 = vsub.f32 %v3558_v19, %v3570_v21  ;;  %v8843_v19 = vld [vmem:[%s13146_s11 + $0x190] sm:$0xf]  ;;  %v10757_v21 = vld [vmem:[%s13146_s11 + $0x19c] sm:$0xf]  ;;  %4037 = vmatpush.bf16.msra.mxu2 %v8852_v20  ;;  %v8869_v20 = vld [vmem:[%s13146_s11 + $0x1e8] sm:$0xf0] }
 0xebe   : > { %v8844_v23 = vor.u32 %v10764_v6, %v8843_v19  ;;  %v8859_v6 = vld [vmem:[%s13146_s11 + $0x1a0] sm:$0xf] }
 0xebf   : > { %v3572_v29 = vmul.f32 %v12149_v27, %v12149_v27 }
 0xec0   : > { %4011 = vmatpush.bf16.msra.mxu1 %v8844_v23  ;;  %v10758_v23 = vld [vmem:[%s13146_s11 + $0x1a4] sm:$0xf] }
 0xec1   : > { %v3573_v25 = vsel %vm13084_vm14, %v3572_v29, 0.0  ;;  %v8853_v29 = vld [vmem:[%s13146_s11 + $0x1d8] sm:$0xf0]  ;;  %4038 = vmatpush.bf16.msra.mxu2 %v8788_v40  ;;  %v8731_v40 = vld [vmem:[%s13146_s11 + $0xa0] sm:$0xf] }
 0xec2   : > { %3574 = vadd.xlane.f32.xlu1 %v3573_v25  ;;  %v8779_v25 = vld [vmem:[%s13146_s11 + $0x110] sm:$0xf]  ;;  %v8856_v30 = vor.u32 %v10757_v21, %v8853_v29  ;;  %v8860_v21 = vor.u32 %v10766_v7, %v8859_v6  ;;  %v8864_v29 = vor.u32 %v10758_v23, %v8861_v22  ;;  %v8732_v57 = vor.u32 %v10734_v15, %v8731_v40  ;;  %v10744_v23 = vld [vmem:[%s13146_s11 + $0x134] sm:$0xf] }
 0xec3   : > { %v8780_v28 = vor.u32 %v10748_v31, %v8779_v25  ;;  %v8795_v25 = vld [vmem:[%s13146_s11 + $0x120] sm:$0xf]  ;;  %v8872_v31 = vor.u32 %v10759_v42, %v8869_v20  ;;  %v8813_v22 = vld [vmem:[%s13146_s11 + $0x170] sm:$0xf0]  ;;  %v10745_v42 = vld [vmem:[%s13146_s11 + $0x13c] sm:$0xf] }
 0xec4   : > { %4050 = vmatpush.bf16.msrb.mxu0 %v8856_v30  ;;  %v8821_v20 = vld [vmem:[%s13146_s11 + $0x178] sm:$0xf0]  ;;  %v8683_v40 = vld [vmem:[%s13146_s11 + $0x30] sm:$0xf] }
 0xec5   : > { %4012 = vmatpush.bf16.msra.mxu1 %v8780_v28  ;;  %4039 = vmatpush.bf16.msra.mxu2 %v8724_v63  ;;  %v8803_v28 = vld [vmem:[%s13146_s11 + $0x128] sm:$0xf]  ;;  %v8667_v63 = vld [vmem:[%s13146_s11 + $0x20] sm:$0xf]  ;;  %v10720_v15 = vld [vmem:[%s13146_s11 + $0x6c] sm:$0xf0] }
 0xec6   : > { %v8804_v34 = vor.u32 %v10751_v45, %v8803_v28  ;;  %v8668_v1 = vor.u32 %v10718_v52, %v8667_v63  ;;  %v8755_v28 = vld [vmem:[%s13146_s11 + $0xb8] sm:$0xf]  ;;  %v8696_v52 = vor.u32 %v10713_v43, %v8693_v48  ;;  %v10827_v43 = vld [vmem:[%s13149_s16 + $0x1c8] sm:$0xff]  ;;  %v10812_v48 = vld [vmem:[%s13149_s16 + $0x150] sm:$0xff] }
 0xec7   : > { %v10737_v45 = vld [vmem:[%s13146_s11 + $0xf4] sm:$0xf0] }
 0xec8   : > { %4051 = vmatpush.bf16.msrb.mxu0 %v8792_v58  ;;  %v8808_v58 = vor.u32 %v10743_v35, %v8805_v36  ;;  %v10729_v35 = vld [vmem:[%s13146_s11 + $0xbc] sm:$0xf] }
 0xec9   : > { %4013 = vmatpush.bf16.msra.mxu1 %v8716_v47  ;;  %4040 = vmatpush.bf16.msra.mxu2 %v8660_v4  ;;  %v10735_v47 = vld [vmem:[%s13146_s11 + $0xe4] sm:$0xf0]  ;;  %v10768_v4 = vld [vmem:[%s13146_s11 + $0x1ec] sm:$0xf0]  ;;  %v8757_v36 = vld [vmem:[%s13146_s11 + $0xf8] sm:$0xf0] }
 0xeca   : > { %v8740_v54 = vor.u32 %v10735_v47, %v8739_v44  ;;  %v8691_v44 = vld [vmem:[%s13146_s11 + $0x38] sm:$0xf] }
 0xecb   : > { %v10721_v47 = vld [vmem:[%s13146_s11 + $0x74] sm:$0xf0] }
 0xecc   : > { %4052 = vmatpush.bf16.msrb.mxu0 %v8728_v56  ;;  %v10710_v56 = vld [vmem:[%s13146_s11 + $0x24] sm:$0xf]  ;;  %v8692_v63 = vor.u32 %v10721_v47, %v8691_v44  ;;  %v10821_v44 = vld [vmem:[%s13149_s16 + $0x198] sm:$0xff]  ;;  %v10803_v47 = vld [vmem:[%s13149_s16 + $0x108] sm:$0xff] }
 0xecd   : > { %4014 = vmatpush.bf16.msra.mxu1 %v8652_v2  ;;  %v8672_v2 = vor.u32 %v10710_v56, %v8669_v60  ;;  %v10785_v56 = vld [vmem:[%s13149_s16 + $0x78] sm:$0xff] }
 0xece   : > { %v10793_v60 = vld [vmem:[%s13149_s16 + $0xb8] sm:$0xff] }
 0xed0   : > { %4053 = vmatpush.bf16.msrb.mxu0 %v8664_v38  ;;  %v8680_v38 = vor.u32 %v10711_v0, %v8677_v51  ;;  %v10784_v0 = vld [vmem:[%s13149_s16 + $0x70] sm:$0xff] }
 0xed1   : > { %v10792_v51 = vld [vmem:[%s13149_s16 + $0xb0] sm:$0xff] }
 0xf35   : > { %v3575_v13 = vpop.xlane.xlu1 %3574 }
 0xf36   : > { %v3576_v59 = vmul.f32 %v3575_v13, %v12146_v26  ;;  %v10767_v13 = vld [vmem:[%s13146_s11 + $0x1e4] sm:$0xf0] }
 0xf37   : > { %v8868_v30 = vor.u32 %v10767_v13, %v8867_v24  ;;  %v8819_v24 = vld [vmem:[%s13146_s11 + $0x138] sm:$0xf] }
 0xf38   : > { %v3577_v39 = vadd.f32 1e-05, %v3576_v59  ;;  %v10750_v59 = vld [vmem:[%s13146_s11 + $0x15c] sm:$0xf0]  ;;  %v10753_v13 = vld [vmem:[%s13146_s11 + $0x174] sm:$0xf0] }
 0xf39   : > { %v8796_v37 = vor.u32 %v10750_v59, %v8795_v25  ;;  %v8747_v25 = vld [vmem:[%s13146_s11 + $0xb0] sm:$0xf] }
 0xf3a   : > { %11319 = vrsqrt.f32 %v3577_v39  ;;  %vm3584_vm4 = vweird.f32 %v3577_v39  ;;  %v10736_v59 = vld [vmem:[%s13146_s11 + $0xec] sm:$0xf0] }
 0xf40   : > { %v11320_v53 = vpop.eup %11319 }
 0xf41   : > { %v3579_v5 = vmul.f32 %v11320_v53, %v3577_v39  ;;  %vm3585_vm2 = vweird.f32 %v11320_v53  ;;  %v8800_v39 = vor.u32 %v10742_v32, %v8797_v33  ;;  %v10728_v32 = vld [vmem:[%s13146_s11 + $0xb4] sm:$0xf] }
 0xf42   : > { %vm3586_vm3 = vmor %vm3584_vm4, %vm3585_vm2  ;;  %v8749_v33 = vld [vmem:[%s13146_s11 + $0xf0] sm:$0xf0] }
 0xf43   : > { %v3580_v8 = vmul.f32 %v11320_v53, %v3579_v5  ;;  %v10760_v5 = vld [vmem:[%s13146_s11 + $0x1b4] sm:$0xf] }
 0xf45   : > { %v3581_v9 = vmul.f32 0.5, %v3580_v8  ;;  %v8877_v8 = vld [vmem:[%s13146_s11 + $0x1f0] sm:$0xf0] }
 0xf47   : > { %v3582_v10 = vsub.f32 1.5, %v3581_v9  ;;  %v8883_v9 = vld [vmem:[%s13146_s11 + $0x1b8] sm:$0xf] }
 0xf49   : > { %v3583_v12 = vmul.f32 %v11320_v53, %v3582_v10  ;;  %v10769_v10 = vld [vmem:[%s13146_s11 + $0x1f4] sm:$0xf0] }
 0xf4a   : > { %v8884_v6 = vor.u32 %v10769_v10, %v8883_v9  ;;  %v10773_v9 = vld [vmem:[%s13149_s16 + $0x18] sm:$0xff] }
 0xf4b   : > { %v3587_v17 = vsel %vm3586_vm3, %v11320_v53, %v3583_v12  ;;  %v8676_v53 = vor.u32 %v10719_v62, %v8675_v61  ;;  %v10761_v12 = vld [vmem:[%s13146_s11 + $0x1bc] sm:$0xf]  ;;  %v10776_v61 = vld [vmem:[%s13149_s16 + $0x30] sm:$0xff] }
 0xf4c   : > { %v3588_v50 = vmul.f32 %v3587_v17, %v12149_v27  ;;  %v8876_v17 = vor.u32 %v10768_v4, %v8875_v3  ;;  %v10800_v62 = vld [vmem:[%s13149_s16 + $0xf0] sm:$0xff]  ;;  %v10783_v3 = vld [vmem:[%s13149_s16 + $0x68] sm:$0xff]  ;;  %v10797_v10 = vld [vmem:[%s13149_s16 + $0xd8] sm:$0xff] }
 0xf4d   : > { %v10791_v4 = vld [vmem:[%s13149_s16 + $0xa8] sm:$0xff] }
 0xf4e   : > { %v3592_v19 = vmul.f32 %v11266_v14, %v3588_v50  ;;  %v8885_v14 = vld [vmem:[%s13146_s11 + $0x1f8] sm:$0xf0]  ;;  %v8811_v50 = vld [vmem:[%s13146_s11 + $0x130] sm:$0xf] }
 0xf4f   : > { %v8888_v7 = vor.u32 %v10761_v12, %v8885_v14  ;;  %v10781_v12 = vld [vmem:[%s13149_s16 + $0x58] sm:$0xff] }
 0xf50   : > { %v12227_v11 = vadd.f32 %v11267_v18, %v3592_v19  ;;  %v8880_v18 = vor.u32 %v10760_v5, %v8877_v8  ;;  %v10752_v19 = vld [vmem:[%s13146_s11 + $0x16c] sm:$0xf0]  ;;  %v10782_v5 = vld [vmem:[%s13149_s16 + $0x60] sm:$0xff]  ;;  %v10789_v14 = vld [vmem:[%s13149_s16 + $0x98] sm:$0xff] }
 0xf51   : > { %v10790_v8 = vld [vmem:[%s13149_s16 + $0xa0] sm:$0xff] }
 0xf52   : > { %v12234_v27 = vpack.c.bf16 %v12227_v11, %v12227_v11 }
 0xf54   : > { %8889 = vmatmul.msk.bf16.vlgmr.msrb.gmra.mxu1 %vm13085_vm15, %v12234_v27  ;;  %8890 = vmatmul.msk.bf16.vlgmr.msrb.gmra.mxu3 %vm13085_vm15, %v12234_v27 }
 0xf55   : > { %8891 = vmatmul.msk.bf16.vlgmr.msrb.gmra.mxu2 %vm13085_vm15, %v12234_v27  ;;  %8892 = vmatmul.msk.bf16.vlgmr.msra.gmra.mxu0 %vm13085_vm15, %v12234_v27 }
 0xf56   : > { %4063 = vmatpush.bf16.msrb.mxu1 %v8860_v21  ;;  %4076 = vmatpush.bf16.msrb.mxu3 %v8864_v29  ;;  %v8812_v21 = vor.u32 %v10752_v19, %v8811_v50  ;;  %v8816_v29 = vor.u32 %v10744_v23, %v8813_v22  ;;  %v10780_v50 = vld [vmem:[%s13149_s16 + $0x50] sm:$0xff]  ;;  %v10787_v23 = vld [vmem:[%s13149_s16 + $0x88] sm:$0xff]  ;;  %v10770_v22 = vld [vmem:[%s13149_s16] sm:$0xff] }
 0xf57   : > { %4089 = vmatpush.bf16.msrb.mxu2 %v8868_v30  ;;  %4102 = vmatpush.bf16.msra.mxu0 %v8872_v31  ;;  %v8820_v30 = vor.u32 %v10753_v13, %v8819_v24  ;;  %v8824_v31 = vor.u32 %v10745_v42, %v8821_v20  ;;  %v10788_v19 = vld [vmem:[%s13149_s16 + $0x90] sm:$0xff]  ;;  %v10794_v24 = vld [vmem:[%s13149_s16 + $0xc0] sm:$0xff]  ;;  %v10809_v13 = vld [vmem:[%s13149_s16 + $0x138] sm:$0xff] }
 0xf58   : > { %v10833_v42 = vld [vmem:[%s13149_s16 + $0x1f8] sm:$0xff]  ;;  %v10778_v20 = vld [vmem:[%s13149_s16 + $0x40] sm:$0xff] }
 0xf5a   : > { %4064 = vmatpush.bf16.msrb.mxu1 %v8796_v37  ;;  %4077 = vmatpush.bf16.msrb.mxu3 %v8800_v39  ;;  %v8748_v37 = vor.u32 %v10736_v59, %v8747_v25  ;;  %v8752_v39 = vor.u32 %v10728_v32, %v8749_v33  ;;  %v10825_v25 = vld [vmem:[%s13149_s16 + $0x1b8] sm:$0xff]  ;;  %v10808_v59 = vld [vmem:[%s13149_s16 + $0x130] sm:$0xff]  ;;  %v10807_v33 = vld [vmem:[%s13149_s16 + $0x128] sm:$0xff] }
 0xf5b   : > { %4090 = vmatpush.bf16.msrb.mxu2 %v8804_v34  ;;  %4103 = vmatpush.bf16.msra.mxu0 %v8808_v58  ;;  %v8756_v34 = vor.u32 %v10737_v45, %v8755_v28  ;;  %v8760_v58 = vor.u32 %v10729_v35, %v8757_v36  ;;  %v10824_v32 = vld [vmem:[%s13149_s16 + $0x1b0] sm:$0xff]  ;;  %v10831_v28 = vld [vmem:[%s13149_s16 + $0x1e8] sm:$0xff]  ;;  %v10806_v36 = vld [vmem:[%s13149_s16 + $0x120] sm:$0xff] }
 0xf5c   : > { %v10815_v45 = vld [vmem:[%s13149_s16 + $0x168] sm:$0xff] }
 0xf5d   : > { %v10823_v35 = vld [vmem:[%s13149_s16 + $0x1a8] sm:$0xff] }
 0xf5e   : > { %4065 = vmatpush.bf16.msrb.mxu1 %v8732_v57  ;;  %4078 = vmatpush.bf16.msrb.mxu3 %v8736_v49  ;;  %v8684_v57 = vor.u32 %v10720_v15, %v8683_v40  ;;  %v8688_v49 = vor.u32 %v10712_v41, %v8685_v46  ;;  %v10822_v40 = vld [vmem:[%s13149_s16 + $0x1a0] sm:$0xff]  ;;  %v10805_v15 = vld [vmem:[%s13149_s16 + $0x118] sm:$0xff]  ;;  %v10828_v41 = vld [vmem:[%s13149_s16 + $0x1d0] sm:$0xff] }
 0xf5f   : > { %4091 = vmatpush.bf16.msrb.mxu2 %v8740_v54  ;;  %4104 = vmatpush.bf16.msra.mxu0 %v8744_v55  ;;  %v10777_v54 = vld [vmem:[%s13149_s16 + $0x38] sm:$0xff] }
 0xf60   : > { %v10801_v55 = vld [vmem:[%s13149_s16 + $0xf8] sm:$0xff] }
 0xf61   : > { %v10813_v46 = vld [vmem:[%s13149_s16 + $0x158] sm:$0xff] }
 0xf62   : > { %4066 = vmatpush.bf16.msrb.mxu1 %v8668_v1  ;;  %4079 = vmatpush.bf16.msrb.mxu3 %v8672_v2  ;;  %v10775_v1 = vld [vmem:[%s13149_s16 + $0x28] sm:$0xff] }
 0xf63   : > { %4092 = vmatpush.bf16.msrb.mxu2 %v8676_v53  ;;  %4105 = vmatpush.bf16.msra.mxu0 %v8680_v38  ;;  %v10799_v2 = vld [vmem:[%s13149_s16 + $0xe8] sm:$0xff]  ;;  %v10774_v53 = vld [vmem:[%s13149_s16 + $0x20] sm:$0xff] }
 0xf64   : > { %8893 = vmatmul.msk.bf16.vlgmr.msra.gmra.mxu1 %vm13085_vm15, %v12234_v27  ;;  %8894 = vmatmul.msk.bf16.vlgmr.msra.gmra.mxu3 %vm13085_vm15, %v12234_v27  ;;  %v10798_v38 = vld [vmem:[%s13149_s16 + $0xe0] sm:$0xff] }
 0xf65   : > { %8895 = vmatmul.msk.bf16.vlgmr.msra.gmra.mxu2 %vm13085_vm15, %v12234_v27  ;;  %8896 = vmatmul.msk.bf16.vlgmr.msrb.gmra.mxu0 %vm13085_vm15, %v12234_v27 }
 0xf66   : > { %4115 = vmatpush.bf16.msra.mxu1 %v8876_v17  ;;  %4128 = vmatpush.bf16.msra.mxu3 %v8880_v18  ;;  %v10772_v17 = vld [vmem:[%s13149_s16 + $0x10] sm:$0xff] }
 0xf67   : > { %4141 = vmatpush.bf16.msra.mxu2 %v8884_v6  ;;  %4154 = vmatpush.bf16.msrb.mxu0 %v8888_v7  ;;  %v10796_v18 = vld [vmem:[%s13149_s16 + $0xd0] sm:$0xff]  ;;  %v10771_v6 = vld [vmem:[%s13149_s16 + $0x8] sm:$0xff] }
 0xf68   : > { %v10779_v7 = vld [vmem:[%s13149_s16 + $0x48] sm:$0xff] }
 0xf6a   : > { %4116 = vmatpush.bf16.msra.mxu1 %v8812_v21  ;;  %4129 = vmatpush.bf16.msra.mxu3 %v8816_v29  ;;  %v10786_v21 = vld [vmem:[%s13149_s16 + $0x80] sm:$0xff]  ;;  %v10817_v29 = vld [vmem:[%s13149_s16 + $0x178] sm:$0xff] }
 0xf6b   : > { %4142 = vmatpush.bf16.msra.mxu2 %v8820_v30  ;;  %4155 = vmatpush.bf16.msrb.mxu0 %v8824_v31  ;;  %v10832_v30 = vld [vmem:[%s13149_s16 + $0x1f0] sm:$0xff] }
 0xf6c   : > { %v10816_v31 = vld [vmem:[%s13149_s16 + $0x170] sm:$0xff] }
 0xf6e   : > { %4117 = vmatpush.bf16.msra.mxu1 %v8748_v37  ;;  %4130 = vmatpush.bf16.msra.mxu3 %v8752_v39  ;;  %v10830_v37 = vld [vmem:[%s13149_s16 + $0x1e0] sm:$0xff] }
 0xf6f   : > { %4143 = vmatpush.bf16.msra.mxu2 %v8756_v34  ;;  %4156 = vmatpush.bf16.msrb.mxu0 %v8760_v58  ;;  %v10814_v39 = vld [vmem:[%s13149_s16 + $0x160] sm:$0xff]  ;;  %v10829_v34 = vld [vmem:[%s13149_s16 + $0x1d8] sm:$0xff]  ;;  %v10804_v58 = vld [vmem:[%s13149_s16 + $0x110] sm:$0xff] }
 0xf72   : > { %4118 = vmatpush.bf16.msra.mxu1 %v8684_v57  ;;  %4131 = vmatpush.bf16.msra.mxu3 %v8688_v49  ;;  %v10820_v57 = vld [vmem:[%s13149_s16 + $0x190] sm:$0xff]  ;;  %v10802_v49 = vld [vmem:[%s13149_s16 + $0x100] sm:$0xff] }
 0xf73   : > { %4144 = vmatpush.bf16.msra.mxu2 %v8692_v63  ;;  %4157 = vmatpush.bf16.msrb.mxu0 %v8696_v52  ;;  %v10826_v63 = vld [vmem:[%s13149_s16 + $0x1c0] sm:$0xff]  ;;  %v10811_v52 = vld [vmem:[%s13149_s16 + $0x148] sm:$0xff] }
 0xf74   : > { %8897 = vmatmul.msk.bf16.vlgmr.msrb.gmra.mxu1 %vm13085_vm15, %v12234_v27  ;;  %8898 = vmatmul.msk.bf16.vlgmr.msrb.gmra.mxu3 %vm13085_vm15, %v12234_v27 }
 0xf75   : > { %8899 = vmatmul.msk.bf16.vlgmr.msrb.gmra.mxu2 %vm13085_vm15, %v12234_v27  ;;  %8900 = vmatmul.msk.bf16.vlgmr.msra.gmra.mxu0 %vm13085_vm15, %v12234_v27 }
 0xf76   : > { %4966 = vmatpush.bf16.msrb.mxu1 %v10777_v54  ;;  %4979 = vmatpush.bf16.msrb.mxu3 %v10785_v56  ;;  %v10819_v54 = vld [vmem:[%s13149_s16 + $0x188] sm:$0xff]  ;;  %v10818_v56 = vld [vmem:[%s13149_s16 + $0x180] sm:$0xff] }
 0xf77   : > { %5005 = vmatpush.bf16.msra.mxu0 %v10801_v55  ;;  %4992 = vmatpush.bf16.msrb.mxu2 %v10793_v60  ;;  %v10810_v55 = vld [vmem:[%s13149_s16 + $0x140] sm:$0xff] }
 0xf78   : > { %v12389_v60 = vld [vmem:[%s13150_s3] sm:$0xff] }
 0xf7a   : > { %4967 = vmatpush.bf16.msrb.mxu1 %v10776_v61  ;;  %4980 = vmatpush.bf16.msrb.mxu3 %v10784_v0  ;;  %v3600_v61 = vperm.slane %v12389_v60, 0 }
 0xf7b   : > { %5006 = vmatpush.bf16.msra.mxu0 %v10800_v62  ;;  %4993 = vmatpush.bf16.msrb.mxu2 %v10792_v51  ;;  %v3603_v62 = vperm.slane %v12389_v60, 3 }
 0xf7e   : > { %4968 = vmatpush.bf16.msrb.mxu1 %v10775_v1  ;;  %4981 = vmatpush.bf16.msrb.mxu3 %v10783_v3 }
 0xf7f   : > { %5007 = vmatpush.bf16.msra.mxu0 %v10799_v2  ;;  %4994 = vmatpush.bf16.msrb.mxu2 %v10791_v4  ;;  %v3601_v4 = vperm.slane %v12389_v60, 1 }
 0xf82   : > { %4969 = vmatpush.bf16.msrb.mxu1 %v10774_v53  ;;  %4982 = vmatpush.bf16.msrb.mxu3 %v10782_v5  ;;  %v10841_v5 = vld [vmem:[%s13149_s16 + $0x238] sm:$0xff] }
 0xf83   : > { %5008 = vmatpush.bf16.msra.mxu0 %v10798_v38  ;;  %4995 = vmatpush.bf16.msrb.mxu2 %v10790_v8  ;;  %v3602_v38 = vperm.slane %v12389_v60, 2 }
 0xf84   : > { %8901 = vmatmul.msk.bf16.vlgmr.msra.gmra.mxu1 %vm13085_vm15, %v12234_v27  ;;  %8902 = vmatmul.msk.bf16.vlgmr.msra.gmra.mxu3 %vm13085_vm15, %v12234_v27 }
 0xf85   : > { %8903 = vmatmul.msk.bf16.vlgmr.msra.gmra.mxu2 %vm13085_vm15, %v12234_v27  ;;  %8904 = vmatmul.msk.bf16.vlgmr.msrb.gmra.mxu0 %vm13085_vm15, %v12234_v27  ;;  %v10795_v27 = vld [vmem:[%s13149_s16 + $0xc8] sm:$0xff] }
 0xf86   : > { %4970 = vmatpush.bf16.msrb.mxu1 %v10773_v9  ;;  %4983 = vmatpush.bf16.msrb.mxu3 %v10781_v12  ;;  %v10865_v9 = vld [vmem:[%s13149_s16 + $0x2f8] sm:$0xff] }
 0xf87   : > { %5009 = vmatpush.bf16.msra.mxu0 %v10797_v10  ;;  %4996 = vmatpush.bf16.msrb.mxu2 %v10789_v14 }
 0xf8a   : > { %4971 = vmatpush.bf16.msrb.mxu1 %v10772_v17  ;;  %4984 = vmatpush.bf16.msrb.mxu3 %v10780_v50 }
 0xf8b   : > { %5010 = vmatpush.bf16.msra.mxu0 %v10796_v18  ;;  %4997 = vmatpush.bf16.msrb.mxu2 %v10788_v19  ;;  %v10840_v19 = vld [vmem:[%s13149_s16 + $0x230] sm:$0xff] }
 0xf8e   : > { %4972 = vmatpush.bf16.msrb.mxu1 %v10771_v6  ;;  %4985 = vmatpush.bf16.msrb.mxu3 %v10779_v7  ;;  %v10864_v7 = vld [vmem:[%s13149_s16 + $0x2f0] sm:$0xff] }
 0xf8f   : > { %5011 = vmatpush.bf16.msra.mxu0 %v10795_v27  ;;  %4998 = vmatpush.bf16.msrb.mxu2 %v10787_v23 }
 0xf92   : > { %4973 = vmatpush.bf16.msrb.mxu1 %v10770_v22  ;;  %4986 = vmatpush.bf16.msrb.mxu3 %v10778_v20  ;;  %v10849_v22 = vld [vmem:[%s13149_s16 + $0x278] sm:$0xff]  ;;  %v10839_v20 = vld [vmem:[%s13149_s16 + $0x228] sm:$0xff] }
 0xf93   : > { %5012 = vmatpush.bf16.msra.mxu0 %v10794_v24  ;;  %4999 = vmatpush.bf16.msrb.mxu2 %v10786_v21  ;;  %v10863_v21 = vld [vmem:[%s13149_s16 + $0x2e8] sm:$0xff] }
 0xf96   : > { %5018 = vmatpush.bf16.msra.mxu1 %v10809_v13  ;;  %5031 = vmatpush.bf16.msra.mxu3 %v10817_v29  ;;  %v10857_v13 = vld [vmem:[%s13149_s16 + $0x2b8] sm:$0xff]  ;;  %v3604_v29 = vperm.slane %v12389_v60, 4 }
 0xf97   : > { %5057 = vmatpush.bf16.msrb.mxu0 %v10833_v42  ;;  %5044 = vmatpush.bf16.msra.mxu2 %v10825_v25 }
 0xf9a   : > { %5019 = vmatpush.bf16.msra.mxu1 %v10808_v59  ;;  %5032 = vmatpush.bf16.msra.mxu3 %v10816_v31  ;;  %v3607_v59 = vperm.slane %v12389_v60, 7 }
 0xf9b   : > { %5058 = vmatpush.bf16.msrb.mxu0 %v10832_v30  ;;  %5045 = vmatpush.bf16.msra.mxu2 %v10824_v32  ;;  %v10848_v30 = vld [vmem:[%s13149_s16 + $0x270] sm:$0xff] }
 0xf9c   : > { %v10856_v32 = vld [vmem:[%s13149_s16 + $0x2b0] sm:$0xff] }
 0xf9e   : > { %5020 = vmatpush.bf16.msra.mxu1 %v10807_v33  ;;  %5033 = vmatpush.bf16.msra.mxu3 %v10815_v45 }
 0xf9f   : > { %5059 = vmatpush.bf16.msrb.mxu0 %v10831_v28  ;;  %5046 = vmatpush.bf16.msra.mxu2 %v10823_v35  ;;  %v10838_v28 = vld [vmem:[%s13149_s16 + $0x220] sm:$0xff] }
 0xfa2   : > { %5021 = vmatpush.bf16.msra.mxu1 %v10806_v36  ;;  %5034 = vmatpush.bf16.msra.mxu3 %v10814_v39  ;;  %v10862_v36 = vld [vmem:[%s13149_s16 + $0x2e0] sm:$0xff]  ;;  %v10847_v39 = vld [vmem:[%s13149_s16 + $0x268] sm:$0xff] }
 0xfa3   : > { %5060 = vmatpush.bf16.msrb.mxu0 %v10830_v37  ;;  %5047 = vmatpush.bf16.msra.mxu2 %v10822_v40 }
 0xfa6   : > { %5022 = vmatpush.bf16.msra.mxu1 %v10805_v15  ;;  %5035 = vmatpush.bf16.msra.mxu3 %v10813_v46  ;;  %v10855_v15 = vld [vmem:[%s13149_s16 + $0x2a8] sm:$0xff]  ;;  %v10837_v46 = vld [vmem:[%s13149_s16 + $0x218] sm:$0xff] }
 0xfa7   : > { %5061 = vmatpush.bf16.msrb.mxu0 %v10829_v34  ;;  %5048 = vmatpush.bf16.msra.mxu2 %v10821_v44  ;;  %v3605_v34 = vperm.slane %v12389_v60, 5 }
 0xfaa   : > { %5023 = vmatpush.bf16.msra.mxu1 %v10804_v58  ;;  %5036 = vmatpush.bf16.msra.mxu3 %v10812_v48 }
 0xfab   : > { %5062 = vmatpush.bf16.msrb.mxu0 %v10828_v41  ;;  %5049 = vmatpush.bf16.msra.mxu2 %v10820_v57  ;;  %v3606_v41 = vperm.slane %v12389_v60, 6  ;;  %v10846_v57 = vld [vmem:[%s13149_s16 + $0x260] sm:$0xff] }
 0xfae   : > { %5024 = vmatpush.bf16.msra.mxu1 %v10803_v47  ;;  %5037 = vmatpush.bf16.msra.mxu3 %v10811_v52  ;;  %v10861_v47 = vld [vmem:[%s13149_s16 + $0x2d8] sm:$0xff]  ;;  %v10854_v52 = vld [vmem:[%s13149_s16 + $0x2a0] sm:$0xff] }
 0xfaf   : > { %5063 = vmatpush.bf16.msrb.mxu0 %v10827_v43  ;;  %5050 = vmatpush.bf16.msra.mxu2 %v10819_v54 }
 0xfb2   : > { %5025 = vmatpush.bf16.msra.mxu1 %v10802_v49  ;;  %5038 = vmatpush.bf16.msra.mxu3 %v10810_v55 }
 0xfb3   : > { %5064 = vmatpush.bf16.msrb.mxu0 %v10826_v63  ;;  %5051 = vmatpush.bf16.msra.mxu2 %v10818_v56  ;;  %v10836_v56 = vld [vmem:[%s13149_s16 + $0x210] sm:$0xff] }
 0xfd1   : > { %v3964_v0 = vpop.f32.mrf.mxu1 }
 0xfd2   : > { %v3965_v51 = vadd.f32 %v3964_v0, %v3600_v61  ;;  %v4003_v1 = vpop.f32.mrf.mxu0 }
 0xfd3   : > { %v4004_v2 = vadd.f32 %v4003_v1, %v3603_v62  ;;  %v10860_v62 = vld [vmem:[%s13149_s16 + $0x2d0] sm:$0xff]  ;;  %v12421_v1 = vld [vmem:[%s13150_s3 + $0x8] sm:$0xff] }
 0xfd4   : > { %v4163_v3 = vmax.f32 %v3965_v51, 0.0  ;;  %v10845_v51 = vld [vmem:[%s13149_s16 + $0x258] sm:$0xff] }
 0xfd5   : > { %v4166_v53 = vmax.f32 %v4004_v2, 0.0 }
 0xfd6   : > { %v4179_v8 = vpack.c.bf16 %v4163_v3, %v4163_v3  ;;  %v10853_v3 = vld [vmem:[%s13149_s16 + $0x298] sm:$0xff] }
 0xfd7   : > { %v4182_v10 = vpack.c.bf16 %v4166_v53, %v4166_v53  ;;  %v3977_v12 = vpop.f32.mrf.mxu3  ;;  %v10835_v53 = vld [vmem:[%s13149_s16 + $0x208] sm:$0xff] }
 0xfd8   : > { %v3978_v14 = vadd.f32 %v3977_v12, %v3601_v4  ;;  %v3990_v17 = vpop.f32.mrf.mxu2  ;;  %4974 = vmatmul.bf16.vlgmr.msrb.gmra.mxu1 %v4179_v8 }
 0xfd9   : > { %v3991_v18 = vadd.f32 %v3990_v17, %v3602_v38  ;;  %5013 = vmatmul.bf16.vlgmr.msra.gmra.mxu0 %v4182_v10  ;;  %5070 = vmatpush.bf16.msrb.mxu1 %v10841_v5  ;;  %v3966_v50 = vpop.f32.mrf.mxu1  ;;  %v10859_v38 = vld [vmem:[%s13149_s16 + $0x2c8] sm:$0xff]  ;;  %v3608_v5 = vperm.slane %v12421_v1, 0  ;;  %v10844_v10 = vld [vmem:[%s13149_s16 + $0x250] sm:$0xff] }
 0xfda   : > { %v4164_v6 = vmax.f32 %v3978_v14, 0.0  ;;  %5109 = vmatpush.bf16.msra.mxu0 %v10865_v9  ;;  %v4005_v27 = vpop.f32.mrf.mxu0  ;;  %v3611_v9 = vperm.slane %v12421_v1, 3  ;;  %v10852_v14 = vld [vmem:[%s13149_s16 + $0x290] sm:$0xff] }
 0xfdb   : > { %v4165_v23 = vmax.f32 %v3991_v18, 0.0  ;;  %v10834_v18 = vld [vmem:[%s13149_s16 + $0x200] sm:$0xff]  ;;  %v10873_v27 = vld [vmem:[%s13149_s16 + $0x338] sm:$0xff] }
 0xfdc   : > { %v4180_v24 = vpack.c.bf16 %v4164_v6, %v4164_v6  ;;  %v10858_v6 = vld [vmem:[%s13149_s16 + $0x2c0] sm:$0xff] }
 0xfdd   : > { %v4181_v42 = vpack.c.bf16 %v4165_v23, %v4165_v23  ;;  %5071 = vmatpush.bf16.msrb.mxu1 %v10840_v19  ;;  %v10897_v23 = vld [vmem:[%s13149_s16 + $0x3f8] sm:$0xff] }
 0xfde   : > { %5110 = vmatpush.bf16.msra.mxu0 %v10864_v7  ;;  %4987 = vmatmul.bf16.vlgmr.msrb.gmra.mxu3 %v4180_v24 }
 0xfdf   : > { %5000 = vmatmul.bf16.vlgmr.msrb.gmra.mxu2 %v4181_v42  ;;  %5083 = vmatpush.bf16.msrb.mxu3 %v10849_v22  ;;  %v3979_v25 = vpop.f32.mrf.mxu3  ;;  %v10843_v22 = vld [vmem:[%s13149_s16 + $0x248] sm:$0xff]  ;;  %v3609_v42 = vperm.slane %v12421_v1, 1 }
 0xfe0   : > { %5096 = vmatpush.bf16.msrb.mxu2 %v10857_v13  ;;  %v3992_v31 = vpop.f32.mrf.mxu2  ;;  %v10851_v13 = vld [vmem:[%s13149_s16 + $0x288] sm:$0xff]  ;;  %v10872_v25 = vld [vmem:[%s13149_s16 + $0x330] sm:$0xff] }
 0xfe1   : > { %5072 = vmatpush.bf16.msrb.mxu1 %v10839_v20  ;;  %v4016_v33 = vpop.f32.mrf.mxu1  ;;  %v10896_v31 = vld [vmem:[%s13149_s16 + $0x3f0] sm:$0xff] }
 0xfe2   : > { %5111 = vmatpush.bf16.msra.mxu0 %v10863_v21  ;;  %v4017_v45 = vadd.f32 %v4016_v33, %v3604_v29  ;;  %v4055_v35 = vpop.f32.mrf.mxu0  ;;  %v3610_v21 = vperm.slane %v12421_v1, 2 }
 0xfe3   : > { %v4056_v37 = vadd.f32 %v4055_v35, %v3607_v59  ;;  %5084 = vmatpush.bf16.msrb.mxu3 %v10848_v30  ;;  %v10881_v35 = vld [vmem:[%s13149_s16 + $0x378] sm:$0xff] }
 0xfe4   : > { %v4167_v40 = vmax.f32 %v4017_v45, 0.0  ;;  %5097 = vmatpush.bf16.msrb.mxu2 %v10856_v32  ;;  %v10842_v32 = vld [vmem:[%s13149_s16 + $0x240] sm:$0xff] }
 0xfe5   : > { %v4170_v58 = vmax.f32 %v4056_v37, 0.0  ;;  %5073 = vmatpush.bf16.msrb.mxu1 %v10838_v28  ;;  %v10850_v45 = vld [vmem:[%s13149_s16 + $0x280] sm:$0xff] }
 0xfe6   : > { %v4183_v44 = vpack.c.bf16 %v4167_v40, %v4167_v40  ;;  %5112 = vmatpush.bf16.msra.mxu0 %v10862_v36 }
 0xfe7   : > { %v4186_v43 = vpack.c.bf16 %v4170_v58, %v4170_v58  ;;  %5085 = vmatpush.bf16.msrb.mxu3 %v10847_v39  ;;  %v4029_v48 = vpop.f32.mrf.mxu3  ;;  %v10889_v39 = vld [vmem:[%s13149_s16 + $0x3b8] sm:$0xff] }
 0xfe8   : > { %5098 = vmatpush.bf16.msrb.mxu2 %v10855_v15  ;;  %v4030_v49 = vadd.f32 %v4029_v48, %v3605_v34  ;;  %v4042_v63 = vpop.f32.mrf.mxu2  ;;  %5026 = vmatmul.bf16.vlgmr.msra.gmra.mxu1 %v4183_v44  ;;  %v10871_v34 = vld [vmem:[%s13149_s16 + $0x328] sm:$0xff]  ;;  %v10880_v44 = vld [vmem:[%s13149_s16 + $0x370] sm:$0xff]  ;;  %v10870_v48 = vld [vmem:[%s13149_s16 + $0x320] sm:$0xff] }
 0xfe9   : > { %v4043_v54 = vadd.f32 %v4042_v63, %v3606_v41  ;;  %5065 = vmatmul.bf16.vlgmr.msrb.gmra.mxu0 %v4186_v43  ;;  %5074 = vmatpush.bf16.msrb.mxu1 %v10837_v46  ;;  %v4018_v55 = vpop.f32.mrf.mxu1  ;;  %v10895_v41 = vld [vmem:[%s13149_s16 + $0x3e8] sm:$0xff]  ;;  %v10888_v43 = vld [vmem:[%s13149_s16 + $0x3b0] sm:$0xff] }
 0xfea   : > { %v4168_v60 = vmax.f32 %v4030_v49, 0.0  ;;  %5113 = vmatpush.bf16.msra.mxu0 %v10861_v47  ;;  %v4057_v61 = vpop.f32.mrf.mxu0  ;;  %v10894_v49 = vld [vmem:[%s13149_s16 + $0x3e0] sm:$0xff]  ;;  %v10887_v55 = vld [vmem:[%s13149_s16 + $0x3a8] sm:$0xff] }
 0xfeb   : > { %v4169_v0 = vmax.f32 %v4043_v54, 0.0  ;;  %5086 = vmatpush.bf16.msrb.mxu3 %v10846_v57  ;;  %v10893_v61 = vld [vmem:[%s13149_s16 + $0x3d8] sm:$0xff] }
 0xfec   : > { %v4184_v2 = vpack.c.bf16 %v4168_v60, %v4168_v60  ;;  %5099 = vmatpush.bf16.msrb.mxu2 %v10854_v52  ;;  %v10879_v52 = vld [vmem:[%s13149_s16 + $0x368] sm:$0xff]  ;;  %v10869_v60 = vld [vmem:[%s13149_s16 + $0x318] sm:$0xff] }
 0xfed   : > { %v4185_v4 = vpack.c.bf16 %v4169_v0, %v4169_v0  ;;  %5075 = vmatpush.bf16.msrb.mxu1 %v10836_v56  ;;  %v10886_v0 = vld [vmem:[%s13149_s16 + $0x3a0] sm:$0xff] }
 0xfee   : > { %5114 = vmatpush.bf16.msra.mxu0 %v10860_v62  ;;  %5039 = vmatmul.bf16.vlgmr.msra.gmra.mxu3 %v4184_v2  ;;  %v10878_v62 = vld [vmem:[%s13149_s16 + $0x360] sm:$0xff]  ;;  %v3612_v2 = vperm.slane %v12421_v1, 4 }
 0xfef   : > { %5052 = vmatmul.bf16.vlgmr.msra.gmra.mxu2 %v4185_v4  ;;  %5087 = vmatpush.bf16.msrb.mxu3 %v10845_v51  ;;  %v4031_v8 = vpop.f32.mrf.mxu3  ;;  %v10868_v51 = vld [vmem:[%s13149_s16 + $0x310] sm:$0xff] }
 0xff0   : > { %5100 = vmatpush.bf16.msrb.mxu2 %v10853_v3  ;;  %v4044_v12 = vpop.f32.mrf.mxu2  ;;  %v10892_v4 = vld [vmem:[%s13149_s16 + $0x3d0] sm:$0xff] }
 0xff1   : > { %5076 = vmatpush.bf16.msrb.mxu1 %v10835_v53  ;;  %v4068_v17 = vpop.f32.mrf.mxu1  ;;  %v3615_v53 = vperm.slane %v12421_v1, 7  ;;  %v10867_v12 = vld [vmem:[%s13149_s16 + $0x308] sm:$0xff] }
 0xff2   : > { %5115 = vmatpush.bf16.msra.mxu0 %v10859_v38  ;;  %v4069_v50 = vadd.f32 %v4068_v17, %v3608_v5  ;;  %v4107_v19 = vpop.f32.mrf.mxu0  ;;  %v10877_v5 = vld [vmem:[%s13149_s16 + $0x358] sm:$0xff]  ;;  %v10891_v17 = vld [vmem:[%s13149_s16 + $0x3c8] sm:$0xff] }
 0xff3   : > { %v4108_v7 = vadd.f32 %v4107_v19, %v3611_v9  ;;  %5088 = vmatpush.bf16.msrb.mxu3 %v10844_v10  ;;  %v10885_v9 = vld [vmem:[%s13149_s16 + $0x398] sm:$0xff]  ;;  %v3613_v19 = vperm.slane %v12421_v1, 5 }
 0xff4   : > { %v4171_v24 = vmax.f32 %v4069_v50, 0.0  ;;  %5101 = vmatpush.bf16.msrb.mxu2 %v10852_v14  ;;  %v10876_v50 = vld [vmem:[%s13149_s16 + $0x350] sm:$0xff] }
 0xff5   : > { %v4174_v20 = vmax.f32 %v4108_v7, 0.0  ;;  %5077 = vmatpush.bf16.msrb.mxu1 %v10834_v18  ;;  %v10866_v7 = vld [vmem:[%s13149_s16 + $0x300] sm:$0xff] }
 0xff6   : > { %v4187_v29 = vpack.c.bf16 %v4171_v24, %v4171_v24  ;;  %5116 = vmatpush.bf16.msra.mxu0 %v10858_v6  ;;  %v10884_v6 = vld [vmem:[%s13149_s16 + $0x390] sm:$0xff]  ;;  %v10890_v24 = vld [vmem:[%s13149_s16 + $0x3c0] sm:$0xff] }
 0xff7   : > { %v4190_v59 = vpack.c.bf16 %v4174_v20, %v4174_v20  ;;  %5089 = vmatpush.bf16.msrb.mxu3 %v10843_v22  ;;  %v4081_v30 = vpop.f32.mrf.mxu3  ;;  %v10875_v20 = vld [vmem:[%s13149_s16 + $0x348] sm:$0xff] }
 0xff8   : > { %5102 = vmatpush.bf16.msrb.mxu2 %v10851_v13  ;;  %v4082_v33 = vadd.f32 %v4081_v30, %v3609_v42  ;;  %v4094_v28 = vpop.f32.mrf.mxu2  ;;  %5078 = vmatmul.bf16.vlgmr.msrb.gmra.mxu1 %v4187_v29  ;;  %v10883_v29 = vld [vmem:[%s13149_s16 + $0x388] sm:$0xff]  ;;  %v10874_v30 = vld [vmem:[%s13149_s16 + $0x340] sm:$0xff] }
 0xff9   : > { %5122 = vmatpush.bf16.msra.mxu1 %v10873_v27  ;;  %v4095_v36 = vadd.f32 %v4094_v28, %v3610_v21  ;;  %5117 = vmatmul.bf16.vlgmr.msra.gmra.mxu0 %v4190_v59  ;;  %v4070_v37 = vpop.f32.mrf.mxu1  ;;  %v3614_v27 = vperm.slane %v12421_v1, 6 }
 0xffa   : > { %5161 = vmatpush.bf16.msrb.mxu0 %v10897_v23  ;;  %v4172_v40 = vmax.f32 %v4082_v33, 0.0  ;;  %v4109_v15 = vpop.f32.mrf.mxu0 }
 0xffb   : > { %v4173_v58 = vmax.f32 %v4095_v36, 0.0  ;;  %5090 = vmatpush.bf16.msrb.mxu3 %v10842_v32  ;;  %v10882_v32 = vld [vmem:[%s13149_s16 + $0x380] sm:$0xff] }
 0xffc   : > { %v4188_v46 = vpack.c.bf16 %v4172_v40, %v4172_v40  ;;  %5103 = vmatpush.bf16.msrb.mxu2 %v10850_v45 }
 0xffd   : > { %5123 = vmatpush.bf16.msra.mxu1 %v10872_v25  ;;  %v4189_v47 = vpack.c.bf16 %v4173_v58, %v4173_v58 }
 0xffe   : > { %5162 = vmatpush.bf16.msrb.mxu0 %v10896_v31  ;;  %5091 = vmatmul.bf16.vlgmr.msrb.gmra.mxu3 %v4188_v46 }
 0xfff   : > { %5135 = vmatpush.bf16.msra.mxu3 %v10881_v35  ;;  %5104 = vmatmul.bf16.vlgmr.msrb.gmra.mxu2 %v4189_v47  ;;  %v4083_v57 = vpop.f32.mrf.mxu3 }
0x1000   : > { %5148 = vmatpush.bf16.msra.mxu2 %v10889_v39  ;;  %v4096_v63 = vpop.f32.mrf.mxu2 }
0x1001   : > { %5124 = vmatpush.bf16.msra.mxu1 %v10871_v34  ;;  %v4120_v54 = vpop.f32.mrf.mxu1 }
0x1002   : > { %5163 = vmatpush.bf16.msrb.mxu0 %v10895_v41  ;;  %v4159_v56 = vpop.f32.mrf.mxu0  ;;  %v4121_v14 = vadd.f32 %v4120_v54, %v3612_v2 }
0x1003   : > { %5136 = vmatpush.bf16.msra.mxu3 %v10880_v44  ;;  %v4160_v18 = vadd.f32 %v4159_v56, %v3615_v53 }
0x1004   : > { %5149 = vmatpush.bf16.msra.mxu2 %v10888_v43  ;;  %v4175_v23 = vmax.f32 %v4121_v14, 0.0  ;;  %v11268_v43 = vld [vmem:[%s13151_s5] ss:$0 sm:$0xff] }
0x1005   : > { %5125 = vmatpush.bf16.msra.mxu1 %v10870_v48  ;;  %v4178_v13 = vmax.f32 %v4160_v18, 0.0 }
0x1006   : > { %5164 = vmatpush.bf16.msrb.mxu0 %v10894_v49  ;;  %v4191_v59 = vpack.c.bf16 %v4175_v23, %v4175_v23 }
0x1007   : > { %5137 = vmatpush.bf16.msra.mxu3 %v10879_v52  ;;  %v4133_v3 = vpop.f32.mrf.mxu3  ;;  %v4194_v1 = vpack.c.bf16 %v4178_v13, %v4178_v13 }
0x1008   : > { %5150 = vmatpush.bf16.msra.mxu2 %v10887_v55  ;;  %v4146_v38 = vpop.f32.mrf.mxu2  ;;  %v4134_v21 = vadd.f32 %v4133_v3, %v3613_v19 }
0x1009   : > { %5126 = vmatpush.bf16.msra.mxu1 %v10869_v60  ;;  %v4122_v8 = vpop.f32.mrf.mxu1  ;;  %v4147_v25 = vadd.f32 %v4146_v38, %v3614_v27 }
0x100a   : > { %5165 = vmatpush.bf16.msrb.mxu0 %v10893_v61  ;;  %v4161_v10 = vpop.f32.mrf.mxu0  ;;  %v4176_v31 = vmax.f32 %v4134_v21, 0.0 }
0x100b   : > { %5138 = vmatpush.bf16.msra.mxu3 %v10878_v62  ;;  %v4177_v33 = vmax.f32 %v4147_v25, 0.0 }
0x100c   : > { %5151 = vmatpush.bf16.msra.mxu2 %v10886_v0  ;;  %v4192_v28 = vpack.c.bf16 %v4176_v31, %v4176_v31  ;;  %v9788_v31 = vld [vmem:[%s13138_s7 + $0x70] sm:$0xf] }
0x100d   : > { %5127 = vmatpush.bf16.msra.mxu1 %v10868_v51  ;;  %v4193_v45 = vpack.c.bf16 %v4177_v33, %v4177_v33 }
0x100e   : > { %5166 = vmatpush.bf16.msrb.mxu0 %v10892_v4 }
0x100f   : > { %5139 = vmatpush.bf16.msra.mxu3 %v10877_v5  ;;  %v4135_v22 = vpop.f32.mrf.mxu3 }
0x1010   : > { %5152 = vmatpush.bf16.msra.mxu2 %v10885_v9  ;;  %v4148_v42 = vpop.f32.mrf.mxu2 }
0x1011   : > { %5128 = vmatpush.bf16.msra.mxu1 %v10867_v12 }
0x1012   : > { %5167 = vmatpush.bf16.msrb.mxu0 %v10891_v17 }
0x1013   : > { %5140 = vmatpush.bf16.msra.mxu3 %v10876_v50 }
0x1014   : > { %5153 = vmatpush.bf16.msra.mxu2 %v10884_v6 }
0x1015   : > { %5129 = vmatpush.bf16.msra.mxu1 %v10866_v7 }
0x1016   : > { %5168 = vmatpush.bf16.msrb.mxu0 %v10890_v24 }
0x1017   : > { %5141 = vmatpush.bf16.msra.mxu3 %v10875_v20 }
0x1018   : > { %5154 = vmatpush.bf16.msra.mxu2 %v10883_v29  ;;  %5130 = vmatmul.bf16.vlgmr.msra.gmra.mxu1 %v4191_v59 }
0x1019   : > { %5169 = vmatmul.bf16.vlgmr.msrb.gmra.mxu0 %v4194_v1 }
0x101b   : > { %5142 = vmatpush.bf16.msra.mxu3 %v10874_v30 }
0x101c   : > { %5155 = vmatpush.bf16.msra.mxu2 %v10882_v32  ;;  %v10904_v32 = vld [vmem:[%s13138_s7 + $0x74] sm:$0xf] }
0x101e   : > { %5143 = vmatmul.bf16.vlgmr.msra.gmra.mxu3 %v4192_v28  ;;  %v9790_v28 = vld [vmem:[%s13138_s7 + $0x78] sm:$0xf0] }
0x101f   : > { %5156 = vmatmul.bf16.vlgmr.msra.gmra.mxu2 %v4193_v45  ;;  %v9793_v45 = vor.u32 %v10904_v32, %v9790_v28 }
0x1021   : > { %5628 = vmatpush.bf16.msrb.mxu3 %v9793_v45 }
0x1055   : > { %v4975_v35 = vpop.f32.mrf.mxu1 }
0x1056   : > { %v5014_v36 = vpop.f32.mrf.mxu0  ;;  %v4976_v49 = vadd.f32 %v11268_v43, %v4975_v35  ;;  %v9780_v35 = vld [vmem:[%s13138_s7 + $0x60] sm:$0xf]  ;;  %v10899_v43 = vld [vmem:[%s13138_s7 + $0x44] sm:$0xf0] }
0x105d   : > { %v4977_v37 = vpop.f32.mrf.mxu1 }
0x105e   : > { %v5016_v39 = vpop.f32.mrf.mxu0  ;;  %v10902_v37 = vld [vmem:[%s13138_s7 + $0x64] sm:$0xf] }
0x1061   : > { %v4988_v40 = vpop.f32.mrf.mxu3 }
0x1062   : > { %v5001_v15 = vpop.f32.mrf.mxu2  ;;  %v4989_v54 = vadd.f32 %v4988_v40, %v4976_v49  ;;  %v9782_v40 = vld [vmem:[%s13138_s7 + $0x68] sm:$0xf0] }
0x1063   : > { %v9766_v49 = vld [vmem:[%s13138_s7 + $0x48] sm:$0xf0] }
0x1064   : > { %v5002_v60 = vadd.f32 %v5001_v15, %v4989_v54  ;;  %v9785_v15 = vor.u32 %v10902_v37, %v9782_v40 }
0x1065   : > { %v5027_v34 = vpop.f32.mrf.mxu1 }
0x1066   : > { %v5066_v58 = vpop.f32.mrf.mxu0  ;;  %v5015_v0 = vadd.f32 %v5014_v36, %v5002_v60  ;;  %v10903_v36 = vld [vmem:[%s13138_s7 + $0x64] sm:$0xf0]  ;;  %5629 = vmatpush.bf16.msrb.mxu3 %v9785_v15 }
0x1067   : > { %v9781_v39 = vor.u32 %v10903_v36, %v9780_v35 }
0x1068   : > { %v5028_v3 = vadd.f32 %v5027_v34, %v5015_v0  ;;  %v9772_v34 = vld [vmem:[%s13138_s7 + $0x50] sm:$0xf] }
0x1069   : > { %v4990_v41 = vpop.f32.mrf.mxu3 }
0x106a   : > { %v5003_v46 = vpop.f32.mrf.mxu2  ;;  %v10900_v41 = vld [vmem:[%s13138_s7 + $0x54] sm:$0xf] }
0x106d   : > { %v5029_v44 = vpop.f32.mrf.mxu1 }
0x106e   : > { %v5068_v47 = vpop.f32.mrf.mxu0  ;;  %v9774_v44 = vld [vmem:[%s13138_s7 + $0x58] sm:$0xf0] }
0x106f   : > { %v9764_v47 = vld [vmem:[%s13138_s7 + $0x40] sm:$0xf] }
0x1071   : > { %v5040_v48 = vpop.f32.mrf.mxu3 }
0x1072   : > { %v5053_v57 = vpop.f32.mrf.mxu2  ;;  %v5041_v4 = vadd.f32 %v5040_v48, %v5028_v3  ;;  %v9777_v48 = vor.u32 %v10900_v41, %v9774_v44  ;;  %v11269_v3 = vld [vmem:[%s13152_s6] ss:$0 sm:$0xff] }
0x1074   : > { %v5054_v53 = vadd.f32 %v5053_v57, %v5041_v4  ;;  %v10898_v57 = vld [vmem:[%s13138_s7 + $0x44] sm:$0xf]  ;;  %5630 = vmatpush.bf16.msrb.mxu3 %v9777_v48 }
0x1075   : > { %v5079_v63 = vpop.f32.mrf.mxu1 }
0x1076   : > { %v5118_v52 = vpop.f32.mrf.mxu0  ;;  %v5067_v8 = vadd.f32 %v5066_v58, %v5054_v53  ;;  %v10901_v58 = vld [vmem:[%s13138_s7 + $0x54] sm:$0xf0] }
0x1077   : > { %v9773_v46 = vor.u32 %v10901_v58, %v9772_v34 }
0x1078   : > { %v5080_v9 = vadd.f32 %v5079_v63, %v5067_v8  ;;  %v9765_v63 = vor.u32 %v10899_v43, %v9764_v47 }
0x1079   : > { %v5042_v55 = vpop.f32.mrf.mxu3 }
0x107a   : > { %v5055_v56 = vpop.f32.mrf.mxu2 }
0x107d   : > { %v5081_v61 = vpop.f32.mrf.mxu1 }
0x107e   : > { %v5120_v62 = vpop.f32.mrf.mxu0 }
0x1081   : > { %v5092_v51 = vpop.f32.mrf.mxu3 }
0x1082   : > { %v5105_v2 = vpop.f32.mrf.mxu2  ;;  %v5093_v12 = vadd.f32 %v5092_v51, %v5080_v9 }
0x1084   : > { %v5106_v17 = vadd.f32 %v5105_v2, %v5093_v12 }
0x1086   : > { %v5119_v50 = vadd.f32 %v5118_v52, %v5106_v17  ;;  %v9769_v52 = vor.u32 %v10898_v57, %v9766_v49 }
0x1088   : > { %5631 = vmatpush.bf16.msrb.mxu3 %v9769_v52 }
0x1089   : > { %v5094_v38 = vpop.f32.mrf.mxu3 }
0x108a   : > { %v5107_v5 = vpop.f32.mrf.mxu2  ;;  %v11270_v38 = vld [vmem:[%s13153_s8] ss:$0 sm:$0xff] }
0x1095   : > { %v5131_v10 = vpop.f32.mrf.mxu1 }
0x1096   : > { %v5170_v14 = vpop.f32.mrf.mxu0  ;;  %v5132_v6 = vadd.f32 %v5131_v10, %v5119_v50  ;;  %v9425_v10 = vld [vmem:[%s13139_s23 + $0x2] sm:$0x3]  ;;  %s13163_s23 = smov 88  }
0x1097   : > { %v5564_v12 = vperm.slane %v9425_v10, 0 }
0x109d   : > { %v5133_v18 = vpop.f32.mrf.mxu1 }
0x109e   : > { %v5172_v19 = vpop.f32.mrf.mxu0 }
0x10a1   : > { %v5144_v27 = vpop.f32.mrf.mxu3 }
0x10a2   : > { %v5145_v7 = vadd.f32 %v5144_v27, %v5132_v6  ;;  %v5157_v23 = vpop.f32.mrf.mxu2  ;;  %v5565_v27 = vperm.slane %v9425_v10, 1 }
0x10a4   : > { %v5158_v22 = vadd.f32 %v5157_v23, %v5145_v7 }
0x10a6   : > { %v5171_v24 = vadd.f32 %v5170_v14, %v5158_v22 }
0x10a8   : > { %v5174_v13 = vadd.f32 %v5171_v24, %v12227_v11  ;;  %v10905_v11 = vld [vmem:[%s13138_s7 + $0x74] sm:$0xf0]  ;;  %s13154_s7 = smov 112  }
0x10a9   : > { %v5146_v42 = vpop.f32.mrf.mxu3  ;;  %v9789_v33 = vor.u32 %v10905_v11, %v9788_v31 }
0x10aa   : > { %v5159_v20 = vpop.f32.mrf.mxu2  ;;  %v5175_v21 = vsel %vm13084_vm14, %v5174_v13, 0.0 }
0x10ab   : > { %5176 = vadd.xlane.f32.xlu0 %v5175_v21  ;;  %5615 = vmatpush.bf16.msrb.mxu1 %v9789_v33 }
0x10af   : > { %5616 = vmatpush.bf16.msrb.mxu1 %v9781_v39 }
0x10b3   : > { %5617 = vmatpush.bf16.msrb.mxu1 %v9773_v46 }
0x10b7   : > { %5618 = vmatpush.bf16.msrb.mxu1 %v9765_v63 }
0x111e   : > { %v5177_v29 = vpop.xlane.xlu0 %5176 }
0x111f   : > { %v5178_v25 = vmul.f32 %v5177_v29, %v12146_v26 }
0x1121   : > { %v5179_v59 = vsub.f32 %v5174_v13, %v5178_v25 }
0x1123   : > { %v5180_v1 = vmul.f32 %v5179_v59, %v5179_v59 }
0x1125   : > { %v5181_v30 = vsel %vm13084_vm14, %v5180_v1, 0.0 }
0x1126   : > { %5182 = vadd.xlane.f32.xlu2 %v5181_v30 }
0x1199   : > { %v5183_v54 = vpop.xlane.xlu2 %5182 }
0x119a   : > { %v5184_v55 = vmul.f32 %v5183_v54, %v12146_v26 }
0x119c   : > { %v5185_v56 = vadd.f32 1e-05, %v5184_v55 }
0x119e   : > { %11321 = vrsqrt.f32 %v5185_v56  ;;  %vm5192_vm4 = vweird.f32 %v5185_v56 }
0x11a4   : > { %v11322_v60 = vpop.eup %11321 }
0x11a5   : > { %v5187_v61 = vmul.f32 %v11322_v60, %v5185_v56  ;;  %vm5193_vm2 = vweird.f32 %v11322_v60 }
0x11a6   : > { %vm5194_vm3 = vmor %vm5192_vm4, %vm5193_vm2 }
0x11a7   : > { %v5188_v62 = vmul.f32 %v11322_v60, %v5187_v61 }
0x11a9   : > { %v5189_v0 = vmul.f32 0.5, %v5188_v62 }
0x11ab   : > { %v5190_v51 = vsub.f32 1.5, %v5189_v0 }
0x11ad   : > { %v5191_v2 = vmul.f32 %v11322_v60, %v5190_v51 }
0x11af   : > { %v5195_v4 = vsel %vm5194_vm3, %v11322_v60, %v5191_v2 }
0x11b0   : > { %v5196_v53 = vmul.f32 %v5195_v4, %v5179_v59 }
0x11b2   : > { %v5200_v5 = vmul.f32 %v11269_v3, %v5196_v53 }
0x11b4   : > { %v12498_v8 = vadd.f32 %v11270_v38, %v5200_v5 }
0x11b6   : > { %v5562_v9 = vpack.c.bf16 %v12498_v8, %v12498_v8 }
0x11b8   : > { %9794 = vmatmul.msk.bf16.vlgmr.msrb.gmra.mxu1 %vm13085_vm15, %v5562_v9  ;;  %9795 = vmatmul.msk.bf16.vlgmr.msrb.gmra.mxu3 %vm13085_vm15, %v5562_v9 }
0x1235   : > { %v5620_v14 = vpop.f32.mrf.mxu1 }
0x1236   : > { %v5621_v17 = vadd.f32 %v5620_v14, %v5564_v12 }
0x1238   : > { %5795 = vrot.lane.b32.xlu2 %v5621_v17, %s13154_s7  ;;  %5797 = vrot.lane.b32.xlu0 %v5621_v17, %s13141_s10 }
0x1239   : > { %5638 = vrot.lane.b32.xlu1 %v5621_v17, %s13155_s9  ;;  %s13161_s9 = smov 80  }
0x123b   : > { %v5633_v18 = vpop.f32.mrf.mxu3 }
0x123c   : > { %v12520_v22 = vadd.f32 %v5633_v18, %v5565_v27 }
0x123d   : > { %v5622_v50 = vpop.f32.mrf.mxu1 }
0x1240   : > { %5957 = vrot.lane.b32.xlu2 %v5621_v17, %s13156_s13  ;;  %5717 = vrot.lane.b32.xlu0 %v5621_v17, %s13144_s1 }
0x1241   : > { %5715 = vrot.lane.b32.xlu1 %v5621_v17, %s13157_s14 }
0x1243   : > { %v5635_v19 = vpop.f32.mrf.mxu3 }
0x1248   : > { %5875 = vrot.lane.b32.xlu2 %v5621_v17, %s13158_s17  ;;  %5955 = vrot.lane.b32.xlu0 %v5621_v17, %s13159_s18 }
0x1249   : > { %5877 = vrot.lane.b32.xlu1 %v5621_v17, %s13143_s26 }
0x1250   : > { %6037 = vrot.lane.b32.xlu2 %v5621_v17, %s13142_s28  ;;  %6117 = vrot.lane.b32.xlu0 %v5621_v17, %s13160_s19 }
0x1251   : > { %6115 = vrot.lane.b32.xlu1 %v5621_v17, %s13161_s9 }
0x1258   : > { %6195 = vrot.lane.b32.xlu2 %v5621_v17, %s13162_s21  ;;  %6035 = vrot.lane.b32.xlu0 %v5621_v17, %s13163_s23 }
0x1259   : > { %6197 = vrot.lane.b32.xlu1 %v5621_v17, %s13164_s24 }
0x1292   : > { %v5796_v6 = vpop.permute.xlu2 %5795 }
0x129a   : > { %v5958_v7 = vpop.permute.xlu2 %5957 }
0x12a2   : > { %v5876_v13 = vpop.permute.xlu2 %5875 }
0x12aa   : > { %v5798_v23 = vpop.permute.xlu0 %5797  ;;  %v6038_v25 = vpop.permute.xlu2 %6037 }
0x12ab   : > { %v5639_v24 = vpop.permute.xlu1 %5638  ;;  %9804 = vmatpush.xpose.msk.msra.mxu3 %vm1472_vm1, %v5798_v23 }
0x12ac   : > { %9796 = vmatpush.xpose.msk.msrb.mxu2 %vm1472_vm1, %v5639_v24 }
0x12ae   : > { %9805 = vmatmul.msk.f32.vlgmr.msra.gmra.mxu3 %vm1472_vm1, %v5796_v6 }
0x12af   : > { %9812 = vmatpush.xpose.msk.msrb.mxu3 %vm1472_vm1, %v5958_v7  ;;  %9797 = vmatmul.msk.f32.vlgmr.msrb.gmra.mxu2 %vm1472_vm1, %v5621_v17 }
0x12b0   : > { %9798 = vmatpush.msk.msra.mxu2 %vm2892_vm12, %v12520_v22 }
0x12b2   : > { %v5718_v42 = vpop.permute.xlu0 %5717  ;;  %v6196_v11 = vpop.permute.xlu2 %6195 }
0x12b3   : > { %v5716_v20 = vpop.permute.xlu1 %5715  ;;  %9800 = vmatpush.xpose.msk.msra.mxu0 %vm1472_vm1, %v5718_v42 }
0x12b6   : > { %9801 = vmatmul.msk.f32.vlgmr.msra.gmra.mxu0 %vm1472_vm1, %v5716_v20 }
0x12ba   : > { %v5956_v21 = vpop.permute.xlu0 %5955 }
0x12bb   : > { %v5878_v29 = vpop.permute.xlu1 %5877  ;;  %9813 = vmatmul.msk.f32.vlgmr.msrb.gmra.mxu3 %vm1472_vm1, %v5956_v21 }
0x12bc   : > { %9808 = vmatpush.xpose.msk.msrb.mxu0 %vm1472_vm1, %v5878_v29 }
0x12bf   : > { %9809 = vmatmul.msk.f32.vlgmr.msrb.gmra.mxu0 %vm1472_vm1, %v5876_v13 }
0x12c0   : > { %9816 = vmatpush.xpose.msk.msra.mxu0 %vm1472_vm1, %v6038_v25 }
0x12c2   : > { %v6118_v59 = vpop.permute.xlu0 %6117 }
0x12c3   : > { %v6116_v1 = vpop.permute.xlu1 %6115  ;;  %9820 = vmatpush.xpose.msk.msra.mxu3 %vm1472_vm1, %v6118_v59 }
0x12c6   : > { %9821 = vmatmul.msk.f32.vlgmr.msra.gmra.mxu3 %vm1472_vm1, %v6116_v1 }
0x12ca   : > { %v6036_v30 = vpop.permute.xlu0 %6035 }
0x12cb   : > { %v6198_v31 = vpop.permute.xlu1 %6197  ;;  %9817 = vmatmul.msk.f32.vlgmr.msra.gmra.mxu0 %vm1472_vm1, %v6036_v30 }
0x12cc   : > { %9824 = vmatpush.xpose.msk.msrb.mxu0 %vm1472_vm1, %v6198_v31 }
0x12d3   : > { %9825 = vmatmul.msk.f32.vlgmr.msrb.gmra.mxu0 %vm1472_vm1, %v6196_v11 }
0x1331   : > { %v5820_v32 = vpop.f32.mrf.mxu3 }
0x1332   : > { %v5661_v33 = vpop.f32.mrf.mxu2  ;;  %v5823_v28 = vmul.f32 0.35355338, %v5820_v32 }
0x1333   : > { %v5664_v45 = vmul.f32 0.35355338, %v5661_v33  ;;  %v5740_v35 = vpop.f32.mrf.mxu0 }
0x1334   : > { %v5743_v36 = vmul.f32 0.35355338, %v5740_v35  ;;  %v5824_v37 = vsel %vm2863_vm13, %v5823_v28, -inf }
0x1335   : > { %5825 = vmax.xlane.f32.xlu2 %v5824_v37  ;;  %v5665_v39 = vsel %vm2863_vm13, %v5664_v45, -inf }
0x1336   : > { %5666 = vmax.xlane.f32.xlu0 %v5665_v39  ;;  %v5744_v40 = vsel %vm2863_vm13, %v5743_v36, -inf }
0x1337   : > { %5745 = vmax.xlane.f32.xlu1 %v5744_v40 }
0x133c   : > { %v5900_v15 = vpop.f32.mrf.mxu0 }
0x133d   : > { %v5903_v34 = vmul.f32 0.35355338, %v5900_v15 }
0x133e   : > { %v5980_v58 = vpop.f32.mrf.mxu3 }
0x133f   : > { %v5983_v41 = vmul.f32 0.35355338, %v5980_v58  ;;  %v5904_v46 = vsel %vm2863_vm13, %v5903_v34, -inf }
0x1340   : > { %5905 = vmax.xlane.f32.xlu0 %v5904_v46 }
0x1341   : > { %v5984_v44 = vsel %vm2863_vm13, %v5983_v41, -inf }
0x1342   : > { %5985 = vmax.xlane.f32.xlu1 %v5984_v44 }
0x1348   : > { %v6060_v47 = vpop.f32.mrf.mxu0 }
0x1349   : > { %v6063_v43 = vmul.f32 0.35355338, %v6060_v47  ;;  %v6140_v48 = vpop.f32.mrf.mxu3 }
0x134a   : > { %v6143_v57 = vmul.f32 0.35355338, %v6140_v48 }
0x134b   : > { %v6064_v49 = vsel %vm2863_vm13, %v6063_v43, -inf }
0x134c   : > { %6065 = vmax.xlane.f32.xlu2 %v6064_v49  ;;  %v6144_v63 = vsel %vm2863_vm13, %v6143_v57, -inf }
0x134d   : > { %6145 = vmax.xlane.f32.xlu0 %v6144_v63 }
0x1350   : > { %v6220_v52 = vpop.f32.mrf.mxu0 }
0x1351   : > { %v6223_v54 = vmul.f32 0.35355338, %v6220_v52 }
0x1353   : > { %v6224_v55 = vsel %vm2863_vm13, %v6223_v54, -inf }
0x1354   : > { %6225 = vmax.xlane.f32.xlu1 %v6224_v55 }
0x1361   : > { %5768 = vrot.lane.b32.xlu0 %v12520_v22, %s13157_s14  ;;  %s13194_s14 = sld [smem:[#allocation30_spill]] }
0x136d   : > { %5848 = vrot.lane.b32.xlu1 %v12520_v22, %s13154_s7  ;;  %s13201_s7 = sld [smem:[#allocation34_spill]] }
0x13a8   : > { %v5826_v56 = vpop.xlane.xlu2 %5825 }
0x13a9   : > { %v5827_v60 = vsub.f32 %v5823_v28, %v5826_v56  ;;  %v5667_v61 = vpop.xlane.xlu0 %5666 }
0x13aa   : > { %v5668_v62 = vsub.f32 %v5664_v45, %v5667_v61  ;;  %v5746_v0 = vpop.xlane.xlu1 %5745 }
0x13ab   : > { %v5828_v51 = vmul.f32 1.442695, %v5827_v60  ;;  %v5747_v2 = vsub.f32 %v5743_v36, %v5746_v0 }
0x13ac   : > { %v5669_v3 = vmul.f32 1.442695, %v5668_v62 }
0x13ad   : > { %11323 = vpow2.f32 %v5828_v51  ;;  %v5748_v4 = vmul.f32 1.442695, %v5747_v2 }
0x13ae   : > { %11325 = vpow2.f32 %v5669_v3 }
0x13af   : > { %11327 = vpow2.f32 %v5748_v4 }
0x13b3   : > { %v12552_v53 = vpop.eup %11323  ;;  %v5906_v38 = vpop.xlane.xlu0 %5905 }
0x13b4   : > { %v12554_v5 = vpop.eup %11325  ;;  %v5907_v9 = vsub.f32 %v5903_v34, %v5906_v38  ;;  %v5830_v10 = vsel %vm2863_vm13, %v12552_v53, 0.0 }
0x13b5   : > { %v12558_v12 = vpop.eup %11327  ;;  %v5671_v14 = vsel %vm2863_vm13, %v12554_v5, 0.0  ;;  %5831 = vadd.xlane.f32.xlu1 %v5830_v10  ;;  %v5986_v17 = vpop.xlane.xlu1 %5985 }
0x13b6   : > { %v5908_v18 = vmul.f32 1.442695, %v5907_v9  ;;  %5672 = vadd.xlane.f32.xlu2 %v5671_v14  ;;  %v5987_v50 = vsub.f32 %v5983_v41, %v5986_v17  ;;  %v5750_v19 = vsel %vm2863_vm13, %v12558_v12, 0.0 }
0x13b7   : > { %5751 = vadd.xlane.f32.xlu0 %v5750_v19 }
0x13b8   : > { %11329 = vpow2.f32 %v5908_v18  ;;  %v5988_v6 = vmul.f32 1.442695, %v5987_v50 }
0x13ba   : > { %11331 = vpow2.f32 %v5988_v6 }
0x13be   : > { %v12564_v27 = vpop.eup %11329 }
0x13bf   : > { %v6066_v7 = vpop.xlane.xlu2 %6065  ;;  %v5910_v23 = vsel %vm2863_vm13, %v12564_v27, 0.0 }
0x13c0   : > { %v12568_v24 = vpop.eup %11331  ;;  %v6067_v13 = vsub.f32 %v6063_v43, %v6066_v7  ;;  %5911 = vadd.xlane.f32.xlu2 %v5910_v23  ;;  %v6146_v42 = vpop.xlane.xlu0 %6145 }
0x13c1   : > { %v6147_v20 = vsub.f32 %v6143_v57, %v6146_v42  ;;  %v5990_v21 = vsel %vm2863_vm13, %v12568_v24, 0.0 }
0x13c2   : > { %v6068_v29 = vmul.f32 1.442695, %v6067_v13  ;;  %5991 = vadd.xlane.f32.xlu0 %v5990_v21 }
0x13c3   : > { %v6148_v25 = vmul.f32 1.442695, %v6147_v20 }
0x13c4   : > { %11333 = vpow2.f32 %v6068_v29 }
0x13c5   : > { %11335 = vpow2.f32 %v6148_v25 }
0x13c7   : > { %v6226_v59 = vpop.xlane.xlu1 %6225 }
0x13c8   : > { %v6227_v1 = vsub.f32 %v6223_v54, %v6226_v59 }
0x13ca   : > { %v12572_v30 = vpop.eup %11333  ;;  %v6228_v31 = vmul.f32 1.442695, %v6227_v1 }
0x13cb   : > { %v12574_v11 = vpop.eup %11335  ;;  %v6070_v32 = vsel %vm2863_vm13, %v12572_v30, 0.0 }
0x13cc   : > { %11337 = vpow2.f32 %v6228_v31  ;;  %6071 = vadd.xlane.f32.xlu1 %v6070_v32  ;;  %v6150_v33 = vsel %vm2863_vm13, %v12574_v11, 0.0 }
0x13cd   : > { %6151 = vadd.xlane.f32.xlu2 %v6150_v33 }
0x13d2   : > { %v12580_v28 = vpop.eup %11337 }
0x13d3   : > { %v5769_v45 = vpop.permute.xlu0 %5768  ;;  %v6230_v35 = vsel %vm2863_vm13, %v12580_v28, 0.0 }
0x13d4   : > { %9802 = vmatpush.msk.msra.mxu1 %vm2892_vm12, %v5769_v45 }
0x13d5   : > { %6231 = vadd.xlane.f32.xlu2 %v6230_v35 }
0x13d6   : > { %6008 = vrot.lane.b32.xlu0 %v12520_v22, %s13159_s18  ;;  %s13197_s18 = sld [smem:[#allocation36_spill]] }
0x13de   : > { %6168 = vrot.lane.b32.xlu0 %v12520_v22, %s13161_s9 }
0x13df   : > { %v5849_v36 = vpop.permute.xlu1 %5848 }
0x13e0   : > { %9806 = vmatpush.msk.msrb.mxu2 %vm2892_vm12, %v5849_v36 }
0x13e5   : > { %6088 = vrot.lane.b32.xlu1 %v12520_v22, %s13163_s23  ;;  %s13202_s23 = sld [smem:[#allocation35_spill]] }
0x13ed   : > { %6248 = vrot.lane.b32.xlu1 %v12520_v22, %s13162_s21  ;;  %5928 = vrot.lane.b32.xlu2 %v12520_v22, %s13158_s17  ;;  %s13189_s17 = sld [smem:[#allocation29_spill]] }
0x13ee   : > { %s13190_s21 = sld [smem:[#allocation32_spill]] }
0x1428   : > { %v5832_v37 = vpop.xlane.xlu1 %5831 }
0x1429   : > { %v5673_v39 = vpop.xlane.xlu2 %5672  ;;  %11339 = vrcp.f32 %v5832_v37  ;;  %vm5838_vm3 = vweird.f32 %v5832_v37  ;;  %v5844_v9 = vand.u32 2147483648, %v5832_v37  ;;  %v5842_v17 = vand.u32 2147483647, %v5832_v37 }
0x142a   : > { %11341 = vrcp.f32 %v5673_v39  ;;  %v5752_v40 = vpop.xlane.xlu0 %5751  ;;  %v5683_v57 = vand.u32 2147483647, %v5673_v39  ;;  %v5685_v49 = vand.u32 2147483648, %v5673_v39  ;;  %vm5679_vm4 = vweird.f32 %v5673_v39 }
0x142b   : > { %11343 = vrcp.f32 %v5752_v40  ;;  %v5764_v54 = vand.u32 2147483648, %v5752_v40  ;;  %v5762_v60 = vand.u32 2147483647, %v5752_v40  ;;  %vm5758_vm15 = vweird.f32 %v5752_v40 }
0x142c   : > { %vm5684_vm14 = vcmp.eq.f32.partialorder %v5683_v57, 8.507059e+37  ;;  %v5686_v62 = vor.u32 1.1754944e-38, %v5685_v49  ;;  %v5845_v13 = vor.u32 1.1754944e-38, %v5844_v9 }
0x142d   : > { %v5765_v3 = vor.u32 1.1754944e-38, %v5764_v54  ;;  %vm5763_vm8 = vcmp.eq.f32.partialorder %v5762_v60, 8.507059e+37 }
0x142f   : > { %v11340_v15 = vpop.eup %11339 }
0x1430   : > { %v11342_v34 = vpop.eup %11341  ;;  %v5834_v58 = vmul.f32 %v11340_v15, %v5832_v37  ;;  %vm5839_vm10 = vweird.f32 %v11340_v15 }
0x1431   : > { %v11344_v41 = vpop.eup %11343  ;;  %v5675_v46 = vmul.f32 %v11342_v34, %v5673_v39  ;;  %vm5680_vm13 = vweird.f32 %v11342_v34 }
0x1432   : > { %v5835_v44 = vsub.f32 1.0, %v5834_v58  ;;  %v5754_v47 = vmul.f32 %v11344_v41, %v5752_v40  ;;  %vm5759_vm2 = vweird.f32 %v11344_v41  ;;  %vm5681_vm11 = vmor %vm5679_vm4, %vm5680_vm13 }
0x1433   : > { %v5676_v43 = vsub.f32 1.0, %v5675_v46  ;;  %v12596_v48 = vpop.xlane.xlu2 %5911  ;;  %vm5760_vm9 = vmor %vm5758_vm15, %vm5759_vm2  ;;  %vm5843_vm15 = vcmp.eq.f32.partialorder %v5842_v17, 8.507059e+37 }
0x1434   : > { %v5755_v63 = vsub.f32 1.0, %v5754_v47  ;;  %11345 = vrcp.f32 %v12596_v48  ;;  %v5836_v52 = vmul.f32 %v11340_v15, %v5835_v44  ;;  %v5924_v39 = vand.u32 2147483648, %v12596_v48 }
0x1435   : > { %v5677_v22 = vmul.f32 %v11342_v34, %v5676_v43  ;;  %v5992_v55 = vpop.xlane.xlu0 %5991  ;;  %vm5918_vm2 = vweird.f32 %v12596_v48 }
0x1436   : > { %v5756_v56 = vmul.f32 %v11344_v41, %v5755_v63  ;;  %11347 = vrcp.f32 %v5992_v55  ;;  %v5837_v2 = vadd.f32 %v11340_v15, %v5836_v52  ;;  %v6004_v59 = vand.u32 2147483648, %v5992_v55 }
0x1437   : > { %v5678_v61 = vadd.f32 %v11342_v34, %v5677_v22  ;;  %v6002_v32 = vand.u32 2147483647, %v5992_v55  ;;  %v5925_v43 = vor.u32 1.1754944e-38, %v5924_v39 }
0x1438   : > { %v5757_v0 = vadd.f32 %v11344_v41, %v5756_v56  ;;  %v6005_v36 = vor.u32 1.1754944e-38, %v6004_v59 }
0x1439   : > { %v5682_v51 = vsel %vm5681_vm11, %v11342_v34, %v5678_v61  ;;  %vm5840_vm11 = vmor %vm5838_vm3, %vm5839_vm10  ;;  %vm6003_vm13 = vcmp.eq.f32.partialorder %v6002_v32, 8.507059e+37  ;;  %v10907_v32 = vld [vmem:[%s13140_s2 + $0x28] sm:$0xff] }
0x143a   : > { %v12599_v4 = vpop.eup %11345  ;;  %v5687_v38 = vsel %vm5684_vm14, %v5686_v62, %v5682_v51  ;;  %v5761_v10 = vsel %vm5760_vm9, %v11344_v41, %v5757_v0  ;;  %v5841_v7 = vsel %vm5840_vm11, %v11340_v15, %v5837_v2  ;;  %vm5998_vm9 = vweird.f32 %v5992_v55 }
0x143b   : > { %v5688_v14 = vmul.f32 %v12554_v5, %v5687_v38  ;;  %v5766_v18 = vsel %vm5763_vm8, %v5765_v3, %v5761_v10  ;;  %v5914_v50 = vmul.f32 %v12599_v4, %v12596_v48  ;;  %v5846_v21 = vsel %vm5843_vm15, %v5845_v13, %v5841_v7 }
0x143c   : > { %v11348_v19 = vpop.eup %11347  ;;  %v5767_v6 = vmul.f32 %v12558_v12, %v5766_v18  ;;  %v5847_v1 = vmul.f32 %v12552_v53, %v5846_v21  ;;  %vm5919_vm14 = vweird.f32 %v12599_v4  ;;  %v5922_v53 = vand.u32 2147483647, %v12596_v48 }
0x143d   : > { %v5994_v23 = vmul.f32 %v11348_v19, %v5992_v55  ;;  %9799 = vmatmul.msk.f32.vlgmr.msra.gmra.mxu2 %vm2888_vm5, %v5688_v14  ;;  %v5915_v42 = vsub.f32 1.0, %v5914_v50  ;;  %vm5999_vm8 = vweird.f32 %v11348_v19  ;;  %vm5920_vm4 = vmor %vm5918_vm2, %vm5919_vm14 }
0x143e   : > { %9803 = vmatmul.msk.f32.vlgmr.msra.gmra.mxu1 %vm2888_vm5, %v5767_v6  ;;  %vm6000_vm10 = vmor %vm5998_vm9, %vm5999_vm8  ;;  %vm5923_vm3 = vcmp.eq.f32.partialorder %v5922_v53, 8.507059e+37 }
0x143f   : > { %v5995_v5 = vsub.f32 1.0, %v5994_v23  ;;  %v12608_v20 = vpop.xlane.xlu1 %6071  ;;  %v5916_v12 = vmul.f32 %v12599_v4, %v5915_v42 }
0x1440   : > { %11349 = vrcp.f32 %v12608_v20  ;;  %v6152_v29 = vpop.xlane.xlu2 %6151  ;;  %vm6078_vm9 = vweird.f32 %v12608_v20  ;;  %v6082_v60 = vand.u32 2147483647, %v12608_v20 }
0x1441   : > { %v5996_v25 = vmul.f32 %v11348_v19, %v5995_v5  ;;  %11351 = vrcp.f32 %v6152_v29  ;;  %v5917_v35 = vadd.f32 %v12599_v4, %v5916_v12  ;;  %v6164_v63 = vand.u32 2147483648, %v6152_v29 }
0x1442   : > { %v6162_v48 = vand.u32 2147483647, %v6152_v29  ;;  %vm6158_vm8 = vweird.f32 %v6152_v29  ;;  %vm6083_vm2 = vcmp.eq.f32.partialorder %v6082_v60, 8.507059e+37 }
0x1443   : > { %v5997_v31 = vadd.f32 %v11348_v19, %v5996_v25  ;;  %v5921_v44 = vsel %vm5920_vm4, %v12599_v4, %v5917_v35  ;;  %v6165_v61 = vor.u32 1.1754944e-38, %v6164_v63 }
0x1444   : > { %v5926_v52 = vsel %vm5923_vm3, %v5925_v43, %v5921_v44  ;;  %vm6163_vm14 = vcmp.eq.f32.partialorder %v6162_v48, 8.507059e+37 }
0x1445   : > { %v6001_v33 = vsel %vm6000_vm10, %v11348_v19, %v5997_v31  ;;  %9807 = vmatmul.msk.f32.vlgmr.msrb.gmra.mxu2 %vm2888_vm5, %v5847_v1  ;;  %v5927_v3 = vmul.f32 %v12564_v27, %v5926_v52  ;;  %v10909_v1 = vld [vmem:[%s13140_s2 + $0x38] sm:$0xff]  ;;  %v10908_v31 = vld [vmem:[%s13140_s2 + $0x30] sm:$0xff] }
0x1446   : > { %v11350_v45 = vpop.eup %11349  ;;  %v6006_v15 = vsel %vm6003_vm13, %v6005_v36, %v6001_v33  ;;  %6345 = vmatpush.bf16.msrb.mxu3 %v10909_v1  ;;  %v10906_v33 = vld [vmem:[%s13140_s2 + $0x20] sm:$0xff] }
0x1447   : > { %v11352_v37 = vpop.eup %11351  ;;  %v6074_v40 = vmul.f32 %v11350_v45, %v12608_v20  ;;  %v6007_v57 = vmul.f32 %v12568_v24, %v6006_v15  ;;  %vm6079_vm15 = vweird.f32 %v11350_v45  ;;  %v6084_v24 = vand.u32 2147483648, %v12608_v20 }
0x1448   : > { %v6154_v34 = vmul.f32 %v11352_v37, %v6152_v29  ;;  %v6009_v58 = vpop.permute.xlu0 %6008  ;;  %v6232_v41 = vpop.xlane.xlu2 %6231  ;;  %vm6159_vm11 = vweird.f32 %v11352_v37  ;;  %vm6080_vm13 = vmor %vm6078_vm9, %vm6079_vm15 }
0x1449   : > { %v6075_v46 = vsub.f32 1.0, %v6074_v40  ;;  %11353 = vrcp.f32 %v6232_v41  ;;  %9814 = vmatpush.msk.msra.mxu2 %vm2892_vm12, %v6009_v58  ;;  %vm6160_vm10 = vmor %vm6158_vm8, %vm6159_vm11  ;;  %v6085_v14 = vor.u32 1.1754944e-38, %v6084_v24  ;;  %v6244_v50 = vand.u32 2147483648, %v6232_v41 }
0x144a   : > { %v6155_v47 = vsub.f32 1.0, %v6154_v34  ;;  %vm6238_vm3 = vweird.f32 %v6232_v41  ;;  %v6242_v7 = vand.u32 2147483647, %v6232_v41  ;;  %6346 = vmatpush.bf16.msrb.mxu3 %v10908_v31  ;;  %vm13167_vm8 = vcmask 457728   ;;  %v10927_v31 = vld [vmem:[%s13146_s11 + $0x28c] sm:$0xf] }
0x144b   : > { %v6076_v49 = vmul.f32 %v11350_v45, %v6075_v46  ;;  %v6245_v23 = vor.u32 1.1754944e-38, %v6244_v50 }
0x144c   : > { %v6156_v22 = vmul.f32 %v11352_v37, %v6155_v47  ;;  %vm6243_vm15 = vcmp.eq.f32.partialorder %v6242_v7, 8.507059e+37  ;;  %v10951_v7 = vld [vmem:[%s13146_s11 + $0x344] sm:$0xf0] }
0x144d   : > { %9815 = vmatmul.msk.f32.vlgmr.msra.gmra.mxu2 %vm2888_vm5, %v6007_v57  ;;  %v6077_v54 = vadd.f32 %v11350_v45, %v6076_v49  ;;  %v11271_v57 = vld [vmem:[%s13145_s12 + $0x1] ss:$0 sm:$0xff] }
0x144e   : > { %v6157_v55 = vadd.f32 %v11352_v37, %v6156_v22  ;;  %6347 = vmatpush.bf16.msrb.mxu3 %v10907_v32  ;;  %v9921_v32 = vld [vmem:[%s13146_s11 + $0x2c8] sm:$0xf0] }
0x144f   : > { %v11354_v56 = vpop.eup %11353  ;;  %v6081_v38 = vsel %vm6080_vm13, %v11350_v45, %v6077_v54 }
0x1450   : > { %v6161_v62 = vsel %vm6160_vm10, %v11352_v37, %v6157_v55  ;;  %v6234_v0 = vmul.f32 %v11354_v56, %v6232_v41  ;;  %v6169_v51 = vpop.permute.xlu0 %6168  ;;  %v5929_v2 = vpop.permute.xlu2 %5928  ;;  %v6086_v18 = vsel %vm6083_vm2, %v6085_v14, %v6081_v38  ;;  %vm6239_vm4 = vweird.f32 %v11354_v56 }
0x1451   : > { %v6166_v4 = vsel %vm6163_vm14, %v6165_v61, %v6161_v62  ;;  %9810 = vmatpush.msk.msrb.mxu1 %vm2892_vm12, %v5929_v2  ;;  %9822 = vmatpush.msk.msrb.mxu2 %vm2892_vm12, %v6169_v51  ;;  %v6087_v6 = vmul.f32 %v12572_v30, %v6086_v18  ;;  %vm6240_vm11 = vmor %vm6238_vm3, %vm6239_vm4  ;;  %v10966_v61 = vld [vmem:[%s13146_s11 + $0x3bc] sm:$0xf0]  ;;  %v10958_v62 = vld [vmem:[%s13146_s11 + $0x384] sm:$0xf] }
0x1452   : > { %v6167_v9 = vmul.f32 %v12574_v11, %v6166_v4  ;;  %v6235_v10 = vsub.f32 1.0, %v6234_v0  ;;  %9811 = vmatmul.msk.f32.vlgmr.msrb.gmra.mxu1 %vm2888_vm5, %v5927_v3  ;;  %6348 = vmatpush.bf16.msrb.mxu3 %v10906_v33  ;;  %v10041_v51 = vld [vmem:[%s13146_s11 + $0x3c0] sm:$0xf0]  ;;  %v10047_v2 = vld [vmem:[%s13146_s11 + $0x388] sm:$0xf]  ;;  %v9924_v33 = vor.u32 %v10927_v31, %v9921_v32 }
0x1453   : > { %v10967_v3 = vld [vmem:[%s13146_s11 + $0x3c4] sm:$0xf0]  ;;  %v10044_v4 = vor.u32 %v10958_v62, %v10041_v51  ;;  %v10950_v18 = vld [vmem:[%s13146_s11 + $0x33c] sm:$0xf0]  ;;  %v10952_v62 = vld [vmem:[%s13146_s11 + $0x34c] sm:$0xf0] }
0x1454   : > { %v6236_v17 = vmul.f32 %v11354_v56, %v6235_v10  ;;  %v10048_v38 = vor.u32 %v10967_v3, %v10047_v2  ;;  %v10049_v10 = vld [vmem:[%s13146_s11 + $0x3c8] sm:$0xf0]  ;;  %v9993_v51 = vld [vmem:[%s13146_s11 + $0x350] sm:$0xf0]  ;;  %v9873_v31 = vld [vmem:[%s13146_s11 + $0x258] sm:$0xf0] }
0x1455   : > { %9823 = vmatmul.msk.f32.vlgmr.msrb.gmra.mxu2 %vm2888_vm5, %v6167_v9  ;;  %v10959_v9 = vld [vmem:[%s13146_s11 + $0x38c] sm:$0xf]  ;;  %6760 = vmatpush.bf16.msra.mxu0 %v10044_v4 }
0x1456   : > { %v6237_v27 = vadd.f32 %v11354_v56, %v6236_v17  ;;  %v10052_v14 = vor.u32 %v10959_v9, %v10049_v10  ;;  %v9975_v17 = vld [vmem:[%s13146_s11 + $0x300] sm:$0xf]  ;;  %v10953_v9 = vld [vmem:[%s13146_s11 + $0x354] sm:$0xf0] }
0x1457   : > { %v6089_v19 = vpop.permute.xlu1 %6088  ;;  %v9976_v50 = vor.u32 %v10950_v18, %v9975_v17  ;;  %v10001_v17 = vld [vmem:[%s13146_s11 + $0x358] sm:$0xf0]  ;;  %v9927_v18 = vld [vmem:[%s13146_s11 + $0x290] sm:$0xf] }
0x1458   : > { %9818 = vmatpush.msk.msra.mxu1 %vm2892_vm12, %v6089_v19  ;;  %v6241_v11 = vsel %vm6240_vm11, %v11354_v56, %v6237_v27  ;;  %v10942_v27 = vld [vmem:[%s13146_s11 + $0x304] sm:$0xf]  ;;  %6786 = vmatpush.bf16.msra.mxu3 %v10052_v14  ;;  %v10945_v14 = vld [vmem:[%s13146_s11 + $0x31c] sm:$0xf] }
0x1459   : > { %v6246_v13 = vsel %vm6243_vm15, %v6245_v23, %v6241_v11  ;;  %v9977_v19 = vld [vmem:[%s13146_s11 + $0x340] sm:$0xf0] }
0x145a   : > { %9819 = vmatmul.msk.f32.vlgmr.msra.gmra.mxu1 %vm2888_vm5, %v6087_v6  ;;  %v6247_v5 = vmul.f32 %v12580_v28, %v6246_v13  ;;  %v9983_v6 = vld [vmem:[%s13146_s11 + $0x308] sm:$0xf]  ;;  %v9980_v11 = vor.u32 %v10942_v27, %v9977_v19  ;;  %v10943_v13 = vld [vmem:[%s13146_s11 + $0x30c] sm:$0xf]  ;;  %v10004_v27 = vor.u32 %v10945_v14, %v10001_v17  ;;  %v10928_v19 = vld [vmem:[%s13146_s11 + $0x294] sm:$0xf] }
0x145b   : > { %v9984_v23 = vor.u32 %v10951_v7, %v9983_v6  ;;  %v9929_v6 = vld [vmem:[%s13146_s11 + $0x2d0] sm:$0xf0]  ;;  %v9943_v14 = vld [vmem:[%s13146_s11 + $0x2a0] sm:$0xf] }
0x145c   : > { %6761 = vmatpush.bf16.msra.mxu0 %v9980_v11  ;;  %v9935_v11 = vld [vmem:[%s13146_s11 + $0x298] sm:$0xf]  ;;  %v10938_v17 = vld [vmem:[%s13146_s11 + $0x2dc] sm:$0xf0] }
0x145f   : > { %v6249_v42 = vpop.permute.xlu1 %6248 }
0x1460   : > { %9826 = vmatpush.msk.msrb.mxu1 %vm2892_vm12, %v6249_v42  ;;  %vm13165_vm12 = vcmask 326656   ;;  %v9985_v42 = vld [vmem:[%s13146_s11 + $0x348] sm:$0xf0] }
0x1462   : > { %9827 = vmatmul.msk.f32.vlgmr.msrb.gmra.mxu1 %vm2888_vm5, %v6247_v5  ;;  %vm13166_vm5 = vcmask 392192   ;;  %v9988_v5 = vor.u32 %v10943_v13, %v9985_v42  ;;  %v10929_v13 = vld [vmem:[%s13146_s11 + $0x29c] sm:$0xf]  ;;  %v9932_v42 = vor.u32 %v10928_v19, %v9929_v6  ;;  %v9945_v19 = vld [vmem:[%s13146_s11 + $0x2e0] sm:$0xf0] }
0x1463   : > { %6773 = vmatpush.bf16.msra.mxu1 %v10048_v38  ;;  %v9999_v38 = vld [vmem:[%s13146_s11 + $0x318] sm:$0xf]  ;;  %v9951_v6 = vld [vmem:[%s13146_s11 + $0x2a8] sm:$0xf] }
0x1464   : > { %6787 = vmatpush.bf16.msra.mxu3 %v9988_v5  ;;  %v10000_v10 = vor.u32 %v10953_v9, %v9999_v38  ;;  %v10017_v38 = vld [vmem:[%s13146_s11 + $0x368] sm:$0xf0] }
0x1467   : > { %6774 = vmatpush.bf16.msra.mxu1 %v9984_v23  ;;  %v10937_v23 = vld [vmem:[%s13146_s11 + $0x2d4] sm:$0xf0] }
0x1468   : > { %6788 = vmatpush.bf16.msra.mxu3 %v9924_v33  ;;  %v9936_v5 = vor.u32 %v10937_v23, %v9935_v11  ;;  %v10931_v11 = vld [vmem:[%s13146_s11 + $0x2ac] sm:$0xf] }
0x1469   : > { %v9953_v23 = vld [vmem:[%s13146_s11 + $0x2e8] sm:$0xf0] }
0x14bb   : > { %v5792_v30 = vpop.f32.mrf.mxu1 }
0x14bc   : > { %6276 = vrot.lane.b32.xlu0 %v5792_v30, %s13164_s24  ;;  %v9911_v30 = vld [vmem:[%s13146_s11 + $0x280] sm:$0xf]  ;;  %s13196_s24 = sld [smem:[#allocation33_spill]] }
0x14c0   : > { %v5712_v20 = vpop.f32.mrf.mxu2 }
0x14c8   : > { %v5872_v21 = vpop.f32.mrf.mxu2 }
0x14c9   : > { %6280 = vrot.lane.b32.xlu2 %v5872_v21, %s13160_s19  ;;  %v10926_v21 = vld [vmem:[%s13146_s11 + $0x284] sm:$0xf]  ;;  %s13195_s19 = sld [smem:[#allocation31_spill]] }
0x14cf   : > { %v5952_v29 = vpop.f32.mrf.mxu1 }
0x14d0   : > { %v6032_v25 = vpop.f32.mrf.mxu2  ;;  %6284 = vrot.lane.b32.xlu1 %v5952_v29, %s13142_s28 }
0x14d1   : > { %6288 = vrot.lane.b32.xlu0 %v6032_v25, %s13156_s13  ;;  %v9913_v25 = vld [vmem:[%s13146_s11 + $0x2c0] sm:$0xf0]  ;;  %s13186_s13 = sld [smem:[#allocation28_spill]] }
0x14d7   : > { %v6112_v28 = vpop.f32.mrf.mxu1 }
0x14d8   : > { %v6192_v12 = vpop.f32.mrf.mxu2  ;;  %6292 = vrot.lane.b32.xlu2 %v6112_v28, %s13143_s26  ;;  %v9919_v28 = vld [vmem:[%s13146_s11 + $0x288] sm:$0xf] }
0x14d9   : > { %6296 = vrot.lane.b32.xlu1 %v6192_v12, %s13141_s10  ;;  %v10935_v12 = vld [vmem:[%s13146_s11 + $0x2c4] sm:$0xf0] }
0x14da   : > { %v9920_v1 = vor.u32 %v10935_v12, %v9919_v28  ;;  %v9865_v28 = vld [vmem:[%s13146_s11 + $0x250] sm:$0xf0]  ;;  %v9871_v12 = vld [vmem:[%s13146_s11 + $0x218] sm:$0xf] }
0x14dc   : > { %6775 = vmatpush.bf16.msra.mxu1 %v9920_v1  ;;  %v10913_v1 = vld [vmem:[%s13146_s11 + $0x21c] sm:$0xf] }
0x14df   : > { %v6272_v59 = vpop.f32.mrf.mxu1 }
0x14e0   : > { %6300 = vrot.lane.b32.xlu0 %v6272_v59, %s13144_s1  ;;  %v9916_v59 = vor.u32 %v10926_v21, %v9913_v25  ;;  %v10920_v21 = vld [vmem:[%s13146_s11 + $0x24c] sm:$0xf0]  ;;  %v10912_v25 = vld [vmem:[%s13146_s11 + $0x214] sm:$0xf] }
0x14e2   : > { %6762 = vmatpush.bf16.msra.mxu0 %v9916_v59  ;;  %v10921_v59 = vld [vmem:[%s13146_s11 + $0x254] sm:$0xf0] }
0x1523   : > { %v6281_v37 = vpop.permute.xlu2 %6280 }
0x152e   : > { %v6277_v45 = vpop.permute.xlu0 %6276 }
0x152f   : > { %v6303_v36 = vsel %vm1472_vm1, %v5712_v20, %v6277_v45  ;;  %vm13168_vm1 = vcmask 523264   ;;  %v10934_v20 = vld [vmem:[%s13146_s11 + $0x2bc] sm:$0xf0] }
0x1530   : > { %v6304_v40 = vsel %vm2138_vm6, %v6303_v36, %v6281_v37  ;;  %v9912_v29 = vor.u32 %v10934_v20, %v9911_v30  ;;  %v9847_v45 = vld [vmem:[%s13146_s11 + $0x200] sm:$0xf]  ;;  %v10910_v36 = vld [vmem:[%s13146_s11 + $0x204] sm:$0xf]  ;;  %v9937_v30 = vld [vmem:[%s13146_s11 + $0x2d8] sm:$0xf0] }
0x1531   : > { %v9863_v20 = vld [vmem:[%s13146_s11 + $0x210] sm:$0xf]  ;;  %vm13171_vm2 = vmmov %vm13168_vm1 }
0x1532   : > { %v6293_v58 = vpop.permute.xlu2 %6292  ;;  %v9864_v32 = vor.u32 %v10920_v21, %v9863_v20  ;;  %vm13172_vm4 = vmmov %vm13168_vm1  ;;  %v9956_v21 = vor.u32 %v10931_v11, %v9953_v23  ;;  %v10917_v11 = vld [vmem:[%s13146_s11 + $0x23c] sm:$0xf] }
0x1533   : > { %vm13173_vm3 = vmmov %vm13168_vm1  ;;  %v9905_v23 = vld [vmem:[%s13146_s11 + $0x278] sm:$0xf0] }
0x1534   : > { %vm13174_vm11 = vmmov %vm13168_vm1 }
0x1535   : > { %vm13175_vm15 = vmmov %vm13168_vm1 }
0x1542   : > { %v6285_v35 = vpop.permute.xlu1 %6284 }
0x1543   : > { %v6289_v39 = vpop.permute.xlu0 %6288  ;;  %v6305_v53 = vsel %vm2141_vm7, %v6304_v40, %v6285_v35  ;;  %vm13169_vm7 = vcmask 517120   ;;  %v10918_v35 = vld [vmem:[%s13146_s11 + $0x23c] sm:$0xf0]  ;;  %v9855_v40 = vld [vmem:[%s13146_s11 + $0x208] sm:$0xf] }
0x1544   : > { %v6306_v15 = vsel %vm1451_vm0, %v6305_v53, %v6289_v39  ;;  %vm13170_vm9 = vmmov %vm13169_vm7  ;;  %v9848_v37 = vor.u32 %v10918_v35, %v9847_v45  ;;  %v9849_v39 = vld [vmem:[%s13146_s11 + $0x240] sm:$0xf0]  ;;  %v10919_v53 = vld [vmem:[%s13146_s11 + $0x244] sm:$0xf0]  ;;  %v9868_v45 = vor.u32 %v10912_v25, %v9865_v28  ;;  %v9872_v35 = vor.u32 %v10921_v59, %v9871_v12 }
0x1545   : > { %v6307_v41 = vsel %vm13165_vm12, %v6306_v15, %v6293_v58  ;;  %v9852_v15 = vor.u32 %v10910_v36, %v9849_v39  ;;  %v10911_v58 = vld [vmem:[%s13146_s11 + $0x20c] sm:$0xf]  ;;  %v9881_v25 = vld [vmem:[%s13146_s11 + $0x260] sm:$0xf0]  ;;  %v9887_v28 = vld [vmem:[%s13146_s11 + $0x228] sm:$0xf] }
0x1546   : > { %v10923_v12 = vld [vmem:[%s13146_s11 + $0x264] sm:$0xf0]  ;;  %v10915_v59 = vld [vmem:[%s13146_s11 + $0x22c] sm:$0xf]  ;;  %vm13176_vm12 = vmmov %vm13168_vm1 }
0x1547   : > { %6763 = vmatpush.bf16.msra.mxu0 %v9852_v15 }
0x154b   : > { %v6297_v34 = vpop.permute.xlu1 %6296 }
0x154c   : > { %v6308_v46 = vsel %vm13166_vm5, %v6307_v41, %v6297_v34  ;;  %v9856_v34 = vor.u32 %v10919_v53, %v9855_v40  ;;  %v9857_v41 = vld [vmem:[%s13146_s11 + $0x248] sm:$0xf0]  ;;  %vm13177_vm5 = vmmov %vm13168_vm1 }
0x154e   : > { %6776 = vmatpush.bf16.msra.mxu1 %v9856_v34  ;;  %v11272_v34 = vld [vmem:[%s13147_s15 + $0x1] ss:$0 sm:$0xff] }
0x1552   : > { %v6301_v44 = vpop.permute.xlu0 %6300 }
0x1553   : > { %v6309_v47 = vsel %vm13167_vm8, %v6308_v46, %v6301_v44  ;;  %v9860_v46 = vor.u32 %v10911_v58, %v9857_v41  ;;  %v10055_v44 = vld [vmem:[%s13146_s11 + $0x390] sm:$0xf]  ;;  %v11273_v41 = vld [vmem:[%s13148_s0 + $0x1] ss:$0 sm:$0xff]  ;;  %vm13178_vm8 = vmmov %vm13168_vm1 }
0x1554   : > { %v6310_v43 = vpack.c.bf16 %v6309_v47, %v6309_v47  ;;  %v10968_v47 = vld [vmem:[%s13146_s11 + $0x3cc] sm:$0xf0] }
0x1555   : > { %6789 = vmatpush.bf16.msra.mxu3 %v9860_v46 }
0x1556   : > { %9844 = vmatmul.msk.bf16.vlgmr.msrb.gmra.mxu3 %vm13168_vm1, %v6310_v43  ;;  %v10960_v43 = vld [vmem:[%s13146_s11 + $0x394] sm:$0xf] }
0x15d9   : > { %v6350_v49 = vpop.f32.mrf.mxu3 }
0x15da   : > { %v6351_v63 = vadd.f32 %v11271_v57, %v6350_v49  ;;  %v10056_v49 = vor.u32 %v10968_v47, %v10055_v44  ;;  %v10071_v47 = vld [vmem:[%s13146_s11 + $0x3a0] sm:$0xf] }
0x15dc   : > { %v6354_v22 = vadd.f32 %v6351_v63, %v12498_v8  ;;  %v10039_v8 = vld [vmem:[%s13146_s11 + $0x380] sm:$0xf]  ;;  %v10057_v63 = vld [vmem:[%s13146_s11 + $0x3d0] sm:$0xf0] }
0x15dd   : > { %v10040_v0 = vor.u32 %v10966_v61, %v10039_v8  ;;  %v9991_v8 = vld [vmem:[%s13146_s11 + $0x310] sm:$0xf] }
0x15de   : > { %v6355_v48 = vsel %vm13169_vm7, %v6354_v22, 0.0  ;;  %v9992_v3 = vor.u32 %v10952_v62, %v9991_v8  ;;  %v10954_v8 = vld [vmem:[%s13146_s11 + $0x35c] sm:$0xf0]  ;;  %vm13179_vm7 = vmmov %vm13168_vm1 }
0x15df   : > { %6356 = vadd.xlane.f32.xlu2 %v6355_v48  ;;  %6747 = vmatpush.bf16.msra.mxu2 %v10040_v0  ;;  %v10969_v48 = vld [vmem:[%s13146_s11 + $0x3d4] sm:$0xf0]  ;;  %v10944_v0 = vld [vmem:[%s13146_s11 + $0x314] sm:$0xf] }
0x15e0   : > { %v9996_v4 = vor.u32 %v10944_v0, %v9993_v51  ;;  %v10946_v0 = vld [vmem:[%s13146_s11 + $0x324] sm:$0xf] }
0x15e1   : > { %v6352_v52 = vpop.f32.mrf.mxu3  ;;  %v10009_v51 = vld [vmem:[%s13146_s11 + $0x360] sm:$0xf0] }
0x15e3   : > { %6748 = vmatpush.bf16.msra.mxu2 %v9976_v50  ;;  %v10936_v50 = vld [vmem:[%s13146_s11 + $0x2cc] sm:$0xf0] }
0x15e4   : > { %v9928_v7 = vor.u32 %v10936_v50, %v9927_v18  ;;  %v10930_v50 = vld [vmem:[%s13146_s11 + $0x2a4] sm:$0xf] }
0x15e7   : > { %6749 = vmatpush.bf16.msra.mxu2 %v9912_v29  ;;  %v9940_v29 = vor.u32 %v10929_v13, %v9937_v30  ;;  %v9944_v13 = vor.u32 %v10938_v17, %v9943_v14  ;;  %v10922_v30 = vld [vmem:[%s13146_s11 + $0x25c] sm:$0xf0]  ;;  %v9895_v14 = vld [vmem:[%s13146_s11 + $0x230] sm:$0xf] }
0x15e8   : > { %v10924_v17 = vld [vmem:[%s13146_s11 + $0x26c] sm:$0xf0] }
0x15eb   : > { %6750 = vmatpush.bf16.msra.mxu2 %v9848_v37  ;;  %v9876_v37 = vor.u32 %v10913_v1, %v9873_v31  ;;  %v9889_v1 = vld [vmem:[%s13146_s11 + $0x268] sm:$0xf0] }
0x15ef   : > { %6799 = vmatpush.bf16.msrb.mxu2 %v10056_v49  ;;  %v10073_v49 = vld [vmem:[%s13146_s11 + $0x3e0] sm:$0xf0] }
0x15f3   : > { %6800 = vmatpush.bf16.msrb.mxu2 %v9992_v3  ;;  %v10955_v3 = vld [vmem:[%s13146_s11 + $0x364] sm:$0xf0] }
0x15f7   : > { %6801 = vmatpush.bf16.msrb.mxu2 %v9928_v7  ;;  %v10939_v7 = vld [vmem:[%s13146_s11 + $0x2e4] sm:$0xf0] }
0x15f8   : > { %v9952_v20 = vor.u32 %v10939_v7, %v9951_v6  ;;  %v9903_v6 = vld [vmem:[%s13146_s11 + $0x238] sm:$0xf] }
0x15f9   : > { %v10925_v7 = vld [vmem:[%s13146_s11 + $0x274] sm:$0xf0] }
0x15fb   : > { %6802 = vmatpush.bf16.msrb.mxu2 %v9864_v32 }
0x1652   : > { %v6357_v54 = vpop.xlane.xlu2 %6356 }
0x1653   : > { %v6358_v55 = vmul.f32 %v6357_v54, %v12146_v26  ;;  %v10060_v54 = vor.u32 %v10960_v43, %v10057_v63  ;;  %v10970_v43 = vld [vmem:[%s13146_s11 + $0x3dc] sm:$0xf0]  ;;  %v10079_v63 = vld [vmem:[%s13146_s11 + $0x3a8] sm:$0xf] }
0x1655   : > { %v12663_v56 = vsub.f32 %v6354_v22, %v6358_v55  ;;  %v10063_v22 = vld [vmem:[%s13146_s11 + $0x398] sm:$0xf]  ;;  %6812 = vmatpush.bf16.msrb.mxu0 %v10060_v54  ;;  %v10081_v54 = vld [vmem:[%s13146_s11 + $0x3e8] sm:$0xf0] }
0x1656   : > { %v10064_v55 = vor.u32 %v10969_v48, %v10063_v22  ;;  %v10971_v48 = vld [vmem:[%s13146_s11 + $0x3e4] sm:$0xf0] }
0x1657   : > { %v6360_v60 = vmul.f32 %v12663_v56, %v12663_v56 }
0x1658   : > { %6825 = vmatpush.bf16.msrb.mxu1 %v10064_v55  ;;  %v10072_v55 = vor.u32 %v10970_v43, %v10071_v47 }
0x1659   : > { %v6361_v24 = vsel %vm13170_vm9, %v6360_v60, 0.0  ;;  %v10961_v60 = vld [vmem:[%s13146_s11 + $0x39c] sm:$0xf]  ;;  %6813 = vmatpush.bf16.msrb.mxu0 %v9996_v4  ;;  %v10947_v4 = vld [vmem:[%s13146_s11 + $0x32c] sm:$0xf]  ;;  %vm13180_vm9 = vmmov %vm13168_vm1 }
0x165a   : > { %6362 = vadd.xlane.f32.xlu1 %v6361_v24  ;;  %v10065_v24 = vld [vmem:[%s13146_s11 + $0x3d8] sm:$0xf0] }
0x165b   : > { %v10068_v61 = vor.u32 %v10961_v60, %v10065_v24  ;;  %v10007_v24 = vld [vmem:[%s13146_s11 + $0x320] sm:$0xf] }
0x165c   : > { %6826 = vmatpush.bf16.msrb.mxu1 %v10000_v10  ;;  %v10008_v9 = vor.u32 %v10954_v8, %v10007_v24  ;;  %v10012_v10 = vor.u32 %v10946_v0, %v10009_v51  ;;  %v9959_v24 = vld [vmem:[%s13146_s11 + $0x2b0] sm:$0xf]  ;;  %v10932_v0 = vld [vmem:[%s13146_s11 + $0x2b4] sm:$0xf] }
0x165d   : > { %6838 = vmatpush.bf16.msrb.mxu3 %v10068_v61  ;;  %6814 = vmatpush.bf16.msrb.mxu0 %v9932_v42  ;;  %v10080_v61 = vor.u32 %v10971_v48, %v10079_v63  ;;  %v9948_v42 = vor.u32 %v10930_v50, %v9945_v19  ;;  %v10031_v63 = vld [vmem:[%s13146_s11 + $0x338] sm:$0xf]  ;;  %v10940_v8 = vld [vmem:[%s13146_s11 + $0x2ec] sm:$0xf0]  ;;  %v9961_v51 = vld [vmem:[%s13146_s11 + $0x2f0] sm:$0xf0] }
0x165e   : > { %v10957_v48 = vld [vmem:[%s13146_s11 + $0x374] sm:$0xf0]  ;;  %v10916_v50 = vld [vmem:[%s13146_s11 + $0x234] sm:$0xf] }
0x165f   : > { %v9897_v19 = vld [vmem:[%s13146_s11 + $0x270] sm:$0xf0] }
0x1660   : > { %6827 = vmatpush.bf16.msrb.mxu1 %v9936_v5  ;;  %v9879_v5 = vld [vmem:[%s13146_s11 + $0x220] sm:$0xf] }
0x1661   : > { %6839 = vmatpush.bf16.msrb.mxu3 %v10004_v27  ;;  %6815 = vmatpush.bf16.msrb.mxu0 %v9868_v45  ;;  %v10020_v27 = vor.u32 %v10947_v4, %v10017_v38  ;;  %v9880_v31 = vor.u32 %v10922_v30, %v9879_v5  ;;  %v10972_v45 = vld [vmem:[%s13146_s11 + $0x3ec] sm:$0xf0]  ;;  %v10933_v4 = vld [vmem:[%s13146_s11 + $0x2bc] sm:$0xf]  ;;  %v9904_v5 = vor.u32 %v10925_v7, %v9903_v6  ;;  %v11015_v7 = vld [vmem:[%s13149_s16 + $0x548] sm:$0xff] }
0x1662   : > { %v9969_v38 = vld [vmem:[%s13146_s11 + $0x2f8] sm:$0xf0]  ;;  %v9908_v30 = vor.u32 %v10917_v11, %v9905_v23  ;;  %v11023_v11 = vld [vmem:[%s13149_s16 + $0x588] sm:$0xff]  ;;  %v11008_v23 = vld [vmem:[%s13149_s16 + $0x510] sm:$0xff] }
0x1663   : > { %v11033_v6 = vld [vmem:[%s13149_s16 + $0x5d8] sm:$0xff] }
0x1664   : > { %6828 = vmatpush.bf16.msrb.mxu1 %v9872_v35  ;;  %v9888_v35 = vor.u32 %v10923_v12, %v9887_v28  ;;  %v10988_v28 = vld [vmem:[%s13149_s16 + $0x470] sm:$0xff] }
0x1665   : > { %6840 = vmatpush.bf16.msrb.mxu3 %v9940_v29  ;;  %v10914_v29 = vld [vmem:[%s13146_s11 + $0x224] sm:$0xf]  ;;  %v10996_v12 = vld [vmem:[%s13149_s16 + $0x4b0] sm:$0xff] }
0x1666   : > { %v9884_v32 = vor.u32 %v10914_v29, %v9881_v25  ;;  %v10981_v29 = vld [vmem:[%s13149_s16 + $0x438] sm:$0xff] }
0x1667   : > { %v11005_v25 = vld [vmem:[%s13149_s16 + $0x4f8] sm:$0xff] }
0x1669   : > { %6841 = vmatpush.bf16.msrb.mxu3 %v9876_v37  ;;  %v10964_v37 = vld [vmem:[%s13146_s11 + $0x3b4] sm:$0xf] }
0x16cd   : > { %v6363_v57 = vpop.xlane.xlu1 %6362 }
0x16ce   : > { %v6364_v52 = vmul.f32 %v6363_v57, %v12146_v26  ;;  %v10962_v57 = vld [vmem:[%s13146_s11 + $0x3a4] sm:$0xf] }
0x16cf   : > { %v10076_v60 = vor.u32 %v10962_v57, %v10073_v49  ;;  %v10948_v57 = vld [vmem:[%s13146_s11 + $0x334] sm:$0xf] }
0x16d0   : > { %v6365_v2 = vadd.f32 1e-05, %v6364_v52  ;;  %v10963_v52 = vld [vmem:[%s13146_s11 + $0x3ac] sm:$0xf]  ;;  %v10025_v49 = vld [vmem:[%s13146_s11 + $0x370] sm:$0xf0] }
0x16d1   : > { %v10084_v62 = vor.u32 %v10963_v52, %v10081_v54  ;;  %v10949_v52 = vld [vmem:[%s13146_s11 + $0x33c] sm:$0xf] }
0x16d2   : > { %11355 = vrsqrt.f32 %v6365_v2  ;;  %vm6372_vm14 = vweird.f32 %v6365_v2  ;;  %v10033_v54 = vld [vmem:[%s13146_s11 + $0x378] sm:$0xf0] }
0x16d8   : > { %v11356_v33 = vpop.eup %11355 }
0x16d9   : > { %v6367_v36 = vmul.f32 %v11356_v33, %v6365_v2  ;;  %vm6373_vm10 = vweird.f32 %v11356_v33  ;;  %v10015_v2 = vld [vmem:[%s13146_s11 + $0x328] sm:$0xf] }
0x16da   : > { %vm6374_vm13 = vmor %vm6372_vm14, %vm6373_vm10  ;;  %v10016_v18 = vor.u32 %v10955_v3, %v10015_v2  ;;  %v9967_v2 = vld [vmem:[%s13146_s11 + $0x2b8] sm:$0xf] }
0x16db   : > { %v6368_v39 = vmul.f32 %v11356_v33, %v6367_v36  ;;  %v9892_v36 = vor.u32 %v10915_v59, %v9889_v1  ;;  %v10941_v3 = vld [vmem:[%s13146_s11 + $0x2f4] sm:$0xf0]  ;;  %vm13181_vm10 = vmmov %vm13168_vm1  ;;  %v10980_v59 = vld [vmem:[%s13149_s16 + $0x430] sm:$0xff] }
0x16dc   : > { %v11004_v1 = vld [vmem:[%s13149_s16 + $0x4f0] sm:$0xff]  ;;  %vm13182_vm14 = vmmov %vm13168_vm1 }
0x16dd   : > { %v6369_v40 = vmul.f32 0.5, %v6368_v39  ;;  %v10089_v39 = vld [vmem:[%s13146_s11 + $0x3f0] sm:$0xf0] }
0x16df   : > { %v6370_v53 = vsub.f32 1.5, %v6369_v40  ;;  %v10095_v40 = vld [vmem:[%s13146_s11 + $0x3b8] sm:$0xf] }
0x16e1   : > { %v6371_v15 = vmul.f32 %v11356_v33, %v6370_v53  ;;  %v10973_v53 = vld [vmem:[%s13146_s11 + $0x3f4] sm:$0xf0] }
0x16e2   : > { %v10096_v47 = vor.u32 %v10973_v53, %v10095_v40  ;;  %v10985_v40 = vld [vmem:[%s13149_s16 + $0x458] sm:$0xff] }
0x16e3   : > { %v6375_v58 = vsel %vm6374_vm13, %v11356_v33, %v6371_v15  ;;  %v10087_v33 = vld [vmem:[%s13146_s11 + $0x3b0] sm:$0xf]  ;;  %v10965_v15 = vld [vmem:[%s13146_s11 + $0x3bc] sm:$0xf]  ;;  %vm13183_vm13 = vmmov %vm13168_vm1 }
0x16e4   : > { %v6376_v46 = vmul.f32 %v6375_v58, %v12663_v56  ;;  %v10088_v58 = vor.u32 %v10972_v45, %v10087_v33  ;;  %v10979_v33 = vld [vmem:[%s13149_s16 + $0x428] sm:$0xff]  ;;  %v10993_v53 = vld [vmem:[%s13149_s16 + $0x498] sm:$0xff] }
0x16e5   : > { %v11003_v45 = vld [vmem:[%s13149_s16 + $0x4e8] sm:$0xff] }
0x16e6   : > { %v6380_v44 = vmul.f32 %v11272_v34, %v6376_v46  ;;  %v10097_v34 = vld [vmem:[%s13146_s11 + $0x3f8] sm:$0xf0]  ;;  %v10023_v46 = vld [vmem:[%s13146_s11 + $0x330] sm:$0xf] }
0x16e7   : > { %v10100_v43 = vor.u32 %v10965_v15, %v10097_v34  ;;  %v10977_v15 = vld [vmem:[%s13149_s16 + $0x418] sm:$0xff] }
0x16e8   : > { %v12741_v22 = vadd.f32 %v11273_v41, %v6380_v44  ;;  %v10092_v41 = vor.u32 %v10964_v37, %v10089_v39  ;;  %v10956_v44 = vld [vmem:[%s13146_s11 + $0x36c] sm:$0xf0]  ;;  %v10978_v37 = vld [vmem:[%s13149_s16 + $0x420] sm:$0xff]  ;;  %v11001_v34 = vld [vmem:[%s13149_s16 + $0x4d8] sm:$0xff] }
0x16e9   : > { %v11002_v39 = vld [vmem:[%s13149_s16 + $0x4e0] sm:$0xff] }
0x16ea   : > { %v12748_v56 = vpack.c.bf16 %v12741_v22, %v12741_v22 }
0x16ec   : > { %10101 = vmatmul.msk.bf16.vlgmr.msra.gmra.mxu2 %vm13171_vm2, %v12748_v56  ;;  %10102 = vmatmul.msk.bf16.vlgmr.msra.gmra.mxu0 %vm13172_vm4, %v12748_v56  ;;  %vm13184_vm2 = vmmov %vm13168_vm1 }
0x16ed   : > { %10103 = vmatmul.msk.bf16.vlgmr.msra.gmra.mxu1 %vm13173_vm3, %v12748_v56  ;;  %10104 = vmatmul.msk.bf16.vlgmr.msra.gmra.mxu3 %vm13174_vm11, %v12748_v56  ;;  %vm13185_vm4 = vmmov %vm13168_vm1  ;;  %vm13187_vm3 = vcmask 517120  }
0x16ee   : > { %6851 = vmatpush.bf16.msra.mxu2 %v10072_v55  ;;  %6864 = vmatpush.bf16.msra.mxu0 %v10076_v60  ;;  %v10024_v55 = vor.u32 %v10956_v44, %v10023_v46  ;;  %v10028_v60 = vor.u32 %v10948_v57, %v10025_v49  ;;  %v10976_v46 = vld [vmem:[%s13149_s16 + $0x410] sm:$0xff]  ;;  %v10999_v57 = vld [vmem:[%s13149_s16 + $0x4c8] sm:$0xff]  ;;  %v10982_v49 = vld [vmem:[%s13149_s16 + $0x440] sm:$0xff] }
0x16ef   : > { %6877 = vmatpush.bf16.msra.mxu1 %v10080_v61  ;;  %6890 = vmatpush.bf16.msra.mxu3 %v10084_v62  ;;  %v10032_v61 = vor.u32 %v10957_v48, %v10031_v63  ;;  %v10036_v62 = vor.u32 %v10949_v52, %v10033_v54  ;;  %v11000_v44 = vld [vmem:[%s13149_s16 + $0x4d0] sm:$0xff]  ;;  %v10990_v63 = vld [vmem:[%s13149_s16 + $0x480] sm:$0xff]  ;;  %v11021_v48 = vld [vmem:[%s13149_s16 + $0x578] sm:$0xff] }
0x16f0   : > { %v11029_v52 = vld [vmem:[%s13149_s16 + $0x5b8] sm:$0xff]  ;;  %v10974_v54 = vld [vmem:[%s13149_s16 + $0x400] sm:$0xff]  ;;  %vm13188_vm11 = vmmov %vm13187_vm3 }
0x16f2   : > { %6852 = vmatpush.bf16.msra.mxu2 %v10008_v9  ;;  %6865 = vmatpush.bf16.msra.mxu0 %v10012_v10  ;;  %v9960_v9 = vor.u32 %v10940_v8, %v9959_v24  ;;  %v9964_v10 = vor.u32 %v10932_v0, %v9961_v51  ;;  %v11037_v24 = vld [vmem:[%s13149_s16 + $0x5f8] sm:$0xff]  ;;  %v11020_v8 = vld [vmem:[%s13149_s16 + $0x570] sm:$0xff]  ;;  %v11019_v51 = vld [vmem:[%s13149_s16 + $0x568] sm:$0xff] }
0x16f3   : > { %6878 = vmatpush.bf16.msra.mxu1 %v10016_v18  ;;  %6891 = vmatpush.bf16.msra.mxu3 %v10020_v27  ;;  %v9968_v18 = vor.u32 %v10941_v3, %v9967_v2  ;;  %v9972_v27 = vor.u32 %v10933_v4, %v9969_v38  ;;  %v11036_v0 = vld [vmem:[%s13149_s16 + $0x5f0] sm:$0xff]  ;;  %v11027_v2 = vld [vmem:[%s13149_s16 + $0x5a8] sm:$0xff]  ;;  %v11018_v38 = vld [vmem:[%s13149_s16 + $0x560] sm:$0xff] }
0x16f4   : > { %v11011_v3 = vld [vmem:[%s13149_s16 + $0x528] sm:$0xff] }
0x16f5   : > { %v11035_v4 = vld [vmem:[%s13149_s16 + $0x5e8] sm:$0xff] }
0x16f6   : > { %6853 = vmatpush.bf16.msra.mxu2 %v9944_v13  ;;  %6866 = vmatpush.bf16.msra.mxu0 %v9948_v42  ;;  %v9896_v13 = vor.u32 %v10924_v17, %v9895_v14  ;;  %v9900_v42 = vor.u32 %v10916_v50, %v9897_v19  ;;  %v11034_v14 = vld [vmem:[%s13149_s16 + $0x5e0] sm:$0xff]  ;;  %v11017_v17 = vld [vmem:[%s13149_s16 + $0x558] sm:$0xff]  ;;  %v11024_v50 = vld [vmem:[%s13149_s16 + $0x590] sm:$0xff] }
0x16f7   : > { %6879 = vmatpush.bf16.msra.mxu1 %v9952_v20  ;;  %6892 = vmatpush.bf16.msra.mxu3 %v9956_v21  ;;  %v10989_v20 = vld [vmem:[%s13149_s16 + $0x478] sm:$0xff] }
0x16f8   : > { %v10997_v21 = vld [vmem:[%s13149_s16 + $0x4b8] sm:$0xff] }
0x16f9   : > { %v11009_v19 = vld [vmem:[%s13149_s16 + $0x518] sm:$0xff] }
0x16fa   : > { %6854 = vmatpush.bf16.msra.mxu2 %v9880_v31  ;;  %6867 = vmatpush.bf16.msra.mxu0 %v9884_v32  ;;  %v10987_v31 = vld [vmem:[%s13149_s16 + $0x468] sm:$0xff] }
0x16fb   : > { %6880 = vmatpush.bf16.msra.mxu1 %v9888_v35  ;;  %6893 = vmatpush.bf16.msra.mxu3 %v9892_v36  ;;  %v10995_v32 = vld [vmem:[%s13149_s16 + $0x4a8] sm:$0xff]  ;;  %v10986_v35 = vld [vmem:[%s13149_s16 + $0x460] sm:$0xff] }
0x16fc   : > { %10105 = vmatmul.msk.bf16.vlgmr.msrb.gmra.mxu2 %vm13175_vm15, %v12748_v56  ;;  %10106 = vmatmul.msk.bf16.vlgmr.msrb.gmra.mxu0 %vm13176_vm12, %v12748_v56  ;;  %v10994_v36 = vld [vmem:[%s13149_s16 + $0x4a0] sm:$0xff] }
0x16fd   : > { %10107 = vmatmul.msk.bf16.vlgmr.msrb.gmra.mxu1 %vm13177_vm5, %v12748_v56  ;;  %10108 = vmatmul.msk.bf16.vlgmr.msrb.gmra.mxu3 %vm13178_vm8, %v12748_v56  ;;  %vm13191_vm8 = vmmov %vm13168_vm1 }
0x16fe   : > { %6903 = vmatpush.bf16.msrb.mxu2 %v10088_v58  ;;  %6916 = vmatpush.bf16.msrb.mxu0 %v10092_v41  ;;  %v10984_v58 = vld [vmem:[%s13149_s16 + $0x450] sm:$0xff] }
0x16ff   : > { %6929 = vmatpush.bf16.msrb.mxu1 %v10096_v47  ;;  %6942 = vmatpush.bf16.msrb.mxu3 %v10100_v43  ;;  %v10992_v41 = vld [vmem:[%s13149_s16 + $0x490] sm:$0xff]  ;;  %v10983_v47 = vld [vmem:[%s13149_s16 + $0x448] sm:$0xff] }
0x1700   : > { %v10975_v43 = vld [vmem:[%s13149_s16 + $0x408] sm:$0xff] }
0x1702   : > { %6904 = vmatpush.bf16.msrb.mxu2 %v10024_v55  ;;  %6917 = vmatpush.bf16.msrb.mxu0 %v10028_v60  ;;  %v10998_v55 = vld [vmem:[%s13149_s16 + $0x4c0] sm:$0xff]  ;;  %v11013_v60 = vld [vmem:[%s13149_s16 + $0x538] sm:$0xff] }
0x1703   : > { %6930 = vmatpush.bf16.msrb.mxu1 %v10032_v61  ;;  %6943 = vmatpush.bf16.msrb.mxu3 %v10036_v62  ;;  %v11028_v61 = vld [vmem:[%s13149_s16 + $0x5b0] sm:$0xff] }
0x1704   : > { %v11012_v62 = vld [vmem:[%s13149_s16 + $0x530] sm:$0xff] }
0x1706   : > { %6905 = vmatpush.bf16.msrb.mxu2 %v9960_v9  ;;  %6918 = vmatpush.bf16.msrb.mxu0 %v9964_v10  ;;  %v11026_v9 = vld [vmem:[%s13149_s16 + $0x5a0] sm:$0xff] }
0x1707   : > { %6931 = vmatpush.bf16.msrb.mxu1 %v9968_v18  ;;  %6944 = vmatpush.bf16.msrb.mxu3 %v9972_v27  ;;  %v11010_v10 = vld [vmem:[%s13149_s16 + $0x520] sm:$0xff]  ;;  %v11025_v18 = vld [vmem:[%s13149_s16 + $0x598] sm:$0xff]  ;;  %v11016_v27 = vld [vmem:[%s13149_s16 + $0x550] sm:$0xff] }
0x170a   : > { %6906 = vmatpush.bf16.msrb.mxu2 %v9896_v13  ;;  %6919 = vmatpush.bf16.msrb.mxu0 %v9900_v42  ;;  %v11032_v13 = vld [vmem:[%s13149_s16 + $0x5d0] sm:$0xff]  ;;  %v11014_v42 = vld [vmem:[%s13149_s16 + $0x540] sm:$0xff] }
0x170b   : > { %6932 = vmatpush.bf16.msrb.mxu1 %v9904_v5  ;;  %6945 = vmatpush.bf16.msrb.mxu3 %v9908_v30  ;;  %v11022_v5 = vld [vmem:[%s13149_s16 + $0x580] sm:$0xff]  ;;  %v11007_v30 = vld [vmem:[%s13149_s16 + $0x508] sm:$0xff] }
0x170c   : > { %10109 = vmatmul.msk.bf16.vlgmr.msra.gmra.mxu2 %vm13168_vm1, %v12748_v56  ;;  %10110 = vmatmul.msk.bf16.vlgmr.msra.gmra.mxu0 %vm13179_vm7, %v12748_v56  ;;  %vm13192_vm1 = vmmov %vm13187_vm3 }
0x170d   : > { %10111 = vmatmul.msk.bf16.vlgmr.msra.gmra.mxu1 %vm13180_vm9, %v12748_v56  ;;  %10112 = vmatmul.msk.bf16.vlgmr.msra.gmra.mxu3 %vm13181_vm10, %v12748_v56  ;;  %vm13193_vm7 = vmmov %vm13192_vm1 }
0x170e   : > { %7767 = vmatpush.bf16.msra.mxu0 %v10989_v20  ;;  %7754 = vmatpush.bf16.msra.mxu2 %v10981_v29  ;;  %v11031_v20 = vld [vmem:[%s13149_s16 + $0x5c8] sm:$0xff]  ;;  %v11030_v29 = vld [vmem:[%s13149_s16 + $0x5c0] sm:$0xff] }
0x170f   : > { %7780 = vmatpush.bf16.msra.mxu1 %v10997_v21  ;;  %7793 = vmatpush.bf16.msra.mxu3 %v11005_v25  ;;  %v11006_v21 = vld [vmem:[%s13149_s16 + $0x500] sm:$0xff]  ;;  %v12903_v25 = vld [vmem:[%s13150_s3 + $0x10] sm:$0xff] }
0x1712   : > { %7768 = vmatpush.bf16.msra.mxu0 %v10988_v28  ;;  %7755 = vmatpush.bf16.msra.mxu2 %v10980_v59  ;;  %v6389_v28 = vperm.slane %v12903_v25, 1 }
0x1713   : > { %7781 = vmatpush.bf16.msra.mxu1 %v10996_v12  ;;  %7794 = vmatpush.bf16.msra.mxu3 %v11004_v1  ;;  %v6390_v12 = vperm.slane %v12903_v25, 2 }
0x1716   : > { %7769 = vmatpush.bf16.msra.mxu0 %v10987_v31  ;;  %7756 = vmatpush.bf16.msra.mxu2 %v10979_v33 }
0x1717   : > { %7782 = vmatpush.bf16.msra.mxu1 %v10995_v32  ;;  %7795 = vmatpush.bf16.msra.mxu3 %v11003_v45  ;;  %v6388_v45 = vperm.slane %v12903_v25, 0 }
0x171a   : > { %7770 = vmatpush.bf16.msra.mxu0 %v10986_v35  ;;  %7757 = vmatpush.bf16.msra.mxu2 %v10978_v37  ;;  %v11053_v37 = vld [vmem:[%s13149_s16 + $0x678] sm:$0xff] }
0x171b   : > { %7783 = vmatpush.bf16.msra.mxu1 %v10994_v36  ;;  %7796 = vmatpush.bf16.msra.mxu3 %v11002_v39  ;;  %v6391_v36 = vperm.slane %v12903_v25, 3 }
0x171c   : > { %10113 = vmatmul.msk.bf16.vlgmr.msrb.gmra.mxu2 %vm13182_vm14, %v12748_v56  ;;  %10114 = vmatmul.msk.bf16.vlgmr.msrb.gmra.mxu0 %vm13183_vm13, %v12748_v56  ;;  %vm13198_vm13 = vmmov %vm13184_vm2 }
0x171d   : > { %10115 = vmatmul.msk.bf16.vlgmr.msrb.gmra.mxu1 %vm13184_vm2, %v12748_v56  ;;  %10116 = vmatmul.msk.bf16.vlgmr.msrb.gmra.mxu3 %vm13185_vm4, %v12748_v56  ;;  %v10991_v56 = vld [vmem:[%s13149_s16 + $0x488] sm:$0xff]  ;;  %vm13199_vm2 = vcmask 254976  }
0x171e   : > { %7771 = vmatpush.bf16.msra.mxu0 %v10985_v40  ;;  %7758 = vmatpush.bf16.msra.mxu2 %v10977_v15  ;;  %v11061_v40 = vld [vmem:[%s13149_s16 + $0x6b8] sm:$0xff]  ;;  %vm13200_vm4 = vmmov %vm13199_vm2 }
0x171f   : > { %7784 = vmatpush.bf16.msra.mxu1 %v10993_v53  ;;  %7797 = vmatpush.bf16.msra.mxu3 %v11001_v34 }
0x1722   : > { %7772 = vmatpush.bf16.msra.mxu0 %v10984_v58  ;;  %7759 = vmatpush.bf16.msra.mxu2 %v10976_v46 }
0x1723   : > { %7785 = vmatpush.bf16.msra.mxu1 %v10992_v41  ;;  %7798 = vmatpush.bf16.msra.mxu3 %v11000_v44  ;;  %v11052_v44 = vld [vmem:[%s13149_s16 + $0x670] sm:$0xff] }
0x1726   : > { %7773 = vmatpush.bf16.msra.mxu0 %v10983_v47  ;;  %7760 = vmatpush.bf16.msra.mxu2 %v10975_v43  ;;  %v11060_v43 = vld [vmem:[%s13149_s16 + $0x6b0] sm:$0xff] }
0x1727   : > { %7786 = vmatpush.bf16.msra.mxu1 %v10991_v56  ;;  %7799 = vmatpush.bf16.msra.mxu3 %v10999_v57 }
0x172a   : > { %7774 = vmatpush.bf16.msra.mxu0 %v10982_v49  ;;  %7761 = vmatpush.bf16.msra.mxu2 %v10974_v54  ;;  %v11045_v49 = vld [vmem:[%s13149_s16 + $0x638] sm:$0xff]  ;;  %v11051_v54 = vld [vmem:[%s13149_s16 + $0x668] sm:$0xff] }
0x172b   : > { %7787 = vmatpush.bf16.msra.mxu1 %v10990_v63  ;;  %7800 = vmatpush.bf16.msra.mxu3 %v10998_v55  ;;  %v11059_v55 = vld [vmem:[%s13149_s16 + $0x6a8] sm:$0xff] }
0x172e   : > { %7819 = vmatpush.bf16.msrb.mxu0 %v11021_v48  ;;  %7806 = vmatpush.bf16.msrb.mxu2 %v11013_v60  ;;  %v11069_v48 = vld [vmem:[%s13149_s16 + $0x6f8] sm:$0xff]  ;;  %v6393_v60 = vperm.slane %v12903_v25, 5 }
0x172f   : > { %7832 = vmatpush.bf16.msrb.mxu1 %v11029_v52  ;;  %7845 = vmatpush.bf16.msrb.mxu3 %v11037_v24 }
0x1732   : > { %7820 = vmatpush.bf16.msrb.mxu0 %v11020_v8  ;;  %7807 = vmatpush.bf16.msrb.mxu2 %v11012_v62  ;;  %v6394_v8 = vperm.slane %v12903_v25, 6 }
0x1733   : > { %7833 = vmatpush.bf16.msrb.mxu1 %v11028_v61  ;;  %7846 = vmatpush.bf16.msrb.mxu3 %v11036_v0  ;;  %v11044_v61 = vld [vmem:[%s13149_s16 + $0x630] sm:$0xff] }
0x1734   : > { %v11068_v0 = vld [vmem:[%s13149_s16 + $0x6f0] sm:$0xff] }
0x1736   : > { %7821 = vmatpush.bf16.msrb.mxu0 %v11019_v51  ;;  %7808 = vmatpush.bf16.msrb.mxu2 %v11011_v3 }
0x1737   : > { %7834 = vmatpush.bf16.msrb.mxu1 %v11027_v2  ;;  %7847 = vmatpush.bf16.msrb.mxu3 %v11035_v4  ;;  %v11050_v2 = vld [vmem:[%s13149_s16 + $0x660] sm:$0xff] }
0x173a   : > { %7822 = vmatpush.bf16.msrb.mxu0 %v11018_v38  ;;  %7809 = vmatpush.bf16.msrb.mxu2 %v11010_v10  ;;  %v11058_v38 = vld [vmem:[%s13149_s16 + $0x6a0] sm:$0xff]  ;;  %v11043_v10 = vld [vmem:[%s13149_s16 + $0x628] sm:$0xff] }
0x173b   : > { %7835 = vmatpush.bf16.msrb.mxu1 %v11026_v9  ;;  %7848 = vmatpush.bf16.msrb.mxu3 %v11034_v14 }
0x173e   : > { %7823 = vmatpush.bf16.msrb.mxu0 %v11017_v17  ;;  %7810 = vmatpush.bf16.msrb.mxu2 %v11009_v19  ;;  %v11067_v17 = vld [vmem:[%s13149_s16 + $0x6e8] sm:$0xff]  ;;  %v11049_v19 = vld [vmem:[%s13149_s16 + $0x658] sm:$0xff] }
0x173f   : > { %7836 = vmatpush.bf16.msrb.mxu1 %v11025_v18  ;;  %7849 = vmatpush.bf16.msrb.mxu3 %v11033_v6  ;;  %v6392_v18 = vperm.slane %v12903_v25, 4 }
0x1742   : > { %7824 = vmatpush.bf16.msrb.mxu0 %v11016_v27  ;;  %7811 = vmatpush.bf16.msrb.mxu2 %v11008_v23 }
0x1743   : > { %7837 = vmatpush.bf16.msrb.mxu1 %v11024_v50  ;;  %7850 = vmatpush.bf16.msrb.mxu3 %v11032_v13  ;;  %v6395_v50 = vperm.slane %v12903_v25, 7  ;;  %v11042_v13 = vld [vmem:[%s13149_s16 + $0x620] sm:$0xff] }
0x1746   : > { %7825 = vmatpush.bf16.msrb.mxu0 %v11015_v7  ;;  %7812 = vmatpush.bf16.msrb.mxu2 %v11007_v30  ;;  %v11057_v7 = vld [vmem:[%s13149_s16 + $0x698] sm:$0xff]  ;;  %v11066_v30 = vld [vmem:[%s13149_s16 + $0x6e0] sm:$0xff] }
0x1747   : > { %7838 = vmatpush.bf16.msrb.mxu1 %v11023_v11  ;;  %7851 = vmatpush.bf16.msrb.mxu3 %v11031_v20 }
0x174a   : > { %7826 = vmatpush.bf16.msrb.mxu0 %v11014_v42  ;;  %7813 = vmatpush.bf16.msrb.mxu2 %v11006_v21 }
0x174b   : > { %7839 = vmatpush.bf16.msrb.mxu1 %v11022_v5  ;;  %7852 = vmatpush.bf16.msrb.mxu3 %v11030_v29  ;;  %v11048_v29 = vld [vmem:[%s13149_s16 + $0x650] sm:$0xff] }
0x1769   : > { %v6765_v59 = vpop.f32.mrf.mxu0 }
0x176a   : > { %v6766_v1 = vadd.f32 %v6765_v59, %v6389_v28  ;;  %v6778_v31 = vpop.f32.mrf.mxu1 }
0x176b   : > { %v6779_v32 = vadd.f32 %v6778_v31, %v6390_v12  ;;  %v11056_v12 = vld [vmem:[%s13149_s16 + $0x690] sm:$0xff]  ;;  %v12935_v31 = vld [vmem:[%s13150_s3 + $0x18] sm:$0xff] }
0x176c   : > { %v6952_v33 = vmax.f32 %v6766_v1, 0.0  ;;  %v11041_v1 = vld [vmem:[%s13149_s16 + $0x618] sm:$0xff] }
0x176d   : > { %v6953_v35 = vmax.f32 %v6779_v32, 0.0 }
0x176e   : > { %v6968_v39 = vpack.c.bf16 %v6952_v33, %v6952_v33  ;;  %v11065_v33 = vld [vmem:[%s13149_s16 + $0x6d8] sm:$0xff] }
0x176f   : > { %v6969_v53 = vpack.c.bf16 %v6953_v35, %v6953_v35  ;;  %v6752_v15 = vpop.f32.mrf.mxu2  ;;  %v11047_v35 = vld [vmem:[%s13149_s16 + $0x648] sm:$0xff] }
0x1770   : > { %v6753_v34 = vadd.f32 %v6752_v15, %v6388_v45  ;;  %v6791_v58 = vpop.f32.mrf.mxu3  ;;  %7775 = vmatmul.bf16.vlgmr.msra.gmra.mxu0 %v6968_v39 }
0x1771   : > { %v6792_v41 = vadd.f32 %v6791_v58, %v6391_v36  ;;  %7788 = vmatmul.bf16.vlgmr.msra.gmra.mxu1 %v6969_v53  ;;  %7871 = vmatpush.bf16.msra.mxu0 %v11053_v37  ;;  %v6767_v46 = vpop.f32.mrf.mxu0  ;;  %v11055_v36 = vld [vmem:[%s13149_s16 + $0x688] sm:$0xff]  ;;  %v6397_v37 = vperm.slane %v12935_v31, 1  ;;  %v11040_v53 = vld [vmem:[%s13149_s16 + $0x610] sm:$0xff] }
0x1772   : > { %v6951_v47 = vmax.f32 %v6753_v34, 0.0  ;;  %7884 = vmatpush.bf16.msra.mxu1 %v11061_v40  ;;  %v6780_v56 = vpop.f32.mrf.mxu1  ;;  %v6398_v40 = vperm.slane %v12935_v31, 2  ;;  %v11064_v34 = vld [vmem:[%s13149_s16 + $0x6d0] sm:$0xff] }
0x1773   : > { %v6954_v57 = vmax.f32 %v6792_v41, 0.0  ;;  %v11046_v41 = vld [vmem:[%s13149_s16 + $0x640] sm:$0xff]  ;;  %v11085_v56 = vld [vmem:[%s13149_s16 + $0x778] sm:$0xff] }
0x1774   : > { %v6967_v63 = vpack.c.bf16 %v6951_v47, %v6951_v47  ;;  %v11054_v47 = vld [vmem:[%s13149_s16 + $0x680] sm:$0xff] }
0x1775   : > { %v6970_v52 = vpack.c.bf16 %v6954_v57, %v6954_v57  ;;  %7872 = vmatpush.bf16.msra.mxu0 %v11052_v44  ;;  %v11093_v57 = vld [vmem:[%s13149_s16 + $0x7b8] sm:$0xff] }
0x1776   : > { %7885 = vmatpush.bf16.msra.mxu1 %v11060_v43  ;;  %7762 = vmatmul.bf16.vlgmr.msra.gmra.mxu2 %v6967_v63 }
0x1777   : > { %7801 = vmatmul.bf16.vlgmr.msra.gmra.mxu3 %v6970_v52  ;;  %7858 = vmatpush.bf16.msra.mxu2 %v11045_v49  ;;  %v6754_v24 = vpop.f32.mrf.mxu2  ;;  %v11039_v49 = vld [vmem:[%s13149_s16 + $0x608] sm:$0xff]  ;;  %v6396_v52 = vperm.slane %v12935_v31, 0 }
0x1778   : > { %7897 = vmatpush.bf16.msra.mxu3 %v11069_v48  ;;  %v6793_v62 = vpop.f32.mrf.mxu3  ;;  %v11063_v48 = vld [vmem:[%s13149_s16 + $0x6c8] sm:$0xff]  ;;  %v11084_v24 = vld [vmem:[%s13149_s16 + $0x770] sm:$0xff] }
0x1779   : > { %7873 = vmatpush.bf16.msra.mxu0 %v11051_v54  ;;  %v6817_v51 = vpop.f32.mrf.mxu0  ;;  %v11092_v62 = vld [vmem:[%s13149_s16 + $0x7b0] sm:$0xff] }
0x177a   : > { %7886 = vmatpush.bf16.msra.mxu1 %v11059_v55  ;;  %v6818_v3 = vadd.f32 %v6817_v51, %v6393_v60  ;;  %v6830_v4 = vpop.f32.mrf.mxu1  ;;  %v6399_v55 = vperm.slane %v12935_v31, 3 }
0x177b   : > { %v6831_v9 = vadd.f32 %v6830_v4, %v6394_v8  ;;  %7859 = vmatpush.bf16.msra.mxu2 %v11044_v61  ;;  %v11077_v4 = vld [vmem:[%s13149_s16 + $0x738] sm:$0xff] }
0x177c   : > { %v6956_v14 = vmax.f32 %v6818_v3, 0.0  ;;  %7898 = vmatpush.bf16.msra.mxu3 %v11068_v0  ;;  %v11038_v0 = vld [vmem:[%s13149_s16 + $0x600] sm:$0xff] }
0x177d   : > { %v6957_v27 = vmax.f32 %v6831_v9, 0.0  ;;  %7874 = vmatpush.bf16.msra.mxu0 %v11050_v2  ;;  %v11062_v3 = vld [vmem:[%s13149_s16 + $0x6c0] sm:$0xff] }
0x177e   : > { %v6972_v6 = vpack.c.bf16 %v6956_v14, %v6956_v14  ;;  %7887 = vmatpush.bf16.msra.mxu1 %v11058_v38 }
0x177f   : > { %v6973_v11 = vpack.c.bf16 %v6957_v27, %v6957_v27  ;;  %7860 = vmatpush.bf16.msra.mxu2 %v11043_v10  ;;  %v6804_v23 = vpop.f32.mrf.mxu2  ;;  %v11101_v10 = vld [vmem:[%s13149_s16 + $0x7f8] sm:$0xff] }
0x1780   : > { %7899 = vmatpush.bf16.msra.mxu3 %v11067_v17  ;;  %v6805_v42 = vadd.f32 %v6804_v23, %v6392_v18  ;;  %v6843_v5 = vpop.f32.mrf.mxu3  ;;  %7827 = vmatmul.bf16.vlgmr.msrb.gmra.mxu0 %v6972_v6  ;;  %v11083_v18 = vld [vmem:[%s13149_s16 + $0x768] sm:$0xff]  ;;  %v11076_v6 = vld [vmem:[%s13149_s16 + $0x730] sm:$0xff]  ;;  %v11082_v23 = vld [vmem:[%s13149_s16 + $0x760] sm:$0xff] }
0x1781   : > { %v6844_v20 = vadd.f32 %v6843_v5, %v6395_v50  ;;  %7840 = vmatmul.bf16.vlgmr.msrb.gmra.mxu1 %v6973_v11  ;;  %7875 = vmatpush.bf16.msra.mxu0 %v11049_v19  ;;  %v6819_v21 = vpop.f32.mrf.mxu0  ;;  %v11091_v50 = vld [vmem:[%s13149_s16 + $0x7a8] sm:$0xff]  ;;  %v11100_v11 = vld [vmem:[%s13149_s16 + $0x7f0] sm:$0xff] }
0x1782   : > { %v6955_v25 = vmax.f32 %v6805_v42, 0.0  ;;  %7888 = vmatpush.bf16.msra.mxu1 %v11057_v7  ;;  %v6832_v28 = vpop.f32.mrf.mxu1  ;;  %v11090_v42 = vld [vmem:[%s13149_s16 + $0x7a0] sm:$0xff]  ;;  %v11099_v21 = vld [vmem:[%s13149_s16 + $0x7e8] sm:$0xff] }
0x1783   : > { %v6958_v59 = vmax.f32 %v6844_v20, 0.0  ;;  %7861 = vmatpush.bf16.msra.mxu2 %v11042_v13  ;;  %v11089_v28 = vld [vmem:[%s13149_s16 + $0x798] sm:$0xff] }
0x1784   : > { %v6971_v32 = vpack.c.bf16 %v6955_v25, %v6955_v25  ;;  %7900 = vmatpush.bf16.msra.mxu3 %v11066_v30  ;;  %v11075_v30 = vld [vmem:[%s13149_s16 + $0x728] sm:$0xff]  ;;  %v11081_v25 = vld [vmem:[%s13149_s16 + $0x758] sm:$0xff] }
0x1785   : > { %v6974_v45 = vpack.c.bf16 %v6958_v59, %v6958_v59  ;;  %7876 = vmatpush.bf16.msra.mxu0 %v11048_v29  ;;  %v11098_v59 = vld [vmem:[%s13149_s16 + $0x7e0] sm:$0xff] }
0x1786   : > { %7889 = vmatpush.bf16.msra.mxu1 %v11056_v12  ;;  %7814 = vmatmul.bf16.vlgmr.msrb.gmra.mxu2 %v6971_v32  ;;  %v11074_v12 = vld [vmem:[%s13149_s16 + $0x720] sm:$0xff]  ;;  %v6401_v32 = vperm.slane %v12935_v31, 5 }
0x1787   : > { %7853 = vmatmul.bf16.vlgmr.msrb.gmra.mxu3 %v6974_v45  ;;  %7862 = vmatpush.bf16.msra.mxu2 %v11041_v1  ;;  %v6806_v39 = vpop.f32.mrf.mxu2  ;;  %v11080_v1 = vld [vmem:[%s13149_s16 + $0x750] sm:$0xff] }
0x1788   : > { %7901 = vmatpush.bf16.msra.mxu3 %v11065_v33  ;;  %v6845_v15 = vpop.f32.mrf.mxu3  ;;  %v11088_v45 = vld [vmem:[%s13149_s16 + $0x790] sm:$0xff] }
0x1789   : > { %7877 = vmatpush.bf16.msra.mxu0 %v11047_v35  ;;  %v6869_v58 = vpop.f32.mrf.mxu0  ;;  %v6402_v35 = vperm.slane %v12935_v31, 6  ;;  %v11079_v15 = vld [vmem:[%s13149_s16 + $0x748] sm:$0xff] }
0x178a   : > { %7890 = vmatpush.bf16.msra.mxu1 %v11055_v36  ;;  %v6870_v46 = vadd.f32 %v6869_v58, %v6397_v37  ;;  %v6882_v44 = vpop.f32.mrf.mxu1  ;;  %v11073_v37 = vld [vmem:[%s13149_s16 + $0x718] sm:$0xff]  ;;  %v11087_v58 = vld [vmem:[%s13149_s16 + $0x788] sm:$0xff] }
0x178b   : > { %v6883_v43 = vadd.f32 %v6882_v44, %v6398_v40  ;;  %7863 = vmatpush.bf16.msra.mxu2 %v11040_v53  ;;  %v11097_v40 = vld [vmem:[%s13149_s16 + $0x7d8] sm:$0xff]  ;;  %v6400_v44 = vperm.slane %v12935_v31, 4 }
0x178c   : > { %v6960_v63 = vmax.f32 %v6870_v46, 0.0  ;;  %7902 = vmatpush.bf16.msra.mxu3 %v11064_v34  ;;  %v11072_v46 = vld [vmem:[%s13149_s16 + $0x710] sm:$0xff] }
0x178d   : > { %v6961_v54 = vmax.f32 %v6883_v43, 0.0  ;;  %7878 = vmatpush.bf16.msra.mxu0 %v11046_v41  ;;  %v11078_v43 = vld [vmem:[%s13149_s16 + $0x740] sm:$0xff] }
0x178e   : > { %v6976_v60 = vpack.c.bf16 %v6960_v63, %v6960_v63  ;;  %7891 = vmatpush.bf16.msra.mxu1 %v11054_v47  ;;  %v11096_v47 = vld [vmem:[%s13149_s16 + $0x7d0] sm:$0xff]  ;;  %v11086_v63 = vld [vmem:[%s13149_s16 + $0x780] sm:$0xff] }
0x178f   : > { %v6977_v8 = vpack.c.bf16 %v6961_v54, %v6961_v54  ;;  %7864 = vmatpush.bf16.msra.mxu2 %v11039_v49  ;;  %v6856_v61 = vpop.f32.mrf.mxu2  ;;  %v11071_v54 = vld [vmem:[%s13149_s16 + $0x708] sm:$0xff] }
0x1790   : > { %7903 = vmatpush.bf16.msra.mxu3 %v11063_v48  ;;  %v6857_v51 = vadd.f32 %v6856_v61, %v6396_v52  ;;  %v6895_v2 = vpop.f32.mrf.mxu3  ;;  %7879 = vmatmul.bf16.vlgmr.msra.gmra.mxu0 %v6976_v60  ;;  %v11095_v60 = vld [vmem:[%s13149_s16 + $0x7c8] sm:$0xff]  ;;  %v11070_v61 = vld [vmem:[%s13149_s16 + $0x700] sm:$0xff] }
0x1791   : > { %7923 = vmatpush.bf16.msrb.mxu0 %v11085_v56  ;;  %v6896_v38 = vadd.f32 %v6895_v2, %v6399_v55  ;;  %7892 = vmatmul.bf16.vlgmr.msra.gmra.mxu1 %v6977_v8  ;;  %v6871_v9 = vpop.f32.mrf.mxu0  ;;  %v6403_v56 = vperm.slane %v12935_v31, 7 }
0x1792   : > { %7936 = vmatpush.bf16.msrb.mxu1 %v11093_v57  ;;  %v6959_v14 = vmax.f32 %v6857_v51, 0.0  ;;  %v6884_v17 = vpop.f32.mrf.mxu1 }
0x1793   : > { %v6962_v27 = vmax.f32 %v6896_v38, 0.0  ;;  %7865 = vmatpush.bf16.msra.mxu2 %v11038_v0  ;;  %v11094_v0 = vld [vmem:[%s13149_s16 + $0x7c0] sm:$0xff] }
0x1794   : > { %v6975_v19 = vpack.c.bf16 %v6959_v14, %v6959_v14  ;;  %7904 = vmatpush.bf16.msra.mxu3 %v11062_v3 }
0x1795   : > { %7924 = vmatpush.bf16.msrb.mxu0 %v11084_v24  ;;  %v6978_v7 = vpack.c.bf16 %v6962_v27, %v6962_v27 }
0x1796   : > { %7937 = vmatpush.bf16.msrb.mxu1 %v11092_v62  ;;  %7866 = vmatmul.bf16.vlgmr.msra.gmra.mxu2 %v6975_v19 }
0x1797   : > { %7910 = vmatpush.bf16.msrb.mxu2 %v11077_v4  ;;  %7905 = vmatmul.bf16.vlgmr.msra.gmra.mxu3 %v6978_v7  ;;  %v6858_v13 = vpop.f32.mrf.mxu2 }
0x1798   : > { %7949 = vmatpush.bf16.msrb.mxu3 %v11101_v10  ;;  %v6897_v5 = vpop.f32.mrf.mxu3 }
0x1799   : > { %7925 = vmatpush.bf16.msrb.mxu0 %v11083_v18  ;;  %v6921_v20 = vpop.f32.mrf.mxu0 }
0x179a   : > { %7938 = vmatpush.bf16.msrb.mxu1 %v11091_v50  ;;  %v6934_v29 = vpop.f32.mrf.mxu1  ;;  %v6922_v34 = vadd.f32 %v6921_v20, %v6401_v32 }
0x179b   : > { %7911 = vmatpush.bf16.msrb.mxu2 %v11076_v6  ;;  %v6935_v41 = vadd.f32 %v6934_v29, %v6402_v35 }
0x179c   : > { %7950 = vmatpush.bf16.msrb.mxu3 %v11100_v11  ;;  %v6964_v57 = vmax.f32 %v6922_v34, 0.0  ;;  %v11274_v11 = vld [vmem:[%s13151_s5 + $0x1] ss:$0 sm:$0xff] }
0x179d   : > { %7926 = vmatpush.bf16.msrb.mxu0 %v11082_v23  ;;  %v6965_v48 = vmax.f32 %v6935_v41, 0.0 }
0x179e   : > { %7939 = vmatpush.bf16.msrb.mxu1 %v11090_v42  ;;  %v6980_v8 = vpack.c.bf16 %v6964_v57, %v6964_v57 }
0x179f   : > { %7912 = vmatpush.bf16.msrb.mxu2 %v11075_v30  ;;  %v6908_v33 = vpop.f32.mrf.mxu2  ;;  %v6981_v31 = vpack.c.bf16 %v6965_v48, %v6965_v48 }
0x17a0   : > { %7951 = vmatpush.bf16.msrb.mxu3 %v11099_v21  ;;  %v6947_v36 = vpop.f32.mrf.mxu3  ;;  %v6909_v55 = vadd.f32 %v6908_v33, %v6400_v44 }
0x17a1   : > { %7927 = vmatpush.bf16.msrb.mxu0 %v11081_v25  ;;  %v6923_v39 = vpop.f32.mrf.mxu0  ;;  %v6948_v24 = vadd.f32 %v6947_v36, %v6403_v56 }
0x17a2   : > { %7940 = vmatpush.bf16.msrb.mxu1 %v11089_v28  ;;  %v6936_v53 = vpop.f32.mrf.mxu1  ;;  %v6963_v62 = vmax.f32 %v6909_v55, 0.0 }
0x17a3   : > { %7913 = vmatpush.bf16.msrb.mxu2 %v11074_v12  ;;  %v6966_v51 = vmax.f32 %v6948_v24, 0.0 }
0x17a4   : > { %7952 = vmatpush.bf16.msrb.mxu3 %v11098_v59  ;;  %v6979_v2 = vpack.c.bf16 %v6963_v62, %v6963_v62  ;;  %v11105_v62 = vld [vmem:[%s13186_s13 + $0x18] sm:$0xff] }
0x17a5   : > { %7928 = vmatpush.bf16.msrb.mxu0 %v11080_v1  ;;  %v6982_v3 = vpack.c.bf16 %v6966_v51, %v6966_v51  ;;  %v11103_v51 = vld [vmem:[%s13186_s13 + $0x8] sm:$0xff] }
0x17a6   : > { %7941 = vmatpush.bf16.msrb.mxu1 %v11088_v45 }
0x17a7   : > { %7914 = vmatpush.bf16.msrb.mxu2 %v11073_v37  ;;  %v6910_v49 = vpop.f32.mrf.mxu2 }
0x17a8   : > { %7953 = vmatpush.bf16.msrb.mxu3 %v11097_v40  ;;  %v6949_v52 = vpop.f32.mrf.mxu3 }
0x17a9   : > { %7929 = vmatpush.bf16.msrb.mxu0 %v11079_v15 }
0x17aa   : > { %7942 = vmatpush.bf16.msrb.mxu1 %v11087_v58 }
0x17ab   : > { %7915 = vmatpush.bf16.msrb.mxu2 %v11072_v46 }
0x17ac   : > { %7954 = vmatpush.bf16.msrb.mxu3 %v11096_v47 }
0x17ad   : > { %7930 = vmatpush.bf16.msrb.mxu0 %v11078_v43 }
0x17ae   : > { %7943 = vmatpush.bf16.msrb.mxu1 %v11086_v63 }
0x17af   : > { %7916 = vmatpush.bf16.msrb.mxu2 %v11071_v54 }
0x17b0   : > { %7955 = vmatpush.bf16.msrb.mxu3 %v11095_v60  ;;  %7931 = vmatmul.bf16.vlgmr.msrb.gmra.mxu0 %v6980_v8 }
0x17b1   : > { %7944 = vmatmul.bf16.vlgmr.msrb.gmra.mxu1 %v6981_v31 }
0x17b3   : > { %7917 = vmatpush.bf16.msrb.mxu2 %v11070_v61 }
0x17b4   : > { %7956 = vmatpush.bf16.msrb.mxu3 %v11094_v0  ;;  %v11104_v0 = vld [vmem:[%s13186_s13 + $0x10] sm:$0xff] }
0x17b6   : > { %7918 = vmatmul.bf16.vlgmr.msrb.gmra.mxu2 %v6979_v2  ;;  %v11102_v2 = vld [vmem:[%s13186_s13] sm:$0xff] }
0x17b7   : > { %7957 = vmatmul.bf16.vlgmr.msrb.gmra.mxu3 %v6982_v3  ;;  %8058 = vmatpush.bf16.msra.mxu2 %v11105_v62 }
0x17bb   : > { %8059 = vmatpush.bf16.msra.mxu2 %v11104_v0 }
0x17bf   : > { %8060 = vmatpush.bf16.msra.mxu2 %v11103_v51 }
0x17c3   : > { %8061 = vmatpush.bf16.msra.mxu2 %v11102_v2 }
0x17ed   : > { %v7776_v4 = vpop.f32.mrf.mxu0 }
0x17ee   : > { %v7789_v38 = vpop.f32.mrf.mxu1 }
0x17f5   : > { %v7778_v9 = vpop.f32.mrf.mxu0 }
0x17f6   : > { %v7791_v10 = vpop.f32.mrf.mxu1 }
0x17f9   : > { %v7763_v14 = vpop.f32.mrf.mxu2 }
0x17fa   : > { %v7802_v17 = vpop.f32.mrf.mxu3  ;;  %v7764_v42 = vadd.f32 %v11274_v11, %v7763_v14 }
0x17fc   : > { %v7777_v20 = vadd.f32 %v7776_v4, %v7764_v42 }
0x17fd   : > { %v7828_v18 = vpop.f32.mrf.mxu0 }
0x17fe   : > { %v7841_v27 = vpop.f32.mrf.mxu1  ;;  %v7790_v25 = vadd.f32 %v7789_v38, %v7777_v20 }
0x1800   : > { %v7803_v59 = vadd.f32 %v7802_v17, %v7790_v25 }
0x1801   : > { %v7765_v50 = vpop.f32.mrf.mxu2 }
0x1802   : > { %v7804_v19 = vpop.f32.mrf.mxu3 }
0x1805   : > { %v7830_v6 = vpop.f32.mrf.mxu0 }
0x1806   : > { %v7843_v7 = vpop.f32.mrf.mxu1  ;;  %v11276_v6 = vld [vmem:[%s13153_s8 + $0x1] ss:$0 sm:$0xff] }
0x1809   : > { %v7815_v23 = vpop.f32.mrf.mxu2 }
0x180a   : > { %v7854_v13 = vpop.f32.mrf.mxu3  ;;  %v7816_v33 = vadd.f32 %v7815_v23, %v7803_v59  ;;  %v11109_v59 = vld [vmem:[%s13190_s21 + $0x18] sm:$0xff] }
0x180b   : > { %8141 = vmatpush.bf16.msra.mxu0 %v11109_v59 }
0x180c   : > { %v7829_v45 = vadd.f32 %v7828_v18, %v7816_v33 }
0x180d   : > { %v7880_v5 = vpop.f32.mrf.mxu0 }
0x180e   : > { %v7893_v30 = vpop.f32.mrf.mxu1  ;;  %v7842_v37 = vadd.f32 %v7841_v27, %v7829_v45  ;;  %v11275_v27 = vld [vmem:[%s13152_s6 + $0x1] ss:$0 sm:$0xff] }
0x1810   : > { %v7855_v39 = vadd.f32 %v7854_v13, %v7842_v37  ;;  %v11277_v13 = vld [vmem:[%s13189_s17] ss:$0 sm:$0xff] }
0x1811   : > { %v7817_v21 = vpop.f32.mrf.mxu2 }
0x1812   : > { %v7856_v29 = vpop.f32.mrf.mxu3 }
0x1815   : > { %v7882_v28 = vpop.f32.mrf.mxu0 }
0x1816   : > { %v7895_v12 = vpop.f32.mrf.mxu1 }
0x1819   : > { %v7867_v1 = vpop.f32.mrf.mxu2 }
0x181a   : > { %v7906_v32 = vpop.f32.mrf.mxu3  ;;  %v7868_v40 = vadd.f32 %v7867_v1, %v7855_v39  ;;  %v11108_v1 = vld [vmem:[%s13190_s21 + $0x10] sm:$0xff] }
0x181b   : > { %8142 = vmatpush.bf16.msra.mxu0 %v11108_v1 }
0x181c   : > { %v7881_v34 = vadd.f32 %v7880_v5, %v7868_v40 }
0x181e   : > { %v7894_v58 = vadd.f32 %v7893_v30, %v7881_v34 }
0x1820   : > { %v7907_v44 = vadd.f32 %v7906_v32, %v7894_v58  ;;  %v11278_v58 = vld [vmem:[%s13194_s14] ss:$0 sm:$0xff] }
0x1821   : > { %v7869_v35 = vpop.f32.mrf.mxu2 }
0x1822   : > { %v7908_v36 = vpop.f32.mrf.mxu3  ;;  %v11107_v35 = vld [vmem:[%s13190_s21 + $0x8] sm:$0xff] }
0x1823   : > { %8143 = vmatpush.bf16.msra.mxu0 %v11107_v35  ;;  %v11106_v36 = vld [vmem:[%s13190_s21] sm:$0xff] }
0x1827   : > { %8144 = vmatpush.bf16.msra.mxu0 %v11106_v36 }
0x182d   : > { %v7932_v53 = vpop.f32.mrf.mxu0 }
0x182e   : > { %v7945_v15 = vpop.f32.mrf.mxu1 }
0x1835   : > { %v7934_v41 = vpop.f32.mrf.mxu0 }
0x1836   : > { %v7947_v46 = vpop.f32.mrf.mxu1  ;;  %v11279_v41 = vld [vmem:[%s13195_s19] ss:$0 sm:$0xff] }
0x1839   : > { %v7919_v47 = vpop.f32.mrf.mxu2 }
0x183a   : > { %v7920_v56 = vadd.f32 %v7919_v47, %v7907_v44  ;;  %v7958_v43 = vpop.f32.mrf.mxu3 }
0x183c   : > { %v7933_v57 = vadd.f32 %v7932_v53, %v7920_v56 }
0x183e   : > { %v7946_v49 = vadd.f32 %v7945_v15, %v7933_v57 }
0x1840   : > { %v7959_v63 = vadd.f32 %v7958_v43, %v7946_v49 }
0x1841   : > { %v7921_v48 = vpop.f32.mrf.mxu2 }
0x1842   : > { %v7960_v52 = vpop.f32.mrf.mxu3  ;;  %v7962_v54 = vadd.f32 %v7959_v63, %v12741_v22 }
0x1844   : > { %v7963_v55 = vsel %vm13187_vm3, %v7962_v54, 0.0 }
0x1845   : > { %7964 = vadd.xlane.f32.xlu0 %v7963_v55 }
0x18b8   : > { %v7965_v60 = vpop.xlane.xlu0 %7964 }
0x18b9   : > { %v7966_v24 = vmul.f32 %v7965_v60, %v12146_v26 }
0x18bb   : > { %v7967_v8 = vsub.f32 %v7962_v54, %v7966_v24  ;;  %v11280_v24 = vld [vmem:[%s13196_s24] ss:$0 sm:$0xff] }
0x18bd   : > { %v7968_v31 = vmul.f32 %v7967_v8, %v7967_v8 }
0x18bf   : > { %v7969_v61 = vsel %vm13188_vm11, %v7968_v31, 0.0 }
0x18c0   : > { %7970 = vadd.xlane.f32.xlu2 %v7969_v61 }
0x1933   : > { %v7971_v22 = vpop.xlane.xlu2 %7970 }
0x1934   : > { %v7972_v3 = vmul.f32 %v7971_v22, %v12146_v26 }
0x1936   : > { %v7973_v4 = vadd.f32 1e-05, %v7972_v3 }
0x1938   : > { %11357 = vrsqrt.f32 %v7973_v4  ;;  %vm7980_vm12 = vweird.f32 %v7973_v4 }
0x193e   : > { %v11358_v38 = vpop.eup %11357 }
0x193f   : > { %v7975_v9 = vmul.f32 %v11358_v38, %v7973_v4  ;;  %vm7981_vm15 = vweird.f32 %v11358_v38  ;;  %v11111_v4 = vld [vmem:[%s13197_s18 + $0x8] sm:$0xff] }
0x1940   : > { %vm7982_vm5 = vmor %vm7980_vm12, %vm7981_vm15  ;;  %8214 = vmatpush.bf16.msra.mxu1 %v11111_v4  ;;  %vm8248_vm12 = vcmask 1024  }
0x1941   : > { %v7976_v10 = vmul.f32 %v11358_v38, %v7975_v9 }
0x1943   : > { %v7977_v14 = vmul.f32 0.5, %v7976_v10 }
0x1945   : > { %v7978_v17 = vsub.f32 1.5, %v7977_v14 }
0x1947   : > { %v7979_v18 = vmul.f32 %v11358_v38, %v7978_v17 }
0x1949   : > { %v7983_v50 = vsel %vm7982_vm5, %v11358_v38, %v7979_v18  ;;  %v11110_v38 = vld [vmem:[%s13197_s18] sm:$0xff] }
0x194a   : > { %v7984_v19 = vmul.f32 %v7983_v50, %v7967_v8  ;;  %8215 = vmatpush.bf16.msra.mxu1 %v11110_v38 }
0x194c   : > { %v7988_v7 = vmul.f32 %v11275_v27, %v7984_v19 }
0x194e   : > { %v7992_v11 = vadd.f32 %v11276_v6, %v7988_v7  ;;  %v11281_v7 = vld [vmem:[%s13201_s7] ss:$0 sm:$0xff] }
0x1950   : > { %v8023_v23 = vpack.c.bf16 %v7992_v11, %v7992_v11 }
0x1952   : > { %10645 = vmatmul.msk.bf16.vlgmr.msra.gmra.mxu2 %vm13191_vm8, %v8023_v23  ;;  %v11112_v23 = vld [vmem:[%s11638_s4] sm:$0xff] }
0x1953   : > { %8241 = vmatpush.bf16.msra.mxu3 %v11112_v23 }
0x19d5   : > { %v8063_v42 = vpop.f32.mrf.mxu2 }
0x19d6   : > { %v8064_v5 = vadd.f32 %v11277_v13, %v8063_v42  ;;  %v11282_v13 = vld [vmem:[%s13202_s23] ss:$0 sm:$0xff] }
0x19d8   : > { %v8067_v30 = vsel %vm13192_vm1, %v8064_v5, 0.0 }
0x19d9   : > { %8068 = vadd.xlane.f32.xlu1 %v8067_v30 }
0x19dd   : > { %v8065_v20 = vpop.f32.mrf.mxu2 }
0x1a4c   : > { %v8069_v21 = vpop.xlane.xlu1 %8068 }
0x1a4d   : > { %v8070_v29 = vmul.f32 %v8069_v21, %v12146_v26 }
0x1a4f   : > { %v8071_v25 = vsub.f32 %v8064_v5, %v8070_v29 }
0x1a51   : > { %v8072_v28 = vmul.f32 %v8071_v25, %v8071_v25 }
0x1a53   : > { %v8073_v12 = vsel %vm13193_vm7, %v8072_v28, 0.0 }
0x1a54   : > { %8074 = vadd.xlane.f32.xlu0 %v8073_v12 }
0x1ac7   : > { %v8075_v32 = vpop.xlane.xlu0 %8074 }
0x1ac8   : > { %v8076_v33 = vmul.f32 %v8075_v32, %v12146_v26 }
0x1aca   : > { %v8077_v45 = vadd.f32 1e-05, %v8076_v33  ;;  %v11283_v33 = vld [vmem:[%s11633_s27] ss:$0 sm:$0xff] }
0x1acc   : > { %11359 = vrsqrt.f32 %v8077_v45  ;;  %vm8084_vm10 = vweird.f32 %v8077_v45 }
0x1ad2   : > { %v11360_v37 = vpop.eup %11359 }
0x1ad3   : > { %v8079_v39 = vmul.f32 %v11360_v37, %v8077_v45  ;;  %vm8085_vm9 = vweird.f32 %v11360_v37 }
0x1ad4   : > { %vm8086_vm14 = vmor %vm8084_vm10, %vm8085_vm9 }
0x1ad5   : > { %v8080_v40 = vmul.f32 %v11360_v37, %v8079_v39  ;;  %v11284_v39 = vld [vmem:[#allocation3] ss:$0 sm:$0xff] }
0x1ad7   : > { %v8081_v53 = vmul.f32 0.5, %v8080_v40 }
0x1ad9   : > { %v8082_v15 = vsub.f32 1.5, %v8081_v53 }
0x1adb   : > { %v8083_v34 = vmul.f32 %v11360_v37, %v8082_v15 }
0x1add   : > { %v8087_v26 = vsel %vm8086_vm14, %v11360_v37, %v8083_v34 }
0x1ade   : > { %v8088_v46 = vmul.f32 %v8087_v26, %v8071_v25 }
0x1ae0   : > { %v8092_v44 = vmul.f32 %v11278_v58, %v8088_v46 }
0x1ae2   : > { %v8096_v47 = vadd.f32 %v11279_v41, %v8092_v44 }
0x1ae4   : > { %v8097_v56 = vmul.f32 %v8096_v47, %v8096_v47 }
0x1ae6   : > { %v8098_v43 = vmul.f32 %v8097_v56, %v8096_v47 }
0x1ae8   : > { %v8099_v57 = vmul.f32 0.044715, %v8098_v43 }
0x1aea   : > { %v8100_v49 = vadd.f32 %v8099_v57, %v8096_v47 }
0x1aec   : > { %v8101_v63 = vmul.f32 0.7978846, %v8100_v49 }
0x1aee   : > { %11361 = vtanh.f32 %v8101_v63 }
0x1af4   : > { %v11362_v48 = vpop.eup %11361 }
0x1af5   : > { %v8103_v52 = vadd.f32 1.0, %v11362_v48 }
0x1af7   : > { %v8104_v54 = vmul.f32 0.5, %v8103_v52 }
0x1af9   : > { %v8105_v55 = vmul.f32 %v8104_v54, %v8096_v47 }
0x1afb   : > { %v8106_v60 = vpack.c.bf16 %v8105_v55, %v8105_v55 }
0x1afd   : > { %10662 = vmatmul.msk.bf16.vlgmr.msra.gmra.mxu0 %vm13198_vm13, %v8106_v60 }
0x1b7a   : > { %v8146_v8 = vpop.f32.mrf.mxu0 }
0x1b7b   : > { %v8147_v31 = vadd.f32 %v11280_v24, %v8146_v8 }
0x1b7d   : > { %v8150_v61 = vsel %vm13199_vm2, %v8147_v31, 0.0 }
0x1b7e   : > { %8151 = vadd.xlane.f32.xlu2 %v8150_v61 }
0x1b82   : > { %v8148_v62 = vpop.f32.mrf.mxu0 }
0x1bf1   : > { %v8152_v0 = vpop.xlane.xlu2 %8151 }
0x1bf2   : > { %v8153_v51 = vmul.f32 %v8152_v0, %v11897_v16 }
0x1bf4   : > { %v8154_v2 = vsub.f32 %v8147_v31, %v8153_v51 }
0x1bf6   : > { %v8155_v22 = vmul.f32 %v8154_v2, %v8154_v2 }
0x1bf8   : > { %v8156_v3 = vsel %vm13200_vm4, %v8155_v22, 0.0 }
0x1bf9   : > { %8157 = vadd.xlane.f32.xlu1 %v8156_v3 }
0x1c6c   : > { %v8158_v9 = vpop.xlane.xlu1 %8157 }
0x1c6d   : > { %v8159_v10 = vmul.f32 %v8158_v9, %v11897_v16 }
0x1c6f   : > { %v8160_v14 = vadd.f32 1e-05, %v8159_v10 }
0x1c71   : > { %11363 = vrsqrt.f32 %v8160_v14  ;;  %vm8167_vm11 = vweird.f32 %v8160_v14 }
0x1c77   : > { %v11364_v17 = vpop.eup %11363 }
0x1c78   : > { %v8162_v18 = vmul.f32 %v11364_v17, %v8160_v14  ;;  %vm8168_vm3 = vweird.f32 %v11364_v17 }
0x1c79   : > { %vm8169_vm15 = vmor %vm8167_vm11, %vm8168_vm3 }
0x1c7a   : > { %v8163_v27 = vmul.f32 %v11364_v17, %v8162_v18 }
0x1c7c   : > { %v8164_v50 = vmul.f32 0.5, %v8163_v27 }
0x1c7e   : > { %v8165_v19 = vsub.f32 1.5, %v8164_v50 }
0x1c80   : > { %v8166_v6 = vmul.f32 %v11364_v17, %v8165_v19 }
0x1c82   : > { %v8170_v11 = vsel %vm8169_vm15, %v11364_v17, %v8166_v6 }
0x1c83   : > { %v8171_v42 = vmul.f32 %v8170_v11, %v8154_v2 }
0x1c85   : > { %v8175_v16 = vmul.f32 %v11281_v7, %v8171_v42 }
0x1c87   : > { %v8179_v5 = vadd.f32 %v11282_v13, %v8175_v16 }
0x1c89   : > { %v8180_v30 = vmul.f32 %v8179_v5, %v8179_v5 }
0x1c8b   : > { %v8181_v20 = vmul.f32 %v8180_v30, %v8179_v5 }
0x1c8d   : > { %v8182_v21 = vmul.f32 0.044715, %v8181_v20 }
0x1c8f   : > { %v8183_v29 = vadd.f32 %v8182_v21, %v8179_v5 }
0x1c91   : > { %v8184_v25 = vmul.f32 0.7978846, %v8183_v29 }
0x1c93   : > { %11365 = vtanh.f32 %v8184_v25 }
0x1c99   : > { %v11366_v28 = vpop.eup %11365 }
0x1c9a   : > { %v8186_v12 = vadd.f32 1.0, %v11366_v28 }
0x1c9c   : > { %v8187_v59 = vmul.f32 0.5, %v8186_v12 }
0x1c9e   : > { %v8188_v1 = vmul.f32 %v8187_v59, %v8179_v5 }
0x1ca0   : > { %v8189_v32 = vpack.c.bf16 %v8188_v1, %v8188_v1 }
0x1ca2   : > { %10671 = vmatmul.msk.bf16.vlgmr.msra.gmra.mxu1 %vm1451_vm0, %v8189_v32 }
0x1d1f   : > { %v8217_v45 = vpop.f32.mrf.mxu1 }
0x1d20   : > { %v8218_v35 = vadd.f32 %v11283_v33, %v8217_v45 }
0x1d22   : > { %v8221_v36 = vpack.c.bf16 %v8218_v35, %v8218_v35 }
0x1d24   : > { %10676 = vmatmul.msk.bf16.vlgmr.msra.gmra.mxu3 %vm2138_vm6, %v8221_v36 }
0x1d27   : > { %v8219_v37 = vpop.f32.mrf.mxu1 }
0x1da7   : > { %v8243_v40 = vpop.f32.mrf.mxu3 }
0x1da8   : > { %v8244_v53 = vadd.f32 %v11284_v39, %v8243_v40 }
0x1daa   : > { %v8247_v15 = vmul.f32 5.0, %v8244_v53 }
0x1dac   : > { %8249 = vst.msk [vmem:[%s11646_s20] sm:$0x3] %vm8248_vm12, %v8247_v15 }
0x1daf   : > { %v8245_v34 = vpop.f32.mrf.mxu3 }
0x1db0 PF: > { %s91_s22 = sadd.s32 1, %s11373_s22  }
0x1db1   : > { %p88_p5 = scmp.ge.s32.totalorder %s91_s22, 4  }
0x1db3   :  { %90 = sbr.rel (!%p88_p5) target bundleno = 91 (0x5b), region = 301 }

</bundles_post_ra>
